<compile_context>
chip_gen: v7x
topology: tpu7x:2x2x1
jax: 0.10.0
libtpu: 0.0.40
codegen_flags: <defaults>
</compile_context>

<pallas_src>
import functools

import jax
import jax.numpy as jnp
from jax import lax
from jax.experimental import pallas as pl
from jax.experimental.pallas import tpu as pltpu

_SMEM = pltpu.MemorySpace.SMEM


def _round_up(v, m):
    return ((v + m - 1) // m) * m


@functools.lru_cache(maxsize=None)
def _vmem_limit_bytes():
    # Above the 16/32 MiB scoped default, below physical VMEM:
    # ~96 MiB on v5e/v6e (128 MiB), ~48 MiB on v7x (64 MiB).
    try:
        cap = int(pltpu.get_tpu_info().vmem_capacity_bytes)
    except Exception:
        cap = 128 * 1024 * 1024
    return int(min(cap * 3 // 4, 96 * 1024 * 1024))


def _pick_block_rows(n_pad_est, vmem_limit, requested=None):
    if requested is None:
        # v5e/v6e (128 MiB VMEM): 512-row tiles to hit the HBM roofline; v7x: 128.
        bn = 512 if vmem_limit >= (72 << 20) else 128
    else:
        bn = max(128, _round_up(int(requested), 128))
    # att_finalize working set ~ 4 streamed (bn, N) bf16 slabs, double-buffered, plus
    # ~8 B/elem of f32 temporaries ~= 24*bn*N bytes; keep it under ~60% of the limit.
    budget = (vmem_limit * 3) // 5
    while bn > 128 and 24 * bn * n_pad_est > budget:
        bn -= 128
    # TODO(synk): for N so large that even bn=128 exceeds the budget, add a column-tiled
    # second ("arbitrary") grid axis to the att kernels.
    return bn


def _cparams():
    # The row-block grid axis is fully independent -> "parallel" (2 TCs on v7x).
    return pltpu.CompilerParams(
        dimension_semantics=("parallel",),
        vmem_limit_bytes=_vmem_limit_bytes(),
    )


def _resident(shape, single_buffer):
    """BlockSpec for an operand whose block index never changes across the grid."""
    index_map = lambda i: (0,) * len(shape)
    if single_buffer:
        return pl.BlockSpec(shape, index_map, pipeline_mode=pl.Buffered(1))
    return pl.BlockSpec(shape, index_map)


def _smem_scalar(shape):
    return pl.BlockSpec(shape, lambda i: (0,) * len(shape), memory_space=_SMEM)


def _probe_single_buffer_residents():
    """True iff this jax build accepts pipeline_mode=pl.Buffered(1) on a BlockSpec."""
    if not hasattr(pl, "Buffered"):
        return False

    def k(x_ref, o_ref):
        o_ref[...] = x_ref[...] * 2.0

    try:
        f = pl.pallas_call(
            k,
            grid=(2,),
            in_specs=[pl.BlockSpec((8, 128), lambda i: (0, 0),
                                   pipeline_mode=pl.Buffered(1))],
            out_specs=pl.BlockSpec((8, 128), lambda i: (i, 0)),
            out_shape=jax.ShapeDtypeStruct((16, 128), jnp.float32),
        )
        jax.block_until_ready(f(jnp.ones((8, 128), jnp.float32)))
        return True
    except Exception:
        return False


# --------------------------------------------------------------------------- #
# Kernels
# --------------------------------------------------------------------------- #
def _diag_mask(tm, n, tile_idx):
    # diag[i_local, j]  <=>  j == i_local + tile_idx * TM  (1-row x 1-col iotas only).
    col = lax.broadcasted_iota(jnp.int32, (1, n), 1)
    row = lax.broadcasted_iota(jnp.int32, (tm, 1), 0) + tile_idx * tm
    return col == row


def _normalize_xw_kernel(x_ref, w_ref, xn_ref, xw_ref):
    """Fused: L2-normalize feature rows (cosine-sim prep, bf16) and x @ W (f32)."""
    x = x_ref[...]                                             # (TM, F) f32
    nrm2 = jnp.sum(x * x, axis=1, keepdims=True)
    inv = jnp.where(nrm2 > 0.0, lax.rsqrt(jnp.where(nrm2 > 0.0, nrm2, 1.0)), 0.0)
    xn_ref[...] = (x * inv).astype(jnp.bfloat16)
    xw_ref[...] = lax.dot_general(
        x.astype(jnp.bfloat16), w_ref[...],
        dimension_numbers=(((1,), (0,)), ((), ())),
        preferred_element_type=jnp.float32,
    )


def _att_rowsum_kernel(xn_tile_ref, xn_full_ref, adj_ref, flags_ref, inv_rs_ref):
    """Pass 1 of att_coef: per-row L1 sums of the masked cosine similarity -> 1/rowsum."""
    tm, n = adj_ref.shape
    remove_diag = flags_ref[0, 0] != 0

    sim = lax.dot_general(                                     # A . B^T, bf16 -> f32 acc
        xn_tile_ref[...], xn_full_ref[...],
        dimension_numbers=(((1,), (1,)), ((), ())),
        preferred_element_type=jnp.float32,
    )                                                          # (TM, N)

    diag = _diag_mask(tm, n, pl.program_id(0))
    keep = (adj_ref[...] != 0.0) & (sim >= 0.1) & jnp.logical_not(diag & remove_diag)
    rs = jnp.sum(jnp.where(keep, sim, 0.0), axis=1, keepdims=True)   # kept sims >= 0 -> L1
    inv_rs_ref[...] = jnp.where(rs > 0.0, 1.0 / jnp.where(rs > 0.0, rs, 1.0), 0.0)


def _att_finalize_kernel(xn_tile_ref, xn_full_ref, adj_ref, adj_t_ref,
                         inv_tile_ref, inv_full_ref,
                         wdrop_ref, bdrop_ref, flags_ref,
                         out_ref, out_t_ref, colsum_ref):
    """Pass 2 of att_coef: mask, L1-normalize, learnable drop, self weight, exp.

    Emits the (TM, N) attention slab, its transpose (a column slab of A^T) and the
    per-block column sums (gcn_norm degree partials) in one pass over the inputs.
    """
    tm, n = out_ref.shape
    remove_diag = flags_ref[0, 0] != 0
    w0 = wdrop_ref[0, 0]
    w1 = wdrop_ref[0, 1]
    b = bdrop_ref[0, 0]

    sim = lax.dot_general(
        xn_tile_ref[...], xn_full_ref[...],
        dimension_numbers=(((1,), (1,)), ((), ())),
        preferred_element_type=jnp.float32,
    )                                                          # (TM, N), symmetric

    diag = _diag_mask(tm, n, pl.program_id(0))
    thr = (sim >= 0.1) & jnp.logical_not(diag & remove_diag)
    keep_ij = (adj_ref[...] != 0.0) & thr                      # support of att_norm[i, j]
    keep_ji = (adj_t_ref[...] != 0.0) & thr                    # support of att_norm[j, i]

    a_ij = jnp.where(keep_ij, sim, 0.0) * inv_tile_ref[...]
    a_ji = jnp.where(keep_ji, sim, 0.0) * inv_full_ref[...]

    # sigmoid(w0*a_ij + w1*a_ji + b) > 0.5  <=>  (w0*a_ij + w1*a_ji + b) > 0
    keep_drop = keep_ij & ((a_ij * w0 + a_ji * w1 + b) > 0.0)
    att = jnp.where(keep_drop, a_ij, 0.0)

    # Self weight lam_i = 1/(deg_i + 1).  With the structural remove-diag flag the
    # reference condition att_norm[0, 0] == 0 provably always holds, so lam is always
    # added.  keep_drop is exactly the nonzero support of att, so reuse it for deg.
    deg = jnp.sum(keep_drop.astype(jnp.float32), axis=1, keepdims=True)
    lam = 1.0 / (deg + 1.0)
    att = att + jnp.where(diag, lam, 0.0)

    out = jnp.where(att != 0.0, jnp.exp(att), 0.0)             # f32 slab
    out_ref[...] = out.astype(jnp.bfloat16)
    out_t_ref[...] = out.T.astype(jnp.bfloat16)                # in-kernel transpose (XLU)

    # gcn_norm degree partials: deg[t] = sum_s A[s, t]; sublane 0 carries this tile's
    # sums, sublanes 1..7 are zero (8-row block keeps the (8,128) tiling rule).
    cs = jnp.sum(out, axis=0, keepdims=True)                   # (1, N)
    row0 = lax.broadcasted_iota(jnp.int32, (8, 1), 0) == 0
    colsum_ref[...] = jnp.where(row0, cs, 0.0)                 # (8, N)


def _gcn_agg_kernel(adj_t_ref, dinv_ref, hw_ref, b_ref, out_ref, *,
                    activation, valid_cols):
    """out[t] = dinv[t] * sum_s A'[s, t] * (dinv[s] * xW[s]) + bias, fused activation.

    NOTE: A1/A2 always have a strictly positive diagonal (exp(lam), lam > 0), so
    gcn_norm's add_remaining_self_loops fill is a structural no-op and is omitted.
    The source-side dinv[s] factor is pre-folded into hw (N x Fout) by the wrapper.
    """
    agg = jnp.dot(adj_t_ref[...], hw_ref[...],                 # bf16 x bf16, f32 acc
                  preferred_element_type=jnp.float32)          # (TM, Fout)
    out = dinv_ref[...] * agg + b_ref[...]
    if activation == "relu":
        out = jnp.maximum(out, 0.0)
    elif activation == "log_softmax":
        fmask = lax.broadcasted_iota(jnp.int32, out.shape, 1) < valid_cols
        z = jnp.where(fmask, out, -jnp.inf)
        m = jnp.max(z, axis=1, keepdims=True)
        z = z - m
        out = z - jnp.log(jnp.sum(jnp.where(fmask, jnp.exp(z), 0.0),
                                  axis=1, keepdims=True))
    out_ref[...] = out


# --------------------------------------------------------------------------- #
# pallas_call wrappers (row-block "parallel" grid everywhere)
# --------------------------------------------------------------------------- #
def normalize_xw(x, w_bf16, bn, *, single_buffer):
    n, f = x.shape
    fin, fout = w_bf16.shape
    return pl.pallas_call(
        _normalize_xw_kernel,
        grid=(n // bn,),
        in_specs=[
            pl.BlockSpec((bn, f), lambda i: (i, 0)),            # x row tile
            _resident((fin, fout), single_buffer),              # W (resident)
        ],
        out_specs=[
            pl.BlockSpec((bn, f), lambda i: (i, 0)),            # normalized rows (bf16)
            pl.BlockSpec((bn, fout), lambda i: (i, 0)),         # x @ W (f32)
        ],
        out_shape=[
            jax.ShapeDtypeStruct((n, f), jnp.bfloat16),
            jax.ShapeDtypeStruct((n, fout), jnp.float32),
        ],
        compiler_params=_cparams(),
    )(x, w_bf16)


def att_rowsum(xn, adj_b, flags, bn, *, single_buffer):
    n, f = xn.shape
    return pl.pallas_call(
        _att_rowsum_kernel,
        grid=(n // bn,),
        in_specs=[
            pl.BlockSpec((bn, f), lambda i: (i, 0)),            # xn row tile
            _resident((n, f), single_buffer),                   # xn full (resident)
            pl.BlockSpec((bn, n), lambda i: (i, 0)),            # adjacency row tile (bf16)
            _smem_scalar((1, 1)),                               # remove-diag flag
        ],
        out_specs=pl.BlockSpec((bn, 1), lambda i: (i, 0)),
        out_shape=jax.ShapeDtypeStruct((n, 1), jnp.float32),
        compiler_params=_cparams(),
    )(xn, xn, adj_b, flags)


def att_finalize(xn, adj_b, adj_t_b, inv_rs, w_drop, b_drop, flags, bn, *, single_buffer):
    n, f = xn.shape
    g = n // bn
    return pl.pallas_call(
        _att_finalize_kernel,
        grid=(g,),
        in_specs=[
            pl.BlockSpec((bn, f), lambda i: (i, 0)),            # xn row tile
            _resident((n, f), single_buffer),                   # xn full
            pl.BlockSpec((bn, n), lambda i: (i, 0)),            # A row tile (bf16)
            pl.BlockSpec((bn, n), lambda i: (i, 0)),            # A^T row tile (bf16)
            pl.BlockSpec((bn, 1), lambda i: (i, 0)),            # 1/rowsum (own rows)
            _resident((1, n), single_buffer),                   # 1/rowsum (all rows)
            _smem_scalar((1, 2)),                               # drop_learn_1 weight
            _smem_scalar((1, 1)),                               # drop_learn_1 bias
            _smem_scalar((1, 1)),                               # remove-diag flag
        ],
        out_specs=[
            pl.BlockSpec((bn, n), lambda i: (i, 0)),            # A_att row slab
            pl.BlockSpec((n, bn), lambda i: (0, i)),            # A_att^T column slab
            pl.BlockSpec((8, n), lambda i: (i, 0)),             # degree partials
        ],
        out_shape=[
            jax.ShapeDtypeStruct((n, n), jnp.bfloat16),
            jax.ShapeDtypeStruct((n, n), jnp.bfloat16),
            jax.ShapeDtypeStruct((8 * g, n), jnp.float32),
        ],
        compiler_params=_cparams(),
    )(xn, xn, adj_b, adj_t_b, inv_rs, inv_rs.reshape(1, n), w_drop, b_drop, flags)


def gcn_aggregate(adj_t_b, dinv_col, hw_scaled_b, bias, bn, *,
                  activation, valid_cols, single_buffer):
    n = adj_t_b.shape[0]
    fout = hw_scaled_b.shape[1]
    kern = functools.partial(_gcn_agg_kernel, activation=activation,
                             valid_cols=valid_cols)
    return pl.pallas_call(
        kern,
        grid=(n // bn,),
        in_specs=[
            pl.BlockSpec((bn, n), lambda i: (i, 0)),            # A^T row tile (bf16)
            pl.BlockSpec((bn, 1), lambda i: (i, 0)),            # dinv (target rows)
            _resident((n, fout), single_buffer),                # dinv-scaled xW (bf16)
            _resident((1, fout), single_buffer),                # bias
        ],
        out_specs=pl.BlockSpec((bn, fout), lambda i: (i, 0)),
        out_shape=jax.ShapeDtypeStruct((n, fout), jnp.float32),
        compiler_params=_cparams(),
    )(adj_t_b, dinv_col, hw_scaled_b, bias)


# --------------------------------------------------------------------------- #
# Forward pass
# --------------------------------------------------------------------------- #
def guard_gcn_forward(x, edge_index, edge_weight, params, *,
                      block_rows=None, single_buffer_residents=True):
    """GuardGCN.forward (layer=2, attention=True, drop=True, use_ln=False, eval mode)."""
    n_real, f_real = x.shape
    nhid = params["w1"].shape[1]
    nclass = params["w2"].shape[1]

    vmem_limit = _vmem_limit_bytes()
    bn = _pick_block_rows(_round_up(n_real, 128), vmem_limit, block_rows)
    n = _round_up(n_real, bn)               # bn is a multiple of 128 -> lane-dense N
    f = _round_up(f_real, 128)
    nhid_p = _round_up(nhid, 128)
    ncls_p = _round_up(nclass, 128)
    sb = single_buffer_residents

    xp = jnp.zeros((n, f), jnp.float32).at[:n_real, :f_real].set(x.astype(jnp.float32))

    src, dst = edge_index[0], edge_index[1]
    w = edge_weight if edge_weight is not None else jnp.ones(src.shape, jnp.float32)
    w = w.astype(jnp.float32)
    # to_dense_adj(edge_index, edge_attr)[0]; A0 only ever acts as a support mask in
    # att_coef, so store 0/1 bf16 masks (transpose built by scatter, no XLA transpose).
    a0 = jnp.zeros((n, n), jnp.float32).at[src, dst].add(w)
    a0_b = (a0 != 0.0).astype(jnp.bfloat16)
    a0t_b = ((jnp.zeros((n, n), jnp.float32).at[dst, src].add(w)) != 0.0
             ).astype(jnp.bfloat16)

    w1 = jnp.zeros((f, nhid_p), jnp.bfloat16).at[:f_real, :nhid].set(
        params["w1"].astype(jnp.bfloat16))
    b1 = jnp.zeros((1, nhid_p), jnp.float32).at[:, :nhid].set(
        params["b1"].reshape(1, nhid).astype(jnp.float32))
    w2 = jnp.zeros((nhid_p, ncls_p), jnp.bfloat16).at[:nhid, :nclass].set(
        params["w2"].astype(jnp.bfloat16))
    b2 = jnp.zeros((1, ncls_p), jnp.float32).at[:, :nclass].set(
        params["b2"].reshape(1, nclass).astype(jnp.float32))
    wd = params["w_drop"].astype(jnp.float32).reshape(1, 2)
    bd = params["b_drop"].astype(jnp.float32).reshape(1, 1)

    def remove_diag_flag(adj00_nonzero, feat):
        # Structural version of "att_dense[0, 0] == 1": a self-loop exists at node 0
        # and its feature row is nonzero (self cosine similarity is then exactly 1).
        rd = adj00_nonzero & (jnp.sum(feat[0] * feat[0]) > 0.0)
        return rd.astype(jnp.int32).reshape(1, 1)

    def dinv_from_partials(colsum_partials):
        deg = jnp.sum(colsum_partials, axis=0)                          # (n,)
        return jnp.where(deg > 0.0, lax.rsqrt(jnp.where(deg > 0.0, deg, 1.0)), 0.0)

    # ---- shared pass over x: xn (bf16, cosine-sim prep) and x @ W1 (f32), fused
    xn, hw1 = normalize_xw(xp, w1, bn, single_buffer=sb)

    # ---- attention pass 1: A1 = att_coef(x, A0)  (also emits A1^T + degree partials)
    fl0 = remove_diag_flag(a0[0, 0] != 0.0, xp)
    inv0 = att_rowsum(xn, a0_b, fl0, bn, single_buffer=sb)
    a1, a1t, cs1 = att_finalize(xn, a0_b, a0t_b, inv0, wd, bd, fl0, bn, single_buffer=sb)

    # ---- h = relu(GCNConv(nfeat, nhid)(x) with A1)
    dinv1 = dinv_from_partials(cs1)
    hw1s = (hw1 * dinv1[:, None]).astype(jnp.bfloat16)         # fold source-side dinv[s]
    h = gcn_aggregate(a1t, dinv1.reshape(n, 1), hw1s, b1, bn,
                      activation="relu", valid_cols=nhid_p, single_buffer=sb)

    # ---- shared pass over h, then attention pass 2: A2 = att_coef(h, A1)
    # TODO(synk): F.dropout before gc2 is identity here (eval-mode forward);
    # training-mode RNG dropout is not implemented.
    hn, hw2 = normalize_xw(h, w2, bn, single_buffer=sb)
    fl1 = remove_diag_flag(a1[0, 0] != 0.0, h)
    inv1 = att_rowsum(hn, a1, fl1, bn, single_buffer=sb)
    a2, a2t, cs2 = att_finalize(hn, a1, a1t, inv1, wd, bd, fl1, bn, single_buffer=sb)

    # ---- out = log_softmax(gc2(h) with A2)
    dinv2 = dinv_from_partials(cs2)
    hw2s = (hw2 * dinv2[:, None]).astype(jnp.bfloat16)
    logits = gcn_aggregate(a2t, dinv2.reshape(n, 1), hw2s, b2, bn,
                           activation="log_softmax", valid_cols=nclass, single_buffer=sb)
    return logits[:n_real, :nclass]


if __name__ == "__main__":
    key = jax.random.PRNGKey(0)
    n_nodes, nfeat, nhid, nclass = 300, 48, 32, 8
    k_x, k_adj, k_w1, k_w2, k_wd, k_bd = jax.random.split(key, 6)

    x = jax.random.normal(k_x, (n_nodes, nfeat), dtype=jnp.float32)

    # random symmetric graph, no self loops
    m = jax.random.uniform(k_adj, (n_nodes, n_nodes)) < 0.03
    m = (m | m.T) & ~jnp.eye(n_nodes, dtype=bool)
    src, dst = jnp.nonzero(m)
    edge_index = jnp.stack([src, dst]).astype(jnp.int32)
    edge_weight = jnp.ones((src.shape[0],), jnp.float32)

    params = {
        "w1": 0.1 * jax.random.normal(k_w1, (nfeat, nhid), jnp.float32),   # GCNConv(nfeat, nhid).weight
        "b1": jnp.zeros((1, nhid), jnp.float32),                           # GCNConv bias (zeros init)
        "w2": 0.1 * jax.random.normal(k_w2, (nhid, nclass), jnp.float32),  # gc2 = GCNConv(nhid, nclass)
        "b2": jnp.zeros((1, nclass), jnp.float32),
        "w_drop": jax.random.normal(k_wd, (1, 2), jnp.float32),            # drop_learn_1 = Linear(2, 1)
        "b_drop": 0.1 * jax.random.normal(k_bd, (1, 1), jnp.float32),
    }

    # Probe whether this jax build supports single-buffered resident operands
    # (pipeline_mode=pl.Buffered(1)); fall back to default double-buffering otherwise.
    sb = _probe_single_buffer_residents()

    # block_rows=128 -> N padded to 384 -> 3 row-block grid steps per kernel
    # (exercises the pipeline).  block_rows=None auto-picks 512 (v5e/v6e) / 128 (v7x).
    fwd = jax.jit(functools.partial(guard_gcn_forward, block_rows=128,
                                    single_buffer_residents=sb))
    out = fwd(x, edge_index, edge_weight, params)
    jax.block_until_ready(out)
    assert out.shape == (n_nodes, nclass)
    assert bool(jnp.all(jnp.isfinite(out)))
    print("KERNEL_OK")
</pallas_src>

<mosaic_0001>
module attributes {stable_mosaic.version = 11 : i64} {
  func.func @k(%arg0: i32, %arg1: memref<8x128xf32, #tpu.memory_space<vmem>>, %arg2: memref<8x128xf32, #tpu.memory_space<vmem>>) attributes {dimension_semantics = [#tpu.dimension_semantics<arbitrary>], iteration_bounds = array<i64: 2>, scalar_prefetch = 0 : i64, scratch_operands = 0 : i64, tpu.core_type = #tpu.core_type<tc>, window_params = [{pipeline_mode = #tpu.pipeline_mode<synchronous>, transform_indices = @transform_0, window_bounds = array<i64: 8, 128>}, {transform_indices = @transform_1, window_bounds = array<i64: 8, 128>}]} {
    %c0 = arith.constant 0 : index
    %c0_0 = arith.constant 0 : index
    %0 = vector.load %arg1[%c0, %c0_0] : memref<8x128xf32, #tpu.memory_space<vmem>>, vector<8x128xf32>
    %cst = arith.constant 2.000000e+00 : f32
    %1 = vector.broadcast %cst : f32 to vector<8x128xf32>
    %2 = arith.mulf %0, %1 : vector<8x128xf32>
    %c0_1 = arith.constant 0 : index
    %c0_2 = arith.constant 0 : index
    %3 = vector.load %arg2[%c0_1, %c0_2] : memref<8x128xf32, #tpu.memory_space<vmem>>, vector<8x128xf32>
    tpu.vector_store %arg2[%c0_1, %c0_2], %2 {strides = array<i32>} : memref<8x128xf32, #tpu.memory_space<vmem>>, vector<8x128xf32>,
    return
  }
  func.func @transform_0(%arg0: i32) -> (i32, i32) {
    %c0_i32 = arith.constant 0 : i32
    %c0_i32_0 = arith.constant 0 : i32
    %c0_i32_1 = arith.constant 0 : i32
    return %c0_i32, %c0_i32_0 : i32, i32
  }
  func.func @transform_1(%arg0: i32) -> (i32, i32) {
    %c0_i32 = arith.constant 0 : i32
    %c0_i32_0 = arith.constant 0 : i32
    return %arg0, %c0_i32 : i32, i32
  }
}

module attributes {stable_mosaic.version = 11 : i64} {
  func.func @_normalize_xw_kernel(%arg0: i32, %arg1: memref<128x128xf32, #tpu.memory_space<vmem>>, %arg2: memref<128x128xbf16, #tpu.memory_space<vmem>>, %arg3: memref<128x128xbf16, #tpu.memory_space<vmem>>, %arg4: memref<128x128xf32, #tpu.memory_space<vmem>>) attributes {dimension_semantics = [#tpu.dimension_semantics<parallel>], iteration_bounds = array<i64: 3>, scalar_prefetch = 0 : i64, scratch_operands = 0 : i64, tpu.core_type = #tpu.core_type<tc>, window_params = [{transform_indices = @transform_0, window_bounds = array<i64: 128, 128>}, {pipeline_mode = #tpu.pipeline_mode<synchronous>, transform_indices = @transform_1, window_bounds = array<i64: 128, 128>}, {transform_indices = @transform_2, window_bounds = array<i64: 128, 128>}, {transform_indices = @transform_3, window_bounds = array<i64: 128, 128>}]} {
    %c0 = arith.constant 0 : index
    %c0_0 = arith.constant 0 : index
    %0 = vector.load %arg1[%c0, %c0_0] : memref<128x128xf32, #tpu.memory_space<vmem>>, vector<128x128xf32>
    %1 = arith.mulf %0, %0 : vector<128x128xf32>
    %cst = arith.constant dense<0.000000e+00> : vector<128xf32>
    %2 = vector.multi_reduction <add>, %1, %cst [1] : vector<128x128xf32> to vector<128xf32>
    %3 = vector.shape_cast %2 : vector<128xf32> to vector<128x1xf32>
    %cst_1 = arith.constant 0.000000e+00 : f32
    %4 = vector.broadcast %cst_1 : f32 to vector<128x1xf32>
    %5 = arith.cmpf ogt, %3, %4 : vector<128x1xf32>
    %cst_2 = arith.constant 0.000000e+00 : f32
    %6 = vector.broadcast %cst_2 : f32 to vector<128x1xf32>
    %7 = arith.cmpf ogt, %3, %6 : vector<128x1xf32>
    %cst_3 = arith.constant 1.000000e+00 : f32
    %8 = vector.broadcast %cst_3 : f32 to vector<128x1xf32>
    %9 = arith.select %7, %3, %8 : vector<128x1xi1>, vector<128x1xf32>
    %10 = math.rsqrt %9 : vector<128x1xf32>
    %cst_4 = arith.constant 0.000000e+00 : f32
    %11 = vector.broadcast %cst_4 : f32 to vector<128x1xf32>
    %12 = arith.select %5, %10, %11 : vector<128x1xi1>, vector<128x1xf32>
    %13 = vector.broadcast %12 : vector<128x1xf32> to vector<128x128xf32>
    %14 = arith.mulf %0, %13 : vector<128x128xf32>
    %15 = arith.truncf %14 : vector<128x128xf32> to vector<128x128xbf16>
    %c0_5 = arith.constant 0 : index
    %c0_6 = arith.constant 0 : index
    %16 = vector.load %arg3[%c0_5, %c0_6] : memref<128x128xbf16, #tpu.memory_space<vmem>>, vector<128x128xbf16>
    tpu.vector_store %arg3[%c0_5, %c0_6], %15 {strides = array<i32>} : memref<128x128xbf16, #tpu.memory_space<vmem>>, vector<128x128xbf16>,
    %17 = arith.truncf %0 : vector<128x128xf32> to vector<128x128xbf16>
    %c0_7 = arith.constant 0 : index
    %c0_8 = arith.constant 0 : index
    %18 = vector.load %arg2[%c0_7, %c0_8] : memref<128x128xbf16, #tpu.memory_space<vmem>>, vector<128x128xbf16>
    %cst_9 = arith.constant dense<0.000000e+00> : vector<128x128xf32>
    %19 = tpu.matmul %17, %18, %cst_9 {dimension_numbers = #tpu.dot_dimension_numbers<[1], [0], [0], [1], [0, 0, 1, 1], [], []>} : vector<128x128xbf16>, vector<128x128xbf16>, vector<128x128xf32> -> vector<128x128xf32>
    %c0_10 = arith.constant 0 : index
    %c0_11 = arith.constant 0 : index
    %20 = vector.load %arg4[%c0_10, %c0_11] : memref<128x128xf32, #tpu.memory_space<vmem>>, vector<128x128xf32>
    tpu.vector_store %arg4[%c0_10, %c0_11], %19 {strides = array<i32>} : memref<128x128xf32, #tpu.memory_space<vmem>>, vector<128x128xf32>,
    return
  }
  func.func @transform_0(%arg0: i32) -> (i32, i32) {
    %c0_i32 = arith.constant 0 : i32
    %c0_i32_0 = arith.constant 0 : i32
    return %arg0, %c0_i32 : i32, i32
  }
  func.func @transform_1(%arg0: i32) -> (i32, i32) {
    %c0_i32 = arith.constant 0 : i32
    %c0_i32_0 = arith.constant 0 : i32
    %c0_i32_1 = arith.constant 0 : i32
    return %c0_i32, %c0_i32_0 : i32, i32
  }
  func.func @transform_2(%arg0: i32) -> (i32, i32) {
    %c0_i32 = arith.constant 0 : i32
    %c0_i32_0 = arith.constant 0 : i32
    return %arg0, %c0_i32 : i32, i32
  }
  func.func @transform_3(%arg0: i32) -> (i32, i32) {
    %c0_i32 = arith.constant 0 : i32
    %c0_i32_0 = arith.constant 0 : i32
    return %arg0, %c0_i32 : i32, i32
  }
}

module attributes {stable_mosaic.version = 11 : i64} {
  func.func @_att_rowsum_kernel(%arg0: i32, %arg1: memref<128x128xbf16, #tpu.memory_space<vmem>>, %arg2: memref<384x128xbf16, #tpu.memory_space<vmem>>, %arg3: memref<128x384xbf16, #tpu.memory_space<vmem>>, %arg4: memref<1x1xi32, #tpu.memory_space<smem>>, %arg5: memref<128x1xf32, #tpu.memory_space<vmem>>) attributes {dimension_semantics = [#tpu.dimension_semantics<parallel>], iteration_bounds = array<i64: 3>, scalar_prefetch = 0 : i64, scratch_operands = 0 : i64, tpu.core_type = #tpu.core_type<tc>, window_params = [{transform_indices = @transform_0, window_bounds = array<i64: 128, 128>}, {pipeline_mode = #tpu.pipeline_mode<synchronous>, transform_indices = @transform_1, window_bounds = array<i64: 384, 128>}, {transform_indices = @transform_2, window_bounds = array<i64: 128, 384>}, {transform_indices = @transform_3, window_bounds = array<i64: 1, 1>}, {transform_indices = @transform_4, window_bounds = array<i64: 128, 1>}]} {
    %c0 = arith.constant 0 : index
    %c0_0 = arith.constant 0 : index
    %0 = memref.load %arg4[%c0, %c0_0] : memref<1x1xi32, #tpu.memory_space<smem>>
    %c0_i32 = arith.constant 0 : i32
    %1 = arith.cmpi ne, %0, %c0_i32 : i32
    %c0_1 = arith.constant 0 : index
    %c0_2 = arith.constant 0 : index
    %2 = vector.load %arg1[%c0_1, %c0_2] : memref<128x128xbf16, #tpu.memory_space<vmem>>, vector<128x128xbf16>
    %c0_3 = arith.constant 0 : index
    %c0_4 = arith.constant 0 : index
    %3 = vector.load %arg2[%c0_3, %c0_4] : memref<384x128xbf16, #tpu.memory_space<vmem>>, vector<384x128xbf16>
    %cst = arith.constant dense<0.000000e+00> : vector<128x384xf32>
    %4 = tpu.matmul %2, %3, %cst {dimension_numbers = #tpu.dot_dimension_numbers<[1], [1], [0], [0], [0, 0, 1, 0], [], []>} : vector<128x128xbf16>, vector<384x128xbf16>, vector<128x384xf32> -> vector<128x384xf32>
    %5 = tpu.iota {dimensions = array<i32: 1>} : vector<1x384xi32>
    %6 = tpu.iota {dimensions = array<i32: 0>} : vector<128x1xi32>
    %c128_i32 = arith.constant 128 : i32
    %7 = arith.muli %arg0, %c128_i32 : i32
    %8 = vector.broadcast %7 : i32 to vector<128x1xi32>
    %9 = arith.addi %6, %8 : vector<128x1xi32>
    %10 = vector.broadcast %5 : vector<1x384xi32> to vector<128x384xi32>
    %11 = vector.broadcast %9 : vector<128x1xi32> to vector<128x384xi32>
    %12 = arith.cmpi eq, %10, %11 : vector<128x384xi32>
    %c0_5 = arith.constant 0 : index
    %c0_6 = arith.constant 0 : index
    %13 = vector.load %arg3[%c0_5, %c0_6] : memref<128x384xbf16, #tpu.memory_space<vmem>>, vector<128x384xbf16>
    %cst_7 = arith.constant 0.000000e+00 : bf16
    %14 = vector.broadcast %cst_7 : bf16 to vector<128x384xbf16>
    %15 = arith.cmpf one, %13, %14 : vector<128x384xbf16>
    %cst_8 = arith.constant 1.000000e-01 : f32
    %16 = vector.broadcast %cst_8 : f32 to vector<128x384xf32>
    %17 = arith.cmpf oge, %4, %16 : vector<128x384xf32>
    %18 = arith.andi %15, %17 : vector<128x384xi1>
    %19 = vector.broadcast %1 : i1 to vector<128x384xi1>
    %20 = arith.andi %12, %19 : vector<128x384xi1>
    %cst_9 = arith.constant dense<true> : vector<128x384xi1>
    %21 = arith.xori %20, %cst_9 : vector<128x384xi1>
    %22 = arith.andi %18, %21 : vector<128x384xi1>
    %cst_10 = arith.constant 0.000000e+00 : f32
    %23 = vector.broadcast %cst_10 : f32 to vector<128x384xf32>
    %24 = arith.select %22, %4, %23 : vector<128x384xi1>, vector<128x384xf32>
    %cst_11 = arith.constant dense<0.000000e+00> : vector<128xf32>
    %25 = vector.multi_reduction <add>, %24, %cst_11 [1] : vector<128x384xf32> to vector<128xf32>
    %26 = vector.shape_cast %25 : vector<128xf32> to vector<128x1xf32>
    %cst_12 = arith.constant 0.000000e+00 : f32
    %27 = vector.broadcast %cst_12 : f32 to vector<128x1xf32>
    %28 = arith.cmpf ogt, %26, %27 : vector<128x1xf32>
    %cst_13 = arith.constant 0.000000e+00 : f32
    %29 = vector.broadcast %cst_13 : f32 to vector<128x1xf32>
    %30 = arith.cmpf ogt, %26, %29 : vector<128x1xf32>
    %cst_14 = arith.constant 1.000000e+00 : f32
    %31 = vector.broadcast %cst_14 : f32 to vector<128x1xf32>
    %32 = arith.select %30, %26, %31 : vector<128x1xi1>, vector<128x1xf32>
    %cst_15 = arith.constant 1.000000e+00 : f32
    %33 = vector.broadcast %cst_15 : f32 to vector<128x1xf32>
    %34 = arith.divf %33, %32 : vector<128x1xf32>
    %cst_16 = arith.constant 0.000000e+00 : f32
    %35 = vector.broadcast %cst_16 : f32 to vector<128x1xf32>
    %36 = arith.select %28, %34, %35 : vector<128x1xi1>, vector<128x1xf32>
    %c0_17 = arith.constant 0 : index
    %c0_18 = arith.constant 0 : index
    %37 = vector.load %arg5[%c0_17, %c0_18] : memref<128x1xf32, #tpu.memory_space<vmem>>, vector<128x1xf32>
    tpu.vector_store %arg5[%c0_17, %c0_18], %36 {strides = array<i32>} : memref<128x1xf32, #tpu.memory_space<vmem>>, vector<128x1xf32>,
    return
  }
  func.func @transform_0(%arg0: i32) -> (i32, i32) {
    %c0_i32 = arith.constant 0 : i32
    %c0_i32_0 = arith.constant 0 : i32
    return %arg0, %c0_i32 : i32, i32
  }
  func.func @transform_1(%arg0: i32) -> (i32, i32) {
    %c0_i32 = arith.constant 0 : i32
    %c0_i32_0 = arith.constant 0 : i32
    %c0_i32_1 = arith.constant 0 : i32
    return %c0_i32, %c0_i32_0 : i32, i32
  }
  func.func @transform_2(%arg0: i32) -> (i32, i32) {
    %c0_i32 = arith.constant 0 : i32
    %c0_i32_0 = arith.constant 0 : i32
    return %arg0, %c0_i32 : i32, i32
  }
  func.func @transform_3(%arg0: i32) -> (i32, i32) {
    %c0_i32 = arith.constant 0 : i32
    %c0_i32_0 = arith.constant 0 : i32
    %c0_i32_1 = arith.constant 0 : i32
    return %c0_i32, %c0_i32_0 : i32, i32
  }
  func.func @transform_4(%arg0: i32) -> (i32, i32) {
    %c0_i32 = arith.constant 0 : i32
    %c0_i32_0 = arith.constant 0 : i32
    return %arg0, %c0_i32 : i32, i32
  }
}

module attributes {stable_mosaic.version = 11 : i64} {
  func.func @_att_finalize_kernel(%arg0: i32, %arg1: memref<128x128xbf16, #tpu.memory_space<vmem>>, %arg2: memref<384x128xbf16, #tpu.memory_space<vmem>>, %arg3: memref<128x384xbf16, #tpu.memory_space<vmem>>, %arg4: memref<128x384xbf16, #tpu.memory_space<vmem>>, %arg5: memref<128x1xf32, #tpu.memory_space<vmem>>, %arg6: memref<1x384xf32, #tpu.memory_space<vmem>>, %arg7: memref<1x2xf32, #tpu.memory_space<smem>>, %arg8: memref<1x1xf32, #tpu.memory_space<smem>>, %arg9: memref<1x1xi32, #tpu.memory_space<smem>>, %arg10: memref<128x384xbf16, #tpu.memory_space<vmem>>, %arg11: memref<384x128xbf16, #tpu.memory_space<vmem>>, %arg12: memref<8x384xf32, #tpu.memory_space<vmem>>) attributes {dimension_semantics = [#tpu.dimension_semantics<parallel>], iteration_bounds = array<i64: 3>, scalar_prefetch = 0 : i64, scratch_operands = 0 : i64, tpu.core_type = #tpu.core_type<tc>, window_params = [{transform_indices = @transform_0, window_bounds = array<i64: 128, 128>}, {pipeline_mode = #tpu.pipeline_mode<synchronous>, transform_indices = @transform_1, window_bounds = array<i64: 384, 128>}, {transform_indices = @transform_2, window_bounds = array<i64: 128, 384>}, {transform_indices = @transform_3, window_bounds = array<i64: 128, 384>}, {transform_indices = @transform_4, window_bounds = array<i64: 128, 1>}, {pipeline_mode = #tpu.pipeline_mode<synchronous>, transform_indices = @transform_5, window_bounds = array<i64: 1, 384>}, {transform_indices = @transform_6, window_bounds = array<i64: 1, 2>}, {transform_indices = @transform_7, window_bounds = array<i64: 1, 1>}, {transform_indices = @transform_8, window_bounds = array<i64: 1, 1>}, {transform_indices = @transform_9, window_bounds = array<i64: 128, 384>}, {transform_indices = @transform_10, window_bounds = array<i64: 384, 128>}, {transform_indices = @transform_11, window_bounds = array<i64: 8, 384>}]} {
    %c0 = arith.constant 0 : index
    %c0_0 = arith.constant 0 : index
    %0 = memref.load %arg9[%c0, %c0_0] : memref<1x1xi32, #tpu.memory_space<smem>>
    %c0_i32 = arith.constant 0 : i32
    %1 = arith.cmpi ne, %0, %c0_i32 : i32
    %c0_1 = arith.constant 0 : index
    %c0_2 = arith.constant 0 : index
    %2 = memref.load %arg7[%c0_1, %c0_2] : memref<1x2xf32, #tpu.memory_space<smem>>
    %c0_3 = arith.constant 0 : index
    %c1 = arith.constant 1 : index
    %3 = memref.load %arg7[%c0_3, %c1] : memref<1x2xf32, #tpu.memory_space<smem>>
    %c0_4 = arith.constant 0 : index
    %c0_5 = arith.constant 0 : index
    %4 = memref.load %arg8[%c0_4, %c0_5] : memref<1x1xf32, #tpu.memory_space<smem>>
    %c0_6 = arith.constant 0 : index
    %c0_7 = arith.constant 0 : index
    %5 = vector.load %arg1[%c0_6, %c0_7] : memref<128x128xbf16, #tpu.memory_space<vmem>>, vector<128x128xbf16>
    %c0_8 = arith.constant 0 : index
    %c0_9 = arith.constant 0 : index
    %6 = vector.load %arg2[%c0_8, %c0_9] : memref<384x128xbf16, #tpu.memory_space<vmem>>, vector<384x128xbf16>
    %cst = arith.constant dense<0.000000e+00> : vector<128x384xf32>
    %7 = tpu.matmul %5, %6, %cst {dimension_numbers = #tpu.dot_dimension_numbers<[1], [1], [0], [0], [0, 0, 1, 0], [], []>} : vector<128x128xbf16>, vector<384x128xbf16>, vector<128x384xf32> -> vector<128x384xf32>
    %8 = tpu.iota {dimensions = array<i32: 1>} : vector<1x384xi32>
    %9 = tpu.iota {dimensions = array<i32: 0>} : vector<128x1xi32>
    %c128_i32 = arith.constant 128 : i32
    %10 = arith.muli %arg0, %c128_i32 : i32
    %11 = vector.broadcast %10 : i32 to vector<128x1xi32>
    %12 = arith.addi %9, %11 : vector<128x1xi32>
    %13 = vector.broadcast %8 : vector<1x384xi32> to vector<128x384xi32>
    %14 = vector.broadcast %12 : vector<128x1xi32> to vector<128x384xi32>
    %15 = arith.cmpi eq, %13, %14 : vector<128x384xi32>
    %cst_10 = arith.constant 1.000000e-01 : f32
    %16 = vector.broadcast %cst_10 : f32 to vector<128x384xf32>
    %17 = arith.cmpf oge, %7, %16 : vector<128x384xf32>
    %18 = vector.broadcast %1 : i1 to vector<128x384xi1>
    %19 = arith.andi %15, %18 : vector<128x384xi1>
    %cst_11 = arith.constant dense<true> : vector<128x384xi1>
    %20 = arith.xori %19, %cst_11 : vector<128x384xi1>
    %21 = arith.andi %17, %20 : vector<128x384xi1>
    %c0_12 = arith.constant 0 : index
    %c0_13 = arith.constant 0 : index
    %22 = vector.load %arg3[%c0_12, %c0_13] : memref<128x384xbf16, #tpu.memory_space<vmem>>, vector<128x384xbf16>
    %cst_14 = arith.constant 0.000000e+00 : bf16
    %23 = vector.broadcast %cst_14 : bf16 to vector<128x384xbf16>
    %24 = arith.cmpf one, %22, %23 : vector<128x384xbf16>
    %25 = arith.andi %24, %21 : vector<128x384xi1>
    %c0_15 = arith.constant 0 : index
    %c0_16 = arith.constant 0 : index
    %26 = vector.load %arg4[%c0_15, %c0_16] : memref<128x384xbf16, #tpu.memory_space<vmem>>, vector<128x384xbf16>
    %cst_17 = arith.constant 0.000000e+00 : bf16
    %27 = vector.broadcast %cst_17 : bf16 to vector<128x384xbf16>
    %28 = arith.cmpf one, %26, %27 : vector<128x384xbf16>
    %29 = arith.andi %28, %21 : vector<128x384xi1>
    %cst_18 = arith.constant 0.000000e+00 : f32
    %30 = vector.broadcast %cst_18 : f32 to vector<128x384xf32>
    %31 = arith.select %25, %7, %30 : vector<128x384xi1>, vector<128x384xf32>
    %c0_19 = arith.constant 0 : index
    %c0_20 = arith.constant 0 : index
    %32 = vector.load %arg5[%c0_19, %c0_20] : memref<128x1xf32, #tpu.memory_space<vmem>>, vector<128x1xf32>
    %33 = vector.broadcast %32 : vector<128x1xf32> to vector<128x384xf32>
    %34 = arith.mulf %31, %33 : vector<128x384xf32>
    %cst_21 = arith.constant 0.000000e+00 : f32
    %35 = vector.broadcast %cst_21 : f32 to vector<128x384xf32>
    %36 = arith.select %29, %7, %35 : vector<128x384xi1>, vector<128x384xf32>
    %c0_22 = arith.constant 0 : index
    %c0_23 = arith.constant 0 : index
    %37 = vector.load %arg6[%c0_22, %c0_23] : memref<1x384xf32, #tpu.memory_space<vmem>>, vector<1x384xf32>
    %38 = vector.broadcast %37 : vector<1x384xf32> to vector<128x384xf32>
    %39 = arith.mulf %36, %38 : vector<128x384xf32>
    %40 = vector.broadcast %2 : f32 to vector<128x384xf32>
    %41 = arith.mulf %34, %40 : vector<128x384xf32>
    %42 = vector.broadcast %3 : f32 to vector<128x384xf32>
    %43 = arith.mulf %39, %42 : vector<128x384xf32>
    %44 = arith.addf %41, %43 : vector<128x384xf32>
    %45 = vector.broadcast %4 : f32 to vector<128x384xf32>
    %46 = arith.addf %44, %45 : vector<128x384xf32>
    %cst_24 = arith.constant 0.000000e+00 : f32
    %47 = vector.broadcast %cst_24 : f32 to vector<128x384xf32>
    %48 = arith.cmpf ogt, %46, %47 : vector<128x384xf32>
    %49 = arith.andi %25, %48 : vector<128x384xi1>
    %cst_25 = arith.constant 0.000000e+00 : f32
    %50 = vector.broadcast %cst_25 : f32 to vector<128x384xf32>
    %51 = arith.select %49, %34, %50 : vector<128x384xi1>, vector<128x384xf32>
    %52 = arith.extui %49 : vector<128x384xi1> to vector<128x384xi32>
    %53 = arith.sitofp %52 : vector<128x384xi32> to vector<128x384xf32>
    %cst_26 = arith.constant dense<0.000000e+00> : vector<128xf32>
    %54 = vector.multi_reduction <add>, %53, %cst_26 [1] : vector<128x384xf32> to vector<128xf32>
    %55 = vector.shape_cast %54 : vector<128xf32> to vector<128x1xf32>
    %cst_27 = arith.constant 1.000000e+00 : f32
    %56 = vector.broadcast %cst_27 : f32 to vector<128x1xf32>
    %57 = arith.addf %55, %56 : vector<128x1xf32>
    %cst_28 = arith.constant 1.000000e+00 : f32
    %58 = vector.broadcast %cst_28 : f32 to vector<128x1xf32>
    %59 = arith.divf %58, %57 : vector<128x1xf32>
    %cst_29 = arith.constant 0.000000e+00 : f32
    %60 = vector.shape_cast %59 : vector<128x1xf32> to vector<128x1xf32>
    %61 = vector.broadcast %60 : vector<128x1xf32> to vector<128x384xf32>
    %62 = vector.broadcast %cst_29 : f32 to vector<128x384xf32>
    %63 = arith.select %15, %61, %62 : vector<128x384xi1>, vector<128x384xf32>
    %64 = arith.addf %51, %63 : vector<128x384xf32>
    %cst_30 = arith.constant 0.000000e+00 : f32
    %65 = vector.broadcast %cst_30 : f32 to vector<128x384xf32>
    %66 = arith.cmpf one, %64, %65 : vector<128x384xf32>
    %67 = math.exp %64 : vector<128x384xf32>
    %cst_31 = arith.constant 0.000000e+00 : f32
    %68 = vector.broadcast %cst_31 : f32 to vector<128x384xf32>
    %69 = arith.select %66, %67, %68 : vector<128x384xi1>, vector<128x384xf32>
    %70 = arith.truncf %69 : vector<128x384xf32> to vector<128x384xbf16>
    %c0_32 = arith.constant 0 : index
    %c0_33 = arith.constant 0 : index
    %71 = vector.load %arg10[%c0_32, %c0_33] : memref<128x384xbf16, #tpu.memory_space<vmem>>, vector<128x384xbf16>
    tpu.vector_store %arg10[%c0_32, %c0_33], %70 {strides = array<i32>} : memref<128x384xbf16, #tpu.memory_space<vmem>>, vector<128x384xbf16>,
    %72 = tpu.transpose %69, [1, 0] : vector<128x384xf32> -> vector<384x128xf32>
    %73 = arith.truncf %72 : vector<384x128xf32> to vector<384x128xbf16>
    %c0_34 = arith.constant 0 : index
    %c0_35 = arith.constant 0 : index
    %74 = vector.load %arg11[%c0_34, %c0_35] : memref<384x128xbf16, #tpu.memory_space<vmem>>, vector<384x128xbf16>
    tpu.vector_store %arg11[%c0_34, %c0_35], %73 {strides = array<i32>} : memref<384x128xbf16, #tpu.memory_space<vmem>>, vector<384x128xbf16>,
    %cst_36 = arith.constant dense<0.000000e+00> : vector<384xf32>
    %75 = vector.multi_reduction <add>, %69, %cst_36 [0] : vector<128x384xf32> to vector<384xf32>
    %76 = vector.shape_cast %75 : vector<384xf32> to vector<1x384xf32>
    %77 = tpu.iota {dimensions = array<i32: 0>} : vector<8x1xi32>
    %c0_i32_37 = arith.constant 0 : i32
    %78 = vector.broadcast %c0_i32_37 : i32 to vector<8x1xi32>
    %79 = arith.cmpi eq, %77, %78 : vector<8x1xi32>
    %cst_38 = arith.constant 0.000000e+00 : f32
    %80 = vector.shape_cast %79 : vector<8x1xi1> to vector<8x1xi1>
    %81 = vector.broadcast %80 : vector<8x1xi1> to vector<8x384xi1>
    %82 = vector.shape_cast %76 : vector<1x384xf32> to vector<1x384xf32>
    %83 = vector.broadcast %82 : vector<1x384xf32> to vector<8x384xf32>
    %84 = vector.broadcast %cst_38 : f32 to vector<8x384xf32>
    %85 = arith.select %81, %83, %84 : vector<8x384xi1>, vector<8x384xf32>
    %c0_39 = arith.constant 0 : index
    %c0_40 = arith.constant 0 : index
    %86 = vector.load %arg12[%c0_39, %c0_40] : memref<8x384xf32, #tpu.memory_space<vmem>>, vector<8x384xf32>
    tpu.vector_store %arg12[%c0_39, %c0_40], %85 {strides = array<i32>} : memref<8x384xf32, #tpu.memory_space<vmem>>, vector<8x384xf32>,
    return
  }
  func.func @transform_0(%arg0: i32) -> (i32, i32) {
    %c0_i32 = arith.constant 0 : i32
    %c0_i32_0 = arith.constant 0 : i32
    return %arg0, %c0_i32 : i32, i32
  }
  func.func @transform_1(%arg0: i32) -> (i32, i32) {
    %c0_i32 = arith.constant 0 : i32
    %c0_i32_0 = arith.constant 0 : i32
    %c0_i32_1 = arith.constant 0 : i32
    return %c0_i32, %c0_i32_0 : i32, i32
  }
  func.func @transform_2(%arg0: i32) -> (i32, i32) {
    %c0_i32 = arith.constant 0 : i32
    %c0_i32_0 = arith.constant 0 : i32
    return %arg0, %c0_i32 : i32, i32
  }
  func.func @transform_3(%arg0: i32) -> (i32, i32) {
    %c0_i32 = arith.constant 0 : i32
    %c0_i32_0 = arith.constant 0 : i32
    return %arg0, %c0_i32 : i32, i32
  }
  func.func @transform_4(%arg0: i32) -> (i32, i32) {
    %c0_i32 = arith.constant 0 : i32
    %c0_i32_0 = arith.constant 0 : i32
    return %arg0, %c0_i32 : i32, i32
  }
  func.func @transform_5(%arg0: i32) -> (i32, i32) {
    %c0_i32 = arith.constant 0 : i32
    %c0_i32_0 = arith.constant 0 : i32
    %c0_i32_1 = arith.constant 0 : i32
    return %c0_i32, %c0_i32_0 : i32, i32
  }
  func.func @transform_6(%arg0: i32) -> (i32, i32) {
    %c0_i32 = arith.constant 0 : i32
    %c0_i32_0 = arith.constant 0 : i32
    %c0_i32_1 = arith.constant 0 : i32
    return %c0_i32, %c0_i32_0 : i32, i32
  }
  func.func @transform_7(%arg0: i32) -> (i32, i32) {
    %c0_i32 = arith.constant 0 : i32
    %c0_i32_0 = arith.constant 0 : i32
    %c0_i32_1 = arith.constant 0 : i32
    return %c0_i32, %c0_i32_0 : i32, i32
  }
  func.func @transform_8(%arg0: i32) -> (i32, i32) {
    %c0_i32 = arith.constant 0 : i32
    %c0_i32_0 = arith.constant 0 : i32
    %c0_i32_1 = arith.constant 0 : i32
    return %c0_i32, %c0_i32_0 : i32, i32
  }
  func.func @transform_9(%arg0: i32) -> (i32, i32) {
    %c0_i32 = arith.constant 0 : i32
    %c0_i32_0 = arith.constant 0 : i32
    return %arg0, %c0_i32 : i32, i32
  }
  func.func @transform_10(%arg0: i32) -> (i32, i32) {
    %c0_i32 = arith.constant 0 : i32
    %c0_i32_0 = arith.constant 0 : i32
    return %c0_i32, %arg0 : i32, i32
  }
  func.func @transform_11(%arg0: i32) -> (i32, i32) {
    %c0_i32 = arith.constant 0 : i32
    %c0_i32_0 = arith.constant 0 : i32
    return %arg0, %c0_i32 : i32, i32
  }
}

module attributes {stable_mosaic.version = 11 : i64} {
  func.func @_gcn_agg_kernel(%arg0: i32, %arg1: memref<128x384xbf16, #tpu.memory_space<vmem>>, %arg2: memref<128x1xf32, #tpu.memory_space<vmem>>, %arg3: memref<384x128xbf16, #tpu.memory_space<vmem>>, %arg4: memref<1x128xf32, #tpu.memory_space<vmem>>, %arg5: memref<128x128xf32, #tpu.memory_space<vmem>>) attributes {dimension_semantics = [#tpu.dimension_semantics<parallel>], iteration_bounds = array<i64: 3>, scalar_prefetch = 0 : i64, scratch_operands = 0 : i64, tpu.core_type = #tpu.core_type<tc>, window_params = [{transform_indices = @transform_0, window_bounds = array<i64: 128, 384>}, {transform_indices = @transform_1, window_bounds = array<i64: 128, 1>}, {pipeline_mode = #tpu.pipeline_mode<synchronous>, transform_indices = @transform_2, window_bounds = array<i64: 384, 128>}, {pipeline_mode = #tpu.pipeline_mode<synchronous>, transform_indices = @transform_3, window_bounds = array<i64: 1, 128>}, {transform_indices = @transform_4, window_bounds = array<i64: 128, 128>}]} {
    %c0 = arith.constant 0 : index
    %c0_0 = arith.constant 0 : index
    %0 = vector.load %arg1[%c0, %c0_0] : memref<128x384xbf16, #tpu.memory_space<vmem>>, vector<128x384xbf16>
    %c0_1 = arith.constant 0 : index
    %c0_2 = arith.constant 0 : index
    %1 = vector.load %arg3[%c0_1, %c0_2] : memref<384x128xbf16, #tpu.memory_space<vmem>>, vector<384x128xbf16>
    %cst = arith.constant dense<0.000000e+00> : vector<128x128xf32>
    %2 = tpu.matmul %0, %1, %cst {dimension_numbers = #tpu.dot_dimension_numbers<[1], [0], [0], [1], [0, 0, 1, 1], [], []>} : vector<128x384xbf16>, vector<384x128xbf16>, vector<128x128xf32> -> vector<128x128xf32>
    %c0_3 = arith.constant 0 : index
    %c0_4 = arith.constant 0 : index
    %3 = vector.load %arg2[%c0_3, %c0_4] : memref<128x1xf32, #tpu.memory_space<vmem>>, vector<128x1xf32>
    %4 = vector.broadcast %3 : vector<128x1xf32> to vector<128x128xf32>
    %5 = arith.mulf %4, %2 : vector<128x128xf32>
    %c0_5 = arith.constant 0 : index
    %c0_6 = arith.constant 0 : index
    %6 = vector.load %arg4[%c0_5, %c0_6] : memref<1x128xf32, #tpu.memory_space<vmem>>, vector<1x128xf32>
    %7 = vector.broadcast %6 : vector<1x128xf32> to vector<128x128xf32>
    %8 = arith.addf %5, %7 : vector<128x128xf32>
    %cst_7 = arith.constant 0.000000e+00 : f32
    %9 = vector.broadcast %cst_7 : f32 to vector<128x128xf32>
    %10 = arith.maximumf %8, %9 : vector<128x128xf32>
    %c0_8 = arith.constant 0 : index
    %c0_9 = arith.constant 0 : index
    %11 = vector.load %arg5[%c0_8, %c0_9] : memref<128x128xf32, #tpu.memory_space<vmem>>, vector<128x128xf32>
    tpu.vector_store %arg5[%c0_8, %c0_9], %10 {strides = array<i32>} : memref<128x128xf32, #tpu.memory_space<vmem>>, vector<128x128xf32>,
    return
  }
  func.func @transform_0(%arg0: i32) -> (i32, i32) {
    %c0_i32 = arith.constant 0 : i32
    %c0_i32_0 = arith.constant 0 : i32
    return %arg0, %c0_i32 : i32, i32
  }
  func.func @transform_1(%arg0: i32) -> (i32, i32) {
    %c0_i32 = arith.constant 0 : i32
    %c0_i32_0 = arith.constant 0 : i32
    return %arg0, %c0_i32 : i32, i32
  }
  func.func @transform_2(%arg0: i32) -> (i32, i32) {
    %c0_i32 = arith.constant 0 : i32
    %c0_i32_0 = arith.constant 0 : i32
    %c0_i32_1 = arith.constant 0 : i32
    return %c0_i32, %c0_i32_0 : i32, i32
  }
  func.func @transform_3(%arg0: i32) -> (i32, i32) {
    %c0_i32 = arith.constant 0 : i32
    %c0_i32_0 = arith.constant 0 : i32
    %c0_i32_1 = arith.constant 0 : i32
    return %c0_i32, %c0_i32_0 : i32, i32
  }
  func.func @transform_4(%arg0: i32) -> (i32, i32) {
    %c0_i32 = arith.constant 0 : i32
    %c0_i32_0 = arith.constant 0 : i32
    return %arg0, %c0_i32 : i32, i32
  }
}

module attributes {stable_mosaic.version = 11 : i64} {
  func.func @_gcn_agg_kernel(%arg0: i32, %arg1: memref<128x384xbf16, #tpu.memory_space<vmem>>, %arg2: memref<128x1xf32, #tpu.memory_space<vmem>>, %arg3: memref<384x128xbf16, #tpu.memory_space<vmem>>, %arg4: memref<1x128xf32, #tpu.memory_space<vmem>>, %arg5: memref<128x128xf32, #tpu.memory_space<vmem>>) attributes {dimension_semantics = [#tpu.dimension_semantics<parallel>], iteration_bounds = array<i64: 3>, scalar_prefetch = 0 : i64, scratch_operands = 0 : i64, tpu.core_type = #tpu.core_type<tc>, window_params = [{transform_indices = @transform_0, window_bounds = array<i64: 128, 384>}, {transform_indices = @transform_1, window_bounds = array<i64: 128, 1>}, {pipeline_mode = #tpu.pipeline_mode<synchronous>, transform_indices = @transform_2, window_bounds = array<i64: 384, 128>}, {pipeline_mode = #tpu.pipeline_mode<synchronous>, transform_indices = @transform_3, window_bounds = array<i64: 1, 128>}, {transform_indices = @transform_4, window_bounds = array<i64: 128, 128>}]} {
    %c0 = arith.constant 0 : index
    %c0_0 = arith.constant 0 : index
    %0 = vector.load %arg1[%c0, %c0_0] : memref<128x384xbf16, #tpu.memory_space<vmem>>, vector<128x384xbf16>
    %c0_1 = arith.constant 0 : index
    %c0_2 = arith.constant 0 : index
    %1 = vector.load %arg3[%c0_1, %c0_2] : memref<384x128xbf16, #tpu.memory_space<vmem>>, vector<384x128xbf16>
    %cst = arith.constant dense<0.000000e+00> : vector<128x128xf32>
    %2 = tpu.matmul %0, %1, %cst {dimension_numbers = #tpu.dot_dimension_numbers<[1], [0], [0], [1], [0, 0, 1, 1], [], []>} : vector<128x384xbf16>, vector<384x128xbf16>, vector<128x128xf32> -> vector<128x128xf32>
    %c0_3 = arith.constant 0 : index
    %c0_4 = arith.constant 0 : index
    %3 = vector.load %arg2[%c0_3, %c0_4] : memref<128x1xf32, #tpu.memory_space<vmem>>, vector<128x1xf32>
    %4 = vector.broadcast %3 : vector<128x1xf32> to vector<128x128xf32>
    %5 = arith.mulf %4, %2 : vector<128x128xf32>
    %c0_5 = arith.constant 0 : index
    %c0_6 = arith.constant 0 : index
    %6 = vector.load %arg4[%c0_5, %c0_6] : memref<1x128xf32, #tpu.memory_space<vmem>>, vector<1x128xf32>
    %7 = vector.broadcast %6 : vector<1x128xf32> to vector<128x128xf32>
    %8 = arith.addf %5, %7 : vector<128x128xf32>
    %9 = tpu.iota {dimensions = array<i32: 1>} : vector<128x128xi32>
    %c8_i32 = arith.constant 8 : i32
    %10 = vector.broadcast %c8_i32 : i32 to vector<128x128xi32>
    %11 = arith.cmpi slt, %9, %10 : vector<128x128xi32>
    %cst_7 = arith.constant 0xFF800000 : f32
    %12 = vector.broadcast %cst_7 : f32 to vector<128x128xf32>
    %13 = arith.select %11, %8, %12 : vector<128x128xi1>, vector<128x128xf32>
    %cst_8 = arith.constant dense<0xFF800000> : vector<128xf32>
    %14 = vector.multi_reduction <maximumf>, %13, %cst_8 [1] : vector<128x128xf32> to vector<128xf32>
    %15 = vector.shape_cast %14 : vector<128xf32> to vector<128x1xf32>
    %16 = vector.broadcast %15 : vector<128x1xf32> to vector<128x128xf32>
    %17 = arith.subf %13, %16 : vector<128x128xf32>
    %18 = math.exp %17 : vector<128x128xf32>
    %cst_9 = arith.constant 0.000000e+00 : f32
    %19 = vector.broadcast %cst_9 : f32 to vector<128x128xf32>
    %20 = arith.select %11, %18, %19 : vector<128x128xi1>, vector<128x128xf32>
    %cst_10 = arith.constant dense<0.000000e+00> : vector<128xf32>
    %21 = vector.multi_reduction <add>, %20, %cst_10 [1] : vector<128x128xf32> to vector<128xf32>
    %22 = vector.shape_cast %21 : vector<128xf32> to vector<128x1xf32>
    %23 = math.log %22 : vector<128x1xf32>
    %24 = vector.broadcast %23 : vector<128x1xf32> to vector<128x128xf32>
    %25 = arith.subf %17, %24 : vector<128x128xf32>
    %c0_11 = arith.constant 0 : index
    %c0_12 = arith.constant 0 : index
    %26 = vector.load %arg5[%c0_11, %c0_12] : memref<128x128xf32, #tpu.memory_space<vmem>>, vector<128x128xf32>
    tpu.vector_store %arg5[%c0_11, %c0_12], %25 {strides = array<i32>} : memref<128x128xf32, #tpu.memory_space<vmem>>, vector<128x128xf32>,
    return
  }
  func.func @transform_0(%arg0: i32) -> (i32, i32) {
    %c0_i32 = arith.constant 0 : i32
    %c0_i32_0 = arith.constant 0 : i32
    return %arg0, %c0_i32 : i32, i32
  }
  func.func @transform_1(%arg0: i32) -> (i32, i32) {
    %c0_i32 = arith.constant 0 : i32
    %c0_i32_0 = arith.constant 0 : i32
    return %arg0, %c0_i32 : i32, i32
  }
  func.func @transform_2(%arg0: i32) -> (i32, i32) {
    %c0_i32 = arith.constant 0 : i32
    %c0_i32_0 = arith.constant 0 : i32
    %c0_i32_1 = arith.constant 0 : i32
    return %c0_i32, %c0_i32_0 : i32, i32
  }
  func.func @transform_3(%arg0: i32) -> (i32, i32) {
    %c0_i32 = arith.constant 0 : i32
    %c0_i32_0 = arith.constant 0 : i32
    %c0_i32_1 = arith.constant 0 : i32
    return %c0_i32, %c0_i32_0 : i32, i32
  }
  func.func @transform_4(%arg0: i32) -> (i32, i32) {
    %c0_i32 = arith.constant 0 : i32
    %c0_i32_0 = arith.constant 0 : i32
    return %arg0, %c0_i32 : i32, i32
  }
}

</mosaic_0001>

<bundles_post_ra>
// kernel: tpu_custom_call.1
= control target key start
LH: loop header
LB: loop body
LE: loop exit
PB: predicated region body
PF: predicated region fallthrough
CT: control target
= control target key end

     0   :  { %6 = vsyncpa [#allocation3], 0  ;;  %s482_s0 = inlined_call_operand.hbm [shape: f32[8,128], index: 0, kind: input, shape index: {}]   ;;  %s483_s1 = inlined_call_operand.hbm [shape: f32[16,128], index: 1, kind: output, shape index: {}]  }
   0x1   :  { %7 = vsyncpa [#allocation4], 0 }
   0x2   :  { %9 = vsyncpa [#allocation4 + $0x1], 0  ;;  %s352_s6 = smov 0   ;;  %s354_s7 = smov 0  }
   0x3   :  { %s356_s8 = smov 0   ;;  %s358_s9 = smov 0  }
   0x4 LB: > { %s373_s10 = sadd.s32 4294967295, %s338_s9   ;;  %s184_s11 = sadd.s32 4294967294, %s338_s9   ;;  %s338_s9 = sphi %s358_s9, %s499_s9   ;;  %s334_s8 = sphi %s356_s8, %s498_s8   ;;  %s330_s7 = sphi %s354_s7, %s497_s7   ;;  %s326_s6 = sphi %s352_s6, %s496_s6  }
   0x5   : > { %s377_s12 = sadd.s32 1, %s338_s9   ;;  %s43_s13 = sadd.s32 1, %s334_s8 }
   0x6   : > { %s40_s14 = ssub.s32 %s338_s9, %s377_s12  ;;  %p53_p0 = scmp.ne.s32.totalorder %s334_s8, %s330_s7 }
   0x7   : > { %p41_p1 = scmp.eq.s32.totalorder %s40_s14, 0  ;;  %p54_p2 = scmp.eq.s32.totalorder %s373_s10, 1 }
   0x8   : > { %p59_p3 = scmp.ne.s32.totalorder %s330_s7, %s326_s6  ;;  %p60_p4 = scmp.eq.s32.totalorder %s184_s11, 1 }
   0x9   : > { %s388_s15 = scalar_select %p41_p1, %s334_s8, %s43_s13  }
   0xa   : > { %p390_p5 = por %p54_p2, %p53_p0  ;;  %p394_p6 = por %p60_p4, %p59_p3 }
   0xb   : > { %p185_p7 = scmp.ge.s32.totalorder %s338_s9, 1  ;;  %p67_p8 = scmp.lt.s32.totalorder %s338_s9, 3 }
   0xc   : > { %s487_s16 = scalar_select %p390_p5, 1, 0 }
   0xd   : > { %s488_s17 = scalar_select %p394_p6, 1, 0 }
   0xe   : > { %p484_p9 = scmp.eq.s32.totalorder %s373_s10, 0  ;;  %p401_p10 = pnand %p185_p7, %p67_p8 }
   0xf   : > { %s340_s19 = smov [#allocation2]   ;;  %s244_s24 = scalar_lea.hbm %s482_s0, 128 }
  0x10   : > { %s489_s18 = scalar_select %p401_p10, 1, 0 }
  0x11   : > { %s80_s20 = sshll.u32 %s340_s19, 4  ;;  %p200_p11 = pneg %p401_p10  ;;  %s81_s20 = int_to_ptr.vmem [resolvable:$true] %s80_s20 }
  0x12   : > { %p245_p13 = scmp.ne.s32.totalorder %s482_s0, %s244_s24  ;;  %p251_p3 = scmp.lt.u32.totalorder %s244_s24, %s482_s0 }
  0x13   : > { %p409_p12 = pnand %p484_p9, %p200_p11 }
  0x15   : > { %p246_p0 = pneg %p409_p12 }
  0x17   : > { %p247_p1 = pnand %p246_p0, %p245_p13 }
  0x19   : > { %p248_p2 = pneg %p247_p1 }
  0x1b   : > { %p253_p4 = pnand %p251_p3, %p248_p2 }
  0x1d   : > { %256 = shalt.err (!%p253_p4)
}
  0x1e   : > { %s257_s29 = scalar_lea.vmem %s81_s20, 128  ;;  %p265_p9 = scmp.lt.s32.totalorder %s81_s20, %s81_s20 }
  0x1f   : > { %p258_p7 = scmp.ne.s32.totalorder %s81_s20, %s257_s29  ;;  %p266_p6 = scmp.lt.s32.totalorder %s257_s29, %s257_s29 }
  0x21   : > { %p260_p8 = pnand %p258_p7, %p246_p0  ;;  %p267_p5 = por %p266_p6, %p265_p9 }
  0x23   : > { %p261_p11 = pneg %p260_p8 }
  0x25   : > { %p268_p10 = pnand %p267_p5, %p261_p11 }
  0x27   : > { %271 = shalt.err (!%p268_p10)
}
  0x28   : > { %203 = dma.hbm_to_vmem [thread:$0]  (!%p409_p12), %s482_s0, 128, %s81_s20, [#allocation3]  }
  0x29   : > { %p491_p13 = scmp.ne.s32.totalorder %s489_s18, 0 }
  0x2a   : > { %p492_p1 = scmp.eq.s32.totalorder (!%p491_p13), %s373_s10, 0 }
  0x2b   : > { %93 = sbr.rel (%p491_p13) target bundleno = 77 (0x4d), region = 24 }
  0x32   : > { %317 = dma.done.wait (%p492_p1), [#allocation3], 128   ;;  %p493_p0 = pmov %p492_p1 }
  0x33   : > { %s105_s3 = sand.u32 1, %s330_s7   ;;  %s191_s13 = sshll.u32 %s373_s10, 7  ;;  %v108_v0 = vld [vmem:[#allocation2] sm:$0xff] }
  0x34   : > { %319 = vsyncadd (%p493_p0), [#allocation3], 4294967168  ;;  %s189_s4 = sshll.u32 %s105_s3, 3  ;;  %v109_v1 = vmul.f32 2.0, %v108_v0  ;;  %s442_s19 = scalar_lea.hbm %s483_s1, %s191_s13 }
  0x35   : > { %s107_s5 = scalar_lea.vmem [#allocation5], %s189_s4  ;;  %s112_s20 = scalar_lea.sflag [#allocation4], %s105_s3 }
  0x36   : > { %s125_s11 = sshll.u32 %s107_s5, 4  ;;  %110 = vst [vmem:[%s107_s5] sm:$0xff] %v109_v1  ;;  %p494_p6 = scmp.ne.s32.totalorder %s487_s16, 0  ;;  %s437_s11 = int_to_ptr.vmem [resolvable:$true] %s125_s11 }
  0x37   : > { %s272_s21 = scalar_lea.vmem %s437_s11, 128  ;;  %s341_s10 = smov [#allocation5]  }
  0x38   : > { %p273_p5 = scmp.ne.s32.totalorder %s437_s11, %s272_s21  ;;  %s276_s22 = sshll.u32 %s341_s10, 4  ;;  %s277_s22 = int_to_ptr.vmem [resolvable:$false] %s276_s22 }
  0x39   : > { %s278_s23 = scalar_lea.vmem %s277_s22, 256  ;;  %p279_p12 = scmp.lt.s32.totalorder %s437_s11, %s277_s22 }
  0x3a   : > { %p274_p9 = pnand %p273_p5, %p494_p6  ;;  %p280_p2 = scmp.lt.s32.totalorder %s278_s23, %s272_s21 }
  0x3c   : > { %p275_p10 = pneg %p274_p9  ;;  %p281_p3 = por %p280_p2, %p279_p12 }
  0x3e   : > { %p282_p4 = pnand %p281_p3, %p275_p10 }
  0x40   : > { %285 = shalt.err (!%p282_p4)
}
  0x41   : > { %s286_s24 = scalar_lea.hbm %s442_s19, 128  ;;  %s290_s27 = scalar_lea.hbm %s483_s1, 256 }
  0x42   : > { %p287_p7 = scmp.ne.s32.totalorder %s442_s19, %s286_s24  ;;  %p291_p13 = scmp.lt.u32.totalorder %s442_s19, %s483_s1 }
  0x43   : > { %p292_p1 = scmp.lt.u32.totalorder %s290_s27, %s286_s24  ;;  %p294_p5 = scmp.lt.u32.totalorder %s286_s24, %s442_s19 }
  0x44   : > { %p288_p8 = pnand %p287_p7, %p494_p6 }
  0x45   : > { %p293_p0 = por %p292_p1, %p291_p13 }
  0x46   : > { %p289_p11 = pneg %p288_p8 }
  0x47   : > { %p295_p9 = por %p294_p5, %p293_p0 }
  0x49   : > { %p296_p10 = pnand %p295_p9, %p289_p11 }
  0x4b   : > { %299 = shalt.err (!%p296_p10)
}
  0x4c   : > { %198 = dma.vmem_to_hbm [thread:$0]  (%p494_p6), %s437_s11, 128, %s442_s19, %s112_s20  }
  0x4d PF: > { %p210_p12 = scmp.ge.s32.totalorder %s338_s9, 2  ;;  %s137_s30 = sand.u32 1, %s326_s6  }
  0x4e   : > { %p495_p2 = scmp.ne.s32.totalorder %s488_s17, 0  ;;  %s138_s2 = scalar_lea.sflag [#allocation4], %s137_s30 }
  0x50   : > { %p205_p3 = pnand %p210_p12, %p495_p2 }
  0x52   : > { %321 = dma.done.wait (!%p205_p3), %s138_s2, 128  }
  0x53   : > { %323 = vsyncadd (!%p205_p3), %s138_s2, 4294967168  ;;  %p12_p4 = scmp.ge.s32.totalorder %s377_s12, 4   ;;  %s496_s6 = smov %s330_s7 }
  0x54   : > { %s497_s7 = smov %s334_s8  ;;  %s498_s8 = smov %s388_s15 }
  0x55   : > { %s499_s9 = smov %s377_s12  ;;  %14 = sbr.rel (!%p12_p4) target bundleno = 4 (0x4), region = 61 }
  0x5c   :  { %143 = vsyncpa [#allocation3], 1 }
  0x5d   :  { %145 = vsyncpa [#allocation3 + $0x1], 1 }
  0x5e   :  { %146 = vsyncpa [#allocation4], 1 }
  0x5f   :  { %148 = vsyncpa [#allocation4 + $0x1], 1 }

// kernel: guard_gcn_forward.8
= control target key start
LH: loop header
LB: loop body
LE: loop exit
PB: predicated region body
PF: predicated region fallthrough
CT: control target
= control target key end

     0   :  { %9 = vsyncpa [#allocation3], 0  ;;  %s1661_s0 = inlined_call_operand.hbm [shape: f32[384,128], index: 0, kind: input, shape index: {}]   ;;  %s1662_s1 = inlined_call_operand.hbm [shape: bf16[128,128], index: 1, kind: input, shape index: {}]   ;;  %s1663_s2 = inlined_call_operand.hbm [shape: bf16[384,128], index: 2, kind: output, shape index: {0}]   ;;  %s1664_s3 = inlined_call_operand.hbm [shape: f32[384,128], index: 3, kind: output, shape index: {1}]  }
   0x1   :  { %11 = vsyncpa [#allocation3 + $0x1], 0 }
   0x2   :  { %12 = vsyncpa [#allocation6], 0 }
   0x3   :  { %13 = vsyncpa [#allocation4], 0 }
   0x4   :  { %15 = vsyncpa [#allocation4 + $0x1], 0 }
   0x5   :  { %16 = vsyncpa [#allocation9], 0 }
   0x6   :  { %18 = vsyncpa [#allocation9 + $0x1], 0  ;;  %s1256_s12 = smov 0   ;;  %s1258_s13 = smov 0  }
   0x7   :  { %s1260_s14 = smov 0   ;;  %s1262_s15 = smov 0  }
   0x8 LB: > { %s1277_s16 = sadd.s32 4294967295, %s1222_s15   ;;  %s778_s17 = sadd.s32 4294967294, %s1222_s15   ;;  %s1222_s15 = sphi %s1262_s15, %s1683_s15   ;;  %s1218_s14 = sphi %s1260_s14, %s1682_s14   ;;  %s1214_s13 = sphi %s1258_s13, %s1681_s13   ;;  %s1210_s12 = sphi %s1256_s12, %s1680_s12  }
   0x9   : > { %p44_p0 = scmp.ne.s32.totalorder %s1214_s13, %s1210_s12  ;;  %p1665_p1 = scmp.eq.s32.totalorder %s1277_s16, 0 }
   0xa   : > { %p95_p3 = scmp.eq.s32.totalorder %s778_s17, 2  ;;  %p779_p5 = scmp.ge.s32.totalorder %s1222_s15, 1 }
   0xb   : > { %p1286_p4 = por %p1665_p1, %p44_p0  ;;  %p128_p7 = scmp.lt.s32.totalorder %s1222_s15, 4 }
   0xc   : > { %p1291_p6 = por %p95_p3, %p44_p0  ;;  %s1224_s21 = smov [#allocation5]  }
   0xd   : > { %s1668_s18 = scalar_select %p1286_p4, 1, 0 }
   0xe   : > { %s1669_s19 = scalar_select %p1291_p6, 1, 0 }
   0xf   : > { %p1296_p8 = pnand %p779_p5, %p128_p7  ;;  %s140_s22 = sshll.u32 %s1224_s21, 4  ;;  %s141_s22 = int_to_ptr.vmem [resolvable:$true] %s140_s22 }
  0x10   : > { %s1309_s24 = sadd.s32 1, %s1222_s15   ;;  %s31_s25 = sadd.s32 1, %s1218_s14 }
  0x11   : > { %s1670_s20 = scalar_select %p1296_p8, 1, 0 }
  0x12   : > { %p962_p9 = pneg %p1296_p8  ;;  %s28_s26 = ssub.s32 %s1222_s15, %s1309_s24 }
  0x13   : > { %s1062_s29 = scalar_lea.hbm %s1662_s1, 1024 }
  0x14   : > { %p1304_p10 = pnand %p962_p9, %p1665_p1  ;;  %p1063_p11 = scmp.ne.s32.totalorder %s1662_s1, %s1062_s29 }
  0x15   : > { %p1069_p3 = scmp.lt.u32.totalorder %s1062_s29, %s1662_s1 }
  0x16   : > { %p1064_p12 = pneg %p1304_p10 }
  0x18   : > { %p1065_p13 = pnand %p1064_p12, %p1063_p11 }
  0x1a   : > { %p1066_p0 = pneg %p1065_p13 }
  0x1c   : > { %p1071_p5 = pnand %p1069_p3, %p1066_p0 }
  0x1e   : > { %1074 = shalt.err (!%p1071_p5)
}
  0x1f   : > { %s1075_s7 = scalar_lea.vmem %s141_s22, 1024  ;;  %p1083_p2 = scmp.lt.s32.totalorder %s141_s22, %s141_s22 }
  0x20   : > { %p1076_p7 = scmp.ne.s32.totalorder %s141_s22, %s1075_s7  ;;  %p1084_p6 = scmp.lt.s32.totalorder %s1075_s7, %s1075_s7 }
  0x22   : > { %p1078_p9 = pnand %p1076_p7, %p1064_p12  ;;  %p1085_p4 = por %p1084_p6, %p1083_p2 }
  0x24   : > { %p1079_p1 = pneg %p1078_p9 }
  0x26   : > { %p1086_p8 = pnand %p1085_p4, %p1079_p1 }
  0x28   : > { %1089 = shalt.err (!%p1086_p8)
}
  0x29   : > { %s1225_s8 = smov 64   ;;  %s1226_s9 = smov 4  }
  0x2a   : > { %965 = dma.hbm_to_vmem [thread:$0]  (!%p1304_p10), %s1662_s1, 1024, %s141_s22, [#allocation6], %s1225_s8, %s1225_s8, %s1226_s9  }
  0x2b   : > { %p29_p11 = scmp.eq.s32.totalorder %s28_s26, 0  ;;  %p38_p2 = scmp.ne.s32.totalorder %s1218_s14, %s1214_s13 }
  0x2c   : > { %p39_p1 = scmp.eq.s32.totalorder %s1222_s15, 0  ;;  %p978_p4 = scmp.lt.s32.totalorder %s1222_s15, 3 }
  0x2d   : > { %s1335_s17 = scalar_select %p29_p11, %s1218_s14, %s31_s25  }
  0x2e   : > { %p40_p6 = por %p39_p1, %p38_p2  ;;  %p1672_p8 = scmp.eq.s32.totalorder %s1277_s16, 2 }
  0x2f   : > { %s154_s27 = sand.u32 1, %s1218_s14   ;;  %s822_s28 = sshll.u32 %s1222_s15, 11 }
  0x30   : > { %p1339_p12 = por %p1672_p8, %p38_p2  ;;  %s782_s29 = sshll.u32 %s154_s27, 7 }
  0x31   : > { %s1348_s4 = scalar_lea.hbm %s1661_s0, %s822_s28  ;;  %s158_s22 = scalar_lea.vmem [#allocation2], %s782_s29 }
  0x32   : > { %s165_s25 = sshll.u32 %s158_s22, 4  ;;  %p1350_p10 = pnand %p978_p4, %p40_p6  ;;  %s1354_s25 = int_to_ptr.vmem [resolvable:$true] %s165_s25 }
  0x33   : > { %s1356_s5 = scalar_lea.sflag [#allocation3], %s154_s27  ;;  %s1090_s6 = scalar_lea.hbm %s1348_s4, 2048 }
  0x34   : > { %p1091_p13 = scmp.ne.s32.totalorder %s1348_s4, %s1090_s6  ;;  %p1092_p0 = pneg %p1350_p10 }
  0x35   : > { %s1095_s9 = scalar_lea.hbm %s1661_s0, 6144  ;;  %p1096_p7 = scmp.lt.u32.totalorder %s1348_s4, %s1661_s0 }
  0x36   : > { %p1093_p3 = pnand %p1092_p0, %p1091_p13  ;;  %p1097_p9 = scmp.lt.u32.totalorder %s1095_s9, %s1090_s6 }
  0x37   : > { %p1099_p2 = scmp.lt.u32.totalorder %s1090_s6, %s1348_s4 }
  0x38   : > { %p1094_p5 = pneg %p1093_p3  ;;  %p1098_p11 = por %p1097_p9, %p1096_p7 }
  0x3a   : > { %p1100_p1 = por %p1099_p2, %p1098_p11 }
  0x3c   : > { %p1101_p4 = pnand %p1100_p1, %p1094_p5 }
  0x3e   : > { %1104 = shalt.err (!%p1101_p4)
}
  0x3f   : > { %s1105_s27 = scalar_lea.vmem %s1354_s25, 2048  ;;  %s1227_s28 = smov [#allocation2]  }
  0x40   : > { %p1106_p6 = scmp.ne.s32.totalorder %s1354_s25, %s1105_s27  ;;  %s1110_s29 = sshll.u32 %s1227_s28, 4  ;;  %s1111_s29 = int_to_ptr.vmem [resolvable:$false] %s1110_s29 }
  0x41   : > { %s1112_s23 = scalar_lea.vmem %s1111_s29, 4096  ;;  %p1113_p3 = scmp.lt.s32.totalorder %s1354_s25, %s1111_s29 }
  0x42   : > { %p1108_p8 = pnand %p1106_p6, %p1092_p0  ;;  %p1114_p7 = scmp.lt.s32.totalorder %s1112_s23, %s1105_s27 }
  0x44   : > { %p1109_p13 = pneg %p1108_p8  ;;  %p1115_p9 = por %p1114_p7, %p1113_p3 }
  0x46   : > { %p1116_p11 = pnand %p1115_p9, %p1109_p13 }
  0x48   : > { %1119 = shalt.err (!%p1116_p11)
}
  0x49   : > { %s1228_s30 = smov 128   ;;  %s1229_s22 = smov 8  }
  0x4a   : > { %969 = dma.hbm_to_vmem [thread:$0]  (!%p1350_p10), %s1348_s4, 2048, %s1354_s25, %s1356_s5, %s1228_s30, %s1228_s30, %s1229_s22  }
  0x4b   : > { %p1675_p0 = scmp.ne.s32.totalorder %s1670_s20, 0 }
  0x4c   : > { %s1387_s6 = sand.u32 (!%p1675_p0), 1, %s1214_s13   ;;  %p1676_p5 = scmp.ne.s32.totalorder (!%p1675_p0), %s1668_s18, 0 }
  0x4d   : > { %177 = sbr.rel (%p1675_p0) target bundleno = 359 (0x167), region = 28  ;;  %s786_s7 = sshll.u32 (!%p1675_p0), %s1387_s6, 7 }
  0x4e   : > { %s180_s8 = scalar_lea.sflag (!%p1675_p0), [#allocation3], %s1387_s6  ;;  %s1393_s9 = scalar_lea.vmem (!%p1675_p0), [#allocation2], %s786_s7 }
  0x54   : > { %1193 = dma.done.wait (%p1676_p5), %s180_s8, 2048  }
  0x55   : > { %1195 = vsyncadd (%p1676_p5), %s180_s8, 4294965248  ;;  %p1677_p10 = scmp.eq.s32.totalorder %s1277_s16, 0 }
  0x57   : > { %1197 = dma.done.wait (%p1677_p10), [#allocation6], 1024   ;;  %p1678_p2 = pmov %p1677_p10 }
  0x58   : > { %v1022_v0 = vld [vmem:[#allocation5] sm:$0xff]   ;;  %v1023_v1 = vld [vmem:[#allocation5 + $0x8] sm:$0xff]   ;;  %v1024_v2 = vld [vmem:[#allocation5 + $0x10] sm:$0xff]   ;;  %s788_s18 = sshll.u32 %s1387_s6, 6  ;;  %s839_s4 = sshll.u32 %s1277_s16, 10 }
  0x59   : > { %1199 = vsyncadd (%p1678_p2), [#allocation6], 4294966272  ;;  %904 = vmatprep.subr.bf16.mxu0 %v1022_v0  ;;  %936 = vmatprep.subr.bf16.mxu1 %v1022_v0  ;;  %v1025_v3 = vld [vmem:[#allocation5 + $0x18] sm:$0xff]   ;;  %v1404_v4 = vld [vmem:[%s1393_s9] sm:$0xff]  ;;  %s1519_s20 = scalar_lea.vmem [#allocation7], %s788_s18  ;;  %s1562_s10 = scalar_lea.hbm %s1663_s2, %s839_s4 }
  0x5a   : > { %905 = vmatpush3.bf16.msra.mxu0 %v1022_v0  ;;  %944 = vmatpush3.bf16.msra.mxu1 %v1022_v0  ;;  %v1407_v5 = vld [vmem:[%s1393_s9 + $0x8] sm:$0xff]  ;;  %v1410_v6 = vld [vmem:[%s1393_s9 + $0x40] sm:$0xff]  ;;  %v1418_v9 = vld [vmem:[%s1393_s9 + $0x10] sm:$0xff]  ;;  %v235_v12 = vmul.f32 %v1404_v4, %v1404_v4  ;;  %s647_s25 = sshll.u32 %s1519_s20, 4  ;;  %s629_s11 = scalar_lea.sflag [#allocation4], %s1387_s6  ;;  %s1564_s25 = int_to_ptr.vmem [resolvable:$true] %s647_s25 }
  0x5b   : > { %906 = vmatprep.subr.bf16.mxu0 %v1023_v1  ;;  %937 = vmatprep.subr.bf16.mxu1 %v1023_v1  ;;  %v443_v7 = vpack.c.bf16 %v1407_v5, %v1404_v4  ;;  %v1415_v8 = vld [vmem:[%s1393_s9 + $0x48] sm:$0xff]  ;;  %v237_v11 = vmul.f32 %v1418_v9, %v1418_v9  ;;  %v1026_v13 = vld [vmem:[#allocation5 + $0x20] sm:$0xff]   ;;  %v1427_v14 = vld [vmem:[%s1393_s9 + $0x18] sm:$0xff]  ;;  %v236_v16 = vmul.f32 %v1407_v5, %v1407_v5  ;;  %s1120_s27 = scalar_lea.vmem %s1564_s25, 1024  ;;  %s1230_s28 = smov [#allocation7]  }
  0x5c   : > { %v447_v10 = vpack.c.bf16 %v1415_v8, %v1410_v6  ;;  %251 = vadd.xlane.f32.xlu0 %v235_v12  ;;  %v238_v15 = vmul.f32 %v1427_v14, %v1427_v14  ;;  %v1027_v17 = vld [vmem:[#allocation5 + $0x28] sm:$0xff]   ;;  %v1434_v18 = vld [vmem:[%s1393_s9 + $0x20] sm:$0xff]  ;;  %v1028_v22 = vld [vmem:[#allocation5 + $0x30] sm:$0xff]   ;;  %v244_v28 = vmul.f32 %v1415_v8, %v1415_v8  ;;  %v243_v29 = vmul.f32 %v1410_v6, %v1410_v6  ;;  %p1121_p1 = scmp.ne.s32.totalorder %s1564_s25, %s1120_s27  ;;  %s1124_s29 = sshll.u32 %s1230_s28, 4  ;;  %s1125_s29 = int_to_ptr.vmem [resolvable:$false] %s1124_s29 }
  0x5d   : > { %920 = vmatprep.mubr.bf16.mxu0 %v443_v7  ;;  %255 = vadd.xlane.f32.xlu1 %v237_v11  ;;  %v1437_v19 = vld [vmem:[%s1393_s9 + $0x28] sm:$0xff]  ;;  %v239_v21 = vmul.f32 %v1434_v18, %v1434_v18  ;;  %v1444_v23 = vld [vmem:[%s1393_s9 + $0x30] sm:$0xff]  ;;  %v1447_v24 = vld [vmem:[%s1393_s9 + $0x38] sm:$0xff]  ;;  %v444_v34 = vpack.c.bf16 %v1427_v14, %v1418_v9  ;;  %s1126_s23 = scalar_lea.vmem %s1125_s29, 2048  ;;  %p1127_p8 = scmp.lt.s32.totalorder %s1564_s25, %s1125_s29 }
  0x5e   : > { %907 = vmatpush3.bf16.msra.mxu0 %v1023_v1  ;;  %945 = vmatpush3.bf16.msra.mxu1 %v1023_v1  ;;  %v240_v20 = vmul.f32 %v1437_v19, %v1437_v19  ;;  %v242_v25 = vmul.f32 %v1447_v24, %v1447_v24  ;;  %v241_v26 = vmul.f32 %v1444_v23, %v1444_v23  ;;  %v1029_v27 = vld [vmem:[#allocation5 + $0x38] sm:$0xff]   ;;  %v1458_v30 = vld [vmem:[%s1393_s9 + $0x50] sm:$0xff]  ;;  %v1464_v32 = vld [vmem:[%s1393_s9 + $0x60] sm:$0xff]  ;;  %p1122_p4 = pnand %p1121_p1, %p1339_p12  ;;  %p1128_p13 = scmp.lt.s32.totalorder %s1126_s23, %s1120_s27 }
  0x5f   : > { %908 = vmatprep.subr.bf16.mxu0 %v1024_v2  ;;  %938 = vmatprep.subr.bf16.mxu1 %v1024_v2  ;;  %v1461_v31 = vld [vmem:[%s1393_s9 + $0x58] sm:$0xff]  ;;  %v1467_v33 = vld [vmem:[%s1393_s9 + $0x68] sm:$0xff]  ;;  %v445_v36 = vpack.c.bf16 %v1437_v19, %v1434_v18  ;;  %v245_v39 = vmul.f32 %v1458_v30, %v1458_v30  ;;  %v1482_v40 = vld [vmem:[%s1393_s9 + $0x70] sm:$0xff]  ;;  %v247_v43 = vmul.f32 %v1464_v32, %v1464_v32 }
  0x60   : > { %928 = vmatprep.mubr.bf16.mxu1 %v447_v10  ;;  %253 = vadd.xlane.f32.xlu0 %v236_v16  ;;  %v448_v35 = vpack.c.bf16 %v1461_v31, %v1458_v30  ;;  %v449_v37 = vpack.c.bf16 %v1467_v33, %v1464_v32  ;;  %v246_v38 = vmul.f32 %v1461_v31, %v1461_v31  ;;  %v1485_v41 = vld [vmem:[%s1393_s9 + $0x78] sm:$0xff]  ;;  %p1123_p6 = pneg %p1122_p4  ;;  %p1129_p3 = por %p1128_p13, %p1127_p8 }
  0x61   : > { %257 = vadd.xlane.f32.xlu1 %v238_v15  ;;  %v248_v42 = vmul.f32 %v1467_v33, %v1467_v33  ;;  %v446_v44 = vpack.c.bf16 %v1447_v24, %v1444_v23  ;;  %v450_v45 = vpack.c.bf16 %v1485_v41, %v1482_v40  ;;  %v250_v46 = vmul.f32 %v1485_v41, %v1485_v41 }
  0x62   : > { %909 = vmatpush3.bf16.msra.mxu0 %v1024_v2  ;;  %946 = vmatpush3.bf16.msra.mxu1 %v1024_v2  ;;  %v249_v47 = vmul.f32 %v1482_v40, %v1482_v40  ;;  %p1130_p7 = pnand %p1129_p3, %p1123_p6 }
  0x63   : > { %910 = vmatprep.subr.bf16.mxu0 %v1025_v3  ;;  %939 = vmatprep.subr.bf16.mxu1 %v1025_v3 }
  0x64   : > { %259 = vadd.xlane.f32.xlu0 %v239_v21 }
  0x65   : > { %261 = vadd.xlane.f32.xlu1 %v240_v20 }
  0x66   : > { %911 = vmatpush3.bf16.msra.mxu0 %v1025_v3  ;;  %947 = vmatpush3.bf16.msra.mxu1 %v1025_v3 }
  0x67   : > { %912 = vmatprep.subr.bf16.mxu0 %v1026_v13  ;;  %940 = vmatprep.subr.bf16.mxu1 %v1026_v13 }
  0x68   : > { %263 = vadd.xlane.f32.xlu0 %v241_v26 }
  0x69   : > { %265 = vadd.xlane.f32.xlu1 %v242_v25 }
  0x6a   : > { %913 = vmatpush3.bf16.msra.mxu0 %v1026_v13  ;;  %948 = vmatpush3.bf16.msra.mxu1 %v1026_v13 }
  0x6b   : > { %914 = vmatprep.subr.bf16.mxu0 %v1027_v17  ;;  %941 = vmatprep.subr.bf16.mxu1 %v1027_v17 }
  0x6c   : > { %267 = vadd.xlane.f32.xlu0 %v243_v29 }
  0x6d   : > { %269 = vadd.xlane.f32.xlu1 %v244_v28 }
  0x6e   : > { %915 = vmatpush3.bf16.msra.mxu0 %v1027_v17  ;;  %949 = vmatpush3.bf16.msra.mxu1 %v1027_v17 }
  0x6f   : > { %916 = vmatprep.subr.bf16.mxu0 %v1028_v22  ;;  %942 = vmatprep.subr.bf16.mxu1 %v1028_v22 }
  0x70   : > { %271 = vadd.xlane.f32.xlu0 %v245_v39 }
  0x71   : > { %273 = vadd.xlane.f32.xlu1 %v246_v38 }
  0x72   : > { %917 = vmatpush3.bf16.msra.mxu0 %v1028_v22  ;;  %950 = vmatpush3.bf16.msra.mxu1 %v1028_v22 }
  0x73   : > { %918 = vmatprep.subr.bf16.mxu0 %v1029_v27  ;;  %943 = vmatprep.subr.bf16.mxu1 %v1029_v27 }
  0x74   : > { %275 = vadd.xlane.f32.xlu0 %v247_v43 }
  0x75   : > { %277 = vadd.xlane.f32.xlu1 %v248_v42 }
  0x76   : > { %919 = vmatpush3.bf16.msra.mxu0 %v1029_v27  ;;  %951 = vmatpush3.bf16.msra.mxu1 %v1029_v27 }
  0x78   : > { %279 = vadd.xlane.f32.xlu0 %v249_v47 }
  0x79   : > { %921 = vmatmul.mubr.bf16.vlgmr.msra.gmra.mrb[0].mxu0 %v444_v34  ;;  %929 = vmatmul.mubr.bf16.vlgmr.msra.gmra.mrb[0].mxu1 %v448_v35 }
  0x7a   : > { %924 = vmatprep.mubr.bf16.mxu0 %v445_v36  ;;  %932 = vmatprep.mubr.bf16.mxu1 %v449_v37 }
  0x7b   : > { %281 = vadd.xlane.f32.xlu1 %v250_v46 }
  0x81   : > { %925 = vmatmul.mubr.bf16.gmra.mrb[4].mxu0 %v446_v44  ;;  %933 = vmatmul.mubr.bf16.gmra.mrb[4].mxu1 %v450_v45 }
  0xe9   : > { %v252_v49 = vpop.xlane.xlu0 %251 }
  0xea   : > { %v256_v48 = vpop.xlane.xlu1 %255  ;;  %vm283_vm1 = vcmp.gt.f32.partialorder %v252_v49, 0.0 }
  0xeb   : > { %vm285_vm0 = vcmp.gt.f32.partialorder %v256_v48, 0.0  ;;  %v299_v51 = vsel %vm283_vm1, %v252_v49, 1.0 }
  0xec   : > { %v301_v50 = vsel %vm285_vm0, %v256_v48, 1.0 }
  0xed   : > { %1030 = vrsqrt.f32 %v301_v50  ;;  %v254_v53 = vpop.xlane.xlu0 %253 }
  0xee   : > { %1032 = vrsqrt.f32 %v299_v51  ;;  %v258_v52 = vpop.xlane.xlu1 %257  ;;  %vm284_vm3 = vcmp.gt.f32.partialorder %v254_v53, 0.0 }
  0xef   : > { %vm286_vm2 = vcmp.gt.f32.partialorder %v258_v52, 0.0  ;;  %v300_v55 = vsel %vm284_vm3, %v254_v53, 1.0 }
  0xf0   : > { %v302_v54 = vsel %vm286_vm2, %v258_v52, 1.0 }
  0xf1   : > { %1034 = vrsqrt.f32 %v302_v54  ;;  %v260_v57 = vpop.xlane.xlu0 %259 }
  0xf2   : > { %1036 = vrsqrt.f32 %v300_v55  ;;  %v262_v56 = vpop.xlane.xlu1 %261  ;;  %vm287_vm5 = vcmp.gt.f32.partialorder %v260_v57, 0.0 }
  0xf3   : > { %vm288_vm4 = vcmp.gt.f32.partialorder %v262_v56, 0.0  ;;  %v303_v59 = vsel %vm287_vm5, %v260_v57, 1.0 }
  0xf4   : > { %v304_v58 = vsel %vm288_vm4, %v262_v56, 1.0 }
  0xf5   : > { %1038 = vrsqrt.f32 %v304_v58  ;;  %v264_v61 = vpop.xlane.xlu0 %263 }
  0xf6   : > { %1040 = vrsqrt.f32 %v303_v59  ;;  %v266_v60 = vpop.xlane.xlu1 %265  ;;  %vm289_vm7 = vcmp.gt.f32.partialorder %v264_v61, 0.0 }
  0xf7   : > { %v1031_v62 = vpop.eup %1030  ;;  %vm290_vm6 = vcmp.gt.f32.partialorder %v266_v60, 0.0  ;;  %v305_v2 = vsel %vm289_vm7, %v264_v61, 1.0 }
  0xf8   : > { %v1033_v63 = vpop.eup %1032  ;;  %v333_v0 = vsel %vm285_vm0, %v1031_v62, 0.0  ;;  %v306_v1 = vsel %vm290_vm6, %v266_v60, 1.0 }
  0xf9   : > { %v331_v3 = vsel %vm283_vm1, %v1033_v63, 0.0  ;;  %1042 = vrsqrt.f32 %v306_v1  ;;  %v268_v10 = vpop.xlane.xlu0 %267  ;;  %v349_v12 = vmul.f32 %v333_v0, %v1418_v9 }
  0xfa   : > { %1044 = vrsqrt.f32 %v305_v2  ;;  %v270_v7 = vpop.xlane.xlu1 %269  ;;  %vm291_vm9 = vcmp.gt.f32.partialorder %v268_v10, 0.0  ;;  %v347_v15 = vmul.f32 %v331_v3, %v1404_v4 }
  0xfb   : > { %v1035_v11 = vpop.eup %1034  ;;  %vm292_vm8 = vcmp.gt.f32.partialorder %v270_v7, 0.0  ;;  %v307_v20 = vsel %vm291_vm9, %v268_v10, 1.0 }
  0xfc   : > { %v1037_v13 = vpop.eup %1036  ;;  %v334_v16 = vsel %vm286_vm2, %v1035_v11, 0.0  ;;  %v308_v17 = vsel %vm292_vm8, %v270_v7, 1.0 }
  0xfd   : > { %v350_v21 = vmul.f32 %v334_v16, %v1427_v14  ;;  %v332_v22 = vsel %vm284_vm3, %v1037_v13, 0.0  ;;  %1046 = vrsqrt.f32 %v308_v17  ;;  %v272_v34 = vpop.xlane.xlu0 %271 }
  0xfe   : > { %v348_v25 = vmul.f32 %v332_v22, %v1407_v5  ;;  %1048 = vrsqrt.f32 %v307_v20  ;;  %v274_v29 = vpop.xlane.xlu1 %273  ;;  %vm293_vm11 = vcmp.gt.f32.partialorder %v272_v34, 0.0 }
  0xff   : > { %v1039_v9 = vpop.eup %1038  ;;  %v849_v26 = vpack.c.bf16 %v350_v21, %v349_v12  ;;  %vm294_vm10 = vcmp.gt.f32.partialorder %v274_v29, 0.0  ;;  %v309_v37 = vsel %vm293_vm11, %v272_v34, 1.0 }
 0x100   : > { %v1041_v27 = vpop.eup %1040  ;;  %v844_v28 = vpack.c.bf16 %v348_v25, %v347_v15  ;;  %v336_v4 = vsel %vm288_vm4, %v1039_v9, 0.0  ;;  %v310_v36 = vsel %vm294_vm10, %v274_v29, 1.0 }
 0x101   : > { %881 = vst [vmem:[%s1519_s20 + $0x8] sm:$0xff] %v849_v26   ;;  %v352_v14 = vmul.f32 %v336_v4, %v1437_v19  ;;  %v335_v35 = vsel %vm287_vm5, %v1041_v27, 0.0  ;;  %1050 = vrsqrt.f32 %v310_v36  ;;  %v276_v44 = vpop.xlane.xlu0 %275 }
 0x102   : > { %845 = vst [vmem:[%s1519_s20] sm:$0xff] %v844_v28   ;;  %v351_v5 = vmul.f32 %v335_v35, %v1434_v18  ;;  %1052 = vrsqrt.f32 %v309_v37  ;;  %v278_v19 = vpop.xlane.xlu1 %277  ;;  %vm295_vm13 = vcmp.gt.f32.partialorder %v276_v44, 0.0 }
 0x103   : > { %v1043_v38 = vpop.eup %1042  ;;  %vm296_vm12 = vcmp.gt.f32.partialorder %v278_v19, 0.0  ;;  %v311_v48 = vsel %vm295_vm13, %v276_v44, 1.0 }
 0x104   : > { %v1045_v39 = vpop.eup %1044  ;;  %v854_v42 = vpack.c.bf16 %v352_v14, %v351_v5  ;;  %v338_v43 = vsel %vm290_vm6, %v1043_v38, 0.0  ;;  %v312_v47 = vsel %vm296_vm12, %v278_v19, 1.0 }
 0x105   : > { %v354_v45 = vmul.f32 %v338_v43, %v1447_v24  ;;  %v337_v46 = vsel %vm289_vm7, %v1045_v39, 0.0  ;;  %1054 = vrsqrt.f32 %v312_v47  ;;  %v280_v53 = vpop.xlane.xlu0 %279 }
 0x106   : > { %882 = vst [vmem:[%s1519_s20 + $0x10] sm:$0xff] %v854_v42   ;;  %v353_v18 = vmul.f32 %v337_v46, %v1444_v23  ;;  %1056 = vrsqrt.f32 %v311_v48  ;;  %vm297_vm15 = vcmp.gt.f32.partialorder %v280_v53, 0.0 }
 0x107   : > { %v1047_v49 = vpop.eup %1046  ;;  %v313_v57 = vsel %vm297_vm15, %v280_v53, 1.0 }
 0x108   : > { %v1049_v50 = vpop.eup %1048  ;;  %v859_v51 = vpack.c.bf16 %v354_v45, %v353_v18  ;;  %v340_v52 = vsel %vm292_vm8, %v1047_v49, 0.0  ;;  %v282_v24 = vpop.xlane.xlu1 %281 }
 0x109   : > { %v356_v54 = vmul.f32 %v340_v52, %v1415_v8  ;;  %v339_v55 = vsel %vm291_vm9, %v1049_v50, 0.0  ;;  %vm298_vm14 = vcmp.gt.f32.partialorder %v282_v24, 0.0 }
 0x10a   : > { %883 = vst [vmem:[%s1519_s20 + $0x18] sm:$0xff] %v859_v51   ;;  %v355_v23 = vmul.f32 %v339_v55, %v1410_v6  ;;  %v314_v56 = vsel %vm298_vm14, %v282_v24, 1.0 }
 0x10b   : > { %1058 = vrsqrt.f32 %v314_v56  ;;  %v1051_v59 = vpop.eup %1050 }
 0x10c   : > { %v864_v58 = vpack.c.bf16 %v356_v54, %v355_v23  ;;  %1060 = vrsqrt.f32 %v313_v57  ;;  %v1053_v60 = vpop.eup %1052  ;;  %v342_v8 = vsel %vm294_vm10, %v1051_v59, 0.0 }
 0x10d   : > { %v358_v61 = vmul.f32 %v342_v8, %v1461_v31  ;;  %v341_v62 = vsel %vm293_vm11, %v1053_v60, 0.0 }
 0x10e   : > { %884 = vst [vmem:[%s1519_s20 + $0x20] sm:$0xff] %v864_v58   ;;  %v357_v6 = vmul.f32 %v341_v62, %v1458_v30 }
 0x10f   : > { %v1055_v63 = vpop.eup %1054 }
 0x110   : > { %v1057_v0 = vpop.eup %1056  ;;  %v869_v1 = vpack.c.bf16 %v358_v61, %v357_v6  ;;  %v344_v2 = vsel %vm296_vm12, %v1055_v63, 0.0 }
 0x111   : > { %v360_v3 = vmul.f32 %v344_v2, %v1467_v33  ;;  %v343_v7 = vsel %vm295_vm13, %v1057_v0, 0.0 }
 0x112   : > { %885 = vst [vmem:[%s1519_s20 + $0x28] sm:$0xff] %v869_v1   ;;  %v359_v31 = vmul.f32 %v343_v7, %v1464_v32 }
 0x114   : > { %v874_v12 = vpack.c.bf16 %v360_v3, %v359_v31 }
 0x115   : > { %v1059_v10 = vpop.eup %1058 }
 0x116   : > { %v1061_v11 = vpop.eup %1060  ;;  %v346_v30 = vsel %vm298_vm14, %v1059_v10, 0.0  ;;  %886 = vst [vmem:[%s1519_s20 + $0x30] sm:$0xff] %v874_v12  }
 0x117   : > { %v362_v13 = vmul.f32 %v346_v30, %v1485_v41  ;;  %v345_v15 = vsel %vm297_vm15, %v1061_v11, 0.0 }
 0x118   : > { %v361_v33 = vmul.f32 %v345_v15, %v1482_v40 }
 0x11a   : > { %v879_v32 = vpack.c.bf16 %v362_v13, %v361_v33 }
 0x11c   : > { %887 = vst [vmem:[%s1519_s20 + $0x38] sm:$0xff] %v879_v32  }
 0x11d   : > { %1133 = shalt.err (!%p1130_p7)
}
 0x11e   : > { %s1134_s30 = scalar_lea.hbm %s1562_s10, 1024  ;;  %s1138_s9 = scalar_lea.hbm %s1663_s2, 3072 }
 0x11f   : > { %p1135_p9 = scmp.ne.s32.totalorder %s1562_s10, %s1134_s30  ;;  %p1139_p5 = scmp.lt.u32.totalorder %s1562_s10, %s1663_s2 }
 0x120   : > { %p1140_p10 = scmp.lt.u32.totalorder %s1138_s9, %s1134_s30  ;;  %p1142_p1 = scmp.lt.u32.totalorder %s1134_s30, %s1562_s10 }
 0x121   : > { %p1136_p11 = pnand %p1135_p9, %p1339_p12 }
 0x122   : > { %p1141_p2 = por %p1140_p10, %p1139_p5 }
 0x123   : > { %p1137_p0 = pneg %p1136_p11 }
 0x124   : > { %p1143_p4 = por %p1142_p1, %p1141_p2 }
 0x126   : > { %p1144_p6 = pnand %p1143_p4, %p1137_p0 }
 0x128   : > { %1147 = shalt.err (!%p1144_p6)
}
 0x129   : > { %s1231_s4 = smov 64   ;;  %s1232_s26 = smov 4  }
 0x12a   : > { %958 = dma.vmem_to_hbm [thread:$0]  (%p1339_p12), %s1564_s25, 1024, %s1562_s10, %s629_s11, %s1231_s4, %s1231_s4, %s1232_s26  }
 0x12b   : > { %s1593_s5 = scalar_lea.vmem [#allocation8], %s786_s7  ;;  %s840_s7 = sshll.u32 %s1277_s16, 11 }
 0x12c   : > { %s663_s25 = sshll.u32 %s1593_s5, 4  ;;  %s1610_s27 = scalar_lea.hbm %s1664_s3, %s840_s7  ;;  %s1612_s25 = int_to_ptr.vmem [resolvable:$true] %s663_s25 }
 0x12d   : > { %s634_s16 = scalar_lea.sflag [#allocation9], %s1387_s6  ;;  %s1148_s28 = scalar_lea.vmem %s1612_s25, 2048 }
 0x12e   : > { %p1149_p8 = scmp.ne.s32.totalorder %s1612_s25, %s1148_s28  ;;  %s1233_s29 = smov [#allocation8]  }
 0x12f   : > { %s1152_s23 = sshll.u32 %s1233_s29, 4  ;;  %s1153_s23 = int_to_ptr.vmem [resolvable:$false] %s1152_s23 }
 0x130   : > { %p1150_p13 = pnand %p1149_p8, %p1339_p12  ;;  %s1154_s30 = scalar_lea.vmem %s1153_s23, 4096 }
 0x131   : > { %p1155_p7 = scmp.lt.s32.totalorder %s1612_s25, %s1153_s23  ;;  %p1156_p9 = scmp.lt.s32.totalorder %s1154_s30, %s1148_s28 }
 0x132   : > { %p1151_p3 = pneg %p1150_p13 }
 0x133   : > { %p1157_p11 = por %p1156_p9, %p1155_p7 }
 0x135   : > { %p1158_p0 = pnand %p1157_p11, %p1151_p3 }
 0x14c   : > { %v922_v40 = vpop.f32.mrb[0].mxu0  ;;  %v930_v41 = vpop.f32.mrb[0].mxu1 }
 0x14d   : > { %614 = vst [vmem:[%s1593_s5 + $0x10] sm:$0xff] %v922_v40  ;;  %622 = vst [vmem:[%s1593_s5 + $0x50] sm:$0xff] %v930_v41  ;;  %v549_v16 = vpop.f32.mrb[1].mxu0  ;;  %v581_v17 = vpop.f32.mrb[1].mxu1 }
 0x14e   : > { %612 = vst [vmem:[%s1593_s5] sm:$0xff] %v549_v16  ;;  %620 = vst [vmem:[%s1593_s5 + $0x40] sm:$0xff] %v581_v17  ;;  %v923_v20 = vpop.f32.mrb[2].mxu0  ;;  %v931_v21 = vpop.f32.mrb[2].mxu1 }
 0x14f   : > { %615 = vst [vmem:[%s1593_s5 + $0x18] sm:$0xff] %v923_v20  ;;  %623 = vst [vmem:[%s1593_s5 + $0x58] sm:$0xff] %v931_v21  ;;  %v552_v22 = vpop.f32.mrb[3].mxu0  ;;  %v584_v25 = vpop.f32.mrb[3].mxu1 }
 0x150   : > { %613 = vst [vmem:[%s1593_s5 + $0x8] sm:$0xff] %v552_v22  ;;  %621 = vst [vmem:[%s1593_s5 + $0x48] sm:$0xff] %v584_v25 }
 0x154   : > { %v926_v9 = vpop.f32.mrb[4].mxu0  ;;  %v934_v26 = vpop.f32.mrb[4].mxu1 }
 0x155   : > { %618 = vst [vmem:[%s1593_s5 + $0x30] sm:$0xff] %v926_v9  ;;  %626 = vst [vmem:[%s1593_s5 + $0x70] sm:$0xff] %v934_v26  ;;  %v565_v27 = vpop.f32.mrb[5].mxu0  ;;  %v597_v28 = vpop.f32.mrb[5].mxu1 }
 0x156   : > { %616 = vst [vmem:[%s1593_s5 + $0x20] sm:$0xff] %v565_v27  ;;  %624 = vst [vmem:[%s1593_s5 + $0x60] sm:$0xff] %v597_v28  ;;  %v927_v4 = vpop.f32.mrb[6].mxu0  ;;  %v935_v29 = vpop.f32.mrb[6].mxu1 }
 0x157   : > { %619 = vst [vmem:[%s1593_s5 + $0x38] sm:$0xff] %v927_v4  ;;  %627 = vst [vmem:[%s1593_s5 + $0x78] sm:$0xff] %v935_v29  ;;  %v568_v34 = vpop.f32.mrb[7].mxu0  ;;  %v600_v14 = vpop.f32.mrb[7].mxu1 }
 0x158   : > { %617 = vst [vmem:[%s1593_s5 + $0x28] sm:$0xff] %v568_v34  ;;  %625 = vst [vmem:[%s1593_s5 + $0x68] sm:$0xff] %v600_v14 }
 0x159   : > { %1161 = shalt.err (!%p1158_p0)
}
 0x15a   : > { %s1162_s22 = scalar_lea.hbm %s1610_s27, 2048  ;;  %s1166_s18 = scalar_lea.hbm %s1664_s3, 6144 }
 0x15b   : > { %p1163_p5 = scmp.ne.s32.totalorder %s1610_s27, %s1162_s22  ;;  %p1167_p1 = scmp.lt.u32.totalorder %s1610_s27, %s1664_s3 }
 0x15c   : > { %p1168_p4 = scmp.lt.u32.totalorder %s1166_s18, %s1162_s22  ;;  %p1170_p8 = scmp.lt.u32.totalorder %s1162_s22, %s1610_s27 }
 0x15d   : > { %p1164_p10 = pnand %p1163_p5, %p1339_p12 }
 0x15e   : > { %p1169_p6 = por %p1168_p4, %p1167_p1 }
 0x15f   : > { %p1165_p2 = pneg %p1164_p10 }
 0x160   : > { %p1171_p13 = por %p1170_p8, %p1169_p6 }
 0x162   : > { %p1172_p3 = pnand %p1171_p13, %p1165_p2 }
 0x164   : > { %1175 = shalt.err (!%p1172_p3)
}
 0x165   : > { %s1234_s26 = smov 128   ;;  %s1235_s5 = smov 8  }
 0x166   : > { %959 = dma.vmem_to_hbm [thread:$0]  (%p1339_p12), %s1612_s25, 2048, %s1610_s27, %s634_s16, %s1234_s26, %s1234_s26, %s1235_s5  }
 0x167 PF: > { %p980_p7 = scmp.ge.s32.totalorder %s1222_s15, 2  ;;  %s678_s7 = sand.u32 1, %s1210_s12  }
 0x168   : > { %p1679_p9 = scmp.ne.s32.totalorder %s1669_s19, 0  ;;  %s679_s10 = scalar_lea.sflag [#allocation4], %s678_s7 }
 0x16a   : > { %p971_p11 = pnand %p980_p7, %p1679_p9 }
 0x16c   : > { %1201 = dma.done.wait (!%p971_p11), %s679_s10, 1024  }
 0x16d   : > { %1203 = vsyncadd (!%p971_p11), %s679_s10, 4294966272  ;;  %s688_s11 = scalar_lea.sflag [#allocation9], %s678_s7 }
 0x16e   : > { %1205 = dma.done.wait (!%p971_p11), %s688_s11, 2048  }
 0x16f   : > { %1207 = vsyncadd (!%p971_p11), %s688_s11, 4294965248  ;;  %p21_p12 = scmp.ge.s32.totalorder %s1309_s24, 5   ;;  %s1680_s12 = smov %s1214_s13 }
 0x170   : > { %s1681_s13 = smov %s1218_s14  ;;  %s1682_s14 = smov %s1335_s17 }
 0x171   : > { %s1683_s15 = smov %s1309_s24  ;;  %23 = sbr.rel (!%p21_p12) target bundleno = 8 (0x8), region = 94 }
 0x178   :  { %693 = vsyncpa [#allocation3], 1 }
 0x179   :  { %695 = vsyncpa [#allocation3 + $0x1], 1 }
 0x17a   :  { %696 = vsyncpa [#allocation6], 1 }
 0x17b   :  { %697 = vsyncpa [#allocation4], 1 }
 0x17c   :  { %699 = vsyncpa [#allocation4 + $0x1], 1 }
 0x17d   :  { %700 = vsyncpa [#allocation9], 1 }
 0x17e   :  { %702 = vsyncpa [#allocation9 + $0x1], 1 }

// kernel: guard_gcn_forward.9
= control target key start
LH: loop header
LB: loop body
LE: loop exit
PB: predicated region body
PF: predicated region fallthrough
CT: control target
= control target key end

     0   :  { %s4141_s0 = inlined_call_operand.hbm [shape: bf16[384,128], index: 0, kind: input, shape index: {}, may-alias: {0,1}]   ;;  %s4142_s1 = inlined_call_operand.hbm [shape: bf16[384,128], index: 1, kind: input, shape index: {}, may-alias: {0,1}]   ;;  %s4143_s2 = inlined_call_operand.hbm [shape: bf16[384,384], index: 2, kind: input, shape index: {}]   ;;  %s4144_s3 = inlined_call_operand.<no memory space> [shape: s32[1,1], index: 3, kind: input, shape index: {}]   ;;  %s4145_s4 = inlined_call_operand.hbm [shape: f32[384,1], index: 4, kind: output, shape index: {}]  }
   0x1   :  { %9 = sst [smem:[#allocation2]] %s4144_s3 }
   0x2   :  { %10 = vsyncpa [#allocation4], 0 }
   0x3   :  { %12 = vsyncpa [#allocation4 + $0x1], 0 }
   0x4   :  { %13 = vsyncpa [#allocation7], 0 }
   0x5   :  { %14 = vsyncpa [#allocation5], 0 }
   0x6   :  { %16 = vsyncpa [#allocation5 + $0x1], 0  ;;  %s2099_s17 = smov 0   ;;  %s2101_s18 = smov 0  }
   0x7   :  { %s2103_s19 = smov 0   ;;  %s2105_s20 = smov 0  }
   0x8 LB: > { %s2120_s3 = sadd.s32 1, %s2057_s20   ;;  %s29_s21 = sadd.s32 1, %s2053_s19  ;;  %s2057_s20 = sphi %s2105_s20, %s4709_s20   ;;  %s2053_s19 = sphi %s2103_s19, %s4708_s19   ;;  %s2049_s18 = sphi %s2101_s18, %s4707_s18   ;;  %s2045_s17 = sphi %s2099_s17, %s4706_s17  }
   0x9   : > { %s26_s22 = ssub.s32 %s2057_s20, %s2120_s3  ;;  %p36_p0 = scmp.ne.s32.totalorder %s2053_s19, %s2049_s18 }
   0xa   : > { %p27_p1 = scmp.eq.s32.totalorder %s26_s22, 0  ;;  %p37_p2 = scmp.eq.s32.totalorder %s2057_s20, 0 }
   0xb   : > { %p1787_p4 = scmp.lt.s32.totalorder %s2057_s20, 3  ;;  %s176_s24 = sand.u32 1, %s2057_s20  }
   0xc   : > { %s2129_s23 = scalar_select %p27_p1, %s2053_s19, %s29_s21  }
   0xd   : > { %p38_p3 = por %p37_p2, %p36_p0  ;;  %s178_s25 = sand.u32 1, %s2053_s19  }
   0xe   : > { %s1628_s26 = sshll.u32 %s178_s25, 6  ;;  %s1676_s27 = sshll.u32 %s2057_s20, 10 }
   0xf   : > { %s2141_s30 = scalar_lea.hbm %s4141_s0, %s1676_s27  ;;  %s180_s5 = scalar_lea.vmem [#allocation3], %s1628_s26 }
  0x10   : > { %s187_s6 = sshll.u32 %s180_s5, 4  ;;  %p2143_p5 = pnand %p1787_p4, %p38_p3  ;;  %s2147_s6 = int_to_ptr.vmem [resolvable:$true] %s187_s6 }
  0x11   : > { %s2149_s8 = smul.u32 192, %s178_s25  ;;  %s2151_s9 = scalar_lea.sflag [#allocation4], %s176_s24 }
  0x12   : > { %s1895_s10 = scalar_lea.hbm %s2141_s30, 1024  ;;  %p1897_p7 = pneg %p2143_p5 }
  0x13   : > { %p1896_p6 = scmp.ne.s32.totalorder %s2141_s30, %s1895_s10  ;;  %s1900_s13 = scalar_lea.hbm %s4141_s0, 3072 }
  0x14   : > { %p1901_p10 = scmp.lt.u32.totalorder %s2141_s30, %s4141_s0  ;;  %p1902_p11 = scmp.lt.u32.totalorder %s1900_s13, %s1895_s10 }
  0x15   : > { %p1898_p8 = pnand %p1897_p7, %p1896_p6  ;;  %p1904_p13 = scmp.lt.u32.totalorder %s1895_s10, %s2141_s30 }
  0x16   : > { %p1903_p12 = por %p1902_p11, %p1901_p10 }
  0x17   : > { %p1899_p9 = pneg %p1898_p8 }
  0x18   : > { %p1905_p1 = por %p1904_p13, %p1903_p12 }
  0x1a   : > { %p1906_p2 = pnand %p1905_p1, %p1899_p9 }
  0x1c   : > { %1909 = shalt.err (!%p1906_p2)
}
  0x1d   : > { %s1910_s16 = scalar_lea.vmem %s2147_s6, 1024  ;;  %s2059_s21 = smov [#allocation3]  }
  0x1e   : > { %p1911_p3 = scmp.ne.s32.totalorder %s2147_s6, %s1910_s16  ;;  %s1915_s22 = sshll.u32 %s2059_s21, 4  ;;  %s1916_s22 = int_to_ptr.vmem [resolvable:$false] %s1915_s22 }
  0x1f   : > { %s1917_s24 = scalar_lea.vmem %s1916_s22, 2048  ;;  %p1918_p8 = scmp.lt.s32.totalorder %s2147_s6, %s1916_s22 }
  0x20   : > { %p1913_p4 = pnand %p1911_p3, %p1897_p7  ;;  %p1919_p10 = scmp.lt.s32.totalorder %s1917_s24, %s1910_s16 }
  0x22   : > { %p1914_p6 = pneg %p1913_p4  ;;  %p1920_p11 = por %p1919_p10, %p1918_p8 }
  0x24   : > { %p1921_p12 = pnand %p1920_p11, %p1914_p6 }
  0x26   : > { %1924 = shalt.err (!%p1921_p12)
}
  0x27   : > { %s4150_s25 = smov 64   ;;  %s4151_s26 = smov 4  }
  0x28   : > { %1778 = dma.hbm_to_vmem [thread:$0]  (!%p2143_p5), %s2141_s30, 1024, %s2147_s6, %s2151_s9, %s4150_s25, %s4150_s25, %s4151_s26  }
  0x29   : > { %s2183_s27 = sadd.s32 4294967295, %s2057_s20   ;;  %s1624_s28 = sadd.s32 4294967294, %s2057_s20  }
  0x2a   : > { %p42_p9 = scmp.ne.s32.totalorder %s2049_s18, %s2045_s17  ;;  %p4146_p13 = scmp.eq.s32.totalorder %s2183_s27, 0 }
  0x2b   : > { %p134_p1 = scmp.eq.s32.totalorder %s2183_s27, 2  ;;  %p140_p2 = scmp.eq.s32.totalorder %s1624_s28, 2 }
  0x2c   : > { %p2192_p3 = por %p4146_p13, %p42_p9  ;;  %p1625_p4 = scmp.ge.s32.totalorder %s2057_s20, 1 }
  0x2d   : > { %p2200_p6 = por %p134_p1, %p36_p0  ;;  %p2204_p8 = por %p140_p2, %p42_p9 }
  0x2e   : > { %s4208_s29 = scalar_select %p2192_p3, 1, 0 }
  0x2f   : > { %s4209_s30 = scalar_select %p2200_p6, 1, 0 }
  0x30   : > { %s4210_s5 = scalar_select %p2204_p8, 1, 0 }
  0x31   : > { %p147_p10 = scmp.lt.s32.totalorder %s2057_s20, 4  ;;  %s1759_s6 = smul.u32 3072, %s2057_s20 }
  0x32   : > { %s2062_s11 = smov [#allocation6]   ;;  %s201_s16 = scalar_lea.vmem [#allocation8], %s2149_s8 }
  0x33   : > { %p2210_p11 = pnand %p1625_p4, %p147_p10  ;;  %s159_s12 = sshll.u32 %s2062_s11, 4  ;;  %s2214_s12 = int_to_ptr.vmem [resolvable:$true] %s159_s12 }
  0x34   : > { %s2219_s15 = scalar_lea.hbm %s4143_s2, %s1759_s6  ;;  %s209_s21 = sshll.u32 %s201_s16, 4  ;;  %s2224_s21 = int_to_ptr.vmem [resolvable:$true] %s209_s21 }
  0x35   : > { %s4211_s10 = scalar_select %p2210_p11, 1, 0 }
  0x36   : > { %p1771_p0 = pneg %p2210_p11  ;;  %s1925_s24 = scalar_lea.hbm %s2219_s15, 3072 }
  0x37   : > { %p1926_p9 = scmp.ne.s32.totalorder %s2219_s15, %s1925_s24  ;;  %s1930_s11 = scalar_lea.hbm %s4143_s2, 9216 }
  0x38   : > { %p2228_p12 = pnand %p1771_p0, %p4146_p13  ;;  %p1931_p4 = scmp.lt.u32.totalorder %s2219_s15, %s4143_s2 }
  0x39   : > { %p1928_p1 = pnand %p1926_p9, %p1897_p7  ;;  %p1932_p10 = scmp.lt.u32.totalorder %s1930_s11, %s1925_s24 }
  0x3a   : > { %p1934_p0 = scmp.lt.u32.totalorder %s1925_s24, %s2219_s15 }
  0x3b   : > { %p1929_p2 = pneg %p1928_p1  ;;  %p1933_p8 = por %p1932_p10, %p1931_p4 }
  0x3d   : > { %p1935_p13 = por %p1934_p0, %p1933_p8 }
  0x3f   : > { %p1936_p6 = pnand %p1935_p13, %p1929_p2 }
  0x41   : > { %1939 = shalt.err (!%p1936_p6)
}
  0x42   : > { %s1940_s14 = scalar_lea.vmem %s2224_s21, 3072  ;;  %s2063_s16 = smov [#allocation8]  }
  0x43   : > { %p1941_p9 = scmp.ne.s32.totalorder %s2224_s21, %s1940_s14  ;;  %s1945_s28 = sshll.u32 %s2063_s16, 4  ;;  %s1946_s28 = int_to_ptr.vmem [resolvable:$false] %s1945_s28 }
  0x44   : > { %s1947_s6 = scalar_lea.vmem %s1946_s28, 6144  ;;  %p1948_p11 = scmp.lt.s32.totalorder %s2224_s21, %s1946_s28 }
  0x45   : > { %p1943_p1 = pnand %p1941_p9, %p1897_p7  ;;  %p1949_p4 = scmp.lt.s32.totalorder %s1947_s6, %s1940_s14 }
  0x47   : > { %p1944_p3 = pneg %p1943_p1  ;;  %p1950_p10 = por %p1949_p4, %p1948_p11 }
  0x49   : > { %p1951_p8 = pnand %p1950_p10, %p1944_p3 }
  0x4b   : > { %1954 = shalt.err (!%p1951_p8)
}
  0x4c   : > { %s2064_s24 = smov 192   ;;  %s2065_s11 = smov 12  }
  0x4d   : > { %1781 = dma.hbm_to_vmem [thread:$0]  (!%p2143_p5), %s2219_s15, 3072, %s2224_s21, %s2151_s9, %s2064_s24, %s2064_s24, %s2065_s11  }
  0x4e   : > { %s1955_s16 = scalar_lea.hbm %s4142_s1, 3072  ;;  %p1957_p13 = pneg %p2228_p12 }
  0x4f   : > { %p1956_p7 = scmp.ne.s32.totalorder %s4142_s1, %s1955_s16  ;;  %p1962_p11 = scmp.lt.u32.totalorder %s1955_s16, %s4142_s1 }
  0x51   : > { %p1958_p3 = pnand %p1957_p13, %p1956_p7 }
  0x53   : > { %p1959_p6 = pneg %p1958_p3 }
  0x55   : > { %p1964_p2 = pnand %p1962_p11, %p1959_p6 }
  0x57   : > { %1967 = shalt.err (!%p1964_p2)
}
  0x58   : > { %s1968_s7 = scalar_lea.vmem %s2214_s12, 3072  ;;  %p1976_p1 = scmp.lt.s32.totalorder %s2214_s12, %s2214_s12 }
  0x59   : > { %p1969_p5 = scmp.ne.s32.totalorder %s2214_s12, %s1968_s7  ;;  %p1977_p4 = scmp.lt.s32.totalorder %s1968_s7, %s1968_s7 }
  0x5b   : > { %p1971_p0 = pnand %p1969_p5, %p1957_p13  ;;  %p1978_p10 = por %p1977_p4, %p1976_p1 }
  0x5d   : > { %p1972_p9 = pneg %p1971_p0 }
  0x5f   : > { %p1979_p8 = pnand %p1978_p10, %p1972_p9 }
  0x61   : > { %1982 = shalt.err (!%p1979_p8)
}
  0x62   : > { %s4213_s9 = smov 4   ;;  %s4214_s25 = smov 64  }
  0x63   : > { %1774 = dma.hbm_to_vmem [thread:$0]  (!%p2228_p12), %s4142_s1, 3072, %s2214_s12, [#allocation7], %s4214_s25, %s4214_s25, %s4213_s9  }
  0x64   : > { %p4215_p7 = scmp.ne.s32.totalorder %s4211_s10, 0 }
  0x66   : > { %221 = sbr.rel (%p4215_p7) target bundleno = 774 (0x306), region = 36 }
  0x6d   : > { %s223_s21 = sand.u32 1, %s2183_s27   ;;  %s2284_s6 = sand.u32 1, %s2049_s18  }
  0x6e   : > { %s1635_s24 = sshll.u32 %s2284_s6, 6  ;;  %s224_s22 = scalar_lea.sflag [#allocation4], %s223_s21 }
  0x6f   : > { %s2287_s11 = scalar_lea.vmem [#allocation3], %s1635_s24  ;;  %p4216_p13 = scmp.ne.s32.totalorder %s4208_s29, 0 }
  0x71   : > { %2028 = dma.done.wait (%p4216_p13), %s224_s22, 1024  }
  0x72   : > { %2030 = vsyncadd (%p4216_p13), %s224_s22, 4294966272  ;;  %p4217_p12 = scmp.eq.s32.totalorder %s2183_s27, 0 }
  0x74   : > { %2032 = dma.done.wait (%p4217_p12), [#allocation7], 3072   ;;  %p4218_p3 = pmov %p4217_p12 }
  0x75   : > { %s1760_s10 = smul.u32 192, %s2284_s6 }
  0x76   : > { %2034 = vsyncadd (%p4218_p3), [#allocation7], 4294964224 }
  0x77   : > { %s2298_s12 = scalar_lea.vmem [#allocation8], %s1760_s10 }
  0x78   : > { %2036 = dma.done.wait (%p4216_p13), %s224_s22, 3072  }
  0x79   : > { %2038 = vsyncadd (%p4216_p13), %s224_s22, 4294964224  ;;  %v1831_v0 = vld [vmem:[#allocation6 + $0x40] sm:$0xff]   ;;  %v1834_v3 = vld [vmem:[#allocation6 + $0x48] sm:$0xff]   ;;  %s276_s29 = sld [smem:[#allocation2]]  ;;  %v744_v32 = vlaneseq  ;;  %s1670_s13 = sshll.u32 %s2183_s27, 7  ;;  %v4219_v40 = vmov 0 }
  0x7a   : > { %v1832_v1 = vld [vmem:[#allocation6] sm:$0xff]   ;;  %1678 = vmatprep.subr.bf16.mxu0 %v1831_v0  ;;  %v1836_v4 = vld [vmem:[#allocation6 + $0x88] sm:$0xff]   ;;  %v1837_v6 = vld [vmem:[#allocation6 + $0x50] sm:$0xff]   ;;  %v2315_v34 = vstv %s1670_s13  ;;  %vm4152_vm6 = vmmov 1   ;;  %v4221_v44 = vmov 0  ;;  %v4223_v47 = vmov 0 }
  0x7b   : > { %v1833_v2 = vld [vmem:[#allocation6 + $0x80] sm:$0xff]   ;;  %1679 = vmatpush3.bf16.xpose.msra.mxu0 %v1832_v1  ;;  %v1835_v5 = vld [vmem:[#allocation6 + $0x8] sm:$0xff]   ;;  %v1839_v7 = vld [vmem:[#allocation6 + $0x90] sm:$0xff]   ;;  %v2313_v33 = vshrl.u32 %v744_v32, 7  ;;  %v2317_v35 = vand.u32 127, %v744_v32  ;;  %v4231_v56 = vmov 0 }
  0x7c   : > { %1726 = vmatprep.subr.bf16.mxu1 %v1833_v2  ;;  %1680 = vmatprep.subr.bf16.mxu0 %v1834_v3  ;;  %v1838_v8 = vld [vmem:[#allocation6 + $0x10] sm:$0xff]   ;;  %v1840_v9 = vld [vmem:[#allocation6 + $0x58] sm:$0xff]   ;;  %v1843_v12 = vld [vmem:[#allocation6 + $0x60] sm:$0xff]   ;;  %v4236_v60 = vmov 0  ;;  %v4242_v0 = vmov 0  ;;  %v4246_v3 = vmov 0 }
  0x7d   : > { %1727 = vmatpush3.bf16.xpose.msra.mxu1 %v1833_v2  ;;  %v1842_v10 = vld [vmem:[#allocation6 + $0x98] sm:$0xff]   ;;  %v1855_v13 = vld [vmem:[%s2287_s11] sm:$0xff]   ;;  %v1846_v16 = vld [vmem:[#allocation6 + $0x68] sm:$0xff]   ;;  %v767_v36 = vadd.s32 %v2315_v34, %v2313_v33  ;;  %v750_v37 = vadd.s32 8, %v2313_v33  ;;  %v2323_v39 = vadd.s32 128, %v2317_v35  ;;  %v752_v42 = vadd.s32 24, %v2313_v33 }
  0x7e   : > { %1728 = vmatprep.subr.bf16.mxu1 %v1836_v4  ;;  %v1841_v11 = vld [vmem:[#allocation6 + $0x18] sm:$0xff]   ;;  %v1845_v14 = vld [vmem:[#allocation6 + $0xa0] sm:$0xff]   ;;  %1694 = vmatprep.mubr.bf16.mxu0 %v1855_v13  ;;  %v1848_v17 = vld [vmem:[#allocation6 + $0xa8] sm:$0xff]   ;;  %v751_v43 = vadd.s32 16, %v2313_v33  ;;  %v2346_v45 = vadd.s32 256, %v2317_v35  ;;  %v753_v49 = vadd.s32 32, %v2313_v33 }
  0x7f   : > { %1742 = vmatprep.mubr.bf16.mxu1 %v1855_v13  ;;  %v1844_v15 = vld [vmem:[#allocation6 + $0x20] sm:$0xff]   ;;  %v1847_v18 = vld [vmem:[#allocation6 + $0x28] sm:$0xff]   ;;  %v1849_v19 = vld [vmem:[#allocation6 + $0x70] sm:$0xff]   ;;  %p277_p6 = scmp.ne.s32.totalorder %s276_s29, 0  ;;  %vm783_vm0 = vcmp.eq.s32.totalorder %v2317_v35, %v767_v36  ;;  %v768_v41 = vadd.s32 %v2315_v34, %v750_v37  ;;  %vm784_vm2 = vcmp.eq.s32.totalorder %v2323_v39, %v767_v36  ;;  %v770_v46 = vadd.s32 %v2315_v34, %v752_v42  ;;  %s1637_s16 = sshll.u32 %s2284_s6, 7 }
  0x80   : > { %v1851_v20 = vld [vmem:[#allocation6 + $0xb0] sm:$0xff]   ;;  %v1852_v22 = vld [vmem:[#allocation6 + $0x78] sm:$0xff]   ;;  %v1856_v25 = vld [vmem:[%s2287_s11 + $0x8] sm:$0xff]   ;;  %v2358_v48 = vadd.s32 %v2315_v34, %v751_v43  ;;  %vm785_vm15 = vcmp.eq.s32.totalorder %v2346_v45, %v767_v36  ;;  %v754_v51 = vadd.s32 40, %v2313_v33  ;;  %v771_v53 = vadd.s32 %v2315_v34, %v753_v49  ;;  %s4036_s14 = scalar_lea.vmem [#allocation9], %s1637_s16  ;;  %s1677_s28 = sshll.u32 %s2183_s27, 11 }
  0x81   : > { %v1850_v21 = vld [vmem:[#allocation6 + $0x30] sm:$0xff]   ;;  %v1854_v23 = vld [vmem:[#allocation6 + $0xb8] sm:$0xff]   ;;  %v1859_v28 = vld [vmem:[%s2287_s11 + $0x20] sm:$0xff]   ;;  %s1007_s8 = scalar_select %p277_p6, 1, 0  ;;  %vm786_vm4 = vcmp.eq.s32.totalorder %v2317_v35, %v768_v41  ;;  %vm787_vm8 = vcmp.eq.s32.totalorder %v2323_v39, %v768_v41  ;;  %vm794_vm11 = vcmp.eq.s32.totalorder %v2346_v45, %v770_v46  ;;  %vm788_vm14 = vcmp.eq.s32.totalorder %v2346_v45, %v768_v41 }
  0x82   : > { %v1853_v24 = vld [vmem:[#allocation6 + $0x38] sm:$0xff]   ;;  %v1857_v26 = vld [vmem:[%s2287_s11 + $0x10] sm:$0xff]   ;;  %v1860_v29 = vld [vmem:[%s2287_s11 + $0x28] sm:$0xff]   ;;  %v755_v54 = vadd.s32 48, %v2313_v33  ;;  %v2410_v58 = vadd.s32 %v2315_v34, %v754_v51  ;;  %v756_v1 = vadd.s32 56, %v2313_v33  ;;  %v4244_v2 = vmov 0  ;;  %s4093_s26 = scalar_lea.hbm %s4145_s4, %s1677_s28 }
  0x83   : > { %1681 = vmatpush3.bf16.xpose.msra.mxu0 %v1835_v5  ;;  %v1858_v27 = vld [vmem:[%s2287_s11 + $0x18] sm:$0xff]   ;;  %v1861_v30 = vld [vmem:[%s2287_s11 + $0x30] sm:$0xff]   ;;  %v1008_v38 = vstv %s1007_s8  ;;  %v831_v63 = vld [vmem:[%s2298_s12] sm:$0xff]  ;;  %v4292_v52 = vmov 0  ;;  %v4295_v61 = vmov 0  ;;  %v4327_v36 = vmov 0 }
  0x84   : > { %1682 = vmatprep.subr.bf16.mxu0 %v1837_v6  ;;  %v1862_v31 = vld [vmem:[%s2287_s11 + $0x38] sm:$0xff]   ;;  %vm2326_vm1 = vcmp.eq.s32.totalorder %v1008_v38, 1  ;;  %v2416_v59 = vadd.s32 %v2315_v34, %v755_v54  ;;  %v4250_v6 = vmov 0  ;;  %v834_v37 = vld [vmem:[%s2298_s12 + $0x14] sm:$0xf]  ;;  %s1521_s7 = sshll.u32 %s4036_s14, 4  ;;  %s4095_s7 = int_to_ptr.vmem [resolvable:$true] %s1521_s7 }
  0x85   : > { %1729 = vmatpush3.bf16.xpose.msra.mxu1 %v1836_v4  ;;  %v4220_v40 = vsel %vm2326_vm1, 4294967295, %v4219_v40  ;;  %vm1010_vm3 = vmand %vm783_vm0, %vm2326_vm1  ;;  %v835_v57 = vld [vmem:[%s2298_s12 + $0x18] sm:$0xff]  ;;  %v4343_v4 = vmov 0  ;;  %s1508_s27 = scalar_lea.sflag [#allocation5], %s2284_s6  ;;  %s1983_s15 = scalar_lea.vmem %s4095_s7, 2048 }
  0x86   : > { %1730 = vmatprep.subr.bf16.mxu1 %v1839_v7  ;;  %vm1011_vm5 = vmand %vm784_vm2, %vm2326_vm1  ;;  %p1984_p11 = scmp.ne.s32.totalorder %s4095_s7, %s1983_s15  ;;  %p4704_p2 = scmp.ne.s32.totalorder %s4209_s30, 0 }
  0x87   : > { %vm2340_vm7 = vmxor %vm1010_vm3, %vm4152_vm6  ;;  %vm789_vm3 = vcmp.eq.s32.totalorder %v2317_v35, %v2358_v48  ;;  %s2068_s21 = smov [#allocation9]  }
  0x88   : > { %v4222_v44 = vsel %vm2340_vm7, 4294967295, %v4221_v44  ;;  %vm1013_vm9 = vmand %vm786_vm4, %vm2326_vm1  ;;  %p1985_p5 = pnand %p1984_p11, %p4704_p2  ;;  %s1987_s24 = sshll.u32 %s2068_s21, 4  ;;  %s1988_s24 = int_to_ptr.vmem [resolvable:$false] %s1987_s24 }
  0x89   : > { %vm2352_vm10 = vmxor %vm1011_vm5, %vm4152_vm6  ;;  %vm790_vm5 = vcmp.eq.s32.totalorder %v2323_v39, %v2358_v48  ;;  %s1989_s22 = scalar_lea.vmem %s1988_s24, 4096  ;;  %p1990_p9 = scmp.lt.s32.totalorder %s4095_s7, %s1988_s24 }
  0x8a   : > { %v4224_v47 = vsel %vm2352_vm10, 4294967295, %v4223_v47  ;;  %vm1014_vm12 = vmand %vm787_vm8, %vm2326_vm1  ;;  %vm796_vm10 = vcmp.eq.s32.totalorder %v2323_v39, %v771_v53  ;;  %p1986_p0 = pneg %p1985_p5  ;;  %p1991_p1 = scmp.lt.s32.totalorder %s1989_s22, %s1983_s15 }
  0x8b   : > { %1683 = vmatpush3.bf16.xpose.msra.mxu0 %v1838_v8  ;;  %vm2364_vm13 = vmxor %vm1013_vm9, %vm4152_vm6  ;;  %v4252_v8 = vmov 0 }
  0x8c   : > { %1684 = vmatprep.subr.bf16.mxu0 %v1840_v9  ;;  %vm1021_vm0 = vmand %vm794_vm11, %vm2326_vm1  ;;  %vm792_vm11 = vcmp.eq.s32.totalorder %v2317_v35, %v770_v46  ;;  %p1992_p4 = por %p1991_p1, %p1990_p9 }
  0x8d   : > { %1731 = vmatpush3.bf16.xpose.msra.mxu1 %v1839_v7  ;;  %vm2374_vm2 = vmxor %vm1014_vm12, %vm4152_vm6  ;;  %vm4235_vm12 = vmmov 1  }
  0x8e   : > { %1732 = vmatprep.subr.bf16.mxu1 %v1842_v10  ;;  %vm1015_vm4 = vmand %vm788_vm14, %vm2326_vm1  ;;  %p1993_p10 = pnand %p1992_p4, %p1986_p0 }
  0x8f   : > { %vm2388_vm8 = vmand %vm785_vm15, %vm2326_vm1  ;;  %vm793_vm15 = vcmp.eq.s32.totalorder %v2323_v39, %v770_v46  ;;  %v4286_v46 = vmov 0 }
  0x90   : > { %vm2393_vm9 = vmxor %vm1021_vm0, %vm4152_vm6  ;;  %vm795_vm6 = vcmp.eq.s32.totalorder %v2317_v35, %v771_v53 }
  0x91   : > { %v4232_v56 = vsel %vm2393_vm9, 4294967295, %v4231_v56  ;;  %vm2404_vm14 = vmand %vm789_vm3, %vm2326_vm1 }
  0x92   : > { %vm1017_vm0 = vmand %vm790_vm5, %vm2326_vm1 }
  0x93   : > { %1685 = vmatpush3.bf16.xpose.msra.mxu0 %v1841_v11  ;;  %vm2419_vm7 = vmxor %vm1015_vm4, %vm4235_vm12  ;;  %vm803_vm4 = vcmp.eq.s32.totalorder %v2346_v45, %v2416_v59  ;;  %v4254_v11 = vmov 0 }
  0x94   : > { %1686 = vmatprep.subr.bf16.mxu0 %v1843_v12  ;;  %v4237_v60 = vsel %vm2419_vm7, 4294967295, %v4236_v60  ;;  %vm2425_vm3 = vmand %vm792_vm11, %vm2326_vm1  ;;  %vm798_vm11 = vcmp.eq.s32.totalorder %v2317_v35, %v2410_v58  ;;  %v4256_v12 = vmov 0 }
  0x95   : > { %1733 = vmatpush3.bf16.xpose.msra.mxu1 %v1842_v10  ;;  %vm2432_vm5 = vmand %vm793_vm15, %vm2326_vm1  ;;  %vm799_vm15 = vcmp.eq.s32.totalorder %v2323_v39, %v2410_v58 }
  0x96   : > { %1734 = vmatprep.subr.bf16.mxu1 %v1845_v14  ;;  %vm2441_vm7 = vmand %vm795_vm6, %vm2326_vm1 }
  0x97   : > { %v4243_v0 = vsel %vm2441_vm7, 4294967295, %v4242_v0  ;;  %vm2455_vm9 = vmxor %vm2404_vm14, %vm4235_vm12 }
  0x98   : > { %v4245_v2 = vsel %vm2455_vm9, 4294967295, %v4244_v2  ;;  %vm2460_vm6 = vmxor %vm1017_vm0, %vm4235_vm12 }
  0x99   : > { %v4247_v3 = vsel %vm2460_vm6, 4294967295, %v4246_v3  ;;  %vm2466_vm7 = vmand %vm796_vm10, %vm2326_vm1 }
  0x9a   : > { %vm2476_vm14 = vmand %vm803_vm4, %vm2326_vm1 }
  0x9b   : > { %1687 = vmatpush3.bf16.xpose.msra.mxu0 %v1844_v15  ;;  %v4251_v6 = vsel %vm2476_vm14, 4294967295, %v4250_v6  ;;  %vm2483_vm10 = vmand %vm798_vm11, %vm2326_vm1 }
  0x9c   : > { %1688 = vmatprep.subr.bf16.mxu0 %v1846_v16  ;;  %v4253_v8 = vsel %vm2483_vm10, 4294967295, %v4252_v8  ;;  %vm2494_vm4 = vmxor %vm2425_vm3, %vm4235_vm12  ;;  %v833_v16 = vld [vmem:[%s2298_s12 + $0xc] sm:$0xff]  ;;  %vm4265_vm10 = vnez %v4222_v44 }
  0x9d   : > { %1735 = vmatpush3.bf16.xpose.msra.mxu1 %v1845_v14  ;;  %v4255_v11 = vsel %vm2494_vm4, 4294967295, %v4254_v11  ;;  %vm2501_vm6 = vmxor %vm2432_vm5, %vm4235_vm12  ;;  %v2512_v14 = vadd.s32 %v2315_v34, %v756_v1  ;;  %v758_v1 = vadd.s32 72, %v2313_v33 }
  0x9e   : > { %1736 = vmatprep.subr.bf16.mxu1 %v1848_v17  ;;  %v4257_v12 = vsel %vm2501_vm6, 4294967295, %v4256_v12  ;;  %vm2507_vm11 = vmand %vm799_vm15, %vm2326_vm1  ;;  %vm4262_vm6 = vcmp.ne.bf16.partialorder %v831_v63, 0  ;;  %v4301_v63 = vmov 0 }
  0x9f   : > { %vm2522_vm5 = vmxor %vm2388_vm8, %vm4235_vm12  ;;  %vm4264_vm8 = vnez %v4224_v47 }
  0xa3   : > { %1689 = vmatpush3.bf16.xpose.msra.mxu0 %v1847_v18  ;;  %v4260_v18 = vmov 0 }
  0xa4   : > { %1690 = vmatprep.subr.bf16.mxu0 %v1849_v19  ;;  %v4261_v18 = vsel %vm2522_vm5, 4294967295, %v4260_v18  ;;  %v2529_v19 = vld [vmem:[%s2298_s12 + $0x8] sm:$0xf]  ;;  %vm4266_vm5 = vmpackc.low %vm4264_vm8, %vm4265_vm10 }
  0xa5   : > { %1737 = vmatpush3.bf16.xpose.msra.mxu1 %v1848_v17  ;;  %vm2559_vm10 = vmxor %vm2466_vm7, %vm4235_vm12  ;;  %vm4276_vm7 = vcmp.eq.s32.totalorder %v2346_v45, %v2512_v14 }
  0xa6   : > { %1738 = vmatprep.subr.bf16.mxu1 %v1851_v20  ;;  %vm2579_vm8 = vmand %vm4276_vm7, %vm2326_vm1  ;;  %vm4281_vm7 = vcmp.ne.bf16.partialorder %v833_v16, 0 }
  0xab   : > { %1691 = vmatpush3.bf16.xpose.msra.mxu0 %v1850_v21 }
  0xac   : > { %1692 = vmatprep.subr.bf16.mxu0 %v1852_v22  ;;  %v4171_v22 = vmov 0  }
  0xad   : > { %1739 = vmatpush3.bf16.xpose.msra.mxu1 %v1851_v20 }
  0xae   : > { %1740 = vmatprep.subr.bf16.mxu1 %v1854_v23 }
  0xb3   : > { %1693 = vmatpush3.bf16.xpose.msra.mxu0 %v1853_v24  ;;  %v838_v24 = vld [vmem:[%s2298_s12 + $0x2c] sm:$0xf] }
  0xb5   : > { %1741 = vmatpush3.bf16.xpose.msra.mxu1 %v1854_v23 }
  0xba   : > { %1695 = vmatmul.mubr.bf16.vlgmr.msra.gmra.mrb[0].mxu0 %v1855_v13  ;;  %v4258_v13 = vmov 0 }
  0xbb   : > { %1696 = vmatprep.mubr.bf16.mxu0 %v1856_v25  ;;  %v4259_v13 = vsel %vm2507_vm11, 4294967295, %v4258_v13 }
  0xbc   : > { %1743 = vmatmul.mubr.bf16.vlgmr.msra.gmra.mrb[0].mxu1 %v1856_v25 }
  0xbd   : > { %1746 = vmatprep.mubr.bf16.mxu1 %v1857_v26 }
  0xc2   : > { %1697 = vmatmul.mubr.bf16.gmra.mrb[4].mxu0 %v1856_v25  ;;  %v4268_v25 = vmov 0 }
  0xc3   : > { %1698 = vmatprep.mubr.bf16.mxu0 %v1857_v26 }
  0xc4   : > { %1747 = vmatmul.mubr.bf16.gmra.mrb[4].mxu1 %v1858_v27 }
  0xc5   : > { %1750 = vmatprep.mubr.bf16.mxu1 %v1859_v28 }
  0xca   : > { %1699 = vmatmul.mubr.bf16.gmra.mrb[8].mxu0 %v1857_v26  ;;  %v4270_v26 = vmov 0 }
  0xcb   : > { %1700 = vmatprep.mubr.bf16.mxu0 %v1858_v27  ;;  %v4271_v26 = vsel %vm2559_vm10, 4294967295, %v4270_v26 }
  0xcc   : > { %1751 = vmatmul.mubr.bf16.gmra.mrb[8].mxu1 %v1860_v29 }
  0xcd   : > { %1754 = vmatprep.mubr.bf16.mxu1 %v1861_v30 }
  0xd2   : > { %1701 = vmatmul.mubr.bf16.gmra.mrb[12].mxu0 %v1858_v27 }
  0xd3   : > { %1702 = vmatprep.mubr.bf16.mxu0 %v1859_v28 }
  0xd4   : > { %1755 = vmatmul.mubr.bf16.gmra.mrb[12].mxu1 %v1862_v31 }
  0xda   : > { %1703 = vmatmul.mubr.bf16.gmra.mrb[16].mxu0 %v1859_v28 }
  0xdb   : > { %1704 = vmatprep.mubr.bf16.mxu0 %v1860_v29 }
  0xe2   : > { %1705 = vmatmul.mubr.bf16.gmra.mrb[20].mxu0 %v1860_v29 }
  0xe3   : > { %1706 = vmatprep.mubr.bf16.mxu0 %v1861_v30 }
  0xea   : > { %1707 = vmatmul.mubr.bf16.gmra.mrb[24].mxu0 %v1861_v30  ;;  %v4277_v30 = vmov 0 }
  0xeb   : > { %1708 = vmatprep.mubr.bf16.mxu0 %v1862_v31  ;;  %v4278_v30 = vsel %vm2579_vm8, 4294967295, %v4277_v30 }
  0xf2   : > { %1709 = vmatmul.mubr.bf16.gmra.mrb[28].mxu0 %v1862_v31  ;;  %v757_v31 = vadd.s32 64, %v2313_v33 }
 0x18d   : > { %v2472_v5 = vpop.f32.mrb[0].mxu0 }
 0x18e   : > { %vm895_vm0 = vcmp.ge.f32.partialorder %v2472_v5, 0.1  ;;  %v570_v7 = vpop.f32.mrb[1].mxu0 }
 0x18f   : > { %vm896_vm9 = vcmp.ge.f32.partialorder %v570_v7, 0.1  ;;  %v2487_v9 = vpop.f32.mrb[2].mxu0  ;;  %v2489_v10 = vpop.f32.mrb[0].mxu1 }
 0x190   : > { %vm943_vm3 = vmpackc.low %vm896_vm9, %vm895_vm0  ;;  %v2514_v15 = vpop.f32.mrb[3].mxu0  ;;  %v2517_v17 = vpop.f32.mrb[1].mxu1  ;;  %vm4263_vm9 = vnez %v4232_v56  ;;  %vm898_vm15 = vcmp.ge.f32.partialorder %v2487_v9, 0.1  ;;  %vm4267_vm0 = vnez %v4243_v0 }
 0x191   : > { %vm975_vm4 = vmand %vm4262_vm6, %vm943_vm3  ;;  %v2531_v20 = vpop.f32.mrb[2].mxu1  ;;  %vm899_vm6 = vcmp.ge.f32.partialorder %v2514_v15, 0.1 }
 0x192   : > { %vm1138_vm14 = vmand %vm975_vm4, %vm4266_vm5  ;;  %v2545_v21 = vpop.f32.mrb[3].mxu1  ;;  %vm906_vm10 = vcmp.ge.f32.partialorder %v2531_v20, 0.1 }
 0x193   : > { %v1170_v23 = vsel %vm1138_vm14, 65537, %v4171_v22  ;;  %vm2552_vm11 = vmxor %vm4267_vm0, %vm4235_vm12  ;;  %vm4272_vm14 = vcmp.eq.s32.totalorder %v2346_v45, %v771_v53  ;;  %v2652_v53 = vadd.s32 %v2315_v34, %v757_v31  ;;  %v2782_v31 = vld [vmem:[%s2298_s12 + $0x50] sm:$0xf] }
 0x194   : > { %v4269_v25 = vsel %vm2552_vm11, 4294967295, %v4268_v25  ;;  %vm2567_vm4 = vmand %vm4272_vm14, %vm2326_vm1  ;;  %v1203_v28 = vunpack.c.h.b16 %v1170_v23  ;;  %v1202_v29 = vunpack.c.l.b16 %v1170_v23  ;;  %v4321_v23 = vmov 0 }
 0x195   : > { %vm945_vm14 = vmpackc.low %vm899_vm6, %vm898_vm15  ;;  %v2588_v32 = vpop.f32.mrb[4].mxu0 }
 0x196   : > { %vm2592_vm5 = vcmp.ne.s32.totalorder %v1203_v28, 0  ;;  %vm977_vm8 = vmand %vm4281_vm7, %vm945_vm14  ;;  %v2598_v38 = vpop.f32.mrb[5].mxu0  ;;  %vm1250_vm15 = vcmp.ne.s32.totalorder %v1202_v29, 0  ;;  %vm4314_vm14 = vcmp.eq.s32.totalorder %v2317_v35, %v2416_v59  ;;  %v2775_v29 = vld [vmem:[%s2298_s12 + $0x30] sm:$0xff] }
 0x197   : > { %v1299_v41 = vsel %vm2592_vm5, %v570_v7, 0.0  ;;  %vm4282_vm3 = vmpackc.low %vm2374_vm2, %vm2364_vm13  ;;  %v2614_v42 = vpop.f32.mrb[6].mxu0  ;;  %v1298_v43 = vsel %vm1250_vm15, %v2472_v5, 0.0  ;;  %v2617_v44 = vpop.f32.mrb[4].mxu1  ;;  %vm4285_vm5 = vnez %v4251_v6  ;;  %vm4288_vm2 = vcmp.ge.f32.partialorder %v2517_v17, 0.1 }
 0x198   : > { %vm1140_vm0 = vmand %vm977_vm8, %vm4282_vm3  ;;  %v2636_v50 = vpop.f32.mrb[7].mxu0  ;;  %v2638_v51 = vadd.f32 %v1299_v41, %v1298_v43  ;;  %vm4291_vm8 = vcmp.eq.s32.totalorder %v2346_v45, %v2358_v48  ;;  %v4298_v48 = vmov 0  ;;  %v2669_v62 = vpop.f32.mrb[5].mxu1  ;;  %v2808_v43 = vadd.s32 %v2315_v34, %v758_v1 }
 0x199   : > { %vm2622_vm6 = vmxor %vm4285_vm5, %vm4235_vm12  ;;  %v1172_v47 = vsel %vm1140_vm0, 65537, %v4171_v22  ;;  %vm4294_vm5 = vnez %v4253_v8  ;;  %vm4300_vm0 = vcmp.eq.s32.totalorder %v2346_v45, %v2410_v58  ;;  %v2688_v0 = vpop.f32.mrb[6].mxu1  ;;  %v759_v58 = vadd.s32 80, %v2313_v33 }
 0x19a   : > { %v4287_v46 = vsel %vm2622_vm6, 4294967295, %v4286_v46  ;;  %vm2632_vm3 = vmpackc.low %vm4288_vm2, %vm4288_vm2  ;;  %v1205_v54 = vunpack.c.l.b16 %v1172_v47  ;;  %v1206_v55 = vunpack.c.h.b16 %v1172_v47  ;;  %v2712_v7 = vpop.f32.mrb[7].mxu1  ;;  %v4315_v8 = vmov 0 }
 0x19b   : > { %vm2645_vm15 = vmand %vm4291_vm8, %vm2326_vm1  ;;  %vm4297_vm8 = vnez %v4259_v13  ;;  %v4318_v13 = vmov 0  ;;  %v2805_v41 = vadd.s32 %v2315_v34, %v759_v58  ;;  %v4335_v47 = vmov 0 }
 0x19c   : > { %v4293_v52 = vsel %vm2645_vm15, 4294967295, %v4292_v52  ;;  %vm2658_vm2 = vmxor %vm4294_vm5, %vm4235_vm12  ;;  %vm4313_vm15 = vnez %v4261_v18  ;;  %v4346_v5 = vmov 0  ;;  %v4388_v18 = vmov 0 }
 0x19d   : > { %v4296_v61 = vsel %vm2658_vm2, 4294967295, %v4295_v61  ;;  %vm2665_vm11 = vmxor %vm4297_vm8, %vm4235_vm12  ;;  %vm4309_vm2 = vcmp.ne.bf16.partialorder %v2529_v19, 0  ;;  %vm4312_vm8 = vcmp.ne.bf16.partialorder %v838_v24, 0  ;;  %v2764_v56 = vpop.f32.mrb[8].mxu0  ;;  %v2768_v24 = vld [vmem:[%s2298_s12 + $0x20] sm:$0xf] }
 0x19e   : > { %v4299_v48 = vsel %vm2665_vm11, 4294967295, %v4298_v48  ;;  %vm2676_vm13 = vmand %vm4300_vm0, %vm2326_vm1  ;;  %vm2692_vm0 = vcmp.ne.s32.totalorder %v1205_v54, 0  ;;  %v2772_v28 = vpop.f32.mrb[9].mxu0 }
 0x19f   : > { %v4302_v63 = vsel %vm2676_vm13, 4294967295, %v4301_v63  ;;  %vm950_vm5 = vmpackc.low %vm906_vm10, %vm906_vm10  ;;  %vm2696_vm10 = vcmp.ne.s32.totalorder %v1206_v55, 0  ;;  %v1301_v16 = vsel %vm2692_vm0, %v2487_v9, 0.0  ;;  %v2826_v49 = vpop.f32.mrb[8].mxu1  ;;  %v2837_v55 = vld [vmem:[%s2298_s12 + $0x3c] sm:$0xff] }
 0x1a0   : > { %vm2704_vm6 = vmand %vm4309_vm2, %vm2632_vm3  ;;  %vm4317_vm3 = vcmp.eq.s32.totalorder %v2323_v39, %v2416_v59  ;;  %v1302_v19 = vsel %vm2696_vm10, %v2514_v15, 0.0  ;;  %v837_v59 = vld [vmem:[%s2298_s12 + $0x24] sm:$0xff]  ;;  %vm4323_vm10 = vcmp.ge.f32.partialorder %v2545_v21, 0.1  ;;  %v760_v15 = vadd.s32 88, %v2313_v33  ;;  %4337 = vst [vmem:[#allocation14_spill] sm:$0xff] %v2826_v49 }
 0x1a1   : > { %vm982_vm11 = vmand %vm4312_vm8, %vm950_vm5  ;;  %vm804_vm5 = vcmp.eq.s32.totalorder %v2317_v35, %v2512_v14  ;;  %v2757_v9 = vadd.f32 %v1302_v19, %v1301_v16  ;;  %v4354_v19 = vmov 0 }
 0x1a2   : > { %vm2719_vm7 = vmand %vm4314_vm14, %vm2326_vm1  ;;  %v2863_v16 = vadd.s32 %v2315_v34, %v760_v15 }
 0x1a3   : > { %v4316_v8 = vsel %vm2719_vm7, 4294967295, %v4315_v8  ;;  %vm2728_vm2 = vmand %vm4317_vm3, %vm2326_vm1 }
 0x1a4   : > { %v4319_v13 = vsel %vm2728_vm2, 4294967295, %v4318_v13  ;;  %vm4320_vm14 = vmpackc.low %vm4263_vm9, %vm4263_vm9 }
 0x1a5   : > { %vm1145_vm3 = vmand %vm982_vm11, %vm4320_vm14  ;;  %vm4332_vm14 = vnez %v4237_v60  ;;  %vm4334_vm11 = vnez %v4278_v30  ;;  %v2839_v30 = vpop.f32.mrb[9].mxu1 }
 0x1a6   : > { %vm2751_vm8 = vmxor %vm2567_vm4, %vm4235_vm12  ;;  %v1177_v27 = vsel %vm1145_vm3, 65537, %v4171_v22  ;;  %vm4324_vm4 = vcmp.ne.bf16.partialorder %v834_v37, 0  ;;  %v4330_v37 = vmov 0  ;;  %4340 = vst [vmem:[#allocation15_spill] sm:$0xff] %v2839_v30 }
 0x1a7   : > { %v4322_v23 = vsel %vm2751_vm8, 4294967295, %v4321_v23  ;;  %vm946_vm9 = vmpackc.low %vm4323_vm10, %vm4323_vm10  ;;  %v1213_v58 = vunpack.c.l.b16 %v1177_v27  ;;  %vm4362_vm8 = vcmp.ge.f32.partialorder %v2614_v42, 0.1  ;;  %v4365_v27 = vmov 0 }
 0x1a8   : > { %vm978_vm0 = vmand %vm4324_vm4, %vm946_vm9  ;;  %vm4329_vm9 = vcmp.eq.s32.totalorder %v2323_v39, %v2512_v14  ;;  %v2817_v14 = vpop.f32.mrb[10].mxu0 }
 0x1a9   : > { %vm2789_vm3 = vmand %vm804_vm5, %vm2326_vm1  ;;  %vm4338_vm5 = vcmp.ge.f32.partialorder %v2588_v32, 0.1  ;;  %v2834_v60 = vpop.f32.mrb[11].mxu0 }
 0x1aa   : > { %v4328_v36 = vsel %vm2789_vm3, 4294967295, %v4327_v36  ;;  %vm2798_vm4 = vmand %vm4329_vm9, %vm2326_vm1 }
 0x1ab   : > { %v4331_v37 = vsel %vm2798_vm4, 4294967295, %v4330_v37  ;;  %vm4333_vm3 = vmpackc.low %vm4332_vm14, %vm4332_vm14  ;;  %vm4339_vm14 = vcmp.ge.f32.partialorder %v2598_v38, 0.1 }
 0x1ac   : > { %vm1141_vm9 = vmand %vm978_vm0, %vm4333_vm3 }
 0x1ad   : > { %vm2822_vm4 = vmxor %vm4334_vm11, %vm4235_vm12  ;;  %v1173_v54 = vsel %vm1141_vm9, 65537, %v4171_v22  ;;  %vm4341_vm11 = vcmp.ne.bf16.partialorder %v835_v57, 0  ;;  %vm4342_vm9 = vcmp.eq.s32.totalorder %v2317_v35, %v2652_v53  ;;  %v2860_v57 = vpop.f32.mrb[10].mxu1 }
 0x1ae   : > { %v4336_v47 = vsel %vm2822_vm4, 4294967295, %v4335_v47  ;;  %vm947_vm0 = vmpackc.low %vm4339_vm14, %vm4338_vm5  ;;  %v1207_v1 = vunpack.c.l.b16 %v1173_v54  ;;  %vm4345_vm5 = vcmp.eq.s32.totalorder %v2323_v39, %v2652_v53  ;;  %4348 = vst [vmem:[#allocation16_spill] sm:$0xff] %v2860_v57 }
 0x1af   : > { %vm979_vm10 = vmand %vm4341_vm11, %vm947_vm0  ;;  %vm4349_vm0 = vnez %v4247_v3  ;;  %vm4350_vm11 = vnez %v4245_v2  ;;  %v2886_v2 = vpop.f32.mrb[11].mxu1  ;;  %v4358_v3 = vmov 0 }
 0x1b0   : > { %vm2847_vm13 = vmand %vm4342_vm9, %vm2326_vm1  ;;  %4356 = vst [vmem:[#allocation17_spill] sm:$0xff] %v2886_v2 }
 0x1b1   : > { %v4344_v4 = vsel %vm2847_vm13, 4294967295, %v4343_v4  ;;  %vm2856_vm14 = vmand %vm4345_vm5, %vm2326_vm1  ;;  %vm4363_vm13 = vcmp.ge.f32.partialorder %v2636_v50, 0.1 }
 0x1b2   : > { %v4347_v5 = vsel %vm2856_vm14, 4294967295, %v4346_v5  ;;  %vm4351_vm9 = vmpackc.low %vm4349_vm0, %vm4350_vm11  ;;  %vm4353_vm14 = vnez %v4302_v63  ;;  %vm4357_vm11 = vcmp.ge.f32.partialorder %v2489_v10, 0.1  ;;  %vm4369_vm0 = vnez %v4299_v48 }
 0x1b3   : > { %vm1142_vm4 = vmand %vm979_vm10, %vm4351_vm9  ;;  %vm4368_vm10 = vnez %v4296_v61  ;;  %v4444_v48 = vmov 0 }
 0x1b4   : > { %vm2878_vm2 = vmxor %vm4353_vm14, %vm4235_vm12  ;;  %vm2896_vm14 = vcmp.ne.s32.totalorder %v1207_v1, 0  ;;  %v1174_v15 = vsel %vm1142_vm4, 65537, %v4171_v22  ;;  %v4404_v22 = vmov 0 }
 0x1b5   : > { %v4355_v19 = vsel %vm2878_vm2, 4294967295, %v4354_v19  ;;  %vm2892_vm9 = vmpackc.low %vm4357_vm11, %vm4357_vm11  ;;  %vm4364_vm11 = vnez %v4293_v52  ;;  %v1303_v54 = vsel %vm2896_vm14, %v2545_v21, 0.0  ;;  %v1209_v1 = vunpack.c.h.b16 %v1174_v15 }
 0x1b6   : > { %v4359_v3 = vsel %vm2892_vm9, 4294967295, %v4358_v3  ;;  %vm949_vm3 = vmpackc.low %vm4363_vm13, %vm4362_vm8  ;;  %vm4367_vm13 = vcmp.ne.bf16.partialorder %v837_v59, 0  ;;  %v1208_v52 = vunpack.c.l.b16 %v1174_v15  ;;  %vm2925_vm2 = vcmp.ne.s32.totalorder %v1213_v58, 0  ;;  %v2937_v59 = vpop.f32.mrb[12].mxu0 }
 0x1b7   : > { %vm2910_vm7 = vmxor %vm4364_vm11, %vm4235_vm12  ;;  %vm4372_vm9 = vnez %v4257_v12  ;;  %v2935_v21 = vadd.f32 %v2757_v9, %v1303_v54  ;;  %v4376_v58 = vmov 0  ;;  %v4380_v12 = vmov 0   ;;  %v2969_v15 = vpop.f32.mrb[13].mxu0 }
 0x1b8   : > { %v4366_v27 = vsel %vm2910_vm7, 4294967295, %v4365_v27  ;;  %vm981_vm8 = vmand %vm4367_vm13, %vm949_vm3  ;;  %vm4373_vm7 = vnez %v4255_v11  ;;  %vm4375_vm3 = vcmp.eq.s32.totalorder %v2346_v45, %v2805_v41  ;;  %vm2965_vm11 = vcmp.ne.s32.totalorder %v1208_v52, 0  ;;  %v3016_v11 = vpop.f32.mrb[12].mxu1 }
 0x1b9   : > { %vm4374_vm14 = vmpackc.low %vm4372_vm9, %vm4373_vm7  ;;  %vm2952_vm9 = vcmp.ne.s32.totalorder %v1209_v1, 0  ;;  %vm4384_vm7 = vnez %v4316_v8  ;;  %v4385_v54 = vmov 0  ;;  %v2996_v8 = vpop.f32.mrb[14].mxu0  ;;  %v1304_v30 = vsel %vm2965_vm11, %v2588_v32, 0.0 }
 0x1ba   : > { %vm1144_vm5 = vmand %vm981_vm8, %vm4374_vm14  ;;  %v1305_v6 = vsel %vm2952_vm9, %v2598_v38, 0.0  ;;  %vm4393_vm9 = vcmp.eq.s32.totalorder %v2317_v35, %v2808_v43  ;;  %v4394_v38 = vmov 0  ;;  %v3027_v49 = vpop.f32.mrb[15].mxu0  ;;  %vm4406_vm11 = vnez %v4331_v37 }
 0x1bb   : > { %vm2944_vm13 = vmand %vm4375_vm3, %vm2326_vm1  ;;  %v1176_v9 = vsel %vm1144_vm5, 65537, %v4380_v12  ;;  %vm4401_vm3 = vnez %v4269_v25  ;;  %v3051_v25 = vpop.f32.mrb[13].mxu1 }
 0x1bc   : > { %v4377_v58 = vsel %vm2944_vm13, 4294967295, %v4376_v58  ;;  %vm4381_vm8 = vmpackc.low %vm4313_vm15, %vm4313_vm15  ;;  %vm4387_vm15 = vnez %v4319_v13  ;;  %v1211_v1 = vunpack.c.l.b16 %v1176_v9  ;;  %v1212_v52 = vunpack.c.h.b16 %v1176_v9  ;;  %v3062_v37 = vpop.f32.mrb[14].mxu1 }
 0x1bd   : > { %vm1139_vm14 = vmand %vm2704_vm6, %vm4381_vm8  ;;  %vm4390_vm6 = vcmp.ge.f32.partialorder %v2764_v56, 0.1  ;;  %v4397_v13 = vmov 0  ;;  %v1309_v9 = vsel %vm2925_vm2, %v2531_v20, 0.0  ;;  %v3035_v20 = vadd.f32 %v1305_v6, %v1304_v30 }
 0x1be   : > { %vm2974_vm5 = vmxor %vm4384_vm7, %vm4235_vm12  ;;  %v1171_v2 = vsel %vm1139_vm14, 65537, %v4380_v12  ;;  %vm4391_vm7 = vcmp.ge.f32.partialorder %v2772_v28, 0.1  ;;  %vm4396_vm14 = vcmp.eq.s32.totalorder %v2323_v39, %v2808_v43  ;;  %vm4425_vm13 = vnez %v4287_v46 }
 0x1bf   : > { %v4386_v54 = vsel %vm2974_vm5, 4294967295, %v4385_v54  ;;  %vm2981_vm4 = vmxor %vm4387_vm15, %vm4235_vm12  ;;  %v1204_v57 = vunpack.c.l.b16 %v1171_v2  ;;  %v4433_v46 = vmov 0 }
 0x1c0   : > { %v4389_v18 = vsel %vm2981_vm4, 4294967295, %v4388_v18  ;;  %vm951_vm8 = vmpackc.low %vm4391_vm7, %vm4390_vm6  ;;  %vm4399_vm7 = vcmp.ne.bf16.partialorder %v2775_v29, 0 }
 0x1c1   : > { %vm3003_vm4 = vmand %vm4393_vm9, %vm2326_vm1 }
 0x1c2   : > { %v4395_v38 = vsel %vm3003_vm4, 4294967295, %v4394_v38  ;;  %vm3012_vm6 = vmand %vm4396_vm14, %vm2326_vm1  ;;  %vm1259_vm14 = vcmp.ne.s32.totalorder %v1211_v1, 0  ;;  %vm4400_vm4 = vnez %v4271_v26  ;;  %v4407_v26 = vmov 0  ;;  %v846_v1 = vld [vmem:[%s2298_s12 + $0x5c] sm:$0xf] }
 0x1c3   : > { %v4398_v13 = vsel %vm3012_vm6, 4294967295, %v4397_v13  ;;  %vm983_vm9 = vmand %vm4399_vm7, %vm951_vm8  ;;  %vm1260_vm6 = vcmp.ne.s32.totalorder %v1212_v52, 0  ;;  %vm4403_vm8 = vnez %v4328_v36  ;;  %v1307_v32 = vsel %vm1259_vm14, %v2614_v42, 0.0 }
 0x1c4   : > { %vm4402_vm5 = vmpackc.low %vm4400_vm4, %vm4401_vm3  ;;  %v1308_v29 = vsel %vm1260_vm6, %v2636_v50, 0.0  ;;  %vm1252_vm4 = vcmp.ne.s32.totalorder %v1204_v57, 0  ;;  %vm4409_vm3 = vcmp.ge.f32.partialorder %v2617_v44, 0.1  ;;  %vm4411_vm6 = vcmp.ne.bf16.partialorder %v2782_v31, 0  ;;  %v3068_v57 = vpop.f32.mrb[15].mxu1 }
 0x1c5   : > { %vm1146_vm2 = vmand %vm983_vm9, %vm4402_vm5  ;;  %v1358_v30 = vadd.f32 %v1308_v29, %v1307_v32  ;;  %v1300_v2 = vsel %vm1252_vm4, %v2517_v17, 0.0  ;;  %v840_v50 = vld [vmem:[%s2298_s12 + $0x38] sm:$0xf]  ;;  %v4413_v52 = vmov 0  ;;  %vm4415_vm4 = vnez %v4347_v5  ;;  %v3124_v32 = vpop.f32.mrb[16].mxu0 }
 0x1c6   : > { %vm3040_vm7 = vmxor %vm4403_vm8, %vm4235_vm12  ;;  %v1178_v36 = vsel %vm1146_vm2, 65537, %v4380_v12  ;;  %v1347_v6 = vadd.f32 %v2638_v51, %v1300_v2  ;;  %vm4412_vm2 = vnez %v4344_v4  ;;  %v4416_v17 = vmov 0  ;;  %v842_v2 = vld [vmem:[%s2298_s12 + $0x44] sm:$0xf] }
 0x1c7   : > { %v4405_v22 = vsel %vm3040_vm7, 4294967295, %v4404_v22  ;;  %vm3047_vm15 = vmxor %vm4406_vm11, %vm4235_vm12  ;;  %v1214_v63 = vunpack.c.l.b16 %v1178_v36  ;;  %v1215_v42 = vunpack.c.h.b16 %v1178_v36  ;;  %v4419_v51 = vmov 0 }
 0x1c8   : > { %v4408_v26 = vsel %vm3047_vm15, 4294967295, %v4407_v26  ;;  %vm956_vm5 = vmpackc.low %vm4409_vm3, %vm4409_vm3  ;;  %vm4431_vm15 = vnez %v4355_v19  ;;  %v3122_v5 = vadd.f32 %v1358_v30, %v1309_v9  ;;  %v4437_v29 = vmov 0  ;;  %1348 = vadd.xlane.f32.xlu0 %v1347_v6 }
 0x1c9   : > { %vm988_vm14 = vmand %vm4411_vm6, %vm956_vm5  ;;  %vm4418_vm5 = vcmp.eq.s32.totalorder %v2346_v45, %v2652_v53  ;;  %vm3097_vm8 = vcmp.ne.s32.totalorder %v1214_v63, 0  ;;  %vm4443_vm9 = vnez %v4377_v58  ;;  %v761_v63 = vadd.s32 96, %v2313_v33 }
 0x1ca   : > { %vm3075_vm11 = vmxor %vm4412_vm2, %vm4235_vm12  ;;  %vm4430_vm2 = vcmp.ge.f32.partialorder %v2834_v60, 0.1  ;;  %v1310_v9 = vsel %vm3097_vm8, %v2764_v56, 0.0  ;;  %v4465_v6 = vmov 0 }
 0x1cb   : > { %v4414_v52 = vsel %vm3075_vm11, 4294967295, %v4413_v52  ;;  %vm3082_vm3 = vmxor %vm4415_vm4, %vm4235_vm12  ;;  %vm3101_vm4 = vcmp.ne.s32.totalorder %v1215_v42, 0  ;;  %vm4429_vm11 = vcmp.ge.f32.partialorder %v2817_v14, 0.1  ;;  %v4455_v42 = vmov 0 }
 0x1cc   : > { %v4417_v17 = vsel %vm3082_vm3, 4294967295, %v4416_v17  ;;  %vm3091_vm6 = vmand %vm4418_vm5, %vm2326_vm1  ;;  %v1311_v36 = vsel %vm3101_vm4, %v2772_v28, 0.0  ;;  %1352 = vadd.xlane.f32.xlu0 %v2935_v21  ;;  %v762_v21 = vadd.s32 104, %v2313_v33 }
 0x1cd   : > { %v4420_v51 = vsel %vm3091_vm6, 4294967295, %v4419_v51  ;;  %vm4426_vm3 = vmpackc.low %vm4425_vm13, %vm4425_vm13  ;;  %vm4432_vm13 = vcmp.eq.s32.totalorder %v2346_v45, %v2863_v16 }
 0x1ce   : > { %vm3110_vm5 = vmand %vm988_vm14, %vm4426_vm3  ;;  %vm4436_vm3 = vcmp.ne.bf16.partialorder %v2768_v24, 0  ;;  %v3154_v24 = vpop.f32.mrb[17].mxu0 }
 0x1cf   : > { %vm953_vm6 = vmpackc.low %vm4430_vm2, %vm4429_vm11  ;;  %vm4435_vm11 = vnez %v4359_v3  ;;  %v3156_v3 = vadd.f32 %v1311_v36, %v1310_v9  ;;  %v3163_v56 = vpop.f32.mrb[18].mxu0 }
 0x1d0   : > { %vm3131_vm14 = vmand %vm4432_vm13, %vm2326_vm1  ;;  %vm4439_vm13 = vcmp.ne.bf16.partialorder %v2837_v55, 0  ;;  %v3177_v61 = vpop.f32.mrb[19].mxu0  ;;  %v4447_v55 = vmov 0 }
 0x1d1   : > { %v4434_v46 = vsel %vm3131_vm14, 4294967295, %v4433_v46  ;;  %vm3139_vm2 = vmand %vm4436_vm3, %vm4435_vm11  ;;  %vm4440_vm14 = vnez %v4366_v27  ;;  %vm4457_vm11 = vnez %v4398_v13  ;;  %v843_v13 = vld [vmem:[%s2298_s12 + $0x48] sm:$0xff] }
 0x1d2   : > { %v4438_v29 = vsel %vm3139_vm2, 4294967295, %v4437_v29  ;;  %vm985_vm7 = vmand %vm4439_vm13, %vm953_vm6  ;;  %vm4442_vm6 = vcmp.ge.f32.partialorder %v2669_v62, 0.1 }
 0x1d3   : > { %vm4441_vm8 = vmpackc.low %vm4369_vm0, %vm4368_vm10  ;;  %vm4446_vm10 = vcmp.eq.s32.totalorder %v2346_v45, %v2808_v43  ;;  %v763_v43 = vadd.s32 112, %v2313_v33 }
 0x1d4   : > { %vm1148_vm3 = vmand %vm985_vm7, %vm4441_vm8  ;;  %vm4449_vm8 = vcmp.ne.bf16.partialorder %v840_v50, 0  ;;  %v4458_v50 = vmov 0 }
 0x1d5   : > { %v1180_v28 = vsel %vm1148_vm3, 65537, %v4380_v12  ;;  %vm952_vm13 = vmpackc.low %vm4442_vm6, %vm4442_vm6 }
 0x1d6   : > { %vm3173_vm2 = vmxor %vm4443_vm9, %vm4235_vm12  ;;  %v1217_v58 = vunpack.c.l.b16 %v1180_v28  ;;  %v1218_v30 = vunpack.c.h.b16 %v1180_v28  ;;  %v3281_v28 = vpop.f32.mrb[20].mxu0 }
 0x1d7   : > { %v4445_v48 = vsel %vm3173_vm2, 4294967295, %v4444_v48  ;;  %vm3184_vm0 = vmand %vm4446_vm10, %vm2326_vm1  ;;  %vm4452_vm10 = vnez %v4322_v23  ;;  %v764_v23 = vadd.s32 120, %v2313_v33  ;;  %v4462_v33 = vmov 0 }
 0x1d8   : > { %v4448_v55 = vsel %vm3184_vm0, 4294967295, %v4447_v55  ;;  %vm984_vm3 = vmand %vm4449_vm8, %vm952_vm13  ;;  %vm4454_vm13 = vnez %v4395_v38 }
 0x1d9   : > { %vm4453_vm9 = vmpackc.low %vm4452_vm10, %vm4452_vm10 }
 0x1da   : > { %vm1147_vm7 = vmand %vm984_vm3, %vm4453_vm9  ;;  %vm1265_vm3 = vcmp.ne.s32.totalorder %v1217_v58, 0  ;;  %vm4461_vm9 = vcmp.eq.s32.totalorder %v2317_v35, %v2805_v41  ;;  %v3287_v58 = vadd.s32 %v2315_v34, %v761_v63 }
 0x1db   : > { %vm3209_vm8 = vmxor %vm4454_vm13, %vm4235_vm12  ;;  %vm1266_vm13 = vcmp.ne.s32.totalorder %v1218_v30, 0  ;;  %v1179_v38 = vsel %vm1147_vm7, 65537, %v4380_v12  ;;  %vm4464_vm7 = vcmp.eq.s32.totalorder %v2323_v39, %v2805_v41  ;;  %v1313_v31 = vsel %vm1265_vm3, %v2817_v14, 0.0  ;;  %v3269_v14 = vld [vmem:[%s2298_s12 + $0x54] sm:$0xff] }
 0x1dc   : > { %v4456_v42 = vsel %vm3209_vm8, 4294967295, %v4455_v42  ;;  %vm3216_vm6 = vmxor %vm4457_vm11, %vm4235_vm12  ;;  %vm4460_vm11 = vcmp.ge.f32.partialorder %v2688_v0, 0.1  ;;  %v1314_v4 = vsel %vm1266_vm13, %v2834_v60, 0.0  ;;  %v1216_v9 = vunpack.c.l.b16 %v1179_v38  ;;  %v3272_v60 = vld [vmem:[%s2298_s12 + $0x60] sm:$0xff]  ;;  %v3299_v38 = vpop.f32.mrb[21].mxu0 }
 0x1dd   : > { %v4459_v50 = vsel %vm3216_vm6, 4294967295, %v4458_v50  ;;  %vm958_vm6 = vmpackc.low %vm4460_vm11, %vm4460_vm11  ;;  %vm4467_vm11 = vcmp.ne.bf16.partialorder %v846_v1, 0  ;;  %v3257_v36 = vadd.f32 %v1314_v4, %v1313_v31  ;;  %v4475_v1 = vmov 0 }
 0x1de   : > { %vm3237_vm10 = vmand %vm4461_vm9, %vm2326_vm1  ;;  %vm4483_vm8 = vcmp.eq.s32.totalorder %v2323_v39, %v2863_v16  ;;  %v3320_v31 = vadd.s32 %v2315_v34, %v764_v23  ;;  %v3335_v23 = vadd.s32 %v2315_v34, %v762_v21  ;;  %v4500_v41 = vmov 0 }
 0x1df   : > { %v4463_v33 = vsel %vm3237_vm10, 4294967295, %v4462_v33  ;;  %vm3246_vm4 = vmand %vm4464_vm7, %vm2326_vm1  ;;  %vm4470_vm7 = vnez %v4336_v47  ;;  %v3284_v47 = vadd.s32 %v2315_v34, %v763_v43  ;;  %v4481_v43 = vmov 0 }
 0x1e0   : > { %v4466_v6 = vsel %vm3246_vm4, 4294967295, %v4465_v6  ;;  %vm990_vm9 = vmand %vm4467_vm11, %vm958_vm6  ;;  %vm4474_vm6 = vnez %v4420_v51  ;;  %vm4479_vm11 = vcmp.ge.f32.partialorder %v2712_v7, 0.1  ;;  %v3297_v51 = vld [vmem:[%s2298_s12 + $0x80] sm:$0xf]  ;;  %vm4487_vm10 = vnez %v4414_v52 }
 0x1e1   : > { %vm4471_vm4 = vmpackc.low %vm4470_vm7, %vm4470_vm7  ;;  %v4491_v34 = vmov 0 }
 0x1e2   : > { %vm3264_vm3 = vmand %vm990_vm9, %vm4471_vm4  ;;  %vm3289_vm4 = vcmp.ne.s32.totalorder %v1216_v9, 0 }
 0x1e3   : > { %vm3277_vm13 = vmxor %vm4474_vm6, %vm4235_vm12  ;;  %vm4480_vm6 = vcmp.eq.s32.totalorder %v2317_v35, %v2863_v16  ;;  %v1312_v4 = vsel %vm3289_vm4, %v2669_v62, 0.0  ;;  %v3332_v16 = vpop.f32.mrb[22].mxu0  ;;  %v1183_v62 = vsel %vm3110_vm5, 65537, %v4380_v12  ;;  %v1185_v19 = vsel %vm3264_vm3, 65537, %v4380_v12 }
 0x1e4   : > { %v4476_v1 = vsel %vm3277_vm13, 4294967295, %v4475_v1  ;;  %vm954_vm9 = vmpackc.low %vm4479_vm11, %vm4479_vm11  ;;  %vm4490_vm13 = vnez %v4434_v46  ;;  %v3355_v53 = vpop.f32.mrb[23].mxu0  ;;  %vm4494_vm5 = vnez %v4438_v29  ;;  %v3370_v46 = vld [vmem:[%s2298_s12 + $0x6c] sm:$0xff]  ;;  %v1222_v27 = vunpack.c.l.b16 %v1183_v62 }
 0x1e5   : > { %vm3306_vm2 = vmand %vm4480_vm6, %vm2326_vm1  ;;  %vm4486_vm6 = vcmp.ne.bf16.partialorder %v842_v2, 0  ;;  %v1363_v2 = vadd.f32 %v3156_v3, %v1312_v4  ;;  %v1225_v30 = vunpack.c.l.b16 %v1185_v19  ;;  %v3433_v4 = vpop.f32.mrb[24].mxu0 }
 0x1e6   : > { %v4482_v43 = vsel %vm3306_vm2, 4294967295, %v4481_v43  ;;  %vm3315_vm11 = vmand %vm4483_vm8, %vm2326_vm1  ;;  %vm4488_vm8 = vnez %v4417_v17 }
 0x1e7   : > { %vm986_vm7 = vmand %vm4486_vm6, %vm954_vm9  ;;  %1364 = vadd.xlane.f32.xlu0 %v1363_v2 }
 0x1e8   : > { %vm4489_vm4 = vmpackc.low %vm4431_vm15, %vm4431_vm15 }
 0x1e9   : > { %vm1149_vm9 = vmand %vm986_vm7, %vm4489_vm4 }
 0x1ea   : > { %vm3351_vm2 = vmxor %vm4490_vm13, %vm4235_vm12  ;;  %v1181_v21 = vsel %vm1149_vm9, 65537, %v4380_v12  ;;  %vm4495_vm9 = vcmp.ge.f32.partialorder %v2937_v59, 0.1  ;;  %vm4497_vm13 = vcmp.ne.bf16.partialorder %v843_v13, 0 }
 0x1eb   : > { %v4492_v34 = vsel %vm3351_vm2, 4294967295, %v4491_v34  ;;  %vm4493_vm15 = vmpackc.low %vm4440_vm14, %vm4440_vm14  ;;  %v1219_v3 = vunpack.c.l.b16 %v1181_v21  ;;  %vm4496_vm14 = vcmp.ge.f32.partialorder %v2969_v15, 0.1  ;;  %v4516_v21 = vmov 0 }
 0x1ec   : > { %vm1143_vm7 = vmand %vm4494_vm5, %vm4493_vm15  ;;  %vm3481_vm15 = vcmp.ne.s32.totalorder %v1225_v30, 0 }
 0x1ed   : > { %v1175_v9 = vsel %vm1143_vm7, 65537, %v4380_v12  ;;  %vm955_vm0 = vmpackc.low %vm4496_vm14, %vm4495_vm9  ;;  %vm4499_vm7 = vnez %v4448_v55  ;;  %vm3398_vm5 = vcmp.ne.s32.totalorder %v1219_v3, 0  ;;  %vm4507_vm14 = vcmp.eq.s32.totalorder %v2346_v45, %v3287_v58  ;;  %v3455_v3 = vpop.f32.mrb[25].mxu0 }
 0x1ee   : > { %v1210_v29 = vunpack.c.l.b16 %v1175_v9  ;;  %vm987_vm4 = vmand %vm4497_vm13, %vm955_vm0  ;;  %vm4504_vm0 = vnez %v4389_v18  ;;  %vm4505_vm13 = vnez %v4386_v54  ;;  %v4508_v55 = vmov 0 }
 0x1ef   : > { %vm3390_vm2 = vmxor %vm4499_vm7, %vm4235_vm12  ;;  %v1315_v54 = vsel %vm3398_vm5, %v2712_v7, 0.0  ;;  %vm4514_vm5 = vcmp.ne.bf16.partialorder %v3269_v14, 0 }
 0x1f0   : > { %v4501_v41 = vsel %vm3390_vm2, 4294967295, %v4500_v41  ;;  %vm4506_vm3 = vmpackc.low %vm4504_vm0, %vm4505_vm13  ;;  %vm4511_vm0 = vcmp.ge.f32.partialorder %v3027_v49, 0.1  ;;  %v3439_v19 = vadd.f32 %v3257_v36, %v1315_v54  ;;  %vm4536_vm2 = vnez %v4476_v1 }
 0x1f1   : > { %vm1150_vm7 = vmand %vm987_vm4, %vm4506_vm3  ;;  %vm1258_vm4 = vcmp.ne.s32.totalorder %v1210_v29, 0  ;;  %vm4510_vm3 = vcmp.ge.f32.partialorder %v2996_v8, 0.1  ;;  %v4598_v1 = vmov 0 }
 0x1f2   : > { %vm3414_vm9 = vmand %vm4507_vm14, %vm2326_vm1  ;;  %v1182_v18 = vsel %vm1150_vm7, 65537, %v4380_v12  ;;  %v1306_v62 = vsel %vm1258_vm4, %v2489_v10, 0.0  ;;  %v4519_v10 = vmov 0  ;;  %vm3457_vm4 = vcmp.ne.s32.totalorder %v1222_v27, 0 }
 0x1f3   : > { %v4509_v55 = vsel %vm3414_vm9, 4294967295, %v4508_v55  ;;  %vm957_vm13 = vmpackc.low %vm4511_vm0, %vm4510_vm3  ;;  %v1220_v7 = vunpack.c.l.b16 %v1182_v18  ;;  %v1221_v2 = vunpack.c.h.b16 %v1182_v18  ;;  %vm4515_vm3 = vnez %v4463_v33  ;;  %v4526_v33 = vld [vmem:[#allocation14_spill] sm:$0xff] }
 0x1f4   : > { %vm989_vm7 = vmand %vm4514_vm5, %vm957_vm13  ;;  %vm4518_vm9 = vnez %v4466_v6  ;;  %v1355_v36 = vadd.f32 %v3035_v20, %v1306_v62  ;;  %vm4523_vm13 = vnez %v4408_v26  ;;  %vm4524_vm5 = vnez %v4405_v22  ;;  %v3479_v20 = vpop.f32.mrb[26].mxu0 }
 0x1f5   : > { %vm3444_vm0 = vmxor %vm4515_vm3, %vm4235_vm12  ;;  %v4528_v6 = vmov 0  ;;  %v4530_v22 = vmov 0  ;;  %v3506_v29 = vpop.f32.mrb[27].mxu0  ;;  %v4542_v62 = vmov 0 }
 0x1f6   : > { %v4517_v21 = vsel %vm3444_vm0, 4294967295, %v4516_v21  ;;  %vm3451_vm6 = vmxor %vm4518_vm9, %vm4235_vm12  ;;  %vm4527_vm9 = vcmp.eq.s32.totalorder %v2346_v45, %v3284_v47  ;;  %v4531_v22 = vsel %vm3481_vm15, 4294967295, %v4530_v22  ;;  %1356 = vadd.xlane.f32.xlu1 %v1355_v36  ;;  %v4555_v36 = vmov 0 }
 0x1f7   : > { %v4520_v10 = vsel %vm3451_vm6, 4294967295, %v4519_v10  ;;  %vm4525_vm3 = vmpackc.low %vm4523_vm13, %vm4524_vm5  ;;  %vm1269_vm13 = vcmp.ne.s32.totalorder %v1221_v2, 0  ;;  %vm4534_vm5 = vcmp.ge.f32.partialorder %v3124_v32, 0.1 }
 0x1f8   : > { %vm1152_vm14 = vmand %vm989_vm7, %vm4525_vm3  ;;  %vm3485_vm7 = vcmp.ne.s32.totalorder %v1220_v7, 0  ;;  %vm4535_vm3 = vcmp.ge.f32.partialorder %v3154_v24, 0.1  ;;  %v1317_v13 = vsel %vm1269_vm13, %v2969_v15, 0.0  ;;  %v4544_v7 = vmov 0 }
 0x1f9   : > { %vm3473_vm6 = vmand %vm4527_vm9, %vm2326_vm1  ;;  %v1184_v9 = vsel %vm1152_vm14, 65537, %v4380_v12  ;;  %v1316_v30 = vsel %vm3485_vm7, %v2937_v59, 0.0  ;;  %vm4540_vm14 = vcmp.ne.bf16.partialorder %v3272_v60, 0  ;;  %v1318_v59 = vsel %vm3457_vm4, %v2617_v44, 0.0 }
 0x1fa   : > { %v4529_v6 = vsel %vm3473_vm6, 4294967295, %v4528_v6  ;;  %vm959_vm9 = vmpackc.low %vm4535_vm3, %vm4534_vm5  ;;  %vm4537_vm6 = vcmp.eq.s32.totalorder %v2346_v45, %v3320_v31  ;;  %v1223_v54 = vunpack.c.l.b16 %v1184_v9  ;;  %v1224_v18 = vunpack.c.h.b16 %v1184_v9  ;;  %1360 = vadd.xlane.f32.xlu1 %v3122_v5  ;;  %v854_v9 = vld [vmem:[%s2298_s12 + $0x8c] sm:$0xf] }
 0x1fb   : > { %vm3502_vm15 = vmand %vm4537_vm6, %vm2326_vm1  ;;  %vm4541_vm6 = vnez %v4482_v43  ;;  %v1370_v15 = vadd.f32 %v1317_v13, %v1316_v30  ;;  %v4548_v60 = vmov 0  ;;  %vm4550_vm4 = vnez %v4531_v22 }
 0x1fc   : > { %vm991_vm5 = vmand %vm4540_vm14, %vm959_vm9  ;;  %v1321_v44 = vsel %vm4550_vm4, %v2688_v0, 0.0  ;;  %v848_v0 = vld [vmem:[%s2298_s12 + $0x68] sm:$0xf]  ;;  %v4572_v13 = vmov 0 }
 0x1fd   : > { %vm3517_vm3 = vmxor %vm4541_vm6, %vm4235_vm12  ;;  %v1371_v14 = vadd.f32 %v1370_v15, %v1318_v59  ;;  %v850_v59 = vld [vmem:[%s2298_s12 + $0x74] sm:$0xf]  ;;  %v4592_v15 = vmov 0 }
 0x1fe   : > { %v4543_v62 = vsel %vm3517_vm3, 4294967295, %v4542_v62  ;;  %vm3524_vm0 = vmxor %vm3315_vm11, %vm4235_vm12  ;;  %vm4547_vm11 = vcmp.eq.s32.totalorder %v2346_v45, %v3335_v23  ;;  %1368 = vadd.xlane.f32.xlu1 %v3439_v19  ;;  %v4589_v19 = vmov 0 }
 0x1ff   : > { %v4545_v7 = vsel %vm3524_vm0, 4294967295, %v4544_v7  ;;  %vm4546_vm7 = vmpackc.low %vm4488_vm8, %vm4487_vm10  ;;  %vm1271_vm10 = vcmp.ne.s32.totalorder %v1223_v54, 0  ;;  %vm1272_vm8 = vcmp.ne.s32.totalorder %v1224_v18, 0  ;;  %1372 = vadd.xlane.f32.xlu0 %v1371_v14  ;;  %v860_v14 = vld [vmem:[%s2298_s12 + $0xb0] sm:$0xf] }
 0x200   : > { %vm1154_vm13 = vmand %vm991_vm5, %vm4546_vm7  ;;  %vm4551_vm5 = vcmp.ge.f32.partialorder %v4526_v33, 0.1  ;;  %v1319_v45 = vsel %vm1271_vm10, %v2996_v8, 0.0  ;;  %v1320_v17 = vsel %vm1272_vm8, %v3027_v49, 0.0  ;;  %vm4557_vm10 = vcmp.eq.s32.totalorder %v2323_v39, %v3287_v58  ;;  %v3585_v8 = vpop.f32.mrb[28].mxu0 }
 0x201   : > { %vm3543_vm6 = vmand %vm4547_vm11, %vm2326_vm1  ;;  %v1186_v52 = vsel %vm1154_vm13, 65537, %v4380_v12  ;;  %vm4553_vm11 = vcmp.ne.bf16.partialorder %v3297_v51, 0  ;;  %v1374_v2 = vadd.f32 %v1320_v17, %v1319_v45  ;;  %vm4554_vm13 = vcmp.eq.s32.totalorder %v2317_v35, %v3287_v58  ;;  %v4568_v51 = vld [vmem:[#allocation15_spill] sm:$0xff]  ;;  %v3608_v22 = vpop.f32.mrb[29].mxu0  ;;  %v851_v17 = vld [vmem:[%s2298_s12 + $0x78] sm:$0xff] }
 0x202   : > { %v4549_v60 = vsel %vm3543_vm6, 4294967295, %v4548_v60  ;;  %vm964_vm7 = vmpackc.low %vm4551_vm5, %vm4551_vm5  ;;  %v1226_v43 = vunpack.c.l.b16 %v1186_v52  ;;  %v1227_v63 = vunpack.c.h.b16 %v1186_v52  ;;  %v4558_v49 = vmov 0  ;;  %v3624_v54 = vpop.f32.mrb[30].mxu0 }
 0x203   : > { %vm996_vm4 = vmand %vm4553_vm11, %vm964_vm7  ;;  %vm4566_vm7 = vcmp.ge.f32.partialorder %v3163_v56, 0.1  ;;  %vm4567_vm11 = vcmp.ge.f32.partialorder %v3177_v61, 0.1  ;;  %v1375_v30 = vadd.f32 %v1374_v2, %v1321_v44  ;;  %v4600_v44 = vld [vmem:[#allocation17_spill] sm:$0xff]  ;;  %v4624_v58 = vmov 0 }
 0x204   : > { %vm3568_vm5 = vmand %vm4554_vm13, %vm2326_vm1  ;;  %vm3587_vm13 = vcmp.ne.s32.totalorder %v1226_v43, 0  ;;  %vm1275_vm9 = vcmp.ne.s32.totalorder %v1227_v63, 0  ;;  %v4605_v43 = vmov 0 }
 0x205   : > { %v4556_v36 = vsel %vm3568_vm5, 4294967295, %v4555_v36  ;;  %vm3577_vm8 = vmand %vm4557_vm10, %vm2326_vm1  ;;  %vm4562_vm5 = vnez %v4445_v48  ;;  %v1322_v48 = vsel %vm3587_vm13, %v3124_v32, 0.0  ;;  %v1323_v26 = vsel %vm1275_vm9, %v3154_v24, 0.0  ;;  %1376 = vadd.xlane.f32.xlu1 %v1375_v30 }
 0x206   : > { %v4559_v49 = vsel %vm3577_vm8, 4294967295, %v4558_v49  ;;  %vm4563_vm10 = vmpackc.low %vm4562_vm5, %vm4562_vm5  ;;  %v1378_v18 = vadd.f32 %v1323_v26, %v1322_v48  ;;  %vm4574_vm13 = vnez %v4459_v50  ;;  %vm4575_vm9 = vnez %v4456_v42  ;;  %v3653_v42 = vpop.f32.mrb[31].mxu0  ;;  %v856_v26 = vld [vmem:[%s2298_s12 + $0x98] sm:$0xf] }
 0x207   : > { %vm3596_vm14 = vmand %vm996_vm4, %vm4563_vm10  ;;  %vm4570_vm4 = vcmp.ne.bf16.partialorder %v3370_v46, 0  ;;  %v4578_v32 = vmov 0  ;;  %v4581_v24 = vmov 0 }
 0x208   : > { %vm961_vm8 = vmpackc.low %vm4567_vm11, %vm4566_vm7  ;;  %vm4571_vm7 = vnez %v4509_v55  ;;  %v1191_v2 = vsel %vm3596_vm14, 65537, %v4380_v12 }
 0x209   : > { %vm993_vm5 = vmand %vm4570_vm4, %vm961_vm8  ;;  %vm4577_vm4 = vcmp.eq.s32.totalorder %v2317_v35, %v3335_v23 }
 0x20a   : > { %vm3620_vm11 = vmxor %vm4571_vm7, %vm4235_vm12  ;;  %vm4580_vm7 = vcmp.eq.s32.totalorder %v2323_v39, %v3335_v23  ;;  %v4584_v23 = vld [vmem:[#allocation16_spill] sm:$0xff] }
 0x20b   : > { %v4573_v13 = vsel %vm3620_vm11, 4294967295, %v4572_v13  ;;  %vm4576_vm3 = vmpackc.low %vm4574_vm13, %vm4575_vm9  ;;  %vm4583_vm13 = vcmp.ge.f32.partialorder %v4568_v51, 0.1 }
 0x20c   : > { %vm1156_vm8 = vmand %vm993_vm5, %vm4576_vm3  ;;  %vm4587_vm5 = vcmp.ne.bf16.partialorder %v848_v0, 0  ;;  %v4615_v0 = vmov 0 }
 0x20d   : > { %vm3636_vm10 = vmand %vm4577_vm4, %vm2326_vm1  ;;  %v1188_v50 = vsel %vm1156_vm8, 65537, %v4380_v12  ;;  %vm930_vm4 = vcmp.ge.f32.partialorder %v4584_v23, 0.1  ;;  %vm4588_vm8 = vnez %v4529_v6  ;;  %v4595_v6 = vmov 0 }
 0x20e   : > { %v4579_v32 = vsel %vm3636_vm10, 4294967295, %v4578_v32  ;;  %vm3645_vm6 = vmand %vm4580_vm7, %vm2326_vm1  ;;  %v1229_v46 = vunpack.c.l.b16 %v1188_v50  ;;  %v1230_v55 = vunpack.c.h.b16 %v1188_v50  ;;  %vm4611_vm7 = vnez %v4556_v36 }
 0x20f   : > { %v4582_v24 = vsel %vm3645_vm6, 4294967295, %v4581_v24  ;;  %vm960_vm9 = vmpackc.low %vm4583_vm13, %vm4583_vm13 }
 0x210   : > { %vm992_vm10 = vmand %vm4587_vm5, %vm960_vm9  ;;  %vm4594_vm9 = vcmp.eq.s32.totalorder %v2317_v35, %v3284_v47 }
 0x211   : > { %vm3670_vm0 = vmxor %vm4588_vm8, %vm4235_vm12 }
 0x212   : > { %v4590_v19 = vsel %vm3670_vm0, 4294967295, %v4589_v19  ;;  %vm4591_vm13 = vmpackc.low %vm4536_vm2, %vm4536_vm2  ;;  %vm4597_vm2 = vcmp.eq.s32.totalorder %v2323_v39, %v3284_v47 }
 0x213   : > { %vm1155_vm3 = vmand %vm992_vm10, %vm4591_vm13  ;;  %vm1278_vm13 = vcmp.ne.s32.totalorder %v1230_v55, 0 }
 0x214   : > { %vm3682_vm5 = vmxor %vm3502_vm15, %vm4235_vm12  ;;  %vm1277_vm15 = vcmp.ne.s32.totalorder %v1229_v46, 0  ;;  %v1187_v27 = vsel %vm1155_vm3, 65537, %v4380_v12  ;;  %v1326_v47 = vsel %vm1278_vm13, %v3177_v61, 0.0  ;;  %vm4604_vm3 = vnez %v4549_v60  ;;  %v853_v60 = vld [vmem:[%s2298_s12 + $0x84] sm:$0xff] }
 0x215   : > { %v4593_v15 = vsel %vm3682_vm5, 4294967295, %v4592_v15  ;;  %vm3691_vm8 = vmand %vm4594_vm9, %vm2326_vm1  ;;  %vm924_vm5 = vcmp.ge.f32.partialorder %v4600_v44, 0.1  ;;  %v1325_v52 = vsel %vm1277_vm15, %v3163_v56, 0.0  ;;  %v1228_v45 = vunpack.c.l.b16 %v1187_v27  ;;  %v862_v27 = vld [vmem:[%s2298_s12 + $0xbc] sm:$0xf] }
 0x216   : > { %v4596_v6 = vsel %vm3691_vm8, 4294967295, %v4595_v6  ;;  %vm3700_vm10 = vmand %vm4597_vm2, %vm2326_vm1  ;;  %vm4603_vm2 = vcmp.ne.bf16.partialorder %v854_v9, 0  ;;  %v1382_v63 = vadd.f32 %v1326_v47, %v1325_v52  ;;  %vm4607_vm15 = vnez %v4492_v34 }
 0x217   : > { %v4599_v1 = vsel %vm3700_vm10, 4294967295, %v4598_v1  ;;  %vm966_vm11 = vmpackc.low %vm930_vm4, %vm930_vm4  ;;  %vm882_vm10 = vcmp.ne.bf16.partialorder %v850_v59, 0  ;;  %vm925_vm9 = vcmp.ge.f32.partialorder %v3281_v28, 0.1  ;;  %vm926_vm8 = vcmp.ge.f32.partialorder %v3299_v38, 0.1 }
 0x218   : > { %vm998_vm1 = vmand %vm4603_vm2, %vm966_vm11  ;;  %vm1276_vm11 = vcmp.ne.s32.totalorder %v1228_v45, 0  ;;  %v4612_v34 = vmov 0  ;;  %v4680_v56 = vmov 0 }
 0x219   : > { %vm3717_vm4 = vmxor %vm4604_vm3, %vm4235_vm12  ;;  %v1324_v61 = vsel %vm1276_vm11, %v4568_v51, 0.0  ;;  %vm928_vm11 = vcmp.ge.f32.partialorder %v3332_v16, 0.1  ;;  %v1234_v51 = vunpack.c.l.b16 %v1191_v2  ;;  %v861_v2 = vld [vmem:[%s2298_s12 + $0xb4] sm:$0xff] }
 0x21a   : > { %v4606_v43 = vsel %vm3717_vm4, 4294967295, %v4605_v43  ;;  %vm4608_vm13 = vmpackc.low %vm4607_vm15, %vm4607_vm15  ;;  %vm883_vm4 = vcmp.ne.bf16.partialorder %v851_v17, 0  ;;  %v1379_v36 = vadd.f32 %v1378_v18, %v1324_v61  ;;  %v4683_v61 = vmov 0 }
 0x21b   : > { %vm3726_vm0 = vmand %vm998_vm1, %vm4608_vm13  ;;  %vm4614_vm1 = vnez %v4559_v49 }
 0x21c   : > { %vm962_vm2 = vmpackc.low %vm924_vm5, %vm924_vm5  ;;  %1380 = vadd.xlane.f32.xlu0 %v1379_v36  ;;  %v1193_v48 = vsel %vm3726_vm0, 65537, %v4380_v12 }
 0x21d   : > { %vm994_vm3 = vmand %vm882_vm10, %vm962_vm2  ;;  %vm4617_vm10 = vnez %v4501_v41  ;;  %vm929_vm2 = vcmp.ge.f32.partialorder %v3355_v53, 0.1  ;;  %v4621_v41 = vmov 0  ;;  %v1237_v50 = vunpack.c.l.b16 %v1193_v48 }
 0x21e   : > { %vm3737_vm6 = vmxor %vm4611_vm7, %vm4235_vm12 }
 0x21f   : > { %v4613_v34 = vsel %vm3737_vm6, 4294967295, %v4612_v34  ;;  %vm3744_vm5 = vmxor %vm4614_vm1, %vm4235_vm12  ;;  %vm4619_vm1 = vnez %v4573_v13 }
 0x220   : > { %v4616_v0 = vsel %vm3744_vm5, 4294967295, %v4615_v0  ;;  %vm4618_vm15 = vmpackc.low %vm4617_vm10, %vm4617_vm10 }
 0x221   : > { %vm1157_vm7 = vmand %vm994_vm3, %vm4618_vm15  ;;  %vm4620_vm3 = vnez %v4579_v32  ;;  %vm4627_vm15 = vnez %v4517_v21  ;;  %v4635_v32 = vmov 0 }
 0x222   : > { %v1189_v5 = vsel %vm1157_vm7, 65537, %v4380_v12  ;;  %vm963_vm13 = vmpackc.low %vm926_vm8, %vm925_vm9  ;;  %vm4623_vm8 = vnez %v4582_v24  ;;  %v4638_v24 = vmov 0 }
 0x223   : > { %v1231_v49 = vunpack.c.l.b16 %v1189_v5  ;;  %vm995_vm5 = vmand %vm883_vm4, %vm963_vm13  ;;  %vm4626_vm4 = vnez %v4520_v10 }
 0x224   : > { %vm3766_vm10 = vmxor %vm4620_vm3, %vm4235_vm12 }
 0x225   : > { %v4622_v41 = vsel %vm3766_vm10, 4294967295, %v4621_v41  ;;  %vm3773_vm9 = vmxor %vm4623_vm8, %vm4235_vm12  ;;  %vm3786_vm14 = vcmp.ne.s32.totalorder %v1231_v49, 0  ;;  %vm931_vm10 = vcmp.ge.f32.partialorder %v3433_v4, 0.1 }
 0x226   : > { %v4625_v58 = vsel %vm3773_vm9, 4294967295, %v4624_v58  ;;  %vm4628_vm7 = vmpackc.low %vm4626_vm4, %vm4627_vm15  ;;  %v1327_v21 = vsel %vm3786_vm14, %v4600_v44, 0.0  ;;  %vm4632_vm15 = vcmp.ne.bf16.partialorder %v853_v60, 0  ;;  %vm4637_vm4 = vnez %v4599_v1  ;;  %v859_v60 = vld [vmem:[%s2298_s12 + $0xa8] sm:$0xff] }
 0x227   : > { %vm1158_vm13 = vmand %vm995_vm5, %vm4628_vm7  ;;  %v1383_v46 = vadd.f32 %v1382_v63, %v1327_v21  ;;  %vm4645_vm14 = vcmp.ge.f32.partialorder %v3016_v11, 0.1  ;;  %v4649_v44 = vmov 0  ;;  %v4672_v63 = vmov 0 }
 0x228   : > { %v1190_v30 = vsel %vm1158_vm13, 65537, %v4380_v12  ;;  %vm965_vm8 = vmpackc.low %vm929_vm2, %vm928_vm11  ;;  %vm4634_vm2 = vnez %v4596_v6  ;;  %vm3830_vm13 = vcmp.ne.s32.totalorder %v1234_v51, 0  ;;  %vm4678_vm9 = vmmov 1  }
 0x229   : > { %v1232_v10 = vunpack.c.l.b16 %v1190_v30  ;;  %v1233_v18 = vunpack.c.h.b16 %v1190_v30  ;;  %vm997_vm7 = vmand %vm4632_vm15, %vm965_vm8  ;;  %vm4640_vm8 = vnez %v4545_v7  ;;  %vm4641_vm15 = vnez %v4543_v62  ;;  %1384 = vadd.xlane.f32.xlu1 %v1383_v46 }
 0x22a   : > { %vm3811_vm3 = vmxor %vm4634_vm2, %vm4235_vm12 }
 0x22b   : > { %v4636_v32 = vsel %vm3811_vm3, 4294967295, %v4635_v32  ;;  %vm3818_vm5 = vmxor %vm4637_vm4, %vm4235_vm12  ;;  %vm933_vm3 = vcmp.ge.f32.partialorder %v3051_v25, 0.1  ;;  %vm1280_vm4 = vcmp.ne.s32.totalorder %v1232_v10, 0  ;;  %vm1281_vm12 = vcmp.ne.s32.totalorder %v1233_v18, 0 }
 0x22c   : > { %v4639_v24 = vsel %vm3818_vm5, 4294967295, %v4638_v24  ;;  %vm4642_vm2 = vmpackc.low %vm4640_vm8, %vm4641_vm15  ;;  %v1328_v62 = vsel %vm1280_vm4, %v3281_v28, 0.0  ;;  %v1329_v7 = vsel %vm1281_vm12, %v3299_v38, 0.0  ;;  %vm4647_vm8 = vnez %v4220_v40 }
 0x22d   : > { %vm1160_vm11 = vmand %vm997_vm7, %vm4642_vm2  ;;  %v4652_v28 = vmov 0  ;;  %v1386_v38 = vadd.f32 %v1329_v7, %v1328_v62  ;;  %vm4654_vm2 = vcmp.ne.bf16.partialorder %v860_v14, 0  ;;  %vm3871_vm7 = vcmp.ne.s32.totalorder %v1237_v50, 0 }
 0x22e   : > { %v1192_v59 = vsel %vm1160_vm11, 65537, %v4380_v12  ;;  %vm972_vm5 = vmpackc.low %vm4645_vm14, %vm4645_vm14  ;;  %vm4648_vm11 = vcmp.eq.s32.totalorder %v2317_v35, %v3320_v31  ;;  %vm4651_vm14 = vcmp.eq.s32.totalorder %v2323_v39, %v3320_v31  ;;  %v1330_v35 = vsel %vm3830_vm13, %v4526_v33, 0.0  ;;  %v858_v33 = vld [vmem:[%s2298_s12 + $0xa4] sm:$0xf] }
 0x22f   : > { %v1235_v6 = vunpack.c.l.b16 %v1192_v59  ;;  %v1236_v1 = vunpack.c.h.b16 %v1192_v59  ;;  %vm3849_vm15 = vmand %vm4648_vm11, %vm4647_vm8  ;;  %vm4661_vm13 = vcmp.ne.bf16.partialorder %v856_v26, 0  ;;  %v1387_v47 = vadd.f32 %v1386_v38, %v1330_v35 }
 0x230   : > { %v4650_v44 = vsel %vm3849_vm15, 4294967295, %v4649_v44  ;;  %vm3858_vm12 = vmand %vm4651_vm14, %vm4647_vm8  ;;  %vm894_vm15 = vcmp.ne.bf16.partialorder %v862_v27, 0 }
 0x231   : > { %v4653_v28 = vsel %vm3858_vm12, 4294967295, %v4652_v28  ;;  %vm3863_vm4 = vmand %vm4654_vm2, %vm972_vm5  ;;  %vm1283_vm8 = vcmp.ne.s32.totalorder %v1235_v6, 0  ;;  %vm1284_vm14 = vcmp.ne.s32.totalorder %v1236_v1, 0  ;;  %1388 = vadd.xlane.f32.xlu0 %v1387_v47  ;;  %vm4670_vm12 = vnez %v4593_v15  ;;  %v857_v15 = vld [vmem:[%s2298_s12 + $0x9c] sm:$0xff] }
 0x232   : > { %vm968_vm0 = vmpackc.low %vm933_vm3, %vm933_vm3  ;;  %v1331_v39 = vsel %vm1283_vm8, %v3332_v16, 0.0  ;;  %v1332_v31 = vsel %vm1284_vm14, %v3355_v53, 0.0  ;;  %v1333_v16 = vsel %vm3871_vm7, %v4584_v23, 0.0  ;;  %vm4665_vm8 = vcmp.ge.f32.partialorder %v3062_v37, 0.1  ;;  %v855_v53 = vld [vmem:[%s2298_s12 + $0x90] sm:$0xff] }
 0x233   : > { %vm1000_vm11 = vmand %vm4661_vm13, %vm968_vm0  ;;  %v1390_v45 = vadd.f32 %v1332_v31, %v1331_v39  ;;  %vm936_vm14 = vcmp.ge.f32.partialorder %v3068_v57, 0.1  ;;  %v4668_v23 = vmov 0  ;;  %vm934_vm5 = vcmp.ge.f32.partialorder %v3479_v20, 0.1 }
 0x234   : > { %vm4662_vm3 = vmpackc.low %vm4619_vm1, %vm4619_vm1 }
 0x235   : > { %vm3891_vm6 = vmand %vm1000_vm11, %vm4662_vm3  ;;  %vm890_vm11 = vcmp.ne.bf16.partialorder %v858_v33, 0  ;;  %v1391_v13 = vadd.f32 %v1390_v45, %v1333_v16  ;;  %vm4666_vm3 = vnez %v4590_v19 }
 0x236   : > { %vm974_vm0 = vmpackc.low %vm4665_vm8, %vm4665_vm8  ;;  %v1195_v19 = vsel %vm3891_vm6, 65537, %v4380_v12  ;;  %vm4682_vm6 = vnez %v4653_v28 }
 0x237   : > { %vm1006_vm1 = vmand %vm894_vm15, %vm974_vm0  ;;  %1392 = vadd.xlane.f32.xlu1 %v1391_v13 }
 0x238   : > { %vm4667_vm7 = vmpackc.low %vm4666_vm3, %vm4666_vm3  ;;  %vm932_vm3 = vcmp.ge.f32.partialorder %v3455_v3, 0.1 }
 0x239   : > { %vm3914_vm8 = vmand %vm3863_vm4, %vm4667_vm7  ;;  %vm935_vm7 = vcmp.ge.f32.partialorder %v3506_v29, 0.1  ;;  %vm4679_vm4 = vnez %v4650_v44 }
 0x23a   : > { %v4669_v23 = vsel %vm3914_vm8, 4294967295, %v4668_v23  ;;  %vm4671_vm13 = vmpackc.low %vm4670_vm12, %vm4670_vm12 }
 0x23b   : > { %vm3923_vm15 = vmand %vm1006_vm1, %vm4671_vm13  ;;  %vm887_vm13 = vcmp.ne.bf16.partialorder %v855_v53, 0 }
 0x23c   : > { %v4673_v63 = vsel %vm3923_vm15, 4294967295, %v4672_v63  ;;  %vm970_vm0 = vmpackc.low %vm936_vm14, %vm936_vm14  ;;  %vm4676_vm14 = vnez %v4606_v43  ;;  %v1240_v43 = vunpack.c.l.b16 %v1195_v19 }
 0x23d   : > { %vm1002_vm12 = vmand %vm890_vm11, %vm970_vm0  ;;  %vm889_vm0 = vcmp.ne.bf16.partialorder %v857_v15, 0 }
 0x23e   : > { %vm4677_vm1 = vmpackc.low %vm4676_vm14, %vm4676_vm14 }
 0x23f   : > { %vm1165_vm15 = vmand %vm1002_vm12, %vm4677_vm1  ;;  %vm4688_vm1 = vnez %v4669_v23 }
 0x240   : > { %vm967_vm8 = vmpackc.low %vm932_vm3, %vm931_vm10  ;;  %v1197_v14 = vsel %vm1165_vm15, 65537, %v4380_v12  ;;  %vm4685_vm3 = vnez %v4616_v0  ;;  %v1199_v36 = vsel %vm4688_vm1, 65537, %v4380_v12 }
 0x241   : > { %vm3947_vm2 = vmxor %vm4679_vm4, %vm4678_vm9  ;;  %vm4686_vm4 = vnez %v4613_v34  ;;  %v1243_v0 = vunpack.c.l.b16 %v1197_v14  ;;  %v1246_v48 = vunpack.c.l.b16 %v1199_v36 }
 0x242   : > { %v4681_v56 = vsel %vm3947_vm2, 4294967295, %v4680_v56  ;;  %vm3954_vm11 = vmxor %vm4682_vm6, %vm4678_vm9  ;;  %vm891_vm6 = vcmp.ne.bf16.partialorder %v859_v60, 0  ;;  %vm3972_vm2 = vcmp.ne.s32.totalorder %v1240_v43, 0 }
 0x243   : > { %v4684_v61 = vsel %vm3954_vm11, 4294967295, %v4683_v61  ;;  %vm999_vm10 = vmand %vm887_vm13, %vm967_vm8  ;;  %vm937_vm8 = vcmp.ge.f32.partialorder %v3585_v8, 0.1  ;;  %vm938_vm13 = vcmp.ge.f32.partialorder %v3608_v22, 0.1  ;;  %vm893_vm11 = vcmp.ne.bf16.partialorder %v861_v2, 0 }
 0x244   : > { %vm4687_vm12 = vmpackc.low %vm4685_vm3, %vm4686_vm4  ;;  %vm4692_vm3 = vnez %v4622_v41  ;;  %v1336_v21 = vsel %vm3972_vm2, %v3051_v25, 0.0 }
 0x245   : > { %vm1162_vm14 = vmand %vm999_vm10, %vm4687_vm12  ;;  %vm4691_vm10 = vnez %v4625_v58  ;;  %vm941_vm12 = vcmp.ge.f32.partialorder %v3653_v42, 0.1 }
 0x246   : > { %v1194_v5 = vsel %vm1162_vm14, 65537, %v4380_v12  ;;  %vm969_vm9 = vmpackc.low %vm935_vm7, %vm934_vm5  ;;  %vm940_vm7 = vcmp.ge.f32.partialorder %v3624_v54, 0.1 }
 0x247   : > { %v1238_v49 = vunpack.c.l.b16 %v1194_v5  ;;  %v1239_v51 = vunpack.c.h.b16 %v1194_v5  ;;  %vm1001_vm15 = vmand %vm889_vm0, %vm969_vm9 }
 0x248   : > { %vm4693_vm4 = vmpackc.low %vm4691_vm10, %vm4692_vm3  ;;  %vm4695_vm10 = vnez %v4639_v24 }
 0x249   : > { %vm1164_vm5 = vmand %vm1001_vm15, %vm4693_vm4  ;;  %vm1286_vm14 = vcmp.ne.s32.totalorder %v1238_v49, 0  ;;  %vm1287_vm0 = vcmp.ne.s32.totalorder %v1239_v51, 0  ;;  %vm4694_vm15 = vnez %v4673_v63  ;;  %vm4002_vm4 = vcmp.ne.s32.totalorder %v1243_v0, 0 }
 0x24a   : > { %v1196_v26 = vsel %vm1164_vm5, 65537, %v4380_v12  ;;  %vm971_vm1 = vmpackc.low %vm938_vm13, %vm937_vm8  ;;  %v1334_v58 = vsel %vm1286_vm14, %v3433_v4, 0.0  ;;  %v1335_v41 = vsel %vm1287_vm0, %v3455_v3, 0.0  ;;  %v1201_v10 = vsel %vm4694_vm15, 65537, %v4380_v12 }
 0x24b   : > { %v1241_v9 = vunpack.c.l.b16 %v1196_v26  ;;  %v1242_v30 = vunpack.c.h.b16 %v1196_v26  ;;  %vm1003_vm9 = vmand %vm891_vm6, %vm971_vm1  ;;  %v1394_v18 = vadd.f32 %v1335_v41, %v1334_v58  ;;  %vm4696_vm8 = vnez %v4636_v32 }
 0x24c   : > { %vm4697_vm13 = vmpackc.low %vm4695_vm10, %vm4696_vm8  ;;  %vm4014_vm0 = vcmp.ne.s32.totalorder %v1246_v48, 0  ;;  %vm4702_vm1 = vnez %v4681_v56  ;;  %v1249_v62 = vunpack.c.l.b16 %v1201_v10 }
 0x24d   : > { %vm1166_vm3 = vmand %vm1003_vm9, %vm4697_vm13  ;;  %vm1289_vm6 = vcmp.ne.s32.totalorder %v1241_v9, 0  ;;  %vm1290_vm5 = vcmp.ne.s32.totalorder %v1242_v30, 0  ;;  %vm4703_vm9 = vnez %v4684_v61  ;;  %v1395_v59 = vadd.f32 %v1394_v18, %v1336_v21 }
 0x24e   : > { %v1198_v3 = vsel %vm1166_vm3, 65537, %v4380_v12  ;;  %vm973_vm2 = vmpackc.low %vm941_vm12, %vm940_vm7  ;;  %v1337_v25 = vsel %vm1289_vm6, %v3479_v20, 0.0  ;;  %v1338_v24 = vsel %vm1290_vm5, %v3506_v29, 0.0  ;;  %v1339_v20 = vsel %vm4002_vm4, %v3068_v57, 0.0 }
 0x24f   : > { %v1244_v32 = vunpack.c.l.b16 %v1198_v3  ;;  %v1245_v50 = vunpack.c.h.b16 %v1198_v3  ;;  %vm1005_vm14 = vmand %vm893_vm11, %vm973_vm2  ;;  %v1398_v55 = vadd.f32 %v1338_v24, %v1337_v25  ;;  %1396 = vadd.xlane.f32.xlu0 %v1395_v59  ;;  %v1342_v38 = vsel %vm4014_vm0, %v3016_v11, 0.0 }
 0x250   : > { %vm1136_vm15 = vmpackc.low %vm4703_vm9, %vm4702_vm1  ;;  %vm1297_vm11 = vcmp.ne.s32.totalorder %v1249_v62, 0  ;;  %vm1490_vm6 = vcmask 7168  }
 0x251   : > { %vm1292_vm7 = vcmp.ne.s32.totalorder %v1244_v32, 0  ;;  %vm1293_vm12 = vcmp.ne.s32.totalorder %v1245_v50, 0  ;;  %vm1168_vm10 = vmand %vm1005_vm14, %vm1136_vm15  ;;  %v1399_v1 = vadd.f32 %v1398_v55, %v1339_v20  ;;  %v1345_v52 = vsel %vm1297_vm11, %v3062_v37, 0.0 }
 0x252   : > { %v1340_v29 = vsel %vm1292_vm7, %v3585_v8, 0.0  ;;  %v1341_v7 = vsel %vm1293_vm12, %v3608_v22, 0.0  ;;  %v1200_v6 = vsel %vm1168_vm10, 65537, %v4380_v12 }
 0x253   : > { %v1402_v27 = vadd.f32 %v1341_v7, %v1340_v29  ;;  %v1247_v44 = vunpack.c.l.b16 %v1200_v6  ;;  %v1248_v28 = vunpack.c.h.b16 %v1200_v6  ;;  %1400 = vadd.xlane.f32.xlu1 %v1399_v1 }
 0x255   : > { %vm1295_vm8 = vcmp.ne.s32.totalorder %v1247_v44, 0  ;;  %vm1296_vm13 = vcmp.ne.s32.totalorder %v1248_v28, 0  ;;  %v1403_v57 = vadd.f32 %v1402_v27, %v1342_v38  ;;  %v1349_v40 = vpop.xlane.xlu0 %1348 }
 0x256   : > { %v1343_v8 = vsel %vm1295_vm8, %v3624_v54, 0.0  ;;  %v1344_v22 = vsel %vm1296_vm13, %v3653_v42, 0.0  ;;  %vm1410_vm3 = vcmp.gt.f32.partialorder %v1349_v40, 0.0 }
 0x257   : > { %v1406_v12 = vadd.f32 %v1344_v22, %v1343_v8  ;;  %1404 = vadd.xlane.f32.xlu0 %v1403_v57  ;;  %v1426_v39 = vsel %vm1410_vm3, %v1349_v40, 1.0 }
 0x258   : > { %1863 = vrcp.f32 %v1426_v39 }
 0x259   : > { %v1407_v35 = vadd.f32 %v1406_v12, %v1345_v52  ;;  %v1353_v11 = vpop.xlane.xlu0 %1352 }
 0x25a   : > { %vm1411_vm4 = vcmp.gt.f32.partialorder %v1353_v11, 0.0 }
 0x25b   : > { %1408 = vadd.xlane.f32.xlu1 %v1407_v35  ;;  %v1427_v31 = vsel %vm1411_vm4, %v1353_v11, 1.0 }
 0x25c   : > { %1865 = vrcp.f32 %v1427_v31 }
 0x262   : > { %v1864_v54 = vpop.eup %1863 }
 0x263   : > { %v1474_v42 = vsel %vm1410_vm3, %v1864_v54, 0.0 }
 0x264   : > { %1491 = vst.msk [vmem:[%s4036_s14] sm:$0xff] %vm1490_vm6, %v1474_v42 }
 0x266   : > { %v1866_v37 = vpop.eup %1865 }
 0x267   : > { %v1475_v45 = vsel %vm1411_vm4, %v1866_v37, 0.0 }
 0x268   : > { %1492 = vst.msk [vmem:[%s4036_s14 + $0x8] sm:$0xff] %vm1490_vm6, %v1475_v45 }
 0x274   : > { %v1365_v33 = vpop.xlane.xlu0 %1364 }
 0x275   : > { %vm1414_vm5 = vcmp.gt.f32.partialorder %v1365_v33, 0.0 }
 0x276   : > { %v1430_v47 = vsel %vm1414_vm5, %v1365_v33, 1.0 }
 0x277   : > { %1867 = vrcp.f32 %v1430_v47 }
 0x281   : > { %v1868_v13 = vpop.eup %1867 }
 0x282   : > { %v1478_v19 = vsel %vm1414_vm5, %v1868_v13, 0.0 }
 0x283   : > { %v1357_v17 = vpop.xlane.xlu1 %1356  ;;  %1495 = vst.msk [vmem:[%s4036_s14 + $0x20] sm:$0xff] %vm1490_vm6, %v1478_v19 }
 0x284   : > { %vm1412_vm2 = vcmp.gt.f32.partialorder %v1357_v17, 0.0 }
 0x285   : > { %v1428_v16 = vsel %vm1412_vm2, %v1357_v17, 1.0 }
 0x286   : > { %1869 = vrcp.f32 %v1428_v16 }
 0x287   : > { %v1361_v53 = vpop.xlane.xlu1 %1360 }
 0x288   : > { %vm1413_vm14 = vcmp.gt.f32.partialorder %v1361_v53, 0.0 }
 0x289   : > { %v1429_v23 = vsel %vm1413_vm14, %v1361_v53, 1.0 }
 0x28a   : > { %1871 = vrcp.f32 %v1429_v23 }
 0x28b   : > { %v1369_v15 = vpop.xlane.xlu1 %1368 }
 0x28c   : > { %v1373_v63 = vpop.xlane.xlu0 %1372  ;;  %vm1415_vm1 = vcmp.gt.f32.partialorder %v1369_v15, 0.0 }
 0x28d   : > { %vm1416_vm0 = vcmp.gt.f32.partialorder %v1373_v63, 0.0  ;;  %v1431_v61 = vsel %vm1415_vm1, %v1369_v15, 1.0 }
 0x28e   : > { %v1432_v56 = vsel %vm1416_vm0, %v1373_v63, 1.0 }
 0x28f   : > { %1873 = vrcp.f32 %v1432_v56 }
 0x290   : > { %1875 = vrcp.f32 %v1431_v61  ;;  %v1870_v60 = vpop.eup %1869 }
 0x291   : > { %v1476_v2 = vsel %vm1412_vm2, %v1870_v60, 0.0 }
 0x292   : > { %v1377_v43 = vpop.xlane.xlu1 %1376  ;;  %1493 = vst.msk [vmem:[%s4036_s14 + $0x10] sm:$0xff] %vm1490_vm6, %v1476_v2 }
 0x293   : > { %vm1417_vm9 = vcmp.gt.f32.partialorder %v1377_v43, 0.0 }
 0x294   : > { %v1433_v14 = vsel %vm1417_vm9, %v1377_v43, 1.0  ;;  %v1872_v36 = vpop.eup %1871 }
 0x295   : > { %1877 = vrcp.f32 %v1433_v14  ;;  %v1477_v5 = vsel %vm1413_vm14, %v1872_v36, 0.0 }
 0x296   : > { %1494 = vst.msk [vmem:[%s4036_s14 + $0x18] sm:$0xff] %vm1490_vm6, %v1477_v5 }
 0x299   : > { %v1874_v51 = vpop.eup %1873 }
 0x29a   : > { %v1480_v34 = vsel %vm1416_vm0, %v1874_v51, 0.0  ;;  %v1876_v48 = vpop.eup %1875 }
 0x29b   : > { %1497 = vst.msk [vmem:[%s4036_s14 + $0x30] sm:$0xff] %vm1490_vm6, %v1480_v34  ;;  %v1479_v26 = vsel %vm1415_vm1, %v1876_v48, 0.0 }
 0x29c   : > { %1496 = vst.msk [vmem:[%s4036_s14 + $0x28] sm:$0xff] %vm1490_vm6, %v1479_v26 }
 0x29f   : > { %v1878_v41 = vpop.eup %1877 }
 0x2a0   : > { %v1481_v9 = vsel %vm1417_vm9, %v1878_v41, 0.0 }
 0x2a1   : > { %1498 = vst.msk [vmem:[%s4036_s14 + $0x38] sm:$0xff] %vm1490_vm6, %v1481_v9 }
 0x2a9   : > { %v1381_v49 = vpop.xlane.xlu0 %1380 }
 0x2aa   : > { %vm1418_vm15 = vcmp.gt.f32.partialorder %v1381_v49, 0.0 }
 0x2ab   : > { %v1434_v0 = vsel %vm1418_vm15, %v1381_v49, 1.0 }
 0x2ac   : > { %1879 = vrcp.f32 %v1434_v0 }
 0x2b6   : > { %v1385_v58 = vpop.xlane.xlu1 %1384  ;;  %v1880_v10 = vpop.eup %1879 }
 0x2b7   : > { %vm1419_vm7 = vcmp.gt.f32.partialorder %v1385_v58, 0.0  ;;  %v1482_v4 = vsel %vm1418_vm15, %v1880_v10, 0.0 }
 0x2b8   : > { %v1435_v30 = vsel %vm1419_vm7, %v1385_v58, 1.0  ;;  %1499 = vst.msk [vmem:[%s4036_s14 + $0x40] sm:$0xff] %vm1490_vm6, %v1482_v4 }
 0x2b9   : > { %1881 = vrcp.f32 %v1435_v30 }
 0x2be   : > { %v1389_v21 = vpop.xlane.xlu0 %1388 }
 0x2bf   : > { %vm1420_vm12 = vcmp.gt.f32.partialorder %v1389_v21, 0.0 }
 0x2c0   : > { %v1436_v18 = vsel %vm1420_vm12, %v1389_v21, 1.0 }
 0x2c1   : > { %1883 = vrcp.f32 %v1436_v18 }
 0x2c3   : > { %v1882_v24 = vpop.eup %1881 }
 0x2c4   : > { %v1393_v3 = vpop.xlane.xlu1 %1392  ;;  %v1483_v32 = vsel %vm1419_vm7, %v1882_v24, 0.0 }
 0x2c5   : > { %vm1421_vm10 = vcmp.gt.f32.partialorder %v1393_v3, 0.0  ;;  %1500 = vst.msk [vmem:[%s4036_s14 + $0x48] sm:$0xff] %vm1490_vm6, %v1483_v32 }
 0x2c6   : > { %v1437_v25 = vsel %vm1421_vm10, %v1393_v3, 1.0 }
 0x2c7   : > { %1885 = vrcp.f32 %v1437_v25 }
 0x2cb   : > { %v1884_v50 = vpop.eup %1883 }
 0x2cc   : > { %v1484_v46 = vsel %vm1420_vm12, %v1884_v50, 0.0 }
 0x2cd   : > { %1501 = vst.msk [vmem:[%s4036_s14 + $0x50] sm:$0xff] %vm1490_vm6, %v1484_v46 }
 0x2d1   : > { %v1886_v55 = vpop.eup %1885 }
 0x2d2   : > { %v1485_v59 = vsel %vm1421_vm10, %v1886_v55, 0.0 }
 0x2d3   : > { %1502 = vst.msk [vmem:[%s4036_s14 + $0x58] sm:$0xff] %vm1490_vm6, %v1485_v59 }
 0x2dc   : > { %v1397_v62 = vpop.xlane.xlu0 %1396 }
 0x2dd   : > { %vm1422_vm11 = vcmp.gt.f32.partialorder %v1397_v62, 0.0 }
 0x2de   : > { %v1438_v20 = vsel %vm1422_vm11, %v1397_v62, 1.0 }
 0x2df   : > { %1887 = vrcp.f32 %v1438_v20 }
 0x2e0   : > { %v1401_v29 = vpop.xlane.xlu1 %1400 }
 0x2e1   : > { %vm1423_vm8 = vcmp.gt.f32.partialorder %v1401_v29, 0.0 }
 0x2e2   : > { %v1439_v7 = vsel %vm1423_vm8, %v1401_v29, 1.0 }
 0x2e3   : > { %1889 = vrcp.f32 %v1439_v7 }
 0x2e4   : > { %v1405_v6 = vpop.xlane.xlu0 %1404 }
 0x2e5   : > { %vm1424_vm13 = vcmp.gt.f32.partialorder %v1405_v6, 0.0 }
 0x2e6   : > { %v1440_v1 = vsel %vm1424_vm13, %v1405_v6, 1.0 }
 0x2e7   : > { %1891 = vrcp.f32 %v1440_v1 }
 0x2e8   : > { %v1409_v27 = vpop.xlane.xlu1 %1408 }
 0x2e9   : > { %vm1425_vm3 = vcmp.gt.f32.partialorder %v1409_v27, 0.0  ;;  %v1888_v28 = vpop.eup %1887 }
 0x2ea   : > { %v1441_v44 = vsel %vm1425_vm3, %v1409_v27, 1.0  ;;  %v1486_v38 = vsel %vm1422_vm11, %v1888_v28, 0.0 }
 0x2eb   : > { %1893 = vrcp.f32 %v1441_v44  ;;  %1503 = vst.msk [vmem:[%s4036_s14 + $0x60] sm:$0xff] %vm1490_vm6, %v1486_v38 }
 0x2ed   : > { %v1890_v57 = vpop.eup %1889 }
 0x2ee   : > { %v1487_v8 = vsel %vm1423_vm8, %v1890_v57, 0.0 }
 0x2ef   : > { %1504 = vst.msk [vmem:[%s4036_s14 + $0x68] sm:$0xff] %vm1490_vm6, %v1487_v8 }
 0x2f1   : > { %v1892_v22 = vpop.eup %1891 }
 0x2f2   : > { %v1488_v12 = vsel %vm1424_vm13, %v1892_v22, 0.0 }
 0x2f3   : > { %1505 = vst.msk [vmem:[%s4036_s14 + $0x70] sm:$0xff] %vm1490_vm6, %v1488_v12 }
 0x2f5   : > { %v1894_v52 = vpop.eup %1893 }
 0x2f6   : > { %v1489_v35 = vsel %vm1425_vm3, %v1894_v52, 0.0 }
 0x2f7   : > { %1506 = vst.msk [vmem:[%s4036_s14 + $0x78] sm:$0xff] %vm1490_vm6, %v1489_v35 }
 0x2f8   : > { %1996 = shalt.err (!%p1993_p10)
}
 0x2f9   : > { %s1997_s11 = scalar_lea.hbm %s4093_s26, 2048  ;;  %s2001_s29 = scalar_lea.hbm %s4145_s4, 6144 }
 0x2fa   : > { %p1998_p8 = scmp.ne.s32.totalorder %s4093_s26, %s1997_s11  ;;  %p2002_p12 = scmp.lt.u32.totalorder %s4093_s26, %s4145_s4 }
 0x2fb   : > { %p2003_p3 = scmp.lt.u32.totalorder %s2001_s29, %s1997_s11  ;;  %p2005_p11 = scmp.lt.u32.totalorder %s1997_s11, %s4093_s26 }
 0x2fc   : > { %p1999_p7 = pnand %p1998_p8, %p4704_p2 }
 0x2fd   : > { %p2004_p6 = por %p2003_p3, %p2002_p12 }
 0x2fe   : > { %p2000_p13 = pneg %p1999_p7 }
 0x2ff   : > { %p2006_p5 = por %p2005_p11, %p2004_p6 }
 0x301   : > { %p2007_p0 = pnand %p2006_p5, %p2000_p13 }
 0x303   : > { %2010 = shalt.err (!%p2007_p0)
}
 0x304   : > { %s2069_s16 = smov 128   ;;  %s2070_s14 = smov 8  }
 0x305   : > { %1769 = dma.vmem_to_hbm [thread:$0]  (%p4704_p2), %s4095_s7, 2048, %s4093_s26, %s1508_s27, %s2069_s16, %s2069_s16, %s2070_s14  }
 0x306 PF: > { %p1789_p9 = scmp.ge.s32.totalorder %s2057_s20, 2  ;;  %s1536_s28 = sand.u32 1, %s2045_s17  }
 0x307   : > { %p4705_p1 = scmp.ne.s32.totalorder %s4210_s5, 0  ;;  %s1537_s9 = scalar_lea.sflag [#allocation5], %s1536_s28 }
 0x309   : > { %p1783_p4 = pnand %p1789_p9, %p4705_p1 }
 0x30b   : > { %2040 = dma.done.wait (!%p1783_p4), %s1537_s9, 2048  }
 0x30c   : > { %2042 = vsyncadd (!%p1783_p4), %s1537_s9, 4294965248  ;;  %p19_p10 = scmp.ge.s32.totalorder %s2120_s3, 5   ;;  %s4706_s17 = smov %s2049_s18 }
 0x30d   : > { %s4707_s18 = smov %s2053_s19  ;;  %s4708_s19 = smov %s2129_s23 }
 0x30e   : > { %s4709_s20 = smov %s2120_s3  ;;  %21 = sbr.rel (!%p19_p10) target bundleno = 8 (0x8), region = 96 }
 0x315   :  { %1542 = vsyncpa [#allocation4], 1 }
 0x316   :  { %1544 = vsyncpa [#allocation4 + $0x1], 1 }
 0x317   :  { %1545 = vsyncpa [#allocation7], 1 }
 0x318   :  { %1546 = vsyncpa [#allocation5], 1 }
 0x319   :  { %1548 = vsyncpa [#allocation5 + $0x1], 1 }

// kernel: guard_gcn_forward.11
= control target key start
LH: loop header
LB: loop body
LE: loop exit
PB: predicated region body
PF: predicated region fallthrough
CT: control target
= control target key end

     0   :  { %s2065_s0 = inlined_call_operand.hbm [shape: bf16[384,384], index: 0, kind: input, shape index: {}]   ;;  %s2066_s1 = inlined_call_operand.hbm [shape: f32[384,1], index: 1, kind: input, shape index: {}]   ;;  %s2067_s2 = inlined_call_operand.hbm [shape: bf16[384,128], index: 2, kind: input, shape index: {}]   ;;  %s2068_s3 = inlined_call_operand.hbm [shape: f32[1,128], index: 3, kind: input, shape index: {}]   ;;  %s2069_s4 = inlined_call_operand.hbm [shape: f32[384,128], index: 4, kind: output, shape index: {}]  }
   0x1   :  { %2073 = sst [smem:[#allocation16_spill]] %s2065_s0 }
   0x2   :  { %2074 = sst [smem:[#allocation17_spill]] %s2067_s2 }
   0x3   :  { %9 = vsyncpa [#allocation3], 0 }
   0x4   :  { %11 = vsyncpa [#allocation3 + $0x1], 0 }
   0x5   :  { %12 = vsyncpa [#allocation6], 0 }
   0x6   :  { %14 = vsyncpa [#allocation6 + $0x1], 0 }
   0x7   :  { %15 = vsyncpa [#allocation9], 0 }
   0x8   :  { %16 = vsyncpa [#allocation4], 0 }
   0x9   :  { %18 = vsyncpa [#allocation4 + $0x1], 0  ;;  %s1691_s15 = smov 0   ;;  %s1693_s16 = smov 0  }
   0xa   :  { %s1695_s17 = smov 0   ;;  %s1697_s18 = smov 0  }
   0xb LB: > { %s1712_s19 = sadd.s32 4294967295, %s1650_s18   ;;  %s1130_s20 = sadd.s32 4294967294, %s1650_s18   ;;  %s1650_s18 = sphi %s1697_s18, %s2094_s18   ;;  %s1646_s17 = sphi %s1695_s17, %s2093_s17   ;;  %s1642_s16 = sphi %s1693_s16, %s2092_s16   ;;  %s1638_s15 = sphi %s1691_s15, %s2091_s15  }
   0xc   : > { %p44_p0 = scmp.ne.s32.totalorder %s1642_s16, %s1638_s15  ;;  %p2070_p1 = scmp.eq.s32.totalorder %s1712_s19, 0 }
   0xd   : > { %p142_p3 = scmp.eq.s32.totalorder %s1130_s20, 2  ;;  %p1131_p5 = scmp.ge.s32.totalorder %s1650_s18, 1 }
   0xe   : > { %p1721_p4 = por %p2070_p1, %p44_p0  ;;  %p149_p7 = scmp.lt.s32.totalorder %s1650_s18, 4 }
   0xf   : > { %p1726_p6 = por %p142_p3, %p44_p0  ;;  %s1652_s24 = smov [#allocation7]  }
  0x10   : > { %s2075_s21 = scalar_select %p1721_p4, 1, 0 }
  0x11   : > { %s2076_s22 = scalar_select %p1726_p6, 1, 0 }
  0x12   : > { %p1731_p8 = pnand %p1131_p5, %p149_p7  ;;  %s161_s25 = sshll.u32 %s1652_s24, 4  ;;  %s162_s25 = int_to_ptr.vmem [resolvable:$true] %s161_s25 }
  0x13   : > { %s1653_s27 = smov [#allocation8]   ;;  %s2079_s2 = sld [smem:[#allocation17_spill]] }
  0x14   : > { %s2077_s23 = scalar_select %p1731_p8, 1, 0 }
  0x15   : > { %p1331_p9 = pneg %p1731_p8  ;;  %s175_s28 = sshll.u32 %s1653_s27, 4  ;;  %s1743_s28 = int_to_ptr.vmem [resolvable:$true] %s175_s28 }
  0x17   : > { %p1739_p10 = pnand %p1331_p9, %p2070_p1 }
  0x19   : > { %s1456_s5 = scalar_lea.hbm %s2079_s2, 3072  ;;  %p1458_p12 = pneg %p1739_p10 }
  0x1a   : > { %p1457_p11 = scmp.ne.s32.totalorder %s2079_s2, %s1456_s5  ;;  %p1463_p3 = scmp.lt.u32.totalorder %s1456_s5, %s2079_s2 }
  0x1c   : > { %p1459_p13 = pnand %p1458_p12, %p1457_p11 }
  0x1e   : > { %p1460_p0 = pneg %p1459_p13 }
  0x20   : > { %p1465_p5 = pnand %p1463_p3, %p1460_p0 }
  0x22   : > { %1468 = shalt.err (!%p1465_p5)
}
  0x23   : > { %s1469_s10 = scalar_lea.vmem %s162_s25, 3072  ;;  %p1477_p2 = scmp.lt.s32.totalorder %s162_s25, %s162_s25 }
  0x24   : > { %p1470_p7 = scmp.ne.s32.totalorder %s162_s25, %s1469_s10  ;;  %p1478_p6 = scmp.lt.s32.totalorder %s1469_s10, %s1469_s10 }
  0x26   : > { %p1472_p9 = pnand %p1470_p7, %p1458_p12  ;;  %p1479_p4 = por %p1478_p6, %p1477_p2 }
  0x28   : > { %p1473_p1 = pneg %p1472_p9 }
  0x2a   : > { %p1480_p8 = pnand %p1479_p4, %p1473_p1 }
  0x2c   : > { %1483 = shalt.err (!%p1480_p8)
}
  0x2d   : > { %s1654_s11 = smov 64   ;;  %s1655_s12 = smov 4  }
  0x2e   : > { %1334 = dma.hbm_to_vmem [thread:$0]  (!%p1739_p10), %s2079_s2, 3072, %s162_s25, [#allocation6], %s1654_s11, %s1654_s11, %s1655_s12  }
  0x2f   : > { %s1484_s27 = scalar_lea.hbm %s2068_s3, 16 }
  0x30   : > { %p1485_p11 = scmp.ne.s32.totalorder %s2068_s3, %s1484_s27  ;;  %p1491_p4 = scmp.lt.u32.totalorder %s1484_s27, %s2068_s3 }
  0x32   : > { %p1487_p1 = pnand %p1485_p11, %p1458_p12 }
  0x34   : > { %p1488_p2 = pneg %p1487_p1 }
  0x36   : > { %p1493_p6 = pnand %p1491_p4, %p1488_p2 }
  0x38   : > { %1496 = shalt.err (!%p1493_p6)
}
  0x39   : > { %s1497_s25 = scalar_lea.vmem %s1743_s28, 16  ;;  %s1504_s7 = scalar_lea.vmem %s1743_s28, 32 }
  0x3a   : > { %p1498_p8 = scmp.ne.s32.totalorder %s1743_s28, %s1497_s25  ;;  %p1505_p3 = scmp.lt.s32.totalorder %s1743_s28, %s1743_s28 }
  0x3b   : > { %p1506_p5 = scmp.lt.s32.totalorder %s1504_s7, %s1497_s25 }
  0x3c   : > { %p1500_p13 = pnand %p1498_p8, %p1458_p12 }
  0x3d   : > { %p1507_p7 = por %p1506_p5, %p1505_p3 }
  0x3e   : > { %p1501_p0 = pneg %p1500_p13 }
  0x40   : > { %p1508_p9 = pnand %p1507_p7, %p1501_p0 }
  0x42   : > { %1511 = shalt.err (!%p1508_p9)
}
  0x43   : > { %1337 = dma.hbm_to_vmem [thread:$0]  (!%p1739_p10), %s2068_s3, 16, %s1743_s28, [#allocation9]  }
  0x44   : > { %s1794_s10 = sadd.s32 1, %s1650_s18   ;;  %s31_s26 = sadd.s32 1, %s1646_s17 }
  0x45   : > { %s28_s11 = ssub.s32 %s1650_s18, %s1794_s10  ;;  %p38_p12 = scmp.ne.s32.totalorder %s1646_s17, %s1642_s16 }
  0x46   : > { %p29_p11 = scmp.eq.s32.totalorder %s28_s11, 0  ;;  %p39_p1 = scmp.eq.s32.totalorder %s1650_s18, 0 }
  0x47   : > { %p2080_p2 = scmp.eq.s32.totalorder %s1712_s19, 2  ;;  %p1351_p6 = scmp.lt.s32.totalorder %s1650_s18, 3 }
  0x48   : > { %s1810_s13 = scalar_select %p29_p11, %s1646_s17, %s31_s26  }
  0x49   : > { %p1804_p4 = por %p2080_p2, %p38_p12  ;;  %p40_p8 = por %p39_p1, %p38_p12 }
  0x4a   : > { %s1813_s14 = sand.u32 1, %s1646_s17   ;;  %s1315_s20 = smul.u32 3072, %s1650_s18 }
  0x4b   : > { %s1314_s28 = smul.u32 192, %s1813_s14  ;;  %p1817_p10 = pnand %p1351_p6, %p40_p8 }
  0x4c   : > { %s2083_s0 = sld [smem:[#allocation16_spill]]  ;;  %s208_s25 = sand.u32 1, %s1650_s18  }
  0x4d   : > { %s190_s5 = scalar_lea.vmem [#allocation2], %s1314_s28  ;;  %s187_s7 = scalar_lea.sflag [#allocation3], %s1813_s14 }
  0x4e   : > { %s198_s6 = sshll.u32 %s190_s5, 4  ;;  %p1514_p0 = pneg %p1817_p10  ;;  %s1826_s6 = int_to_ptr.vmem [resolvable:$true] %s198_s6 }
  0x52   : > { %s1824_s30 = scalar_lea.hbm %s2083_s0, %s1315_s20  ;;  %s1517_s11 = scalar_lea.hbm %s2083_s0, 9216 }
  0x53   : > { %s1512_s8 = scalar_lea.hbm %s1824_s30, 3072  ;;  %p1518_p7 = scmp.lt.u32.totalorder %s1824_s30, %s2083_s0 }
  0x54   : > { %p1513_p13 = scmp.ne.s32.totalorder %s1824_s30, %s1512_s8  ;;  %p1519_p9 = scmp.lt.u32.totalorder %s1517_s11, %s1512_s8 }
  0x55   : > { %p1521_p11 = scmp.lt.u32.totalorder %s1512_s8, %s1824_s30 }
  0x56   : > { %p1515_p3 = pnand %p1514_p0, %p1513_p13  ;;  %p1520_p12 = por %p1519_p9, %p1518_p7 }
  0x58   : > { %p1516_p5 = pneg %p1515_p3  ;;  %p1522_p1 = por %p1521_p11, %p1520_p12 }
  0x5a   : > { %p1523_p2 = pnand %p1522_p1, %p1516_p5 }
  0x5c   : > { %1526 = shalt.err (!%p1523_p2)
}
  0x5d   : > { %s1527_s28 = scalar_lea.vmem %s1826_s6, 3072  ;;  %s1656_s29 = smov [#allocation2]  }
  0x5e   : > { %p1528_p6 = scmp.ne.s32.totalorder %s1826_s6, %s1527_s28  ;;  %s1532_s5 = sshll.u32 %s1656_s29, 4  ;;  %s1533_s5 = int_to_ptr.vmem [resolvable:$false] %s1532_s5 }
  0x5f   : > { %s1534_s9 = scalar_lea.vmem %s1533_s5, 6144  ;;  %p1535_p3 = scmp.lt.s32.totalorder %s1826_s6, %s1533_s5 }
  0x60   : > { %p1530_p8 = pnand %p1528_p6, %p1514_p0  ;;  %p1536_p7 = scmp.lt.s32.totalorder %s1534_s9, %s1527_s28 }
  0x62   : > { %p1531_p13 = pneg %p1530_p8  ;;  %p1537_p9 = por %p1536_p7, %p1535_p3 }
  0x64   : > { %p1538_p12 = pnand %p1537_p9, %p1531_p13 }
  0x66   : > { %1541 = shalt.err (!%p1538_p12)
}
  0x67   : > { %s1657_s8 = smov 192   ;;  %s1658_s26 = smov 12  }
  0x68   : > { %1341 = dma.hbm_to_vmem [thread:$0]  (!%p1817_p10), %s1824_s30, 3072, %s1826_s6, %s187_s7, %s1657_s8, %s1657_s8, %s1658_s26  }
  0x69   : > { %s1138_s11 = sshll.u32 %s1813_s14, 7  ;;  %s1200_s20 = sshll.u32 %s1650_s18, 11 }
  0x6a   : > { %s1862_s29 = scalar_lea.hbm %s2066_s1, %s1200_s20  ;;  %s212_s5 = scalar_lea.vmem [#allocation5], %s1138_s11 }
  0x6b   : > { %s219_s9 = sshll.u32 %s212_s5, 4  ;;  %s1868_s0 = scalar_lea.sflag [#allocation6], %s208_s25  ;;  %s1864_s9 = int_to_ptr.vmem [resolvable:$true] %s219_s9 }
  0x6c   : > { %s1542_s2 = scalar_lea.hbm %s1862_s29, 2048  ;;  %s1547_s6 = scalar_lea.hbm %s2066_s1, 6144 }
  0x6d   : > { %p1543_p5 = scmp.ne.s32.totalorder %s1862_s29, %s1542_s2  ;;  %p1548_p2 = scmp.lt.u32.totalorder %s1862_s29, %s2066_s1 }
  0x6e   : > { %p1549_p6 = scmp.lt.u32.totalorder %s1547_s6, %s1542_s2  ;;  %p1551_p13 = scmp.lt.u32.totalorder %s1542_s2, %s1862_s29 }
  0x6f   : > { %p1545_p11 = pnand %p1543_p5, %p1514_p0 }
  0x70   : > { %p1550_p8 = por %p1549_p6, %p1548_p2 }
  0x71   : > { %p1546_p1 = pneg %p1545_p11 }
  0x72   : > { %p1552_p3 = por %p1551_p13, %p1550_p8 }
  0x74   : > { %p1553_p7 = pnand %p1552_p3, %p1546_p1 }
  0x76   : > { %1556 = shalt.err (!%p1553_p7)
}
  0x77   : > { %s1557_s25 = scalar_lea.vmem %s1864_s9, 2048  ;;  %s1659_s26 = smov [#allocation5]  }
  0x78   : > { %p1558_p9 = scmp.ne.s32.totalorder %s1864_s9, %s1557_s25  ;;  %s1562_s11 = sshll.u32 %s1659_s26, 4  ;;  %s1563_s11 = int_to_ptr.vmem [resolvable:$false] %s1562_s11 }
  0x79   : > { %s1564_s20 = scalar_lea.vmem %s1563_s11, 4096  ;;  %p1565_p11 = scmp.lt.s32.totalorder %s1864_s9, %s1563_s11 }
  0x7a   : > { %p1560_p12 = pnand %p1558_p9, %p1514_p0  ;;  %p1566_p2 = scmp.lt.s32.totalorder %s1564_s20, %s1557_s25 }
  0x7c   : > { %p1561_p5 = pneg %p1560_p12  ;;  %p1567_p6 = por %p1566_p2, %p1565_p11 }
  0x7e   : > { %p1568_p8 = pnand %p1567_p6, %p1561_p5 }
  0x80   : > { %1571 = shalt.err (!%p1568_p8)
}
  0x81   : > { %s1660_s2 = smov 128   ;;  %s1661_s27 = smov 8  }
  0x82   : > { %1344 = dma.hbm_to_vmem [thread:$0]  (!%p1817_p10), %s1862_s29, 2048, %s1864_s9, %s1868_s0, %s1660_s2, %s1660_s2, %s1661_s27  }
  0x83   : > { %p2084_p0 = scmp.ne.s32.totalorder %s2077_s23, 0 }
  0x84   : > { %s1897_s28 = sand.u32 (!%p2084_p0), 1, %s1642_s16   ;;  %p2085_p1 = scmp.ne.s32.totalorder (!%p2084_p0), %s2075_s21, 0 }
  0x85   : > { %231 = sbr.rel (%p2084_p0) target bundleno = 480 (0x1e0), region = 36  ;;  %s234_s14 = scalar_lea.sflag (!%p2084_p0), [#allocation3], %s1897_s28 }
  0x86   : > { %s1316_s5 = smul.u32 (!%p2084_p0), 192, %s1897_s28 }
  0x88   : > { %s1901_s30 = scalar_lea.vmem (!%p2084_p0), [#allocation2], %s1316_s5 }
  0x8c   : > { %1617 = dma.done.wait (%p2085_p1), %s234_s14, 3072  }
  0x8d   : > { %1619 = vsyncadd (%p2085_p1), %s234_s14, 4294964224  ;;  %s242_s0 = sand.u32 1, %s1712_s19   ;;  %s1142_s23 = sshll.u32 %s1897_s28, 7 }
  0x8e   : > { %s243_s24 = scalar_lea.sflag [#allocation6], %s242_s0  ;;  %s1911_s29 = scalar_lea.vmem [#allocation5], %s1142_s23 }
  0x8f   : > { %1621 = dma.done.wait (%p2085_p1), %s243_s24, 2048  }
  0x90   : > { %1623 = vsyncadd (%p2085_p1), %s243_s24, 4294965248  ;;  %p2086_p10 = scmp.eq.s32.totalorder %s1712_s19, 0 }
  0x92   : > { %1625 = dma.done.wait (%p2086_p10), [#allocation6], 3072   ;;  %p2087_p13 = pmov %p2086_p10 }
  0x93   : > { %p2088_p3 = pmov %p2086_p10 }
  0x94   : > { %1627 = vsyncadd (%p2087_p13), [#allocation6], 4294964224 }
  0x95   : > { %1629 = dma.done.wait (%p2088_p3), [#allocation9], 16   ;;  %p2089_p7 = pmov %p2088_p3 }
  0x96   : > { %v1662_v0 = vmov 0   ;;  %v1400_v1 = vld [vmem:[#allocation7 + $0x40] sm:$0xff]   ;;  %v1403_v4 = vld [vmem:[#allocation7 + $0x48] sm:$0xff]   ;;  %v1406_v7 = vld [vmem:[#allocation7 + $0x50] sm:$0xff]   ;;  %s1971_s21 = scalar_lea.vmem [#allocation10], %s1142_s23  ;;  %s1201_s9 = sshll.u32 %s1712_s19, 11 }
  0x97   : > { %1631 = vsyncadd (%p2089_p7), [#allocation9], 4294967280  ;;  %1398 = vset.pattern.permute.xlu0 %v1662_v0  ;;  %1399 = vset.pattern.permute.xlu1 %v1662_v0  ;;  %v1401_v2 = vld [vmem:[#allocation7] sm:$0xff]   ;;  %v1404_v5 = vld [vmem:[#allocation7 + $0x8] sm:$0xff]   ;;  %s1015_s6 = sshll.u32 %s1971_s21, 4  ;;  %s2018_s25 = scalar_lea.hbm %s2069_s4, %s1201_s9  ;;  %s2020_s6 = int_to_ptr.vmem [resolvable:$true] %s1015_s6 }
  0x98   : > { %1202 = vmatprep.subr.bf16.mxu0 %v1400_v1  ;;  %v1402_v3 = vld [vmem:[#allocation7 + $0x80] sm:$0xff]   ;;  %v1405_v6 = vld [vmem:[#allocation7 + $0x88] sm:$0xff]   ;;  %v1407_v8 = vld [vmem:[#allocation7 + $0x10] sm:$0xff]   ;;  %s1002_s26 = scalar_lea.sflag [#allocation4], %s1897_s28  ;;  %s1572_s11 = scalar_lea.vmem %s2020_s6, 2048 }
  0x99   : > { %1203 = vmatpush3.bf16.msra.mxu0 %v1401_v2  ;;  %1282 = vmatprep.subr.bf16.mxu1 %v1402_v3  ;;  %v1408_v9 = vld [vmem:[#allocation7 + $0x90] sm:$0xff]   ;;  %v1409_v10 = vld [vmem:[#allocation7 + $0x58] sm:$0xff]   ;;  %v1412_v13 = vld [vmem:[#allocation7 + $0x60] sm:$0xff]   ;;  %p1573_p9 = scmp.ne.s32.totalorder %s2020_s6, %s1572_s11  ;;  %s1663_s19 = smov [#allocation10]  }
  0x9a   : > { %1283 = vmatpush3.bf16.msra.mxu1 %v1402_v3  ;;  %1204 = vmatprep.subr.bf16.mxu0 %v1403_v4  ;;  %v1410_v11 = vld [vmem:[#allocation7 + $0x18] sm:$0xff]   ;;  %v1414_v14 = vld [vmem:[#allocation7 + $0xa0] sm:$0xff]   ;;  %v1415_v16 = vld [vmem:[#allocation7 + $0x68] sm:$0xff]   ;;  %s1576_s20 = sshll.u32 %s1663_s19, 4  ;;  %s1577_s20 = int_to_ptr.vmem [resolvable:$false] %s1576_s20 }
  0x9b   : > { %1284 = vmatprep.subr.bf16.mxu1 %v1405_v6  ;;  %v1411_v12 = vld [vmem:[#allocation7 + $0x98] sm:$0xff]   ;;  %v1413_v15 = vld [vmem:[#allocation7 + $0x20] sm:$0xff]   ;;  %v1417_v17 = vld [vmem:[#allocation7 + $0xa8] sm:$0xff]   ;;  %p1574_p12 = pnand %p1573_p9, %p1804_p4  ;;  %s1578_s2 = scalar_lea.vmem %s1577_s20, 4096 }
  0x9c   : > { %v1416_v18 = vld [vmem:[#allocation7 + $0x28] sm:$0xff]   ;;  %v1418_v19 = vld [vmem:[#allocation7 + $0x70] sm:$0xff]   ;;  %v1421_v22 = vld [vmem:[#allocation7 + $0x78] sm:$0xff]   ;;  %p1579_p11 = scmp.lt.s32.totalorder %s2020_s6, %s1577_s20  ;;  %p1580_p2 = scmp.lt.s32.totalorder %s1578_s2, %s1572_s11 }
  0x9d   : > { %1205 = vmatpush3.bf16.msra.mxu0 %v1404_v5  ;;  %v1419_v20 = vld [vmem:[#allocation7 + $0x30] sm:$0xff]   ;;  %v1423_v23 = vld [vmem:[#allocation7 + $0xb8] sm:$0xff]   ;;  %v1424_v27 = vld [vmem:[%s1901_s30] ss:$12 sps:$4 sm:$0xff]   ;;  %p1575_p5 = pneg %p1574_p12 }
  0x9e   : > { %1206 = vmatprep.subr.bf16.mxu0 %v1406_v7  ;;  %1285 = vmatpush3.bf16.msra.mxu1 %v1405_v6  ;;  %v1420_v21 = vld [vmem:[#allocation7 + $0xb0] sm:$0xff]   ;;  %v1422_v26 = vld [vmem:[#allocation7 + $0x38] sm:$0xff]   ;;  %v1428_v29 = vld [vmem:[%s1901_s30 + $0x20] ss:$12 sps:$4 sm:$0xff]   ;;  %p1581_p6 = por %p1580_p2, %p1579_p11 }
  0x9f   : > { %1286 = vmatprep.subr.bf16.mxu1 %v1408_v9  ;;  %v1426_v24 = vld [vmem:[%s1901_s30 + $0x4] ss:$12 sps:$4 sm:$0xff]   ;;  %v1427_v25 = vld [vmem:[%s1901_s30 + $0x8] ss:$12 sps:$4 sm:$0xff]   ;;  %v837_v38 = vld [vmem:[%s1911_s29 + $0x18] sm:$0xff] }
  0xa0   : > { %672 = vmatprep.mubr.bf16.mxu0 %v1426_v24  ;;  %1298 = vmatprep.mubr.bf16.mxu1 %v1427_v25  ;;  %v1429_v28 = vld [vmem:[%s1901_s30 + $0x1c] ss:$12 sps:$4 sm:$0xff]   ;;  %v1435_v30 = vld [vmem:[%s1901_s30 + $0x38] ss:$12 sps:$4 sm:$0xff]   ;;  %v1432_v32 = vld [vmem:[%s1901_s30 + $0x34] ss:$12 sps:$4 sm:$0xff]   ;;  %p1582_p8 = pnand %p1581_p6, %p1575_p5 }
  0xa1   : > { %1207 = vmatpush3.bf16.msra.mxu0 %v1407_v8  ;;  %v1431_v31 = vld [vmem:[%s1901_s30 + $0x18] ss:$12 sps:$4 sm:$0xff]   ;;  %v1436_v33 = vld [vmem:[%s1901_s30 + $0x50] ss:$12 sps:$4 sm:$0xff]   ;;  %v1443_v34 = vld [vmem:[%s1901_s30 + $0x68] ss:$12 sps:$4 sm:$0xff]  }
  0xa2   : > { %1208 = vmatprep.subr.bf16.mxu0 %v1409_v10  ;;  %1287 = vmatpush3.bf16.msra.mxu1 %v1408_v9  ;;  %v834_v35 = vld [vmem:[%s1911_s29] sm:$0xff]  ;;  %v836_v36 = vld [vmem:[%s1911_s29 + $0x10] sm:$0xff]  ;;  %v835_v37 = vld [vmem:[%s1911_s29 + $0x8] sm:$0xff] }
  0xa3   : > { %1288 = vmatprep.subr.bf16.mxu1 %v1411_v12  ;;  %852 = vperm.xlu0 %1398, %v834_v35   ;;  %v1434_v39 = vld [vmem:[%s1901_s30 + $0x30] ss:$12 sps:$4 sm:$0xff]   ;;  %v1437_v40 = vld [vmem:[%s1901_s30 + $0x4c] ss:$12 sps:$4 sm:$0xff]   ;;  %v838_v42 = vld [vmem:[%s1911_s29 + $0x20] sm:$0xff] }
  0xa4   : > { %862 = vperm.xlu1 %1399, %v836_v36   ;;  %v1444_v41 = vld [vmem:[%s1901_s30 + $0x80] ss:$12 sps:$4 sm:$0xff]   ;;  %v1451_v43 = vld [vmem:[%s1901_s30 + $0x98] ss:$12 sps:$4 sm:$0xff]   ;;  %v840_v45 = vld [vmem:[%s1911_s29 + $0x30] sm:$0xff] }
  0xa5   : > { %1209 = vmatpush3.bf16.msra.mxu0 %v1410_v11  ;;  %v839_v44 = vld [vmem:[%s1911_s29 + $0x28] sm:$0xff]  ;;  %v841_v46 = vld [vmem:[%s1911_s29 + $0x38] sm:$0xff]  ;;  %v1440_v48 = vld [vmem:[%s1901_s30 + $0x64] ss:$12 sps:$4 sm:$0xff]  }
  0xa6   : > { %1210 = vmatprep.subr.bf16.mxu0 %v1412_v13  ;;  %1289 = vmatpush3.bf16.msra.mxu1 %v1411_v12  ;;  %v1439_v47 = vld [vmem:[%s1901_s30 + $0x48] ss:$12 sps:$4 sm:$0xff]   ;;  %v1452_v49 = vld [vmem:[%s1901_s30 + $0xb0] ss:$12 sps:$4 sm:$0xff]   ;;  %v842_v50 = vld [vmem:[%s1911_s29 + $0x40] sm:$0xff] }
  0xa7   : > { %1290 = vmatprep.subr.bf16.mxu1 %v1414_v14  ;;  %857 = vperm.xlu0 %1398, %v835_v37   ;;  %v843_v51 = vld [vmem:[%s1911_s29 + $0x48] sm:$0xff]  ;;  %v844_v52 = vld [vmem:[%s1911_s29 + $0x50] sm:$0xff]  ;;  %v845_v53 = vld [vmem:[%s1911_s29 + $0x58] sm:$0xff] }
  0xa8   : > { %867 = vperm.xlu1 %1399, %v837_v38   ;;  %v1442_v54 = vld [vmem:[%s1901_s30 + $0x60] ss:$12 sps:$4 sm:$0xff]   ;;  %v1445_v55 = vld [vmem:[%s1901_s30 + $0x7c] ss:$12 sps:$4 sm:$0xff]   ;;  %v848_v58 = vld [vmem:[%s1911_s29 + $0x70] sm:$0xff] }
  0xa9   : > { %1211 = vmatpush3.bf16.msra.mxu0 %v1413_v15  ;;  %v846_v56 = vld [vmem:[%s1911_s29 + $0x60] sm:$0xff]  ;;  %v847_v57 = vld [vmem:[%s1911_s29 + $0x68] sm:$0xff]  ;;  %v849_v59 = vld [vmem:[%s1911_s29 + $0x78] sm:$0xff] }
  0xaa   : > { %1212 = vmatprep.subr.bf16.mxu0 %v1415_v16  ;;  %1291 = vmatpush3.bf16.msra.mxu1 %v1414_v14  ;;  %v1447_v60 = vld [vmem:[%s1901_s30 + $0x78] ss:$12 sps:$4 sm:$0xff]   ;;  %v1448_v61 = vld [vmem:[%s1901_s30 + $0x94] ss:$12 sps:$4 sm:$0xff]   ;;  %v1450_v62 = vld [vmem:[%s1901_s30 + $0x90] ss:$12 sps:$4 sm:$0xff]  }
  0xab   : > { %1292 = vmatprep.subr.bf16.mxu1 %v1417_v17  ;;  %872 = vperm.xlu0 %1398, %v838_v42   ;;  %v1453_v63 = vld [vmem:[%s1901_s30 + $0xac] ss:$12 sps:$4 sm:$0xff]   ;;  %v1455_v0 = vld [vmem:[%s1901_s30 + $0xa8] ss:$12 sps:$4 sm:$0xff]   ;;  %v1965_v12 = vld [vmem:[#allocation8] ss:$0 sm:$0xff] }
  0xac   : > { %877 = vperm.xlu1 %1399, %v839_v44  }
  0xad   : > { %1213 = vmatpush3.bf16.msra.mxu0 %v1416_v18 }
  0xae   : > { %1214 = vmatprep.subr.bf16.mxu0 %v1418_v19  ;;  %1293 = vmatpush3.bf16.msra.mxu1 %v1417_v17 }
  0xaf   : > { %1294 = vmatprep.subr.bf16.mxu1 %v1420_v21  ;;  %882 = vperm.xlu0 %1398, %v840_v45  }
  0xb0   : > { %887 = vperm.xlu1 %1399, %v841_v46  }
  0xb1   : > { %1215 = vmatpush3.bf16.msra.mxu0 %v1419_v20 }
  0xb2   : > { %1216 = vmatprep.subr.bf16.mxu0 %v1421_v22  ;;  %1295 = vmatpush3.bf16.msra.mxu1 %v1420_v21 }
  0xb3   : > { %1296 = vmatprep.subr.bf16.mxu1 %v1423_v23  ;;  %892 = vperm.xlu0 %1398, %v842_v50  }
  0xb4   : > { %897 = vperm.xlu1 %1399, %v843_v51  }
  0xb5   : > { %1217 = vmatpush3.bf16.msra.mxu0 %v1422_v26 }
  0xb6   : > { %1297 = vmatpush3.bf16.msra.mxu1 %v1423_v23 }
  0xb7   : > { %902 = vperm.xlu0 %1398, %v844_v52  }
  0xb8   : > { %673 = vmatmul.mubr.bf16.vlgmr.msra.gmra.mrb[0].mxu0 %v1424_v27  ;;  %907 = vperm.xlu1 %1399, %v845_v53  }
  0xb9   : > { %680 = vmatprep.mubr.bf16.mxu0 %v1429_v28  ;;  %1299 = vmatmul.mubr.bf16.vlgmr.msra.gmra.mrb[0].mxu1 %v1428_v29 }
  0xba   : > { %1302 = vmatprep.mubr.bf16.mxu1 %v1435_v30 }
  0xbb   : > { %912 = vperm.xlu0 %1398, %v846_v56  }
  0xbc   : > { %917 = vperm.xlu1 %1399, %v847_v57  }
  0xbf   : > { %922 = vperm.xlu0 %1398, %v848_v58  }
  0xc0   : > { %681 = vmatmul.mubr.bf16.gmra.mrb[4].mxu0 %v1431_v31  ;;  %927 = vperm.xlu1 %1399, %v849_v59  }
  0xc1   : > { %688 = vmatprep.mubr.bf16.mxu0 %v1432_v32  ;;  %1303 = vmatmul.mubr.bf16.gmra.mrb[4].mxu1 %v1436_v33 }
  0xc2   : > { %1306 = vmatprep.mubr.bf16.mxu1 %v1443_v34 }
  0xc8   : > { %689 = vmatmul.mubr.bf16.gmra.mrb[8].mxu0 %v1434_v39 }
  0xc9   : > { %696 = vmatprep.mubr.bf16.mxu0 %v1437_v40  ;;  %1307 = vmatmul.mubr.bf16.gmra.mrb[8].mxu1 %v1444_v41 }
  0xca   : > { %1310 = vmatprep.mubr.bf16.mxu1 %v1451_v43 }
  0xd0   : > { %697 = vmatmul.mubr.bf16.gmra.mrb[12].mxu0 %v1439_v47 }
  0xd1   : > { %704 = vmatprep.mubr.bf16.mxu0 %v1440_v48  ;;  %1311 = vmatmul.mubr.bf16.gmra.mrb[12].mxu1 %v1452_v49 }
  0xd8   : > { %705 = vmatmul.mubr.bf16.gmra.mrb[16].mxu0 %v1442_v54 }
  0xd9   : > { %712 = vmatprep.mubr.bf16.mxu0 %v1445_v55 }
  0xe0   : > { %713 = vmatmul.mubr.bf16.gmra.mrb[20].mxu0 %v1447_v60 }
  0xe1   : > { %720 = vmatprep.mubr.bf16.mxu0 %v1448_v61 }
  0xe8   : > { %721 = vmatmul.mubr.bf16.gmra.mrb[24].mxu0 %v1450_v62 }
  0xe9   : > { %728 = vmatprep.mubr.bf16.mxu0 %v1453_v63 }
  0xf0   : > { %729 = vmatmul.mubr.bf16.gmra.mrb[28].mxu0 %v1455_v0 }
 0x122   : > { %v853_v1 = vpop.permute.xlu0 %852 }
 0x123   : > { %v863_v20 = vpop.permute.xlu1 %862 }
 0x126   : > { %v858_v14 = vpop.permute.xlu0 %857 }
 0x127   : > { %v868_v36 = vpop.permute.xlu1 %867 }
 0x12a   : > { %v873_v52 = vpop.permute.xlu0 %872 }
 0x12b   : > { %v878_v56 = vpop.permute.xlu1 %877 }
 0x18b   : > { %v1218_v2 = vpop.f32.mrb[0].mxu0 }
 0x18c   : > { %v1219_v3 = vpop.f32.mrb[1].mxu0  ;;  %v1300_v6 = vpop.f32.mrb[0].mxu1 }
 0x18d   : > { %v1220_v4 = vadd.f32 %v1219_v3, %v1218_v2  ;;  %v1221_v5 = vpop.f32.mrb[2].mxu0  ;;  %v771_v8 = vpop.f32.mrb[1].mxu1 }
 0x18e   : > { %v1222_v7 = vpop.f32.mrb[3].mxu0  ;;  %v1301_v11 = vpop.f32.mrb[2].mxu1 }
 0x18f   : > { %v1223_v9 = vadd.f32 %v1222_v7, %v1221_v5  ;;  %v772_v10 = vadd.f32 %v1220_v4, %v771_v8  ;;  %v774_v13 = vpop.f32.mrb[3].mxu1  ;;  %v883_v8 = vpop.permute.xlu0 %882 }
 0x191   : > { %v930_v15 = vmul.f32 %v853_v1, %v772_v10  ;;  %v775_v16 = vadd.f32 %v1223_v9, %v774_v13  ;;  %v888_v13 = vpop.permute.xlu1 %887 }
 0x193   : > { %v953_v17 = vadd.f32 %v1965_v12, %v930_v15  ;;  %v931_v18 = vmul.f32 %v858_v14, %v775_v16  ;;  %v1224_v19 = vpop.f32.mrb[4].mxu0 }
 0x194   : > { %v1225_v21 = vpop.f32.mrb[5].mxu0  ;;  %v1304_v26 = vpop.f32.mrb[4].mxu1 }
 0x195   : > { %v969_v22 = vmax.f32 %v953_v17, 0.0  ;;  %v954_v23 = vadd.f32 %v1965_v12, %v931_v18  ;;  %v1226_v24 = vadd.f32 %v1225_v21, %v1224_v19  ;;  %v1227_v25 = vpop.f32.mrb[6].mxu0  ;;  %v787_v28 = vpop.f32.mrb[5].mxu1 }
 0x196   : > { %v1228_v27 = vpop.f32.mrb[7].mxu0  ;;  %v1305_v32 = vpop.f32.mrb[6].mxu1 }
 0x197   : > { %985 = vst [vmem:[%s1971_s21] sm:$0xff] %v969_v22  ;;  %v970_v29 = vmax.f32 %v954_v23, 0.0  ;;  %v780_v30 = vadd.f32 %v1300_v6, %v1226_v24  ;;  %v1229_v31 = vadd.f32 %v1228_v27, %v1227_v25  ;;  %v790_v33 = vpop.f32.mrb[7].mxu1 }
 0x199   : > { %986 = vst [vmem:[%s1971_s21 + $0x8] sm:$0xff] %v970_v29  ;;  %v932_v34 = vmul.f32 %v863_v20, %v780_v30  ;;  %v783_v35 = vadd.f32 %v1301_v11, %v1229_v31  ;;  %v898_v29 = vpop.permute.xlu1 %897 }
 0x19b   : > { %v955_v37 = vadd.f32 %v1965_v12, %v932_v34  ;;  %v933_v38 = vmul.f32 %v868_v36, %v783_v35  ;;  %v1230_v39 = vpop.f32.mrb[8].mxu0 }
 0x19c   : > { %v1231_v40 = vpop.f32.mrb[9].mxu0  ;;  %v1977_v45 = vpop.f32.mrb[8].mxu1 }
 0x19d   : > { %v971_v41 = vmax.f32 %v955_v37, 0.0  ;;  %v956_v42 = vadd.f32 %v1965_v12, %v933_v38  ;;  %v1232_v43 = vadd.f32 %v1231_v40, %v1230_v39  ;;  %v1233_v44 = vpop.f32.mrb[10].mxu0  ;;  %v803_v47 = vpop.f32.mrb[9].mxu1 }
 0x19e   : > { %v1234_v46 = vpop.f32.mrb[11].mxu0  ;;  %v1980_v51 = vpop.f32.mrb[10].mxu1 }
 0x19f   : > { %987 = vst [vmem:[%s1971_s21 + $0x10] sm:$0xff] %v971_v41  ;;  %v972_v48 = vmax.f32 %v956_v42, 0.0  ;;  %v1235_v49 = vadd.f32 %v1234_v46, %v1233_v44  ;;  %v788_v50 = vadd.f32 %v1232_v43, %v787_v28  ;;  %v806_v53 = vpop.f32.mrb[11].mxu1  ;;  %v908_v46 = vpop.permute.xlu1 %907 }
 0x1a1   : > { %988 = vst [vmem:[%s1971_s21 + $0x18] sm:$0xff] %v972_v48  ;;  %v934_v54 = vmul.f32 %v873_v52, %v788_v50  ;;  %v791_v55 = vadd.f32 %v1235_v49, %v790_v33 }
 0x1a3   : > { %v957_v57 = vadd.f32 %v1965_v12, %v934_v54  ;;  %v935_v58 = vmul.f32 %v878_v56, %v791_v55  ;;  %v1236_v59 = vpop.f32.mrb[12].mxu0 }
 0x1a4   : > { %v1237_v60 = vpop.f32.mrb[13].mxu0  ;;  %v1985_v1 = vpop.f32.mrb[12].mxu1 }
 0x1a5   : > { %v973_v61 = vmax.f32 %v957_v57, 0.0  ;;  %v958_v62 = vadd.f32 %v1965_v12, %v935_v58  ;;  %v1238_v63 = vadd.f32 %v1237_v60, %v1236_v59  ;;  %v1239_v0 = vpop.f32.mrb[14].mxu0  ;;  %v819_v3 = vpop.f32.mrb[13].mxu1 }
 0x1a6   : > { %v1240_v2 = vpop.f32.mrb[15].mxu0  ;;  %v1988_v7 = vpop.f32.mrb[14].mxu1 }
 0x1a7   : > { %989 = vst [vmem:[%s1971_s21 + $0x20] sm:$0xff] %v973_v61  ;;  %v974_v4 = vmax.f32 %v958_v62, 0.0  ;;  %v796_v5 = vadd.f32 %v1304_v26, %v1238_v63  ;;  %v1241_v6 = vadd.f32 %v1240_v2, %v1239_v0  ;;  %v822_v9 = vpop.f32.mrb[15].mxu1  ;;  %v893_v26 = vpop.permute.xlu0 %892 }
 0x1a8   : > { %v918_v61 = vpop.permute.xlu1 %917 }
 0x1a9   : > { %990 = vst [vmem:[%s1971_s21 + $0x28] sm:$0xff] %v974_v4  ;;  %v936_v10 = vmul.f32 %v883_v8, %v796_v5  ;;  %v799_v11 = vadd.f32 %v1305_v32, %v1241_v6 }
 0x1ab   : > { %v959_v14 = vadd.f32 %v1965_v12, %v936_v10  ;;  %v937_v15 = vmul.f32 %v888_v13, %v799_v11  ;;  %v1242_v16 = vpop.f32.mrb[16].mxu0  ;;  %v903_v42 = vpop.permute.xlu0 %902 }
 0x1ac   : > { %v1243_v17 = vpop.f32.mrb[17].mxu0 }
 0x1ad   : > { %v975_v18 = vmax.f32 %v959_v14, 0.0  ;;  %v960_v19 = vadd.f32 %v1965_v12, %v937_v15  ;;  %v1244_v20 = vadd.f32 %v1243_v17, %v1242_v16  ;;  %v1245_v21 = vpop.f32.mrb[18].mxu0  ;;  %v928_v16 = vpop.permute.xlu1 %927 }
 0x1ae   : > { %v1246_v22 = vpop.f32.mrb[19].mxu0 }
 0x1af   : > { %991 = vst [vmem:[%s1971_s21 + $0x30] sm:$0xff] %v975_v18  ;;  %v976_v23 = vmax.f32 %v960_v19, 0.0  ;;  %v1247_v24 = vadd.f32 %v1246_v22, %v1245_v21  ;;  %v804_v25 = vadd.f32 %v1244_v20, %v803_v47  ;;  %v913_v59 = vpop.permute.xlu0 %912 }
 0x1b1   : > { %992 = vst [vmem:[%s1971_s21 + $0x38] sm:$0xff] %v976_v23  ;;  %v938_v27 = vmul.f32 %v893_v26, %v804_v25  ;;  %v807_v28 = vadd.f32 %v1247_v24, %v806_v53 }
 0x1b3   : > { %v961_v30 = vadd.f32 %v1965_v12, %v938_v27  ;;  %v939_v31 = vmul.f32 %v898_v29, %v807_v28  ;;  %v1248_v32 = vpop.f32.mrb[20].mxu0  ;;  %v923_v13 = vpop.permute.xlu0 %922 }
 0x1b4   : > { %v1249_v33 = vpop.f32.mrb[21].mxu0 }
 0x1b5   : > { %v977_v34 = vmax.f32 %v961_v30, 0.0  ;;  %v962_v35 = vadd.f32 %v1965_v12, %v939_v31  ;;  %v1250_v36 = vadd.f32 %v1249_v33, %v1248_v32  ;;  %v1251_v37 = vpop.f32.mrb[22].mxu0 }
 0x1b6   : > { %v1252_v38 = vpop.f32.mrb[23].mxu0 }
 0x1b7   : > { %993 = vst [vmem:[%s1971_s21 + $0x40] sm:$0xff] %v977_v34  ;;  %v978_v39 = vmax.f32 %v962_v35, 0.0  ;;  %v812_v40 = vadd.f32 %v1977_v45, %v1250_v36  ;;  %v1253_v41 = vadd.f32 %v1252_v38, %v1251_v37 }
 0x1b9   : > { %994 = vst [vmem:[%s1971_s21 + $0x48] sm:$0xff] %v978_v39  ;;  %v940_v43 = vmul.f32 %v903_v42, %v812_v40  ;;  %v815_v44 = vadd.f32 %v1980_v51, %v1253_v41 }
 0x1bb   : > { %v963_v47 = vadd.f32 %v1965_v12, %v940_v43  ;;  %v941_v48 = vmul.f32 %v908_v46, %v815_v44  ;;  %v1254_v49 = vpop.f32.mrb[24].mxu0 }
 0x1bc   : > { %v1255_v50 = vpop.f32.mrb[25].mxu0 }
 0x1bd   : > { %v979_v52 = vmax.f32 %v963_v47, 0.0  ;;  %v964_v53 = vadd.f32 %v1965_v12, %v941_v48  ;;  %v1256_v54 = vadd.f32 %v1255_v50, %v1254_v49  ;;  %v1257_v55 = vpop.f32.mrb[26].mxu0 }
 0x1be   : > { %v1258_v45 = vpop.f32.mrb[27].mxu0 }
 0x1bf   : > { %995 = vst [vmem:[%s1971_s21 + $0x50] sm:$0xff] %v979_v52  ;;  %v980_v56 = vmax.f32 %v964_v53, 0.0  ;;  %v1259_v57 = vadd.f32 %v1258_v45, %v1257_v55  ;;  %v820_v58 = vadd.f32 %v1256_v54, %v819_v3 }
 0x1c1   : > { %996 = vst [vmem:[%s1971_s21 + $0x58] sm:$0xff] %v980_v56  ;;  %v942_v51 = vmul.f32 %v913_v59, %v820_v58  ;;  %v823_v60 = vadd.f32 %v1259_v57, %v822_v9 }
 0x1c3   : > { %v965_v62 = vadd.f32 %v1965_v12, %v942_v51  ;;  %v943_v63 = vmul.f32 %v918_v61, %v823_v60  ;;  %v1260_v0 = vpop.f32.mrb[28].mxu0 }
 0x1c4   : > { %v1261_v2 = vpop.f32.mrb[29].mxu0 }
 0x1c5   : > { %v981_v4 = vmax.f32 %v965_v62, 0.0  ;;  %v966_v5 = vadd.f32 %v1965_v12, %v943_v63  ;;  %v1262_v6 = vadd.f32 %v1261_v2, %v1260_v0  ;;  %v1263_v8 = vpop.f32.mrb[30].mxu0 }
 0x1c6   : > { %v1264_v10 = vpop.f32.mrb[31].mxu0 }
 0x1c7   : > { %997 = vst [vmem:[%s1971_s21 + $0x60] sm:$0xff] %v981_v4  ;;  %v982_v3 = vmax.f32 %v966_v5, 0.0  ;;  %v828_v9 = vadd.f32 %v1985_v1, %v1262_v6  ;;  %v1265_v11 = vadd.f32 %v1264_v10, %v1263_v8 }
 0x1c9   : > { %998 = vst [vmem:[%s1971_s21 + $0x68] sm:$0xff] %v982_v3  ;;  %v944_v14 = vmul.f32 %v923_v13, %v828_v9  ;;  %v831_v15 = vadd.f32 %v1988_v7, %v1265_v11 }
 0x1cb   : > { %v967_v17 = vadd.f32 %v1965_v12, %v944_v14  ;;  %v945_v18 = vmul.f32 %v928_v16, %v831_v15 }
 0x1cd   : > { %v983_v19 = vmax.f32 %v967_v17, 0.0  ;;  %v968_v20 = vadd.f32 %v1965_v12, %v945_v18 }
 0x1cf   : > { %999 = vst [vmem:[%s1971_s21 + $0x70] sm:$0xff] %v983_v19  ;;  %v984_v1 = vmax.f32 %v968_v20, 0.0 }
 0x1d1   : > { %1000 = vst [vmem:[%s1971_s21 + $0x78] sm:$0xff] %v984_v1 }
 0x1d2   : > { %1585 = shalt.err (!%p1582_p8)
}
 0x1d3   : > { %s1586_s27 = scalar_lea.hbm %s2018_s25, 2048  ;;  %s1590_s30 = scalar_lea.hbm %s2069_s4, 6144 }
 0x1d4   : > { %p1587_p0 = scmp.ne.s32.totalorder %s2018_s25, %s1586_s27  ;;  %p1591_p13 = scmp.lt.u32.totalorder %s2018_s25, %s2069_s4 }
 0x1d5   : > { %p1592_p3 = scmp.lt.u32.totalorder %s1590_s30, %s1586_s27  ;;  %p1594_p9 = scmp.lt.u32.totalorder %s1586_s27, %s2018_s25 }
 0x1d6   : > { %p1588_p1 = pnand %p1587_p0, %p1804_p4 }
 0x1d7   : > { %p1593_p7 = por %p1592_p3, %p1591_p13 }
 0x1d8   : > { %p1589_p10 = pneg %p1588_p1 }
 0x1d9   : > { %p1595_p12 = por %p1594_p9, %p1593_p7 }
 0x1db   : > { %p1596_p5 = pnand %p1595_p12, %p1589_p10 }
 0x1dd   : > { %1599 = shalt.err (!%p1596_p5)
}
 0x1de   : > { %s1664_s24 = smov 128   ;;  %s1665_s29 = smov 8  }
 0x1df   : > { %1329 = dma.vmem_to_hbm [thread:$0]  (%p1804_p4), %s2020_s6, 2048, %s2018_s25, %s1002_s26, %s1664_s24, %s1664_s24, %s1665_s29  }
 0x1e0 PF: > { %p1354_p11 = scmp.ge.s32.totalorder %s1650_s18, 2  ;;  %s1030_s21 = sand.u32 1, %s1638_s15  }
 0x1e1   : > { %p2090_p2 = scmp.ne.s32.totalorder %s2076_s22, 0  ;;  %s1031_s9 = scalar_lea.sflag [#allocation4], %s1030_s21 }
 0x1e3   : > { %p1346_p6 = pnand %p1354_p11, %p2090_p2 }
 0x1e5   : > { %1633 = dma.done.wait (!%p1346_p6), %s1031_s9, 2048  }
 0x1e6   : > { %1635 = vsyncadd (!%p1346_p6), %s1031_s9, 4294965248  ;;  %p21_p8 = scmp.ge.s32.totalorder %s1794_s10, 5   ;;  %s2091_s15 = smov %s1642_s16 }
 0x1e7   : > { %s2092_s16 = smov %s1646_s17  ;;  %s2093_s17 = smov %s1810_s13 }
 0x1e8   : > { %s2094_s18 = smov %s1794_s10  ;;  %23 = sbr.rel (!%p21_p8) target bundleno = 11 (0xb), region = 102 }
 0x1ef   :  { %1036 = vsyncpa [#allocation3], 1 }
 0x1f0   :  { %1038 = vsyncpa [#allocation3 + $0x1], 1 }
 0x1f1   :  { %1039 = vsyncpa [#allocation6], 1 }
 0x1f2   :  { %1041 = vsyncpa [#allocation6 + $0x1], 1 }
 0x1f3   :  { %1042 = vsyncpa [#allocation9], 1 }
 0x1f4   :  { %1043 = vsyncpa [#allocation4], 1 }
 0x1f5   :  { %1045 = vsyncpa [#allocation4 + $0x1], 1 }

// kernel: guard_gcn_forward.15
= control target key start
LH: loop header
LB: loop body
LE: loop exit
PB: predicated region body
PF: predicated region fallthrough
CT: control target
= control target key end

     0   :  { %s2503_s0 = inlined_call_operand.hbm [shape: bf16[384,384], index: 0, kind: input, shape index: {}]   ;;  %s2504_s1 = inlined_call_operand.hbm [shape: f32[384,1], index: 1, kind: input, shape index: {}]   ;;  %s2505_s2 = inlined_call_operand.hbm [shape: bf16[384,128], index: 2, kind: input, shape index: {}]   ;;  %s2506_s3 = inlined_call_operand.hbm [shape: f32[1,128], index: 3, kind: input, shape index: {}]   ;;  %s2507_s4 = inlined_call_operand.hbm [shape: f32[384,128], index: 4, kind: output, shape index: {}]  }
   0x1   :  { %2511 = sst [smem:[#allocation16_spill]] %s2503_s0 }
   0x2   :  { %2512 = sst [smem:[#allocation17_spill]] %s2505_s2 }
   0x3   :  { %9 = vsyncpa [#allocation3], 0 }
   0x4   :  { %11 = vsyncpa [#allocation3 + $0x1], 0 }
   0x5   :  { %12 = vsyncpa [#allocation6], 0 }
   0x6   :  { %14 = vsyncpa [#allocation6 + $0x1], 0 }
   0x7   :  { %15 = vsyncpa [#allocation9], 0 }
   0x8   :  { %16 = vsyncpa [#allocation4], 0 }
   0x9   :  { %18 = vsyncpa [#allocation4 + $0x1], 0  ;;  %s1934_s15 = smov 0   ;;  %s1936_s16 = smov 0  }
   0xa   :  { %s1938_s17 = smov 0   ;;  %s1940_s18 = smov 0  }
   0xb LB: > { %s1955_s19 = sadd.s32 4294967295, %s1893_s18   ;;  %s1309_s20 = sadd.s32 4294967294, %s1893_s18   ;;  %s1893_s18 = sphi %s1940_s18, %s2532_s18   ;;  %s1889_s17 = sphi %s1938_s17, %s2531_s17   ;;  %s1885_s16 = sphi %s1936_s16, %s2530_s16   ;;  %s1881_s15 = sphi %s1934_s15, %s2529_s15  }
   0xc   : > { %p44_p0 = scmp.ne.s32.totalorder %s1885_s16, %s1881_s15  ;;  %p2508_p1 = scmp.eq.s32.totalorder %s1955_s19, 0 }
   0xd   : > { %p142_p3 = scmp.eq.s32.totalorder %s1309_s20, 2  ;;  %p1310_p5 = scmp.ge.s32.totalorder %s1893_s18, 1 }
   0xe   : > { %p1964_p4 = por %p2508_p1, %p44_p0  ;;  %p149_p7 = scmp.lt.s32.totalorder %s1893_s18, 4 }
   0xf   : > { %p1969_p6 = por %p142_p3, %p44_p0  ;;  %s1895_s24 = smov [#allocation7]  }
  0x10   : > { %s2513_s21 = scalar_select %p1964_p4, 1, 0 }
  0x11   : > { %s2514_s22 = scalar_select %p1969_p6, 1, 0 }
  0x12   : > { %p1974_p8 = pnand %p1310_p5, %p149_p7  ;;  %s161_s25 = sshll.u32 %s1895_s24, 4  ;;  %s162_s25 = int_to_ptr.vmem [resolvable:$true] %s161_s25 }
  0x13   : > { %s1896_s27 = smov [#allocation8]   ;;  %s2517_s2 = sld [smem:[#allocation17_spill]] }
  0x14   : > { %s2515_s23 = scalar_select %p1974_p8, 1, 0 }
  0x15   : > { %p1510_p9 = pneg %p1974_p8  ;;  %s175_s28 = sshll.u32 %s1896_s27, 4  ;;  %s1986_s28 = int_to_ptr.vmem [resolvable:$true] %s175_s28 }
  0x17   : > { %p1982_p10 = pnand %p1510_p9, %p2508_p1 }
  0x19   : > { %s1699_s5 = scalar_lea.hbm %s2517_s2, 3072  ;;  %p1701_p12 = pneg %p1982_p10 }
  0x1a   : > { %p1700_p11 = scmp.ne.s32.totalorder %s2517_s2, %s1699_s5  ;;  %p1706_p3 = scmp.lt.u32.totalorder %s1699_s5, %s2517_s2 }
  0x1c   : > { %p1702_p13 = pnand %p1701_p12, %p1700_p11 }
  0x1e   : > { %p1703_p0 = pneg %p1702_p13 }
  0x20   : > { %p1708_p5 = pnand %p1706_p3, %p1703_p0 }
  0x22   : > { %1711 = shalt.err (!%p1708_p5)
}
  0x23   : > { %s1712_s10 = scalar_lea.vmem %s162_s25, 3072  ;;  %p1720_p2 = scmp.lt.s32.totalorder %s162_s25, %s162_s25 }
  0x24   : > { %p1713_p7 = scmp.ne.s32.totalorder %s162_s25, %s1712_s10  ;;  %p1721_p6 = scmp.lt.s32.totalorder %s1712_s10, %s1712_s10 }
  0x26   : > { %p1715_p9 = pnand %p1713_p7, %p1701_p12  ;;  %p1722_p4 = por %p1721_p6, %p1720_p2 }
  0x28   : > { %p1716_p1 = pneg %p1715_p9 }
  0x2a   : > { %p1723_p8 = pnand %p1722_p4, %p1716_p1 }
  0x2c   : > { %1726 = shalt.err (!%p1723_p8)
}
  0x2d   : > { %s1897_s11 = smov 64   ;;  %s1898_s12 = smov 4  }
  0x2e   : > { %1513 = dma.hbm_to_vmem [thread:$0]  (!%p1982_p10), %s2517_s2, 3072, %s162_s25, [#allocation6], %s1897_s11, %s1897_s11, %s1898_s12  }
  0x2f   : > { %s1727_s27 = scalar_lea.hbm %s2506_s3, 16 }
  0x30   : > { %p1728_p11 = scmp.ne.s32.totalorder %s2506_s3, %s1727_s27  ;;  %p1734_p4 = scmp.lt.u32.totalorder %s1727_s27, %s2506_s3 }
  0x32   : > { %p1730_p1 = pnand %p1728_p11, %p1701_p12 }
  0x34   : > { %p1731_p2 = pneg %p1730_p1 }
  0x36   : > { %p1736_p6 = pnand %p1734_p4, %p1731_p2 }
  0x38   : > { %1739 = shalt.err (!%p1736_p6)
}
  0x39   : > { %s1740_s25 = scalar_lea.vmem %s1986_s28, 16  ;;  %s1747_s7 = scalar_lea.vmem %s1986_s28, 32 }
  0x3a   : > { %p1741_p8 = scmp.ne.s32.totalorder %s1986_s28, %s1740_s25  ;;  %p1748_p3 = scmp.lt.s32.totalorder %s1986_s28, %s1986_s28 }
  0x3b   : > { %p1749_p5 = scmp.lt.s32.totalorder %s1747_s7, %s1740_s25 }
  0x3c   : > { %p1743_p13 = pnand %p1741_p8, %p1701_p12 }
  0x3d   : > { %p1750_p7 = por %p1749_p5, %p1748_p3 }
  0x3e   : > { %p1744_p0 = pneg %p1743_p13 }
  0x40   : > { %p1751_p9 = pnand %p1750_p7, %p1744_p0 }
  0x42   : > { %1754 = shalt.err (!%p1751_p9)
}
  0x43   : > { %1516 = dma.hbm_to_vmem [thread:$0]  (!%p1982_p10), %s2506_s3, 16, %s1986_s28, [#allocation9]  }
  0x44   : > { %s2037_s10 = sadd.s32 1, %s1893_s18   ;;  %s31_s26 = sadd.s32 1, %s1889_s17 }
  0x45   : > { %s28_s11 = ssub.s32 %s1893_s18, %s2037_s10  ;;  %p38_p12 = scmp.ne.s32.totalorder %s1889_s17, %s1885_s16 }
  0x46   : > { %p29_p11 = scmp.eq.s32.totalorder %s28_s11, 0  ;;  %p39_p1 = scmp.eq.s32.totalorder %s1893_s18, 0 }
  0x47   : > { %p2518_p2 = scmp.eq.s32.totalorder %s1955_s19, 2  ;;  %p1530_p6 = scmp.lt.s32.totalorder %s1893_s18, 3 }
  0x48   : > { %s2053_s13 = scalar_select %p29_p11, %s1889_s17, %s31_s26  }
  0x49   : > { %p2047_p4 = por %p2518_p2, %p38_p12  ;;  %p40_p8 = por %p39_p1, %p38_p12 }
  0x4a   : > { %s2056_s14 = sand.u32 1, %s1889_s17   ;;  %s1494_s20 = smul.u32 3072, %s1893_s18 }
  0x4b   : > { %s1493_s28 = smul.u32 192, %s2056_s14  ;;  %p2060_p10 = pnand %p1530_p6, %p40_p8 }
  0x4c   : > { %s2521_s0 = sld [smem:[#allocation16_spill]]  ;;  %s208_s25 = sand.u32 1, %s1893_s18  }
  0x4d   : > { %s190_s5 = scalar_lea.vmem [#allocation2], %s1493_s28  ;;  %s187_s7 = scalar_lea.sflag [#allocation3], %s2056_s14 }
  0x4e   : > { %s198_s6 = sshll.u32 %s190_s5, 4  ;;  %p1757_p0 = pneg %p2060_p10  ;;  %s2069_s6 = int_to_ptr.vmem [resolvable:$true] %s198_s6 }
  0x52   : > { %s2067_s30 = scalar_lea.hbm %s2521_s0, %s1494_s20  ;;  %s1760_s11 = scalar_lea.hbm %s2521_s0, 9216 }
  0x53   : > { %s1755_s8 = scalar_lea.hbm %s2067_s30, 3072  ;;  %p1761_p7 = scmp.lt.u32.totalorder %s2067_s30, %s2521_s0 }
  0x54   : > { %p1756_p13 = scmp.ne.s32.totalorder %s2067_s30, %s1755_s8  ;;  %p1762_p9 = scmp.lt.u32.totalorder %s1760_s11, %s1755_s8 }
  0x55   : > { %p1764_p11 = scmp.lt.u32.totalorder %s1755_s8, %s2067_s30 }
  0x56   : > { %p1758_p3 = pnand %p1757_p0, %p1756_p13  ;;  %p1763_p12 = por %p1762_p9, %p1761_p7 }
  0x58   : > { %p1759_p5 = pneg %p1758_p3  ;;  %p1765_p1 = por %p1764_p11, %p1763_p12 }
  0x5a   : > { %p1766_p2 = pnand %p1765_p1, %p1759_p5 }
  0x5c   : > { %1769 = shalt.err (!%p1766_p2)
}
  0x5d   : > { %s1770_s28 = scalar_lea.vmem %s2069_s6, 3072  ;;  %s1899_s29 = smov [#allocation2]  }
  0x5e   : > { %p1771_p6 = scmp.ne.s32.totalorder %s2069_s6, %s1770_s28  ;;  %s1775_s5 = sshll.u32 %s1899_s29, 4  ;;  %s1776_s5 = int_to_ptr.vmem [resolvable:$false] %s1775_s5 }
  0x5f   : > { %s1777_s9 = scalar_lea.vmem %s1776_s5, 6144  ;;  %p1778_p3 = scmp.lt.s32.totalorder %s2069_s6, %s1776_s5 }
  0x60   : > { %p1773_p8 = pnand %p1771_p6, %p1757_p0  ;;  %p1779_p7 = scmp.lt.s32.totalorder %s1777_s9, %s1770_s28 }
  0x62   : > { %p1774_p13 = pneg %p1773_p8  ;;  %p1780_p9 = por %p1779_p7, %p1778_p3 }
  0x64   : > { %p1781_p12 = pnand %p1780_p9, %p1774_p13 }
  0x66   : > { %1784 = shalt.err (!%p1781_p12)
}
  0x67   : > { %s1900_s8 = smov 192   ;;  %s1901_s26 = smov 12  }
  0x68   : > { %1520 = dma.hbm_to_vmem [thread:$0]  (!%p2060_p10), %s2067_s30, 3072, %s2069_s6, %s187_s7, %s1900_s8, %s1900_s8, %s1901_s26  }
  0x69   : > { %s1317_s11 = sshll.u32 %s2056_s14, 7  ;;  %s1379_s20 = sshll.u32 %s1893_s18, 11 }
  0x6a   : > { %s2105_s29 = scalar_lea.hbm %s2504_s1, %s1379_s20  ;;  %s212_s5 = scalar_lea.vmem [#allocation5], %s1317_s11 }
  0x6b   : > { %s219_s9 = sshll.u32 %s212_s5, 4  ;;  %s2111_s0 = scalar_lea.sflag [#allocation6], %s208_s25  ;;  %s2107_s9 = int_to_ptr.vmem [resolvable:$true] %s219_s9 }
  0x6c   : > { %s1785_s2 = scalar_lea.hbm %s2105_s29, 2048  ;;  %s1790_s6 = scalar_lea.hbm %s2504_s1, 6144 }
  0x6d   : > { %p1786_p5 = scmp.ne.s32.totalorder %s2105_s29, %s1785_s2  ;;  %p1791_p2 = scmp.lt.u32.totalorder %s2105_s29, %s2504_s1 }
  0x6e   : > { %p1792_p6 = scmp.lt.u32.totalorder %s1790_s6, %s1785_s2  ;;  %p1794_p13 = scmp.lt.u32.totalorder %s1785_s2, %s2105_s29 }
  0x6f   : > { %p1788_p11 = pnand %p1786_p5, %p1757_p0 }
  0x70   : > { %p1793_p8 = por %p1792_p6, %p1791_p2 }
  0x71   : > { %p1789_p1 = pneg %p1788_p11 }
  0x72   : > { %p1795_p3 = por %p1794_p13, %p1793_p8 }
  0x74   : > { %p1796_p7 = pnand %p1795_p3, %p1789_p1 }
  0x76   : > { %1799 = shalt.err (!%p1796_p7)
}
  0x77   : > { %s1800_s25 = scalar_lea.vmem %s2107_s9, 2048  ;;  %s1902_s26 = smov [#allocation5]  }
  0x78   : > { %p1801_p9 = scmp.ne.s32.totalorder %s2107_s9, %s1800_s25  ;;  %s1805_s11 = sshll.u32 %s1902_s26, 4  ;;  %s1806_s11 = int_to_ptr.vmem [resolvable:$false] %s1805_s11 }
  0x79   : > { %s1807_s20 = scalar_lea.vmem %s1806_s11, 4096  ;;  %p1808_p11 = scmp.lt.s32.totalorder %s2107_s9, %s1806_s11 }
  0x7a   : > { %p1803_p12 = pnand %p1801_p9, %p1757_p0  ;;  %p1809_p2 = scmp.lt.s32.totalorder %s1807_s20, %s1800_s25 }
  0x7c   : > { %p1804_p5 = pneg %p1803_p12  ;;  %p1810_p6 = por %p1809_p2, %p1808_p11 }
  0x7e   : > { %p1811_p8 = pnand %p1810_p6, %p1804_p5 }
  0x80   : > { %1814 = shalt.err (!%p1811_p8)
}
  0x81   : > { %s1903_s2 = smov 128   ;;  %s1904_s27 = smov 8  }
  0x82   : > { %1523 = dma.hbm_to_vmem [thread:$0]  (!%p2060_p10), %s2105_s29, 2048, %s2107_s9, %s2111_s0, %s1903_s2, %s1903_s2, %s1904_s27  }
  0x83   : > { %p2522_p0 = scmp.ne.s32.totalorder %s2515_s23, 0 }
  0x84   : > { %s2140_s28 = sand.u32 (!%p2522_p0), 1, %s1885_s16   ;;  %p2523_p1 = scmp.ne.s32.totalorder (!%p2522_p0), %s2513_s21, 0 }
  0x85   : > { %231 = sbr.rel (%p2522_p0) target bundleno = 794 (0x31a), region = 36  ;;  %s234_s14 = scalar_lea.sflag (!%p2522_p0), [#allocation3], %s2140_s28 }
  0x86   : > { %s1495_s5 = smul.u32 (!%p2522_p0), 192, %s2140_s28 }
  0x88   : > { %s2144_s30 = scalar_lea.vmem (!%p2522_p0), [#allocation2], %s1495_s5 }
  0x8c   : > { %1860 = dma.done.wait (%p2523_p1), %s234_s14, 3072  }
  0x8d   : > { %1862 = vsyncadd (%p2523_p1), %s234_s14, 4294964224  ;;  %s242_s0 = sand.u32 1, %s1955_s19   ;;  %s1321_s23 = sshll.u32 %s2140_s28, 7 }
  0x8e   : > { %s243_s24 = scalar_lea.sflag [#allocation6], %s242_s0  ;;  %s2154_s29 = scalar_lea.vmem [#allocation5], %s1321_s23 }
  0x8f   : > { %1864 = dma.done.wait (%p2523_p1), %s243_s24, 2048  }
  0x90   : > { %1866 = vsyncadd (%p2523_p1), %s243_s24, 4294965248  ;;  %p2524_p10 = scmp.eq.s32.totalorder %s1955_s19, 0 }
  0x92   : > { %1868 = dma.done.wait (%p2524_p10), [#allocation6], 3072   ;;  %p2525_p13 = pmov %p2524_p10 }
  0x93   : > { %p2526_p3 = pmov %p2524_p10 }
  0x94   : > { %1870 = vsyncadd (%p2525_p13), [#allocation6], 4294964224 }
  0x95   : > { %1872 = dma.done.wait (%p2526_p3), [#allocation9], 16   ;;  %p2527_p7 = pmov %p2526_p3 }
  0x96   : > { %v1905_v0 = vmov 0   ;;  %v1579_v1 = vld [vmem:[#allocation7 + $0x40] sm:$0xff]   ;;  %v1582_v4 = vld [vmem:[#allocation7 + $0x48] sm:$0xff]   ;;  %v1585_v7 = vld [vmem:[#allocation7 + $0x50] sm:$0xff]   ;;  %s2420_s21 = scalar_lea.vmem [#allocation10], %s1321_s23  ;;  %s1380_s9 = sshll.u32 %s1955_s19, 11 }
  0x97   : > { %1874 = vsyncadd (%p2527_p7), [#allocation9], 4294967280  ;;  %1577 = vset.pattern.permute.xlu0 %v1905_v0  ;;  %1578 = vset.pattern.permute.xlu1 %v1905_v0  ;;  %v1580_v2 = vld [vmem:[#allocation7] sm:$0xff]   ;;  %v1583_v5 = vld [vmem:[#allocation7 + $0x8] sm:$0xff]   ;;  %s1194_s6 = sshll.u32 %s2420_s21, 4  ;;  %s2455_s25 = scalar_lea.hbm %s2507_s4, %s1380_s9  ;;  %s2457_s6 = int_to_ptr.vmem [resolvable:$true] %s1194_s6 }
  0x98   : > { %1381 = vmatprep.subr.bf16.mxu0 %v1579_v1  ;;  %v1581_v3 = vld [vmem:[#allocation7 + $0x80] sm:$0xff]   ;;  %v1584_v6 = vld [vmem:[#allocation7 + $0x88] sm:$0xff]   ;;  %v1586_v8 = vld [vmem:[#allocation7 + $0x10] sm:$0xff]   ;;  %s1181_s19 = scalar_lea.sflag [#allocation4], %s2140_s28  ;;  %s1815_s26 = scalar_lea.vmem %s2457_s6, 2048 }
  0x99   : > { %1382 = vmatpush3.bf16.msra.mxu0 %v1580_v2  ;;  %1461 = vmatprep.subr.bf16.mxu1 %v1581_v3  ;;  %v1587_v9 = vld [vmem:[#allocation7 + $0x90] sm:$0xff]   ;;  %v1588_v10 = vld [vmem:[#allocation7 + $0x58] sm:$0xff]   ;;  %v1591_v13 = vld [vmem:[#allocation7 + $0x60] sm:$0xff]   ;;  %v969_v2 = vlaneseq  ;;  %p1816_p9 = scmp.ne.s32.totalorder %s2457_s6, %s1815_s26  ;;  %s1906_s11 = smov [#allocation10]  }
  0x9a   : > { %1462 = vmatpush3.bf16.msra.mxu1 %v1581_v3  ;;  %1383 = vmatprep.subr.bf16.mxu0 %v1582_v4  ;;  %v1589_v11 = vld [vmem:[#allocation7 + $0x18] sm:$0xff]   ;;  %v1593_v14 = vld [vmem:[#allocation7 + $0xa0] sm:$0xff]   ;;  %v1594_v16 = vld [vmem:[#allocation7 + $0x68] sm:$0xff]   ;;  %s1819_s20 = sshll.u32 %s1906_s11, 4  ;;  %s1820_s20 = int_to_ptr.vmem [resolvable:$false] %s1819_s20 }
  0x9b   : > { %1463 = vmatprep.subr.bf16.mxu1 %v1584_v6  ;;  %v1590_v12 = vld [vmem:[#allocation7 + $0x98] sm:$0xff]   ;;  %v1592_v15 = vld [vmem:[#allocation7 + $0x20] sm:$0xff]   ;;  %v1596_v17 = vld [vmem:[#allocation7 + $0xa8] sm:$0xff]   ;;  %p1817_p12 = pnand %p1816_p9, %p2047_p4  ;;  %s1821_s2 = scalar_lea.vmem %s1820_s20, 4096 }
  0x9c   : > { %v1595_v18 = vld [vmem:[#allocation7 + $0x28] sm:$0xff]   ;;  %v1597_v19 = vld [vmem:[#allocation7 + $0x70] sm:$0xff]   ;;  %v1600_v22 = vld [vmem:[#allocation7 + $0x78] sm:$0xff]   ;;  %p1822_p11 = scmp.lt.s32.totalorder %s2457_s6, %s1820_s20  ;;  %p1823_p2 = scmp.lt.s32.totalorder %s1821_s2, %s1815_s26 }
  0x9d   : > { %1384 = vmatpush3.bf16.msra.mxu0 %v1583_v5  ;;  %v1598_v20 = vld [vmem:[#allocation7 + $0x30] sm:$0xff]   ;;  %v1602_v23 = vld [vmem:[#allocation7 + $0xb8] sm:$0xff]   ;;  %v1603_v27 = vld [vmem:[%s2144_s30] ss:$12 sps:$4 sm:$0xff]   ;;  %p1818_p5 = pneg %p1817_p12 }
  0x9e   : > { %1385 = vmatprep.subr.bf16.mxu0 %v1585_v7  ;;  %1464 = vmatpush3.bf16.msra.mxu1 %v1584_v6  ;;  %v1599_v21 = vld [vmem:[#allocation7 + $0xb0] sm:$0xff]   ;;  %v1601_v26 = vld [vmem:[#allocation7 + $0x38] sm:$0xff]   ;;  %v1607_v29 = vld [vmem:[%s2144_s30 + $0x20] ss:$12 sps:$4 sm:$0xff]   ;;  %p1824_p6 = por %p1823_p2, %p1822_p11 }
  0x9f   : > { %1465 = vmatprep.subr.bf16.mxu1 %v1587_v9  ;;  %v1605_v24 = vld [vmem:[%s2144_s30 + $0x4] ss:$12 sps:$4 sm:$0xff]   ;;  %v1606_v25 = vld [vmem:[%s2144_s30 + $0x8] ss:$12 sps:$4 sm:$0xff]   ;;  %v837_v38 = vld [vmem:[%s2154_s29 + $0x18] sm:$0xff] }
  0xa0   : > { %672 = vmatprep.mubr.bf16.mxu0 %v1605_v24  ;;  %1477 = vmatprep.mubr.bf16.mxu1 %v1606_v25  ;;  %v1608_v28 = vld [vmem:[%s2144_s30 + $0x1c] ss:$12 sps:$4 sm:$0xff]   ;;  %v1614_v30 = vld [vmem:[%s2144_s30 + $0x38] ss:$12 sps:$4 sm:$0xff]   ;;  %v1611_v32 = vld [vmem:[%s2144_s30 + $0x34] ss:$12 sps:$4 sm:$0xff]   ;;  %p1825_p8 = pnand %p1824_p6, %p1818_p5 }
  0xa1   : > { %1386 = vmatpush3.bf16.msra.mxu0 %v1586_v8  ;;  %v1610_v31 = vld [vmem:[%s2144_s30 + $0x18] ss:$12 sps:$4 sm:$0xff]   ;;  %v1615_v33 = vld [vmem:[%s2144_s30 + $0x50] ss:$12 sps:$4 sm:$0xff]   ;;  %v1622_v34 = vld [vmem:[%s2144_s30 + $0x68] ss:$12 sps:$4 sm:$0xff]  }
  0xa2   : > { %1387 = vmatprep.subr.bf16.mxu0 %v1588_v10  ;;  %1466 = vmatpush3.bf16.msra.mxu1 %v1587_v9  ;;  %v834_v35 = vld [vmem:[%s2154_s29] sm:$0xff]  ;;  %v836_v36 = vld [vmem:[%s2154_s29 + $0x10] sm:$0xff]  ;;  %v835_v37 = vld [vmem:[%s2154_s29 + $0x8] sm:$0xff]  ;;  %v2208_v10 = vand.u32 127, %v969_v2 }
  0xa3   : > { %1467 = vmatprep.subr.bf16.mxu1 %v1590_v12  ;;  %852 = vperm.xlu0 %1577, %v834_v35   ;;  %v1613_v39 = vld [vmem:[%s2144_s30 + $0x30] ss:$12 sps:$4 sm:$0xff]   ;;  %v1616_v40 = vld [vmem:[%s2144_s30 + $0x4c] ss:$12 sps:$4 sm:$0xff]   ;;  %v838_v42 = vld [vmem:[%s2154_s29 + $0x20] sm:$0xff] }
  0xa4   : > { %862 = vperm.xlu1 %1578, %v836_v36   ;;  %v1623_v41 = vld [vmem:[%s2144_s30 + $0x80] ss:$12 sps:$4 sm:$0xff]   ;;  %v1630_v43 = vld [vmem:[%s2144_s30 + $0x98] ss:$12 sps:$4 sm:$0xff]   ;;  %v840_v45 = vld [vmem:[%s2154_s29 + $0x30] sm:$0xff]  ;;  %vm971_vm0 = vcmp.lt.s32.totalorder %v2208_v10, 8 }
  0xa5   : > { %1388 = vmatpush3.bf16.msra.mxu0 %v1589_v11  ;;  %v839_v44 = vld [vmem:[%s2154_s29 + $0x28] sm:$0xff]  ;;  %v841_v46 = vld [vmem:[%s2154_s29 + $0x38] sm:$0xff]  ;;  %v1619_v48 = vld [vmem:[%s2144_s30 + $0x64] ss:$12 sps:$4 sm:$0xff]  }
  0xa6   : > { %1389 = vmatprep.subr.bf16.mxu0 %v1591_v13  ;;  %1468 = vmatpush3.bf16.msra.mxu1 %v1590_v12  ;;  %v1618_v47 = vld [vmem:[%s2144_s30 + $0x48] ss:$12 sps:$4 sm:$0xff]   ;;  %v1631_v49 = vld [vmem:[%s2144_s30 + $0xb0] ss:$12 sps:$4 sm:$0xff]   ;;  %v842_v50 = vld [vmem:[%s2154_s29 + $0x40] sm:$0xff] }
  0xa7   : > { %1469 = vmatprep.subr.bf16.mxu1 %v1593_v14  ;;  %857 = vperm.xlu0 %1577, %v835_v37   ;;  %v843_v51 = vld [vmem:[%s2154_s29 + $0x48] sm:$0xff]  ;;  %v844_v52 = vld [vmem:[%s2154_s29 + $0x50] sm:$0xff]  ;;  %v845_v53 = vld [vmem:[%s2154_s29 + $0x58] sm:$0xff] }
  0xa8   : > { %867 = vperm.xlu1 %1578, %v837_v38   ;;  %v1621_v54 = vld [vmem:[%s2144_s30 + $0x60] ss:$12 sps:$4 sm:$0xff]   ;;  %v1624_v55 = vld [vmem:[%s2144_s30 + $0x7c] ss:$12 sps:$4 sm:$0xff]   ;;  %v848_v58 = vld [vmem:[%s2154_s29 + $0x70] sm:$0xff] }
  0xa9   : > { %1390 = vmatpush3.bf16.msra.mxu0 %v1592_v15  ;;  %v846_v56 = vld [vmem:[%s2154_s29 + $0x60] sm:$0xff]  ;;  %v847_v57 = vld [vmem:[%s2154_s29 + $0x68] sm:$0xff]  ;;  %v849_v59 = vld [vmem:[%s2154_s29 + $0x78] sm:$0xff] }
  0xaa   : > { %1391 = vmatprep.subr.bf16.mxu0 %v1594_v16  ;;  %1470 = vmatpush3.bf16.msra.mxu1 %v1593_v14  ;;  %v1626_v60 = vld [vmem:[%s2144_s30 + $0x78] ss:$12 sps:$4 sm:$0xff]   ;;  %v1627_v61 = vld [vmem:[%s2144_s30 + $0x94] ss:$12 sps:$4 sm:$0xff]   ;;  %v1629_v62 = vld [vmem:[%s2144_s30 + $0x90] ss:$12 sps:$4 sm:$0xff]  }
  0xab   : > { %1471 = vmatprep.subr.bf16.mxu1 %v1596_v17  ;;  %872 = vperm.xlu0 %1577, %v838_v42   ;;  %v1632_v63 = vld [vmem:[%s2144_s30 + $0xac] ss:$12 sps:$4 sm:$0xff]   ;;  %v1634_v0 = vld [vmem:[%s2144_s30 + $0xa8] ss:$12 sps:$4 sm:$0xff]   ;;  %v2210_v16 = vld [vmem:[#allocation8] ss:$0 sm:$0xff] }
  0xac   : > { %877 = vperm.xlu1 %1578, %v839_v44  }
  0xad   : > { %1392 = vmatpush3.bf16.msra.mxu0 %v1595_v18 }
  0xae   : > { %1393 = vmatprep.subr.bf16.mxu0 %v1597_v19  ;;  %1472 = vmatpush3.bf16.msra.mxu1 %v1596_v17 }
  0xaf   : > { %1473 = vmatprep.subr.bf16.mxu1 %v1599_v21  ;;  %882 = vperm.xlu0 %1577, %v840_v45  }
  0xb0   : > { %887 = vperm.xlu1 %1578, %v841_v46  }
  0xb1   : > { %1394 = vmatpush3.bf16.msra.mxu0 %v1598_v20 }
  0xb2   : > { %1395 = vmatprep.subr.bf16.mxu0 %v1600_v22  ;;  %1474 = vmatpush3.bf16.msra.mxu1 %v1599_v21 }
  0xb3   : > { %1475 = vmatprep.subr.bf16.mxu1 %v1602_v23  ;;  %892 = vperm.xlu0 %1577, %v842_v50  }
  0xb4   : > { %897 = vperm.xlu1 %1578, %v843_v51  }
  0xb5   : > { %1396 = vmatpush3.bf16.msra.mxu0 %v1601_v26 }
  0xb6   : > { %1476 = vmatpush3.bf16.msra.mxu1 %v1602_v23 }
  0xb7   : > { %902 = vperm.xlu0 %1577, %v844_v52  }
  0xb8   : > { %673 = vmatmul.mubr.bf16.vlgmr.msra.gmra.mrb[0].mxu0 %v1603_v27  ;;  %907 = vperm.xlu1 %1578, %v845_v53  }
  0xb9   : > { %680 = vmatprep.mubr.bf16.mxu0 %v1608_v28  ;;  %1478 = vmatmul.mubr.bf16.vlgmr.msra.gmra.mrb[0].mxu1 %v1607_v29 }
  0xba   : > { %1481 = vmatprep.mubr.bf16.mxu1 %v1614_v30 }
  0xbb   : > { %912 = vperm.xlu0 %1577, %v846_v56  }
  0xbc   : > { %917 = vperm.xlu1 %1578, %v847_v57  }
  0xbf   : > { %922 = vperm.xlu0 %1577, %v848_v58  }
  0xc0   : > { %681 = vmatmul.mubr.bf16.gmra.mrb[4].mxu0 %v1610_v31  ;;  %927 = vperm.xlu1 %1578, %v849_v59  }
  0xc1   : > { %688 = vmatprep.mubr.bf16.mxu0 %v1611_v32  ;;  %1482 = vmatmul.mubr.bf16.gmra.mrb[4].mxu1 %v1615_v33 }
  0xc2   : > { %1485 = vmatprep.mubr.bf16.mxu1 %v1622_v34 }
  0xc8   : > { %689 = vmatmul.mubr.bf16.gmra.mrb[8].mxu0 %v1613_v39 }
  0xc9   : > { %696 = vmatprep.mubr.bf16.mxu0 %v1616_v40  ;;  %1486 = vmatmul.mubr.bf16.gmra.mrb[8].mxu1 %v1623_v41 }
  0xca   : > { %1489 = vmatprep.mubr.bf16.mxu1 %v1630_v43 }
  0xd0   : > { %697 = vmatmul.mubr.bf16.gmra.mrb[12].mxu0 %v1618_v47 }
  0xd1   : > { %704 = vmatprep.mubr.bf16.mxu0 %v1619_v48  ;;  %1490 = vmatmul.mubr.bf16.gmra.mrb[12].mxu1 %v1631_v49 }
  0xd8   : > { %705 = vmatmul.mubr.bf16.gmra.mrb[16].mxu0 %v1621_v54 }
  0xd9   : > { %712 = vmatprep.mubr.bf16.mxu0 %v1624_v55 }
  0xe0   : > { %713 = vmatmul.mubr.bf16.gmra.mrb[20].mxu0 %v1626_v60 }
  0xe1   : > { %720 = vmatprep.mubr.bf16.mxu0 %v1627_v61 }
  0xe8   : > { %721 = vmatmul.mubr.bf16.gmra.mrb[24].mxu0 %v1629_v62 }
  0xe9   : > { %728 = vmatprep.mubr.bf16.mxu0 %v1632_v63 }
  0xf0   : > { %729 = vmatmul.mubr.bf16.gmra.mrb[28].mxu0 %v1634_v0 }
 0x122   : > { %v853_v1 = vpop.permute.xlu0 %852 }
 0x123   : > { %v863_v22 = vpop.permute.xlu1 %862 }
 0x126   : > { %v858_v15 = vpop.permute.xlu0 %857 }
 0x127   : > { %v868_v38 = vpop.permute.xlu1 %867 }
 0x12a   : > { %v873_v53 = vpop.permute.xlu0 %872 }
 0x12b   : > { %v878_v58 = vpop.permute.xlu1 %877 }
 0x18b   : > { %v1397_v3 = vpop.f32.mrb[0].mxu0 }
 0x18c   : > { %v1398_v4 = vpop.f32.mrb[1].mxu0  ;;  %v1479_v7 = vpop.f32.mrb[0].mxu1 }
 0x18d   : > { %v1399_v5 = vadd.f32 %v1398_v4, %v1397_v3  ;;  %v1400_v6 = vpop.f32.mrb[2].mxu0  ;;  %v771_v9 = vpop.f32.mrb[1].mxu1 }
 0x18e   : > { %v1401_v8 = vpop.f32.mrb[3].mxu0  ;;  %v1480_v13 = vpop.f32.mrb[2].mxu1 }
 0x18f   : > { %v1402_v11 = vadd.f32 %v1401_v8, %v1400_v6  ;;  %v772_v12 = vadd.f32 %v1399_v5, %v771_v9  ;;  %v774_v14 = vpop.f32.mrb[3].mxu1 }
 0x191   : > { %v930_v17 = vmul.f32 %v853_v1, %v772_v12  ;;  %v775_v18 = vadd.f32 %v1402_v11, %v774_v14  ;;  %v883_v11 = vpop.permute.xlu0 %882 }
 0x193   : > { %v931_v19 = vmul.f32 %v858_v15, %v775_v18  ;;  %v1403_v20 = vpop.f32.mrb[4].mxu0  ;;  %v953_v21 = vadd.f32 %v2210_v16, %v930_v17  ;;  %v888_v15 = vpop.permute.xlu1 %887 }
 0x194   : > { %v1404_v23 = vpop.f32.mrb[5].mxu0  ;;  %v1483_v28 = vpop.f32.mrb[4].mxu1 }
 0x195   : > { %v1405_v24 = vadd.f32 %v1404_v23, %v1403_v20  ;;  %v1406_v25 = vpop.f32.mrb[6].mxu0  ;;  %v2216_v26 = vsel %vm971_vm0, %v953_v21, -inf  ;;  %v954_v27 = vadd.f32 %v2210_v16, %v931_v19  ;;  %v787_v30 = vpop.f32.mrb[5].mxu1 }
 0x196   : > { %v1407_v29 = vpop.f32.mrb[7].mxu0  ;;  %988 = vmax.xlane.f32.xlu0 %v2216_v26  ;;  %v1484_v34 = vpop.f32.mrb[6].mxu1 }
 0x197   : > { %v780_v31 = vadd.f32 %v1479_v7, %v1405_v24  ;;  %v1408_v32 = vadd.f32 %v1407_v29, %v1406_v25  ;;  %v2222_v33 = vsel %vm971_vm0, %v954_v27, -inf  ;;  %v790_v35 = vpop.f32.mrb[7].mxu1 }
 0x198   : > { %990 = vmax.xlane.f32.xlu1 %v2222_v33 }
 0x199   : > { %v783_v36 = vadd.f32 %v1480_v13, %v1408_v32  ;;  %v932_v37 = vmul.f32 %v863_v22, %v780_v31 }
 0x19b   : > { %v1409_v39 = vpop.f32.mrb[8].mxu0  ;;  %v955_v40 = vadd.f32 %v2210_v16, %v932_v37  ;;  %v933_v41 = vmul.f32 %v868_v38, %v783_v36 }
 0x19c   : > { %v1410_v42 = vpop.f32.mrb[9].mxu0  ;;  %v2231_v47 = vpop.f32.mrb[8].mxu1 }
 0x19d   : > { %v1411_v43 = vadd.f32 %v1410_v42, %v1409_v39  ;;  %v1412_v44 = vpop.f32.mrb[10].mxu0  ;;  %v2228_v45 = vsel %vm971_vm0, %v955_v40, -inf  ;;  %v956_v46 = vadd.f32 %v2210_v16, %v933_v41  ;;  %v803_v49 = vpop.f32.mrb[9].mxu1 }
 0x19e   : > { %v1413_v48 = vpop.f32.mrb[11].mxu0  ;;  %992 = vmax.xlane.f32.xlu0 %v2228_v45  ;;  %v2234_v52 = vpop.f32.mrb[10].mxu1 }
 0x19f   : > { %v1414_v50 = vadd.f32 %v1413_v48, %v1412_v44  ;;  %v788_v51 = vadd.f32 %v1411_v43, %v787_v30  ;;  %v806_v54 = vpop.f32.mrb[11].mxu1  ;;  %v2238_v57 = vsel %vm971_vm0, %v956_v46, -inf  ;;  %v893_v30 = vpop.permute.xlu0 %892 }
 0x1a1   : > { %v934_v55 = vmul.f32 %v873_v53, %v788_v51  ;;  %v791_v56 = vadd.f32 %v1414_v50, %v790_v35 }
 0x1a2   : > { %994 = vmax.xlane.f32.xlu0 %v2238_v57 }
 0x1a3   : > { %v935_v59 = vmul.f32 %v878_v58, %v791_v56  ;;  %v1415_v60 = vpop.f32.mrb[12].mxu0  ;;  %v957_v61 = vadd.f32 %v2210_v16, %v934_v55 }
 0x1a4   : > { %v1416_v62 = vpop.f32.mrb[13].mxu0  ;;  %v2247_v3 = vpop.f32.mrb[12].mxu1 }
 0x1a5   : > { %v1417_v63 = vadd.f32 %v1416_v62, %v1415_v60  ;;  %v1418_v0 = vpop.f32.mrb[14].mxu0  ;;  %v2244_v1 = vsel %vm971_vm0, %v957_v61, -inf  ;;  %v958_v2 = vadd.f32 %v2210_v16, %v935_v59  ;;  %v819_v5 = vpop.f32.mrb[13].mxu1 }
 0x1a6   : > { %v1419_v4 = vpop.f32.mrb[15].mxu0  ;;  %996 = vmax.xlane.f32.xlu1 %v2244_v1  ;;  %v2254_v9 = vpop.f32.mrb[14].mxu1 }
 0x1a7   : > { %v796_v6 = vadd.f32 %v1483_v28, %v1417_v63  ;;  %v1420_v7 = vadd.f32 %v1419_v4, %v1418_v0  ;;  %v2252_v8 = vsel %vm971_vm0, %v958_v2, -inf  ;;  %v822_v12 = vpop.f32.mrb[15].mxu1 }
 0x1a8   : > { %998 = vmax.xlane.f32.xlu0 %v2252_v8 }
 0x1a9   : > { %v799_v13 = vadd.f32 %v1484_v34, %v1420_v7  ;;  %v936_v14 = vmul.f32 %v883_v11, %v796_v6  ;;  %v898_v34 = vpop.permute.xlu1 %897 }
 0x1ab   : > { %v1421_v17 = vpop.f32.mrb[16].mxu0  ;;  %v959_v18 = vadd.f32 %v2210_v16, %v936_v14  ;;  %v937_v19 = vmul.f32 %v888_v15, %v799_v13 }
 0x1ac   : > { %v1422_v20 = vpop.f32.mrb[17].mxu0 }
 0x1ad   : > { %v1423_v21 = vadd.f32 %v1422_v20, %v1421_v17  ;;  %v1424_v22 = vpop.f32.mrb[18].mxu0  ;;  %v2260_v23 = vsel %vm971_vm0, %v959_v18, -inf  ;;  %v960_v24 = vadd.f32 %v2210_v16, %v937_v19  ;;  %v908_v53 = vpop.permute.xlu1 %907 }
 0x1ae   : > { %v1425_v25 = vpop.f32.mrb[19].mxu0  ;;  %1000 = vmax.xlane.f32.xlu1 %v2260_v23 }
 0x1af   : > { %v1426_v27 = vadd.f32 %v1425_v25, %v1424_v22  ;;  %v804_v28 = vadd.f32 %v1423_v21, %v803_v49  ;;  %v2266_v29 = vsel %vm971_vm0, %v960_v24, -inf  ;;  %v903_v49 = vpop.permute.xlu0 %902 }
 0x1b0   : > { %1002 = vmax.xlane.f32.xlu0 %v2266_v29 }
 0x1b1   : > { %v938_v31 = vmul.f32 %v893_v30, %v804_v28  ;;  %v807_v32 = vadd.f32 %v1426_v27, %v806_v54  ;;  %v918_v7 = vpop.permute.xlu1 %917 }
 0x1b3   : > { %v939_v35 = vmul.f32 %v898_v34, %v807_v32  ;;  %v1427_v36 = vpop.f32.mrb[20].mxu0  ;;  %v961_v37 = vadd.f32 %v2210_v16, %v938_v31  ;;  %v913_v2 = vpop.permute.xlu0 %912 }
 0x1b4   : > { %v1428_v38 = vpop.f32.mrb[21].mxu0 }
 0x1b5   : > { %v1429_v39 = vadd.f32 %v1428_v38, %v1427_v36  ;;  %v1430_v40 = vpop.f32.mrb[22].mxu0  ;;  %v2272_v41 = vsel %vm971_vm0, %v961_v37, -inf  ;;  %v962_v42 = vadd.f32 %v2210_v16, %v939_v35  ;;  %v928_v28 = vpop.permute.xlu1 %927 }
 0x1b6   : > { %v1431_v43 = vpop.f32.mrb[23].mxu0  ;;  %1004 = vmax.xlane.f32.xlu1 %v2272_v41 }
 0x1b7   : > { %v812_v44 = vadd.f32 %v2231_v47, %v1429_v39  ;;  %v1432_v46 = vadd.f32 %v1431_v43, %v1430_v40  ;;  %v2279_v48 = vsel %vm971_vm0, %v962_v42, -inf  ;;  %v923_v24 = vpop.permute.xlu0 %922 }
 0x1b8   : > { %1006 = vmax.xlane.f32.xlu0 %v2279_v48 }
 0x1b9   : > { %v815_v50 = vadd.f32 %v2234_v52, %v1432_v46  ;;  %v940_v51 = vmul.f32 %v903_v49, %v812_v44 }
 0x1bb   : > { %v1433_v54 = vpop.f32.mrb[24].mxu0  ;;  %v963_v55 = vadd.f32 %v2210_v16, %v940_v51  ;;  %v941_v56 = vmul.f32 %v908_v53, %v815_v50 }
 0x1bc   : > { %v1434_v58 = vpop.f32.mrb[25].mxu0 }
 0x1bd   : > { %v1435_v59 = vadd.f32 %v1434_v58, %v1433_v54  ;;  %v1436_v60 = vpop.f32.mrb[26].mxu0  ;;  %v2286_v47 = vsel %vm971_vm0, %v963_v55, -inf  ;;  %v964_v61 = vadd.f32 %v2210_v16, %v941_v56 }
 0x1be   : > { %v1437_v62 = vpop.f32.mrb[27].mxu0  ;;  %1008 = vmax.xlane.f32.xlu1 %v2286_v47 }
 0x1bf   : > { %v1438_v63 = vadd.f32 %v1437_v62, %v1436_v60  ;;  %v820_v52 = vadd.f32 %v1435_v59, %v819_v5  ;;  %v2292_v0 = vsel %vm971_vm0, %v964_v61, -inf }
 0x1c0   : > { %1010 = vmax.xlane.f32.xlu0 %v2292_v0 }
 0x1c1   : > { %v942_v4 = vmul.f32 %v913_v2, %v820_v52  ;;  %v823_v6 = vadd.f32 %v1438_v63, %v822_v12 }
 0x1c3   : > { %v943_v11 = vmul.f32 %v918_v7, %v823_v6  ;;  %v1439_v13 = vpop.f32.mrb[28].mxu0  ;;  %v965_v14 = vadd.f32 %v2210_v16, %v942_v4 }
 0x1c4   : > { %v1440_v15 = vpop.f32.mrb[29].mxu0 }
 0x1c5   : > { %v1441_v17 = vadd.f32 %v1440_v15, %v1439_v13  ;;  %v1442_v18 = vpop.f32.mrb[30].mxu0  ;;  %v2298_v5 = vsel %vm971_vm0, %v965_v14, -inf  ;;  %v966_v19 = vadd.f32 %v2210_v16, %v943_v11 }
 0x1c6   : > { %v1443_v20 = vpop.f32.mrb[31].mxu0  ;;  %1012 = vmax.xlane.f32.xlu1 %v2298_v5 }
 0x1c7   : > { %v828_v21 = vadd.f32 %v2247_v3, %v1441_v17  ;;  %v1444_v12 = vadd.f32 %v1443_v20, %v1442_v18  ;;  %v2305_v22 = vsel %vm971_vm0, %v966_v19, -inf }
 0x1c8   : > { %1014 = vmax.xlane.f32.xlu0 %v2305_v22 }
 0x1c9   : > { %v831_v25 = vadd.f32 %v2254_v9, %v1444_v12  ;;  %v944_v27 = vmul.f32 %v923_v24, %v828_v21 }
 0x1cb   : > { %v967_v30 = vadd.f32 %v2210_v16, %v944_v27  ;;  %v945_v31 = vmul.f32 %v928_v28, %v831_v25 }
 0x1cd   : > { %v2312_v32 = vsel %vm971_vm0, %v967_v30, -inf  ;;  %v968_v3 = vadd.f32 %v2210_v16, %v945_v31 }
 0x1ce   : > { %1016 = vmax.xlane.f32.xlu1 %v2312_v32 }
 0x1cf   : > { %v2318_v34 = vsel %vm971_vm0, %v968_v3, -inf }
 0x1d0   : > { %1018 = vmax.xlane.f32.xlu0 %v2318_v34 }
 0x223   : > { %v989_v9 = vpop.xlane.xlu0 %988 }
 0x224   : > { %v2322_v35 = vsub.f32 %v2216_v26, %v989_v9 }
 0x225   : > { %v991_v36 = vpop.xlane.xlu1 %990 }
 0x226   : > { %v1036_v37 = vmul.f32 1.442695, %v2322_v35  ;;  %v2326_v38 = vsub.f32 %v2222_v33, %v991_v36 }
 0x228   : > { %1635 = vpow2.f32 %v1036_v37  ;;  %v1038_v16 = vmul.f32 1.442695, %v2326_v38 }
 0x22a   : > { %1637 = vpow2.f32 %v1038_v16 }
 0x22b   : > { %v993_v39 = vpop.xlane.xlu0 %992 }
 0x22c   : > { %v2330_v40 = vsub.f32 %v2228_v45, %v993_v39 }
 0x22e   : > { %v1040_v42 = vmul.f32 1.442695, %v2330_v40 }
 0x22f   : > { %v995_v43 = vpop.xlane.xlu0 %994 }
 0x230   : > { %1639 = vpow2.f32 %v1040_v42  ;;  %v2334_v26 = vsub.f32 %v2238_v57, %v995_v43 }
 0x232   : > { %v1636_v44 = vpop.eup %1635  ;;  %v1042_v46 = vmul.f32 1.442695, %v2334_v26 }
 0x233   : > { %v997_v33 = vpop.xlane.xlu1 %996  ;;  %v1068_v49 = vsel %vm971_vm0, %v1636_v44, 0.0 }
 0x234   : > { %v1638_v50 = vpop.eup %1637  ;;  %1641 = vpow2.f32 %v1042_v46  ;;  %v2340_v51 = vsub.f32 %v2244_v1, %v997_v33  ;;  %1084 = vadd.xlane.f32.xlu1 %v1068_v49 }
 0x235   : > { %v999_v45 = vpop.xlane.xlu0 %998  ;;  %v1069_v53 = vsel %vm971_vm0, %v1638_v50, 0.0 }
 0x236   : > { %v1044_v57 = vmul.f32 1.442695, %v2340_v51  ;;  %v2346_v54 = vsub.f32 %v2252_v8, %v999_v45  ;;  %1086 = vadd.xlane.f32.xlu0 %v1069_v53 }
 0x238   : > { %1643 = vpow2.f32 %v1044_v57  ;;  %v1046_v55 = vmul.f32 1.442695, %v2346_v54 }
 0x23a   : > { %v1640_v56 = vpop.eup %1639  ;;  %1645 = vpow2.f32 %v1046_v55 }
 0x23b   : > { %v1001_v58 = vpop.xlane.xlu1 %1000  ;;  %v1070_v1 = vsel %vm971_vm0, %v1640_v56, 0.0 }
 0x23c   : > { %v2352_v59 = vsub.f32 %v2260_v23, %v1001_v58  ;;  %1088 = vadd.xlane.f32.xlu1 %v1070_v1 }
 0x23d   : > { %v1003_v60 = vpop.xlane.xlu0 %1002 }
 0x23e   : > { %v1642_v61 = vpop.eup %1641  ;;  %v1048_v62 = vmul.f32 1.442695, %v2352_v59  ;;  %v2356_v8 = vsub.f32 %v2266_v29, %v1003_v60 }
 0x23f   : > { %v1071_v63 = vsel %vm971_vm0, %v1642_v61, 0.0 }
 0x240   : > { %1647 = vpow2.f32 %v1048_v62  ;;  %v1050_v52 = vmul.f32 1.442695, %v2356_v8  ;;  %1090 = vadd.xlane.f32.xlu0 %v1071_v63 }
 0x242   : > { %v1644_v2 = vpop.eup %1643  ;;  %1649 = vpow2.f32 %v1050_v52 }
 0x243   : > { %v1005_v4 = vpop.xlane.xlu1 %1004  ;;  %v1072_v23 = vsel %vm971_vm0, %v1644_v2, 0.0 }
 0x244   : > { %v1646_v6 = vpop.eup %1645  ;;  %v2364_v7 = vsub.f32 %v2272_v41, %v1005_v4  ;;  %1092 = vadd.xlane.f32.xlu1 %v1072_v23 }
 0x245   : > { %v1007_v29 = vpop.xlane.xlu0 %1006  ;;  %v1073_v11 = vsel %vm971_vm0, %v1646_v6, 0.0 }
 0x246   : > { %v1052_v13 = vmul.f32 1.442695, %v2364_v7  ;;  %v2370_v14 = vsub.f32 %v2279_v48, %v1007_v29  ;;  %1094 = vadd.xlane.f32.xlu0 %v1073_v11 }
 0x248   : > { %1651 = vpow2.f32 %v1052_v13  ;;  %v1054_v15 = vmul.f32 1.442695, %v2370_v14 }
 0x24a   : > { %v1648_v17 = vpop.eup %1647  ;;  %1653 = vpow2.f32 %v1054_v15 }
 0x24b   : > { %v1009_v18 = vpop.xlane.xlu1 %1008  ;;  %v1074_v41 = vsel %vm971_vm0, %v1648_v17, 0.0 }
 0x24c   : > { %v1650_v19 = vpop.eup %1649  ;;  %v2376_v20 = vsub.f32 %v2286_v47, %v1009_v18  ;;  %1096 = vadd.xlane.f32.xlu1 %v1074_v41 }
 0x24d   : > { %v1011_v21 = vpop.xlane.xlu0 %1010  ;;  %v1075_v48 = vsel %vm971_vm0, %v1650_v19, 0.0 }
 0x24e   : > { %v1056_v12 = vmul.f32 1.442695, %v2376_v20  ;;  %v2382_v24 = vsub.f32 %v2292_v0, %v1011_v21  ;;  %1098 = vadd.xlane.f32.xlu0 %v1075_v48 }
 0x250   : > { %1655 = vpow2.f32 %v1056_v12  ;;  %v1058_v25 = vmul.f32 1.442695, %v2382_v24 }
 0x252   : > { %v1652_v27 = vpop.eup %1651  ;;  %1657 = vpow2.f32 %v1058_v25 }
 0x253   : > { %v1013_v28 = vpop.xlane.xlu1 %1012  ;;  %v1076_v47 = vsel %vm971_vm0, %v1652_v27, 0.0 }
 0x254   : > { %v1654_v30 = vpop.eup %1653  ;;  %v2388_v31 = vsub.f32 %v2298_v5, %v1013_v28  ;;  %1100 = vadd.xlane.f32.xlu1 %v1076_v47 }
 0x255   : > { %v1015_v3 = vpop.xlane.xlu0 %1014  ;;  %v1077_v0 = vsel %vm971_vm0, %v1654_v30, 0.0 }
 0x256   : > { %v1060_v9 = vmul.f32 1.442695, %v2388_v31  ;;  %v2394_v36 = vsub.f32 %v2305_v22, %v1015_v3  ;;  %1102 = vadd.xlane.f32.xlu0 %v1077_v0 }
 0x258   : > { %1659 = vpow2.f32 %v1060_v9  ;;  %v1062_v37 = vmul.f32 1.442695, %v2394_v36 }
 0x25a   : > { %v1656_v16 = vpop.eup %1655  ;;  %1661 = vpow2.f32 %v1062_v37 }
 0x25b   : > { %v1017_v39 = vpop.xlane.xlu1 %1016  ;;  %v1078_v5 = vsel %vm971_vm0, %v1656_v16, 0.0 }
 0x25c   : > { %v1658_v42 = vpop.eup %1657  ;;  %v2400_v43 = vsub.f32 %v2312_v32, %v1017_v39  ;;  %1104 = vadd.xlane.f32.xlu1 %v1078_v5 }
 0x25d   : > { %v1019_v44 = vpop.xlane.xlu0 %1018  ;;  %v1079_v22 = vsel %vm971_vm0, %v1658_v42, 0.0 }
 0x25e   : > { %v1064_v46 = vmul.f32 1.442695, %v2400_v43  ;;  %v2406_v33 = vsub.f32 %v2318_v34, %v1019_v44  ;;  %1106 = vadd.xlane.f32.xlu0 %v1079_v22 }
 0x260   : > { %1663 = vpow2.f32 %v1064_v46  ;;  %v1066_v49 = vmul.f32 1.442695, %v2406_v33 }
 0x262   : > { %v1660_v50 = vpop.eup %1659  ;;  %1665 = vpow2.f32 %v1066_v49 }
 0x263   : > { %v1080_v32 = vsel %vm971_vm0, %v1660_v50, 0.0 }
 0x264   : > { %v1662_v45 = vpop.eup %1661  ;;  %1108 = vadd.xlane.f32.xlu1 %v1080_v32 }
 0x265   : > { %v1081_v53 = vsel %vm971_vm0, %v1662_v45, 0.0 }
 0x266   : > { %1110 = vadd.xlane.f32.xlu0 %v1081_v53 }
 0x26a   : > { %v1664_v57 = vpop.eup %1663 }
 0x26b   : > { %v1082_v34 = vsel %vm971_vm0, %v1664_v57, 0.0 }
 0x26c   : > { %v1666_v55 = vpop.eup %1665  ;;  %1112 = vadd.xlane.f32.xlu1 %v1082_v34 }
 0x26d   : > { %v1083_v56 = vsel %vm971_vm0, %v1666_v55, 0.0 }
 0x26e   : > { %1114 = vadd.xlane.f32.xlu0 %v1083_v56 }
 0x2c1   : > { %v1085_v58 = vpop.xlane.xlu1 %1084 }
 0x2c2   : > { %1667 = vlog2.f32 %v1085_v58 }
 0x2c3   : > { %v1087_v1 = vpop.xlane.xlu0 %1086 }
 0x2c4   : > { %1669 = vlog2.f32 %v1087_v1 }
 0x2c9   : > { %v1089_v60 = vpop.xlane.xlu1 %1088 }
 0x2ca   : > { %1671 = vlog2.f32 %v1089_v60 }
 0x2cc   : > { %v1668_v61 = vpop.eup %1667 }
 0x2cd   : > { %v1117_v62 = vmul.f32 0.6931472, %v1668_v61  ;;  %v1091_v63 = vpop.xlane.xlu0 %1090 }
 0x2ce   : > { %v1670_v52 = vpop.eup %1669  ;;  %1673 = vlog2.f32 %v1091_v63 }
 0x2cf   : > { %v1148_v2 = vsub.f32 %v2322_v35, %v1117_v62  ;;  %v1119_v4 = vmul.f32 0.6931472, %v1670_v52 }
 0x2d1   : > { %1164 = vst [vmem:[%s2420_s21] sm:$0xff] %v1148_v2  ;;  %v1149_v10 = vsub.f32 %v2326_v38, %v1119_v4  ;;  %v1093_v23 = vpop.xlane.xlu1 %1092 }
 0x2d2   : > { %1675 = vlog2.f32 %v1093_v23 }
 0x2d3   : > { %1165 = vst [vmem:[%s2420_s21 + $0x8] sm:$0xff] %v1149_v10  ;;  %v1095_v6 = vpop.xlane.xlu0 %1094 }
 0x2d4   : > { %v1672_v29 = vpop.eup %1671  ;;  %1677 = vlog2.f32 %v1095_v6 }
 0x2d5   : > { %v1121_v11 = vmul.f32 0.6931472, %v1672_v29 }
 0x2d7   : > { %v1150_v35 = vsub.f32 %v2330_v40, %v1121_v11 }
 0x2d8   : > { %v1674_v13 = vpop.eup %1673 }
 0x2d9   : > { %1166 = vst [vmem:[%s2420_s21 + $0x10] sm:$0xff] %v1150_v35  ;;  %v1123_v15 = vmul.f32 0.6931472, %v1674_v13  ;;  %v1097_v17 = vpop.xlane.xlu1 %1096 }
 0x2da   : > { %1679 = vlog2.f32 %v1097_v17 }
 0x2db   : > { %v1151_v18 = vsub.f32 %v2334_v26, %v1123_v15  ;;  %v1099_v38 = vpop.xlane.xlu0 %1098 }
 0x2dc   : > { %v1676_v41 = vpop.eup %1675  ;;  %1681 = vlog2.f32 %v1099_v38 }
 0x2dd   : > { %1167 = vst [vmem:[%s2420_s21 + $0x18] sm:$0xff] %v1151_v18  ;;  %v1125_v19 = vmul.f32 0.6931472, %v1676_v41 }
 0x2de   : > { %v1678_v21 = vpop.eup %1677 }
 0x2df   : > { %v1152_v48 = vsub.f32 %v2340_v51, %v1125_v19  ;;  %v1127_v12 = vmul.f32 0.6931472, %v1678_v21 }
 0x2e1   : > { %1168 = vst [vmem:[%s2420_s21 + $0x20] sm:$0xff] %v1152_v48  ;;  %v1153_v40 = vsub.f32 %v2346_v54, %v1127_v12  ;;  %v1101_v25 = vpop.xlane.xlu1 %1100 }
 0x2e2   : > { %1683 = vlog2.f32 %v1101_v25 }
 0x2e3   : > { %1169 = vst [vmem:[%s2420_s21 + $0x28] sm:$0xff] %v1153_v40  ;;  %v1103_v27 = vpop.xlane.xlu0 %1102 }
 0x2e4   : > { %v1680_v28 = vpop.eup %1679  ;;  %1685 = vlog2.f32 %v1103_v27 }
 0x2e5   : > { %v1129_v26 = vmul.f32 0.6931472, %v1680_v28 }
 0x2e6   : > { %v1682_v47 = vpop.eup %1681 }
 0x2e7   : > { %v1154_v30 = vsub.f32 %v2352_v59, %v1129_v26  ;;  %v1131_v3 = vmul.f32 0.6931472, %v1682_v47 }
 0x2e9   : > { %1170 = vst [vmem:[%s2420_s21 + $0x30] sm:$0xff] %v1154_v30  ;;  %v1155_v51 = vsub.f32 %v2356_v8, %v1131_v3  ;;  %v1105_v0 = vpop.xlane.xlu1 %1104 }
 0x2ea   : > { %1687 = vlog2.f32 %v1105_v0 }
 0x2eb   : > { %1171 = vst [vmem:[%s2420_s21 + $0x38] sm:$0xff] %v1155_v51  ;;  %v1107_v54 = vpop.xlane.xlu0 %1106 }
 0x2ec   : > { %v1684_v9 = vpop.eup %1683  ;;  %1689 = vlog2.f32 %v1107_v54 }
 0x2ed   : > { %v1133_v37 = vmul.f32 0.6931472, %v1684_v9 }
 0x2ee   : > { %v1686_v16 = vpop.eup %1685 }
 0x2ef   : > { %v1156_v39 = vsub.f32 %v2364_v7, %v1133_v37  ;;  %v1135_v5 = vmul.f32 0.6931472, %v1686_v16 }
 0x2f1   : > { %1172 = vst [vmem:[%s2420_s21 + $0x40] sm:$0xff] %v1156_v39  ;;  %v1157_v59 = vsub.f32 %v2370_v14, %v1135_v5  ;;  %v1109_v42 = vpop.xlane.xlu1 %1108 }
 0x2f2   : > { %1691 = vlog2.f32 %v1109_v42 }
 0x2f3   : > { %1173 = vst [vmem:[%s2420_s21 + $0x48] sm:$0xff] %v1157_v59  ;;  %v1111_v8 = vpop.xlane.xlu0 %1110 }
 0x2f4   : > { %v1688_v44 = vpop.eup %1687  ;;  %1693 = vlog2.f32 %v1111_v8 }
 0x2f5   : > { %v1137_v22 = vmul.f32 0.6931472, %v1688_v44 }
 0x2f6   : > { %v1690_v46 = vpop.eup %1689 }
 0x2f7   : > { %v1158_v49 = vsub.f32 %v2376_v20, %v1137_v22  ;;  %v1139_v50 = vmul.f32 0.6931472, %v1690_v46 }
 0x2f9   : > { %1174 = vst [vmem:[%s2420_s21 + $0x50] sm:$0xff] %v1158_v49  ;;  %v1159_v7 = vsub.f32 %v2382_v24, %v1139_v50  ;;  %v1113_v32 = vpop.xlane.xlu1 %1112 }
 0x2fa   : > { %1695 = vlog2.f32 %v1113_v32 }
 0x2fb   : > { %1175 = vst [vmem:[%s2420_s21 + $0x58] sm:$0xff] %v1159_v7  ;;  %v1115_v14 = vpop.xlane.xlu0 %1114 }
 0x2fc   : > { %v1692_v45 = vpop.eup %1691  ;;  %1697 = vlog2.f32 %v1115_v14 }
 0x2fd   : > { %v1141_v53 = vmul.f32 0.6931472, %v1692_v45 }
 0x2fe   : > { %v1694_v57 = vpop.eup %1693 }
 0x2ff   : > { %v1160_v34 = vsub.f32 %v2388_v31, %v1141_v53  ;;  %v1143_v20 = vmul.f32 0.6931472, %v1694_v57 }
 0x301   : > { %1176 = vst [vmem:[%s2420_s21 + $0x60] sm:$0xff] %v1160_v34  ;;  %v1161_v55 = vsub.f32 %v2394_v36, %v1143_v20 }
 0x303   : > { %1177 = vst [vmem:[%s2420_s21 + $0x68] sm:$0xff] %v1161_v55 }
 0x304   : > { %v1696_v24 = vpop.eup %1695 }
 0x305   : > { %v1145_v56 = vmul.f32 0.6931472, %v1696_v24 }
 0x306   : > { %v1698_v58 = vpop.eup %1697 }
 0x307   : > { %v1162_v1 = vsub.f32 %v2400_v43, %v1145_v56  ;;  %v1147_v60 = vmul.f32 0.6931472, %v1698_v58 }
 0x309   : > { %1178 = vst [vmem:[%s2420_s21 + $0x70] sm:$0xff] %v1162_v1  ;;  %v1163_v31 = vsub.f32 %v2406_v33, %v1147_v60 }
 0x30b   : > { %1179 = vst [vmem:[%s2420_s21 + $0x78] sm:$0xff] %v1163_v31 }
 0x30c   : > { %1828 = shalt.err (!%p1825_p8)
}
 0x30d   : > { %s1829_s27 = scalar_lea.hbm %s2455_s25, 2048  ;;  %s1833_s30 = scalar_lea.hbm %s2507_s4, 6144 }
 0x30e   : > { %p1830_p0 = scmp.ne.s32.totalorder %s2455_s25, %s1829_s27  ;;  %p1834_p13 = scmp.lt.u32.totalorder %s2455_s25, %s2507_s4 }
 0x30f   : > { %p1835_p3 = scmp.lt.u32.totalorder %s1833_s30, %s1829_s27  ;;  %p1837_p9 = scmp.lt.u32.totalorder %s1829_s27, %s2455_s25 }
 0x310   : > { %p1831_p1 = pnand %p1830_p0, %p2047_p4 }
 0x311   : > { %p1836_p7 = por %p1835_p3, %p1834_p13 }
 0x312   : > { %p1832_p10 = pneg %p1831_p1 }
 0x313   : > { %p1838_p12 = por %p1837_p9, %p1836_p7 }
 0x315   : > { %p1839_p5 = pnand %p1838_p12, %p1832_p10 }
 0x317   : > { %1842 = shalt.err (!%p1839_p5)
}
 0x318   : > { %s1907_s24 = smov 128   ;;  %s1908_s29 = smov 8  }
 0x319   : > { %1508 = dma.vmem_to_hbm [thread:$0]  (%p2047_p4), %s2457_s6, 2048, %s2455_s25, %s1181_s19, %s1907_s24, %s1907_s24, %s1908_s29  }
 0x31a PF: > { %p1533_p11 = scmp.ge.s32.totalorder %s1893_s18, 2  ;;  %s1209_s21 = sand.u32 1, %s1881_s15  }
 0x31b   : > { %p2528_p2 = scmp.ne.s32.totalorder %s2514_s22, 0  ;;  %s1210_s9 = scalar_lea.sflag [#allocation4], %s1209_s21 }
 0x31d   : > { %p1525_p6 = pnand %p1533_p11, %p2528_p2 }
 0x31f   : > { %1876 = dma.done.wait (!%p1525_p6), %s1210_s9, 2048  }
 0x320   : > { %1878 = vsyncadd (!%p1525_p6), %s1210_s9, 4294965248  ;;  %p21_p8 = scmp.ge.s32.totalorder %s2037_s10, 5   ;;  %s2529_s15 = smov %s1885_s16 }
 0x321   : > { %s2530_s16 = smov %s1889_s17  ;;  %s2531_s17 = smov %s2053_s13 }
 0x322   : > { %s2532_s18 = smov %s2037_s10  ;;  %23 = sbr.rel (!%p21_p8) target bundleno = 11 (0xb), region = 102 }
 0x329   :  { %1215 = vsyncpa [#allocation3], 1 }
 0x32a   :  { %1217 = vsyncpa [#allocation3 + $0x1], 1 }
 0x32b   :  { %1218 = vsyncpa [#allocation6], 1 }
 0x32c   :  { %1220 = vsyncpa [#allocation6 + $0x1], 1 }
 0x32d   :  { %1221 = vsyncpa [#allocation9], 1 }
 0x32e   :  { %1222 = vsyncpa [#allocation4], 1 }
 0x32f   :  { %1224 = vsyncpa [#allocation4 + $0x1], 1 }

// kernel: guard_gcn_forward.10
= control target key start
LH: loop header
LB: loop body
LE: loop exit
PB: predicated region body
PF: predicated region fallthrough
CT: control target
= control target key end

     0   :  { %s10231_s0 = inlined_call_operand.hbm [shape: bf16[384,128], index: 0, kind: input, shape index: {}, may-alias: {0,1}]   ;;  %s10232_s1 = inlined_call_operand.hbm [shape: bf16[384,128], index: 1, kind: input, shape index: {}, may-alias: {0,1}]   ;;  %s10233_s2 = inlined_call_operand.hbm [shape: bf16[384,384], index: 2, kind: input, shape index: {}]   ;;  %s10234_s3 = inlined_call_operand.hbm [shape: bf16[384,384], index: 3, kind: input, shape index: {}]   ;;  %s10235_s4 = inlined_call_operand.hbm [shape: f32[384,1], index: 4, kind: input, shape index: {}]   ;;  %s10236_s5 = inlined_call_operand.hbm [shape: f32[1,384], index: 5, kind: input, shape index: {}]   ;;  %s10237_s6 = inlined_call_operand.hbm [shape: f32[1,2], index: 6, kind: input, shape index: {}]   ;;  %s10238_s7 = inlined_call_operand.<no memory space> [shape: f32[1,1], index: 7, kind: input, shape index: {}]   ;;  %s10239_s8 = inlined_call_operand.<no memory space> [shape: s32[1,1], index: 8, kind: input, shape index: {}]   ;;  %s10240_s9 = inlined_call_operand.hbm [shape: bf16[384,384], index: 9, kind: output, shape index: {0}]   ;;  %s10241_s10 = inlined_call_operand.hbm [shape: bf16[384,384], index: 10, kind: output, shape index: {1}]   ;;  %s10242_s11 = inlined_call_operand.hbm [shape: f32[24,384], index: 11, kind: output, shape index: {2}]  }
   0x1   :  { %10556 = sst [smem:[#allocation122_spill]] %s10231_s0 }
   0x2   :  { %10557 = sst [smem:[#allocation123_spill]] %s10233_s2 }
   0x3   :  { %10558 = sst [smem:[#allocation124_spill]] %s10234_s3 }
   0x4   :  { %10559 = sst [smem:[#allocation125_spill]] %s10242_s11 }
   0x5   :  { %17 = sst [smem:[#allocation2]] %s10238_s7 }
   0x6   :  { %18 = sst [smem:[#allocation3]] %s10239_s8 }
   0x7   :  { %19 = vsyncpa [#allocation5], 0 }
   0x8   :  { %21 = vsyncpa [#allocation5 + $0x1], 0 }
   0x9   :  { %22 = vsyncpa [#allocation9], 0 }
   0xa   :  { %23 = vsyncpa [#allocation7], 0 }
   0xb   :  { %24 = vsyncpa [#allocation6], 0 }
   0xc   :  { %26 = vsyncpa [#allocation6 + $0x1], 0 }
   0xd   :  { %27 = vsyncpa [#allocation17], 0 }
   0xe   :  { %29 = vsyncpa [#allocation17 + $0x1], 0  ;;  %s5298_s21 = smov 0   ;;  %s5300_s22 = smov 0  }
   0xf   :  { %s5302_s23 = smov 0   ;;  %s5304_s24 = smov 0  }
  0x10 LB: > { %10560 = sst [smem:[#allocation26_spill]] %s5195_s21  ;;  %s5319_s7 = sadd.s32 1, %s5207_s24   ;;  %s5207_s24 = sphi %s5304_s24, %s11805_s24   ;;  %s5203_s23 = sphi %s5302_s23, %s11807_s23   ;;  %s5199_s22 = sphi %s5300_s22, %s11809_s22   ;;  %s5195_s21 = sphi %s5298_s21, %s11808_s21  }
  0x11   : > { %10561 = sst [smem:[#allocation27_spill]] %s5203_s23  ;;  %s42_s8 = sadd.s32 1, %s5203_s23 }
  0x12   : > { %10562 = sst [smem:[#allocation28_spill]] %s5319_s7  ;;  %s39_s25 = ssub.s32 %s5207_s24, %s5319_s7 }
  0x13   : > { %p10243_p0 = scmp.ne.s32.totalorder %s5203_s23, %s5199_s22  ;;  %p40_p1 = scmp.eq.s32.totalorder %s39_s25, 0 }
  0x14   : > { %p50_p2 = scmp.eq.s32.totalorder %s5207_s24, 0  ;;  %p4549_p4 = scmp.lt.s32.totalorder %s5207_s24, 3 }
  0x15   : > { %s5328_s26 = scalar_select %p40_p1, %s5203_s23, %s42_s8  }
  0x16   : > { %p51_p3 = por %p50_p2, %p10243_p0  ;;  %s379_s27 = sand.u32 1, %s5207_s24  }
  0x17   : > { %10563 = sst [smem:[#allocation29_spill]] %s5328_s26  ;;  %s5336_s28 = sand.u32 1, %s5203_s23  }
  0x18   : > { %s3987_s29 = sshll.u32 %s5336_s28, 6  ;;  %s4174_s30 = sshll.u32 %s5207_s24, 10 }
  0x19   : > { %s10564_s0 = sld [smem:[#allocation122_spill]]  ;;  %s383_s15 = scalar_lea.vmem [#allocation4], %s3987_s29 }
  0x1a   : > { %s390_s16 = sshll.u32 %s383_s15, 4  ;;  %p5345_p5 = pnand %p4549_p4, %p51_p3  ;;  %s5349_s16 = int_to_ptr.vmem [resolvable:$true] %s390_s16 }
  0x1b   : > { %s4479_s18 = smul.u32 192, %s5336_s28  ;;  %s5353_s20 = scalar_lea.sflag [#allocation5], %s379_s27 }
  0x1c   : > { %s4480_s19 = smul.u32 3072, %s5207_s24  ;;  %p5359_p7 = pneg %p5345_p5 }
  0x1f   : > { %s5343_s14 = scalar_lea.hbm %s10564_s0, %s4174_s30  ;;  %s4881_s12 = scalar_lea.hbm %s10564_s0, 3072 }
  0x20   : > { %s4876_s8 = scalar_lea.hbm %s5343_s14, 1024  ;;  %p4882_p10 = scmp.lt.u32.totalorder %s5343_s14, %s10564_s0 }
  0x21   : > { %p4877_p6 = scmp.ne.s32.totalorder %s5343_s14, %s4876_s8  ;;  %p4883_p11 = scmp.lt.u32.totalorder %s4881_s12, %s4876_s8 }
  0x22   : > { %p4885_p13 = scmp.lt.u32.totalorder %s4876_s8, %s5343_s14 }
  0x23   : > { %p4879_p8 = pnand %p5359_p7, %p4877_p6  ;;  %p4884_p12 = por %p4883_p11, %p4882_p10 }
  0x25   : > { %p4880_p9 = pneg %p4879_p8  ;;  %p4886_p1 = por %p4885_p13, %p4884_p12 }
  0x27   : > { %p4887_p2 = pnand %p4886_p1, %p4880_p9 }
  0x29   : > { %4890 = shalt.err (!%p4887_p2)
}
  0x2a   : > { %s4891_s27 = scalar_lea.vmem %s5349_s16, 1024  ;;  %s5209_s29 = smov [#allocation4]  }
  0x2b   : > { %p4892_p3 = scmp.ne.s32.totalorder %s5349_s16, %s4891_s27  ;;  %s4896_s30 = sshll.u32 %s5209_s29, 4  ;;  %s4897_s30 = int_to_ptr.vmem [resolvable:$false] %s4896_s30 }
  0x2c   : > { %s4898_s13 = scalar_lea.vmem %s4897_s30, 2048  ;;  %p4899_p8 = scmp.lt.s32.totalorder %s5349_s16, %s4897_s30 }
  0x2d   : > { %p4894_p4 = pnand %p4892_p3, %p5359_p7  ;;  %p4900_p0 = scmp.lt.s32.totalorder %s4898_s13, %s4891_s27 }
  0x2f   : > { %p4895_p6 = pneg %p4894_p4  ;;  %p4901_p10 = por %p4900_p0, %p4899_p8 }
  0x31   : > { %p4902_p11 = pnand %p4901_p10, %p4895_p6 }
  0x33   : > { %4905 = shalt.err (!%p4902_p11)
}
  0x34   : > { %s10244_s8 = smov 64   ;;  %s10246_s12 = smov 4  }
  0x35   : > { %4526 = dma.hbm_to_vmem [thread:$0]  (!%p5345_p5), %s5343_s14, 1024, %s5349_s16, %s5353_s20, %s10244_s8, %s10244_s8, %s10246_s12  }
  0x36   : > { %s10567_s2 = sld [smem:[#allocation123_spill]]  ;;  %s404_s30 = scalar_lea.vmem [#allocation10], %s4479_s18 }
  0x37   : > { %s412_s13 = sshll.u32 %s404_s30, 4  ;;  %s5395_s13 = int_to_ptr.vmem [resolvable:$true] %s412_s13 }
  0x3c   : > { %s5391_s29 = scalar_lea.hbm %s10567_s2, %s4480_s19  ;;  %s4911_s15 = scalar_lea.hbm %s10567_s2, 9216 }
  0x3d   : > { %s4906_s0 = scalar_lea.hbm %s5391_s29, 3072  ;;  %p4912_p13 = scmp.lt.u32.totalorder %s5391_s29, %s10567_s2 }
  0x3e   : > { %p4907_p0 = scmp.ne.s32.totalorder %s5391_s29, %s4906_s0  ;;  %p4913_p1 = scmp.lt.u32.totalorder %s4911_s15, %s4906_s0 }
  0x3f   : > { %p4915_p3 = scmp.lt.u32.totalorder %s4906_s0, %s5391_s29 }
  0x40   : > { %p4909_p9 = pnand %p4907_p0, %p5359_p7  ;;  %p4914_p2 = por %p4913_p1, %p4912_p13 }
  0x42   : > { %p4910_p12 = pneg %p4909_p9  ;;  %p4916_p4 = por %p4915_p3, %p4914_p2 }
  0x44   : > { %p4917_p6 = pnand %p4916_p4, %p4910_p12 }
  0x46   : > { %4920 = shalt.err (!%p4917_p6)
}
  0x47   : > { %s4921_s30 = scalar_lea.vmem %s5395_s13, 3072  ;;  %s5212_s14 = smov [#allocation10]  }
  0x48   : > { %p4922_p8 = scmp.ne.s32.totalorder %s5395_s13, %s4921_s30  ;;  %s4926_s16 = sshll.u32 %s5212_s14, 4  ;;  %s4927_s16 = int_to_ptr.vmem [resolvable:$false] %s4926_s16 }
  0x49   : > { %s4928_s8 = scalar_lea.vmem %s4927_s16, 6144  ;;  %p4929_p0 = scmp.lt.s32.totalorder %s5395_s13, %s4927_s16 }
  0x4a   : > { %p4924_p10 = pnand %p4922_p8, %p5359_p7  ;;  %p4930_p9 = scmp.lt.s32.totalorder %s4928_s8, %s4921_s30 }
  0x4c   : > { %p4925_p11 = pneg %p4924_p10  ;;  %p4931_p13 = por %p4930_p9, %p4929_p0 }
  0x4e   : > { %p4932_p1 = pnand %p4931_p13, %p4925_p11 }
  0x50   : > { %4935 = shalt.err (!%p4932_p1)
}
  0x51   : > { %s10247_s0 = smov 192   ;;  %s10248_s15 = smov 12  }
  0x52   : > { %4529 = dma.hbm_to_vmem [thread:$0]  (!%p5345_p5), %s5391_s29, 3072, %s5395_s13, %s5353_s20, %s10247_s0, %s10247_s0, %s10248_s15  }
  0x53   : > { %s5423_s27 = sadd.s32 4294967295, %s5207_s24   ;;  %s10245_s30 = sadd.s32 4294967294, %s5207_s24  }
  0x54   : > { %p55_p12 = scmp.ne.s32.totalorder %s5199_s22, %s5195_s21  ;;  %p10253_p2 = scmp.eq.s32.totalorder %s5423_s27, 0 }
  0x55   : > { %p262_p3 = scmp.eq.s32.totalorder %s5423_s27, 2  ;;  %p268_p4 = scmp.eq.s32.totalorder %s10245_s30, 2 }
  0x56   : > { %p5434_p6 = por %p10253_p2, %p55_p12  ;;  %p3982_p8 = scmp.ge.s32.totalorder %s5207_s24, 1 }
  0x57   : > { %p10569_p10 = scmp.ne.s32.totalorder %s5203_s23, %s5199_s22  ;;  %p5446_p0 = por %p268_p4, %p55_p12 }
  0x58   : > { %s10568_s14 = scalar_select %p5434_p6, 1, 0 }
  0x59   : > { %p5442_p11 = por %p262_p3, %p10569_p10  ;;  %p327_p9 = scmp.lt.s32.totalorder %s5207_s24, 4 }
  0x5a   : > { %s10571_s13 = scalar_select %p5446_p0, 1, 0 }
  0x5b   : > { %s10570_s29 = scalar_select %p5442_p11, 1, 0 }
  0x5c   : > { %10572 = sst [smem:[#allocation30_spill]] %s10571_s13  ;;  %p5451_p13 = pnand %p3982_p8, %p327_p9 }
  0x5d   : > { %s5215_s8 = smov [#allocation8]   ;;  %s10574_s3 = sld [smem:[#allocation124_spill]] }
  0x5e   : > { %s10573_s16 = scalar_select %p5451_p13, 1, 0 }
  0x5f   : > { %s339_s30 = sshll.u32 %s5215_s8, 4  ;;  %p4513_p1 = pneg %p5451_p13  ;;  %s5455_s30 = int_to_ptr.vmem [resolvable:$true] %s339_s30 }
  0x60   : > { %s426_s2 = scalar_lea.vmem [#allocation11], %s4479_s18  ;;  %s5216_s23 = smov [#allocation13]  }
  0x61   : > { %s434_s26 = sshll.u32 %s426_s2, 4  ;;  %p5472_p12 = pnand %p4513_p1, %p10253_p2  ;;  %s5468_s26 = int_to_ptr.vmem [resolvable:$true] %s434_s26 }
  0x62   : > { %s5476_s12 = sshll.u32 %s5216_s23, 4  ;;  %s5504_s12 = int_to_ptr.vmem [resolvable:$true] %s5476_s12 }
  0x63   : > { %s5462_s15 = scalar_lea.hbm %s10574_s3, %s4480_s19  ;;  %s4941_s18 = scalar_lea.hbm %s10574_s3, 9216 }
  0x64   : > { %s10575_s8 = scalar_select %p5472_p12, 1, 0 }
  0x65   : > { %s4936_s19 = scalar_lea.hbm %s5462_s15, 3072  ;;  %p4942_p10 = scmp.lt.u32.totalorder %s5462_s15, %s10574_s3 }
  0x66   : > { %p4937_p3 = scmp.ne.s32.totalorder %s5462_s15, %s4936_s19  ;;  %p4943_p9 = scmp.lt.u32.totalorder %s4941_s18, %s4936_s19 }
  0x67   : > { %p4945_p2 = scmp.lt.u32.totalorder %s4936_s19, %s5462_s15 }
  0x68   : > { %p4939_p4 = pnand %p4937_p3, %p5359_p7  ;;  %p4944_p1 = por %p4943_p9, %p4942_p10 }
  0x6a   : > { %p4940_p8 = pneg %p4939_p4  ;;  %p4946_p0 = por %p4945_p2, %p4944_p1 }
  0x6c   : > { %p4947_p11 = pnand %p4946_p0, %p4940_p8 }
  0x6e   : > { %4950 = shalt.err (!%p4947_p11)
}
  0x6f   : > { %s4951_s23 = scalar_lea.vmem %s5468_s26, 3072  ;;  %s5217_s7 = smov [#allocation11]  }
  0x70   : > { %p4952_p3 = scmp.ne.s32.totalorder %s5468_s26, %s4951_s23  ;;  %s4956_s0 = sshll.u32 %s5217_s7, 4  ;;  %s4957_s0 = int_to_ptr.vmem [resolvable:$false] %s4956_s0 }
  0x71   : > { %s4958_s13 = scalar_lea.vmem %s4957_s0, 6144  ;;  %p4959_p13 = scmp.lt.s32.totalorder %s5468_s26, %s4957_s0 }
  0x72   : > { %p4954_p4 = pnand %p4952_p3, %p5359_p7  ;;  %p4960_p12 = scmp.lt.s32.totalorder %s4958_s13, %s4951_s23 }
  0x74   : > { %p4955_p6 = pneg %p4954_p4  ;;  %p4961_p10 = por %p4960_p12, %p4959_p13 }
  0x76   : > { %p4962_p9 = pnand %p4961_p10, %p4955_p6 }
  0x78   : > { %4965 = shalt.err (!%p4962_p9)
}
  0x79   : > { %s10576_s19 = smov 12   ;;  %s10577_s18 = smov 192  }
  0x7a   : > { %4532 = dma.hbm_to_vmem [thread:$0]  (!%p5345_p5), %s5462_s15, 3072, %s5468_s26, %s5353_s20, %s10577_s18, %s10577_s18, %s10576_s19  }
  0x7b   : > { %s4966_s23 = scalar_lea.hbm %s10232_s1, 3072  ;;  %p10578_p6 = scmp.ne.s32.totalorder %s10575_s8, 0 }
  0x7c   : > { %p4967_p2 = scmp.ne.s32.totalorder %s10232_s1, %s4966_s23  ;;  %p4973_p12 = scmp.lt.u32.totalorder %s4966_s23, %s10232_s1 }
  0x7d   : > { %p5514_p11 = pneg %p10578_p6 }
  0x7f   : > { %p4969_p0 = pnand %p5514_p11, %p4967_p2 }
  0x81   : > { %p4970_p13 = pneg %p4969_p0 }
  0x83   : > { %p4975_p8 = pnand %p4973_p12, %p4970_p13 }
  0x85   : > { %4978 = shalt.err (!%p4975_p8)
}
  0x86   : > { %s4979_s19 = scalar_lea.vmem %s5455_s30, 3072  ;;  %p4987_p10 = scmp.lt.s32.totalorder %s5455_s30, %s5455_s30 }
  0x87   : > { %p4980_p1 = scmp.ne.s32.totalorder %s5455_s30, %s4979_s19  ;;  %p4988_p9 = scmp.lt.s32.totalorder %s4979_s19, %s4979_s19 }
  0x89   : > { %p4982_p3 = pnand %p4980_p1, %p5514_p11  ;;  %p4989_p2 = por %p4988_p9, %p4987_p10 }
  0x8b   : > { %p4983_p4 = pneg %p4982_p3 }
  0x8d   : > { %p4990_p0 = pnand %p4989_p2, %p4983_p4 }
  0x8f   : > { %4993 = shalt.err (!%p4990_p0)
}
  0x90   : > { %s10580_s18 = smov 4   ;;  %s10581_s2 = smov 64  }
  0x91   : > { %4516 = dma.hbm_to_vmem [thread:$0]  (!%p10578_p6), %s10232_s1, 3072, %s5455_s30, [#allocation9], %s10581_s2, %s10581_s2, %s10580_s18  }
  0x92   : > { %s4994_s26 = scalar_lea.hbm %s10236_s5, 48 }
  0x93   : > { %p4995_p13 = scmp.ne.s32.totalorder %s10236_s5, %s4994_s26  ;;  %p5001_p1 = scmp.lt.u32.totalorder %s4994_s26, %s10236_s5 }
  0x95   : > { %p4997_p12 = pnand %p4995_p13, %p5514_p11 }
  0x97   : > { %p4998_p8 = pneg %p4997_p12 }
  0x99   : > { %p5003_p3 = pnand %p5001_p1, %p4998_p8 }
  0x9b   : > { %5006 = shalt.err (!%p5003_p3)
}
  0x9c   : > { %s5007_s30 = scalar_lea.vmem %s5504_s12, 48  ;;  %s5014_s18 = scalar_lea.vmem %s5504_s12, 64 }
  0x9d   : > { %p5008_p4 = scmp.ne.s32.totalorder %s5504_s12, %s5007_s30  ;;  %p5015_p2 = scmp.lt.s32.totalorder %s5504_s12, %s5504_s12 }
  0x9e   : > { %p5016_p0 = scmp.lt.s32.totalorder %s5014_s18, %s5007_s30 }
  0x9f   : > { %p5010_p10 = pnand %p5008_p4, %p5514_p11 }
  0xa0   : > { %p5017_p13 = por %p5016_p0, %p5015_p2 }
  0xa1   : > { %p5011_p9 = pneg %p5010_p10 }
  0xa3   : > { %p5018_p12 = pnand %p5017_p13, %p5011_p9 }
  0xa5   : > { %5021 = shalt.err (!%p5018_p12)
}
  0xa6   : > { %4519 = dma.hbm_to_vmem [thread:$0]  (!%p10578_p6), %s10236_s5, 48, %s5504_s12, [#allocation9]  }
  0xa7   : > { %s3996_s2 = sshll.u32 %s5336_s28, 7  ;;  %s5022_s0 = scalar_lea.hbm %s10237_s6, 16 }
  0xa8   : > { %p5023_p8 = scmp.ne.s32.totalorder %s10237_s6, %s5022_s0  ;;  %p5029_p4 = scmp.lt.u32.totalorder %s5022_s0, %s10237_s6 }
  0xaa   : > { %p5025_p1 = pnand %p5023_p8, %p5514_p11 }
  0xac   : > { %p5026_p3 = pneg %p5025_p1 }
  0xae   : > { %p5031_p10 = pnand %p5029_p4, %p5026_p3 }
  0xb0   : > { %5034 = shalt.err (!%p5031_p10)
}
  0xb1   : > { %s5218_s30 = smov [#allocation14]   ;;  %s4175_s18 = sshll.u32 %s5207_s24, 11 }
  0xb2   : > { %4522 = dma.hbm_to_smem (!%p10578_p6), %s10237_s6, 16, %s5218_s30, [#allocation7]  }
  0xb3   : > { %s5583_s21 = scalar_lea.hbm %s10235_s4, %s4175_s18  ;;  %s448_s7 = scalar_lea.vmem [#allocation12], %s3996_s2 }
  0xb4   : > { %s455_s23 = sshll.u32 %s448_s7, 4  ;;  %s5035_s8 = scalar_lea.hbm %s5583_s21, 2048  ;;  %s5585_s23 = int_to_ptr.vmem [resolvable:$true] %s455_s23 }
  0xb5   : > { %p5036_p11 = scmp.ne.s32.totalorder %s5583_s21, %s5035_s8  ;;  %s5040_s26 = scalar_lea.hbm %s10235_s4, 6144 }
  0xb6   : > { %p5041_p6 = scmp.lt.u32.totalorder %s5583_s21, %s10235_s4  ;;  %p5042_p0 = scmp.lt.u32.totalorder %s5040_s26, %s5035_s8 }
  0xb7   : > { %p5038_p9 = pnand %p5036_p11, %p5359_p7  ;;  %p5044_p12 = scmp.lt.u32.totalorder %s5035_s8, %s5583_s21 }
  0xb8   : > { %p5043_p13 = por %p5042_p0, %p5041_p6 }
  0xb9   : > { %p5039_p2 = pneg %p5038_p9 }
  0xba   : > { %p5045_p8 = por %p5044_p12, %p5043_p13 }
  0xbc   : > { %p5046_p1 = pnand %p5045_p8, %p5039_p2 }
  0xbe   : > { %5049 = shalt.err (!%p5046_p1)
}
  0xbf   : > { %s5050_s2 = scalar_lea.vmem %s5585_s23, 2048  ;;  %s5219_s30 = smov [#allocation12]  }
  0xc0   : > { %p5051_p3 = scmp.ne.s32.totalorder %s5585_s23, %s5050_s2  ;;  %s5055_s28 = sshll.u32 %s5219_s30, 4  ;;  %s5056_s28 = int_to_ptr.vmem [resolvable:$false] %s5055_s28 }
  0xc1   : > { %s5057_s12 = scalar_lea.vmem %s5056_s28, 4096  ;;  %p5058_p11 = scmp.lt.s32.totalorder %s5585_s23, %s5056_s28 }
  0xc2   : > { %p5053_p4 = pnand %p5051_p3, %p5359_p7  ;;  %p5059_p9 = scmp.lt.s32.totalorder %s5057_s12, %s5050_s2 }
  0xc4   : > { %p5054_p10 = pneg %p5053_p4  ;;  %p5060_p6 = por %p5059_p9, %p5058_p11 }
  0xc6   : > { %p5061_p0 = pnand %p5060_p6, %p5054_p10 }
  0xc8   : > { %5064 = shalt.err (!%p5061_p0)
}
  0xc9   : > { %s5220_s18 = smov 128   ;;  %s5221_s11 = smov 8  }
  0xca   : > { %4535 = dma.hbm_to_vmem [thread:$0]  (!%p5345_p5), %s5583_s21, 2048, %s5585_s23, %s5353_s20, %s5220_s18, %s5220_s18, %s5221_s11  }
  0xcb   : > { %p10582_p7 = scmp.ne.s32.totalorder %s10573_s16, 0 }
  0xcd   : > { %467 = sbr.rel (%p10582_p7) target bundleno = 1238 (0x4d6), region = 56 }
  0xd4   : > { %s469_s25 = sand.u32 1, %s5423_s27   ;;  %s5613_s3 = sand.u32 1, %s5199_s22  }
  0xd5   : > { %s4000_s7 = sshll.u32 %s5613_s3, 6  ;;  %s470_s8 = scalar_lea.sflag [#allocation5], %s469_s25 }
  0xd6   : > { %s5618_s0 = scalar_lea.vmem [#allocation4], %s4000_s7  ;;  %p10583_p2 = scmp.ne.s32.totalorder %s10568_s14, 0 }
  0xd8   : > { %5166 = dma.done.wait (%p10583_p2), %s470_s8, 1024  }
  0xd9   : > { %5168 = vsyncadd (%p10583_p2), %s470_s8, 4294966272  ;;  %p10584_p5 = scmp.eq.s32.totalorder %s5423_s27, 0 }
  0xdb   : > { %5170 = dma.done.wait (%p10584_p5), [#allocation9], 3072   ;;  %p10585_p13 = pmov %p10584_p5 }
  0xdc   : > { %s5629_s17 = smul.u32 192, %s5613_s3 }
  0xdd   : > { %5172 = vsyncadd (%p10585_p13), [#allocation9], 4294964224 }
  0xde   : > { %s5632_s20 = scalar_lea.vmem [#allocation10], %s5629_s17 }
  0xdf   : > { %5174 = dma.done.wait (%p10583_p2), %s470_s8, 8192  }
  0xe0   : > { %5176 = vsyncadd (%p10583_p2), %s470_s8, 4294959104  ;;  %s4002_s16 = sshll.u32 %s5613_s3, 7  ;;  %s5640_s21 = scalar_lea.vmem [#allocation11], %s5629_s17 }
  0xe1   : > { %s5642_s23 = scalar_lea.vmem [#allocation12], %s4002_s16  ;;  %p10586_p12 = pmov %p10584_p5 }
  0xe2   : > { %p10587_p8 = pmov %p10584_p5 }
  0xe3   : > { %5178 = dma.done.wait (%p10586_p12), [#allocation9], 48  }
  0xe4   : > { %5180 = vsyncadd (%p10587_p8), [#allocation9], 4294967248  ;;  %p10588_p1 = pmov %p10584_p5 }
  0xe6   : > { %5182 = dma.done.wait (%p10588_p1), [#allocation7], 16   ;;  %p10589_p3 = pmov %p10588_p1 }
  0xe8   : > { %5184 = vsyncadd (%p10589_p3), [#allocation7], 4294967280 }
  0xe9   : > { %517 = sfence }
  0xea   : > { %v4716_v0 = vld [vmem:[#allocation8 + $0x40] sm:$0xff]   ;;  %v10273_v2 = vmov 0   ;;  %v4719_v4 = vld [vmem:[#allocation8 + $0x48] sm:$0xff]   ;;  %v4722_v7 = vld [vmem:[#allocation8 + $0x50] sm:$0xff]   ;;  %s585_s14 = sld [smem:[#allocation3]]  ;;  %v1056_v49 = vlaneseq  ;;  %s4038_s13 = sshll.u32 %s5423_s27, 7 }
  0xeb   : > { %v4717_v1 = vld [vmem:[#allocation8 + $0x80] sm:$0xff]   ;;  %4602 = vset.pattern.permute.xlu0 %v10273_v2  ;;  %4603 = vset.pattern.permute.xlu1 %v10273_v2  ;;  %v4720_v5 = vld [vmem:[#allocation8 + $0x88] sm:$0xff]   ;;  %v4723_v8 = vld [vmem:[#allocation8 + $0x90] sm:$0xff]   ;;  %v5686_v51 = vstv %s4038_s13  ;;  %v10592_v56 = vmov 0  ;;  %vm10268_vm5 = vmmov 1   ;;  %s5765_s15 = sld [smem:[#allocation14]] }
  0xec   : > { %4399 = vmatprep.subr.bf16.mxu0 %v4716_v0  ;;  %v4718_v3 = vld [vmem:[#allocation8] sm:$0xff]   ;;  %4447 = vmatprep.subr.bf16.mxu1 %v4717_v1  ;;  %v4721_v6 = vld [vmem:[#allocation8 + $0x8] sm:$0xff]   ;;  %v4724_v9 = vld [vmem:[#allocation8 + $0x10] sm:$0xff]   ;;  %v5684_v50 = vshrl.u32 %v1056_v49, 7  ;;  %v5688_v52 = vand.u32 127, %v1056_v49  ;;  %s5776_s19 = sld [smem:[#allocation14 + $0x1]] }
  0xed   : > { %4400 = vmatpush3.bf16.xpose.msra.mxu0 %v4718_v3  ;;  %4448 = vmatpush3.bf16.xpose.msra.mxu1 %v4717_v1  ;;  %v4725_v10 = vld [vmem:[#allocation8 + $0x58] sm:$0xff]   ;;  %v4728_v13 = vld [vmem:[#allocation8 + $0x60] sm:$0xff]   ;;  %v1740_v18 = vld [vmem:[%s5642_s23 + $0x10] sm:$0xff]  ;;  %s5959_s2 = sld [smem:[#allocation2]]  ;;  %s9593_s30 = scalar_lea.vmem [#allocation15], %s5629_s17 }
  0xee   : > { %4401 = vmatprep.subr.bf16.mxu0 %v4719_v4  ;;  %4449 = vmatprep.subr.bf16.mxu1 %v4720_v5  ;;  %v4726_v11 = vld [vmem:[#allocation8 + $0x98] sm:$0xff]   ;;  %v5655_v14 = vld [vmem:[%s5618_s0] sm:$0xff]   ;;  %v4731_v19 = vld [vmem:[#allocation8 + $0x68] sm:$0xff]   ;;  %10590 = vst [vmem:[#allocation31_spill] sm:$0xff] %v5684_v50  ;;  %v5692_v53 = vadd.s32 %v5686_v51, %v5684_v50  ;;  %v1063_v54 = vadd.s32 16, %v5684_v50  ;;  %v5702_v57 = vadd.s32 256, %v5688_v52 }
  0xef   : > { %v4727_v12 = vld [vmem:[#allocation8 + $0x18] sm:$0xff]   ;;  %v4729_v15 = vld [vmem:[#allocation8 + $0xa0] sm:$0xff]   ;;  %4415 = vmatprep.mubr.bf16.mxu0 %v5655_v14  ;;  %4463 = vmatprep.mubr.bf16.mxu1 %v5655_v14  ;;  %v4732_v20 = vld [vmem:[#allocation8 + $0xa8] sm:$0xff]   ;;  %v5708_v59 = vadd.s32 128, %v5688_v52  ;;  %v1062_v60 = vadd.s32 8, %v5684_v50  ;;  %v1064_v61 = vadd.s32 24, %v5684_v50 }
  0xf0   : > { %v4730_v16 = vld [vmem:[#allocation8 + $0x20] sm:$0xff]   ;;  %1766 = vperm.xlu1 %4603, %v1740_v18   ;;  %v1739_v21 = vld [vmem:[%s5642_s23 + $0x8] sm:$0xff]  ;;  %v1741_v22 = vld [vmem:[%s5642_s23 + $0x18] sm:$0xff]  ;;  %p586_p4 = scmp.ne.s32.totalorder %s585_s14, 0  ;;  %10591 = vst [vmem:[#allocation32_spill] sm:$0xff] %v5692_v53  ;;  %vm10264_vm0 = vcmp.eq.s32.totalorder %v5688_v52, %v5692_v53  ;;  %v5705_v58 = vadd.s32 %v5686_v51, %v1063_v54  ;;  %vm10267_vm7 = vcmp.eq.s32.totalorder %v5702_v57, %v5692_v53  ;;  %s4484_s28 = smul.u32 24, %s5613_s3 }
  0xf1   : > { %v1738_v17 = vld [vmem:[%s5642_s23] sm:$0xff]  ;;  %v1743_v24 = vld [vmem:[%s5642_s23 + $0x28] sm:$0xff]  ;;  %v4734_v26 = vld [vmem:[#allocation8 + $0x70] sm:$0xff]   ;;  %10594 = vst [vmem:[#allocation33_spill] sm:$0xff] %v5702_v57  ;;  %vm10262_vm4 = vcmp.eq.s32.totalorder %v5708_v59, %v5692_v53  ;;  %v5729_v63 = vadd.s32 %v5686_v51, %v1062_v60  ;;  %v5737_v0 = vadd.s32 %v5686_v51, %v1064_v61  ;;  %s4485_s12 = smul.u32 3072, %s5423_s27  ;;  %s3727_s18 = sshll.u32 %s9593_s30, 4  ;;  %s10084_s18 = int_to_ptr.vmem [resolvable:$true] %s3727_s18 }
  0xf2   : > { %1756 = vperm.xlu0 %4602, %v1738_v17   ;;  %v1742_v23 = vld [vmem:[%s5642_s23 + $0x20] sm:$0xff]  ;;  %v4733_v25 = vld [vmem:[#allocation8 + $0x28] sm:$0xff]   ;;  %v4735_v27 = vld [vmem:[#allocation8 + $0xb0] sm:$0xff]   ;;  %s1191_s26 = scalar_select %p586_p4, 1, 0  ;;  %10595 = vst [vmem:[#allocation34_spill] sm:$0xff] %v5705_v58  ;;  %vm10260_vm3 = vcmp.eq.s32.totalorder %v5702_v57, %v5705_v58  ;;  %v5957_v49 = vstv %s5776_s19 }
  0xf3   : > { %v1744_v28 = vld [vmem:[%s5642_s23 + $0x30] sm:$0xff]  ;;  %v1745_v29 = vld [vmem:[%s5642_s23 + $0x38] sm:$0xff]  ;;  %v1746_v30 = vld [vmem:[%s5642_s23 + $0x40] sm:$0xff]  ;;  %10598 = vst [vmem:[#allocation35_spill] sm:$0xff] %v5729_v63  ;;  %vm10261_vm12 = vcmp.eq.s32.totalorder %v5688_v52, %v5729_v63  ;;  %vm10263_vm14 = vcmp.eq.s32.totalorder %v5702_v57, %v5737_v0  ;;  %s10076_s11 = scalar_lea.vmem [#allocation18], %s4484_s28  ;;  %s5065_s16 = scalar_lea.vmem %s10084_s18, 3072 }
  0xf4   : > { %1771 = vperm.xlu1 %4603, %v1741_v22   ;;  %v1747_v31 = vld [vmem:[%s5642_s23 + $0x48] sm:$0xff]  ;;  %v4736_v32 = vld [vmem:[#allocation8 + $0x30] sm:$0xff]   ;;  %v4737_v33 = vld [vmem:[#allocation8 + $0x78] sm:$0xff]   ;;  %v1192_v55 = vstv %s1191_s26  ;;  %10599 = vst [vmem:[#allocation36_spill] sm:$0xff] %v5737_v0  ;;  %v10649_v22 = vmov 0  ;;  %p5066_p10 = scmp.ne.s32.totalorder %s10084_s18, %s5065_s16  ;;  %p11799_p11 = scmp.ne.s32.totalorder %s10570_s29, 0 }
  0xf5   : > { %4402 = vmatpush3.bf16.xpose.msra.mxu0 %v4721_v6  ;;  %4450 = vmatpush3.bf16.xpose.msra.mxu1 %v4720_v5  ;;  %v4738_v34 = vld [vmem:[#allocation8 + $0xb8] sm:$0xff]   ;;  %v1748_v35 = vld [vmem:[%s5642_s23 + $0x50] sm:$0xff]  ;;  %v1750_v37 = vld [vmem:[%s5642_s23 + $0x60] sm:$0xff]  ;;  %vm5697_vm1 = vcmp.eq.s32.totalorder %v1192_v55, 1 }
  0xf6   : > { %4403 = vmatprep.subr.bf16.mxu0 %v4722_v7  ;;  %4451 = vmatprep.subr.bf16.mxu1 %v4723_v8  ;;  %v1749_v36 = vld [vmem:[%s5642_s23 + $0x58] sm:$0xff]  ;;  %v1751_v38 = vld [vmem:[%s5642_s23 + $0x68] sm:$0xff]  ;;  %v1752_v40 = vld [vmem:[%s5642_s23 + $0x70] sm:$0xff]  ;;  %v10593_v56 = vsel %vm5697_vm1, 4294967295, %v10592_v56  ;;  %p5067_p9 = pnand %p5066_p10, %p11799_p11 }
  0xf7   : > { %1761 = vperm.xlu0 %4602, %v1739_v21   ;;  %v4739_v39 = vld [vmem:[#allocation8 + $0x38] sm:$0xff]   ;;  %v4741_v42 = vld [vmem:[%s5618_s0 + $0x8] sm:$0xff]   ;;  %v4742_v43 = vld [vmem:[%s5618_s0 + $0x10] sm:$0xff]  }
  0xf8   : > { %1781 = vperm.xlu1 %4603, %v1743_v24   ;;  %v1753_v41 = vld [vmem:[%s5642_s23 + $0x78] sm:$0xff]  ;;  %v4744_v45 = vld [vmem:[%s5618_s0 + $0x20] sm:$0xff]   ;;  %v4745_v46 = vld [vmem:[%s5618_s0 + $0x28] sm:$0xff]   ;;  %p5068_p6 = pneg %p5067_p9 }
  0xf9   : > { %v4743_v44 = vld [vmem:[%s5618_s0 + $0x18] sm:$0xff]   ;;  %v4746_v47 = vld [vmem:[%s5618_s0 + $0x30] sm:$0xff]   ;;  %vm1194_vm2 = vmand %vm10264_vm0, %vm5697_vm1 }
  0xfa   : > { %v4747_v48 = vld [vmem:[%s5618_s0 + $0x38] sm:$0xff]   ;;  %vm5722_vm6 = vmxor %vm1194_vm2, %vm10268_vm5  ;;  %vm10265_vm2 = vcmp.eq.s32.totalorder %v5708_v59, %v5729_v63  ;;  %v2058_v24 = vld [vmem:[#allocation13] sm:$0x7]  ;;  %s10082_s0 = scalar_lea.hbm %s10240_s9, %s4485_s12 }
  0xfb   : > { %1776 = vperm.xlu0 %4602, %v1742_v23   ;;  %vm1202_vm8 = vmand %vm10260_vm3, %vm5697_vm1  ;;  %v5845_v23 = vld [vmem:[%s5640_s21 + $0x20] sm:$0xf]  ;;  %v6470_v62 = vld [vmem:[%s5640_s21 + $0x50] sm:$0xf] }
  0xfc   : > { %1791 = vperm.xlu1 %4603, %v1745_v29   ;;  %vm1195_vm9 = vmand %vm10262_vm4, %vm5697_vm1 }
  0xfd   : > { %4404 = vmatpush3.bf16.xpose.msra.mxu0 %v4724_v9  ;;  %4452 = vmatpush3.bf16.xpose.msra.mxu1 %v4723_v8  ;;  %vm1196_vm10 = vmand %vm10267_vm7, %vm5697_vm1 }
  0xfe   : > { %4405 = vmatprep.subr.bf16.mxu0 %v4725_v10  ;;  %4453 = vmatprep.subr.bf16.mxu1 %v4726_v11  ;;  %vm5750_vm11 = vmxor %vm1202_vm8, %vm10268_vm5  ;;  %v1067_v10 = vadd.s32 48, %v5684_v50 }
  0xff   : > { %1786 = vperm.xlu0 %4602, %v1744_v28   ;;  %vm5757_vm13 = vmxor %vm1195_vm9, %vm10268_vm5  ;;  %vm10266_vm9 = vcmp.eq.s32.totalorder %v5702_v57, %v5729_v63  ;;  %v1071_v63 = vadd.s32 80, %v5684_v50 }
 0x100   : > { %1801 = vperm.xlu1 %4603, %v1747_v31   ;;  %vm5770_vm15 = vmxor %vm1196_vm10, %vm10268_vm5  ;;  %v5869_v31 = vld [vmem:[%s5632_s20 + $0x8] sm:$0xf] }
 0x101   : > { %vm5787_vm8 = vmand %vm10261_vm12, %vm5697_vm1 }
 0x102   : > { %vm5807_vm3 = vmand %vm10263_vm14, %vm5697_vm1 }
 0x103   : > { %1796 = vperm.xlu0 %4602, %v1746_v30   ;;  %vm5820_vm4 = vmand %vm10265_vm2, %vm5697_vm1  ;;  %v2066_v30 = vsub.s32 1, %v5684_v50 }
 0x104   : > { %1811 = vperm.xlu1 %4603, %v1749_v36   ;;  %vm5834_vm0 = vmand %vm10266_vm9, %vm5697_vm1 }
 0x105   : > { %4406 = vmatpush3.bf16.xpose.msra.mxu0 %v4727_v12  ;;  %4454 = vmatpush3.bf16.xpose.msra.mxu1 %v4726_v11  ;;  %v5796_v11 = vld [vmem:[%s5632_s20 + $0x20] sm:$0xf]  ;;  %v5961_v60 = vrot.slane %v2058_v24, %v2066_v30 }
 0x106   : > { %4407 = vmatprep.subr.bf16.mxu0 %v4728_v13  ;;  %4455 = vmatprep.subr.bf16.mxu1 %v4729_v15 }
 0x107   : > { %1806 = vperm.xlu0 %4602, %v1748_v35  }
 0x108   : > { %1821 = vperm.xlu1 %4603, %v1751_v38  }
 0x10b   : > { %1816 = vperm.xlu0 %4602, %v1750_v37  }
 0x10c   : > { %1831 = vperm.xlu1 %4603, %v1753_v41   ;;  %v10630_v41 = vmov 0 }
 0x10d   : > { %4408 = vmatpush3.bf16.xpose.msra.mxu0 %v4730_v16  ;;  %4456 = vmatpush3.bf16.xpose.msra.mxu1 %v4729_v15  ;;  %v1338_v15 = vld [vmem:[%s5632_s20] sm:$0xff] }
 0x10e   : > { %4409 = vmatprep.subr.bf16.mxu0 %v4731_v19  ;;  %4457 = vmatprep.subr.bf16.mxu1 %v4732_v20  ;;  %v2070_v19 = vsub.s32 2, %v5684_v50 }
 0x10f   : > { %1826 = vperm.xlu0 %4602, %v1752_v40   ;;  %v10627_v40 = vmov 0 }
 0x115   : > { %4410 = vmatpush3.bf16.xpose.msra.mxu0 %v4733_v25  ;;  %4458 = vmatpush3.bf16.xpose.msra.mxu1 %v4732_v20  ;;  %v1466_v20 = vld [vmem:[%s5640_s21] sm:$0xff]  ;;  %v2062_v25 = vsub.s32 0, %v5684_v50 }
 0x116   : > { %4411 = vmatprep.subr.bf16.mxu0 %v4734_v26  ;;  %4459 = vmatprep.subr.bf16.mxu1 %v4735_v27  ;;  %v5849_v26 = vadd.s32 %v5686_v51, %v1067_v10  ;;  %v1068_v10 = vadd.s32 56, %v5684_v50 }
 0x117   : > { %v5902_v38 = vrot.slane %v2058_v24, %v2062_v25 }
 0x118   : > { %10617 = vst [vmem:[#allocation38_spill] sm:$0xff] %v5849_v26 }
 0x11d   : > { %4412 = vmatpush3.bf16.xpose.msra.mxu0 %v4736_v32  ;;  %4460 = vmatpush3.bf16.xpose.msra.mxu1 %v4735_v27  ;;  %v1065_v27 = vadd.s32 32, %v5684_v50  ;;  %v5872_v32 = vld [vmem:[%s5640_s21 + $0x8] sm:$0xf] }
 0x11e   : > { %4413 = vmatprep.subr.bf16.mxu0 %v4737_v33  ;;  %4461 = vmatprep.subr.bf16.mxu1 %v4738_v34 }
 0x125   : > { %4414 = vmatpush3.bf16.xpose.msra.mxu0 %v4739_v39  ;;  %4462 = vmatpush3.bf16.xpose.msra.mxu1 %v4738_v34  ;;  %v5882_v34 = vrot.slane %v2058_v24, %v2070_v19  ;;  %v5905_v39 = vstv %s5765_s15  ;;  %v10651_v24 = vmov 0 }
 0x12c   : > { %4416 = vmatmul.mubr.bf16.vlgmr.msra.gmra.mrb[0].mxu0 %v5655_v14  ;;  %4464 = vmatmul.mubr.bf16.vlgmr.msra.gmra.mrb[0].mxu1 %v4741_v42 }
 0x12d   : > { %4417 = vmatprep.mubr.bf16.mxu0 %v4741_v42  ;;  %4467 = vmatprep.mubr.bf16.mxu1 %v4742_v43 }
 0x134   : > { %4418 = vmatmul.mubr.bf16.gmra.mrb[4].mxu0 %v4741_v42  ;;  %4468 = vmatmul.mubr.bf16.gmra.mrb[4].mxu1 %v4743_v44  ;;  %v5925_v42 = vld [vmem:[%s5632_s20 + $0xc] sm:$0xff] }
 0x135   : > { %4419 = vmatprep.mubr.bf16.mxu0 %v4742_v43  ;;  %4471 = vmatprep.mubr.bf16.mxu1 %v4744_v45 }
 0x13c   : > { %4420 = vmatmul.mubr.bf16.gmra.mrb[8].mxu0 %v4742_v43  ;;  %4472 = vmatmul.mubr.bf16.gmra.mrb[8].mxu1 %v4745_v46  ;;  %v5928_v43 = vld [vmem:[%s5640_s21 + $0xc] sm:$0xff] }
 0x13d   : > { %4421 = vmatprep.mubr.bf16.mxu0 %v4743_v44  ;;  %4475 = vmatprep.mubr.bf16.mxu1 %v4746_v47 }
 0x144   : > { %4422 = vmatmul.mubr.bf16.gmra.mrb[12].mxu0 %v4743_v44  ;;  %4476 = vmatmul.mubr.bf16.gmra.mrb[12].mxu1 %v4747_v48 }
 0x145   : > { %4423 = vmatprep.mubr.bf16.mxu0 %v4744_v45 }
 0x14c   : > { %4424 = vmatmul.mubr.bf16.gmra.mrb[16].mxu0 %v4744_v45  ;;  %v5935_v45 = vadd.s32 %v5686_v51, %v1065_v27 }
 0x14d   : > { %4425 = vmatprep.mubr.bf16.mxu0 %v4745_v46 }
 0x14e   : > { %10632 = vst [vmem:[#allocation40_spill] sm:$0xff] %v5935_v45 }
 0x154   : > { %4426 = vmatmul.mubr.bf16.gmra.mrb[20].mxu0 %v4745_v46  ;;  %v6047_v46 = vld [vmem:[%s5640_s21 + $0x2c] sm:$0xf] }
 0x155   : > { %4427 = vmatprep.mubr.bf16.mxu0 %v4746_v47 }
 0x15c   : > { %4428 = vmatmul.mubr.bf16.gmra.mrb[24].mxu0 %v4746_v47 }
 0x15d   : > { %4429 = vmatprep.mubr.bf16.mxu0 %v4747_v48 }
 0x164   : > { %4430 = vmatmul.mubr.bf16.gmra.mrb[28].mxu0 %v4747_v48 }
 0x171   : > { %v6035_v21 = vpop.permute.xlu0 %1756 }
 0x1ff   : > { %v5763_v4 = vpop.f32.mrb[0].mxu0  ;;  %v5767_v5 = vpop.f32.mrb[0].mxu1 }
 0x200   : > { %v5778_v7 = vpop.f32.mrb[1].mxu0  ;;  %v5780_v8 = vpop.f32.mrb[1].mxu1  ;;  %vm1143_vm10 = vcmp.ge.f32.partialorder %v5763_v4, 0.1  ;;  %vm1151_vm12 = vcmp.ge.f32.partialorder %v5767_v5, 0.1 }
 0x201   : > { %v5798_v12 = vpop.f32.mrb[2].mxu0  ;;  %v5800_v13 = vpop.f32.mrb[2].mxu1  ;;  %vm1144_vm14 = vcmp.ge.f32.partialorder %v5778_v7, 0.1  ;;  %vm5840_vm2 = vmand %vm1143_vm10, %vm5722_vm6  ;;  %vm1370_vm10 = vcmp.ne.bf16.partialorder %v1338_v15, 0 }
 0x202   : > { %v5813_v16 = vpop.f32.mrb[3].mxu0  ;;  %v5824_v18 = vpop.f32.mrb[3].mxu1  ;;  %vm5856_vm9 = vmand %vm1151_vm12, %vm5750_vm11  ;;  %vm10622_vm11 = vmmov 1   ;;  %v6069_v15 = vld [vmem:[%s5632_s20 + $0x14] sm:$0xf] }
 0x203   : > { %10612 = vst [vmem:[#allocation37_spill] sm:$0xff] %v5824_v18  ;;  %vm5863_vm7 = vmand %vm1144_vm14, %vm5757_vm13 }
 0x204   : > { %vm5877_vm12 = vmxor %vm5787_vm8, %vm10622_vm11 }
 0x205   : > { %vm1402_vm14 = vmpackc.low %vm5863_vm7, %vm5840_vm2  ;;  %vm10636_vm7 = vcmp.ge.f32.partialorder %v5780_v8, 0.1 }
 0x206   : > { %vm5892_vm5 = vmxor %vm5807_vm3, %vm10622_vm11 }
 0x207   : > { %v5896_v36 = vpop.f32.mrb[4].mxu0  ;;  %v5900_v37 = vpop.f32.mrb[4].mxu1  ;;  %vm5913_vm3 = vmand %vm1370_vm10, %vm1402_vm14 }
 0x208   : > { %v10628_v40 = vsel %vm5913_vm3, 4294967295, %v10627_v40  ;;  %vm5920_vm13 = vmxor %vm5820_vm4, %vm10622_vm11  ;;  %v5932_v44 = vpop.f32.mrb[5].mxu0  ;;  %vm10633_vm4 = vcmp.ne.bf16.partialorder %v1466_v20, 0  ;;  %v1562_v47 = vsel %vm5913_vm3, 65537, %v10273_v2  ;;  %v5954_v48 = vpop.f32.mrb[5].mxu1 }
 0x209   : > { %10629 = vst [vmem:[#allocation39_spill] sm:$0xff] %v10628_v40  ;;  %v10631_v41 = vsel %vm5920_vm13, 4294967295, %v10630_v41  ;;  %vm5943_vm10 = vmand %vm10633_vm4, %vm1402_vm14  ;;  %vm10270_vm13 = vcmp.eq.s32.totalorder %v5708_v59, %v5705_v58  ;;  %v1594_v54 = vunpack.c.l.b16 %v1562_v47  ;;  %v1595_v55 = vunpack.c.h.b16 %v1562_v47  ;;  %v5980_v1 = vpop.f32.mrb[6].mxu0  ;;  %v5982_v3 = vpop.f32.mrb[6].mxu1  ;;  %v6013_v20 = vld [vmem:[%s5632_s20 + $0x2c] sm:$0xf] }
 0x20a   : > { %vm5967_vm2 = vmand %vm10636_vm7, %vm5770_vm15  ;;  %vm10639_vm14 = vcmp.eq.s32.totalorder %v5688_v52, %v5705_v58  ;;  %v1882_v6 = vsel %vm5943_vm10, 65537, %v10273_v2  ;;  %v6002_v14 = vpop.f32.mrb[7].mxu0  ;;  %v6033_v25 = vpop.f32.mrb[7].mxu1  ;;  %v1066_v47 = vadd.s32 40, %v5684_v50  ;;  %v6124_v58 = vld [vmem:[%s5640_s21 + $0x14] sm:$0xf] }
 0x20b   : > { %vm5976_vm4 = vmand %vm10639_vm14, %vm5697_vm1  ;;  %vm10642_vm14 = vcmp.eq.s32.totalorder %v5702_v57, %v5849_v26  ;;  %vm6004_vm15 = vcmp.ne.s32.totalorder %v1594_v54, 0  ;;  %vm6008_vm10 = vcmp.ne.s32.totalorder %v1595_v55, 0  ;;  %v1914_v19 = vunpack.c.l.b16 %v1882_v6  ;;  %10653 = vst [vmem:[#allocation41_spill] sm:$0xff] %v6033_v25 }
 0x20c   : > { %vm5997_vm8 = vmand %vm10642_vm14, %vm5697_vm1  ;;  %v1690_v27 = vsel %vm6004_vm15, %v5763_v4, 0.0  ;;  %v1691_v29 = vsel %vm6008_vm10, %v5778_v7, 0.0  ;;  %v1915_v30 = vunpack.c.h.b16 %v1882_v6  ;;  %vm10655_vm15 = vcmp.ne.bf16.partialorder %v5796_v11, 0  ;;  %v6263_v11 = vld [vmem:[%s5640_s21 + $0x18] sm:$0xff] }
 0x20d   : > { %vm6018_vm14 = vmxor %vm5834_vm0, %vm10622_vm11  ;;  %v10656_v54 = vmov 0  ;;  %v6062_v55 = vmul.f32 %v6035_v21, %v1690_v27  ;;  %v6065_v6 = vmul.f32 %v6035_v21, %v1691_v29  ;;  %vm1962_vm10 = vcmp.ne.s32.totalorder %v1914_v19, 0 }
 0x20e   : > { %v10650_v22 = vsel %vm6018_vm14, 4294967295, %v10649_v22  ;;  %vm6027_vm6 = vmand %vm10270_vm13, %vm5697_vm1  ;;  %vm1146_vm0 = vcmp.ge.f32.partialorder %v5798_v12, 0.1  ;;  %v2010_v17 = vsel %vm1962_vm10, %v5763_v4, 0.0  ;;  %vm1154_vm14 = vcmp.ge.f32.partialorder %v5800_v13, 0.1 }
 0x20f   : > { %v10652_v24 = vsel %vm6027_vm6, 4294967295, %v10651_v24  ;;  %vm10654_vm13 = vmpackc.low %vm5856_vm9, %vm5856_vm9  ;;  %10659 = vst [vmem:[#allocation43_spill] sm:$0xff] %v6062_v55  ;;  %vm1963_vm6 = vcmp.ne.s32.totalorder %v1915_v30, 0  ;;  %v6085_v19 = vadd.s32 %v5686_v51, %v1068_v10  ;;  %v6087_v27 = vpop.f32.mrb[8].mxu0  ;;  %v6089_v29 = vpop.f32.mrb[8].mxu1  ;;  %v2124_v2 = vmul.f32 %v5905_v39, %v6062_v55 }
 0x210   : > { %vm6057_vm7 = vmand %vm10655_vm15, %vm10654_vm13  ;;  %10660 = vst [vmem:[#allocation44_spill] sm:$0xff] %v6065_v6  ;;  %v2011_v28 = vsel %vm1963_vm6, %v5778_v7, 0.0  ;;  %v10670_v4 = vmov 0  ;;  %v6107_v7 = vpop.f32.mrb[9].mxu0  ;;  %v6109_v10 = vpop.f32.mrb[9].mxu1  ;;  %v6136_v33 = vadd.s32 %v5686_v51, %v1066_v47  ;;  %v1069_v47 = vadd.s32 64, %v5684_v50 }
 0x211   : > { %v10657_v54 = vsel %vm6057_vm7, 4294967295, %v10656_v54  ;;  %vm10661_vm3 = vmmov %vm10654_vm13  ;;  %vm10662_vm13 = vcmp.ne.bf16.partialorder %v5845_v23, 0  ;;  %10665 = vst [vmem:[#allocation45_spill] sm:$0xff] %v6085_v19  ;;  %v2075_v23 = vmul.f32 %v5902_v38, %v2010_v17  ;;  %v2076_v30 = vmul.f32 %v5961_v60, %v2011_v28  ;;  %v6139_v53 = vpop.f32.mrb[10].mxu0  ;;  %v6141_v55 = vpop.f32.mrb[10].mxu1 }
 0x212   : > { %10658 = vst [vmem:[#allocation42_spill] sm:$0xff] %v10657_v54  ;;  %vm6078_vm15 = vmand %vm10662_vm13, %vm10661_vm3  ;;  %vm10669_vm3 = vcmp.ne.bf16.partialorder %v5869_v31, 0  ;;  %v2125_v17 = vmul.f32 %v5905_v39, %v6065_v6  ;;  %v10678_v28 = vmov 0  ;;  %v6285_v54 = vadd.s32 112, %v5684_v50 }
 0x213   : > { %10666 = vst [vmem:[#allocation46_spill] sm:$0xff] %v6087_v27  ;;  %10667 = vst [vmem:[#allocation47_spill] sm:$0xff] %v6089_v29  ;;  %v2173_v6 = vmul.f32 %v5957_v49, %v2075_v23  ;;  %v10687_v23 = vmov 0   ;;  %v2174_v29 = vmul.f32 %v5957_v49, %v2076_v30  ;;  %v6232_v30 = vld [vmem:[%s5632_s20 + $0x18] sm:$0xff] }
 0x214   : > { %vm10668_vm9 = vmpackc.low %vm5967_vm2, %vm5967_vm2  ;;  %10673 = vst [vmem:[#allocation49_spill] sm:$0xff] %v6107_v7  ;;  %v6158_v7 = vpop.f32.mrb[11].mxu0  ;;  %v1567_v35 = vsel %vm6057_vm7, 65537, %v10687_v23  ;;  %vm10692_vm7 = vcmp.ne.bf16.partialorder %v5872_v32, 0  ;;  %vm10299_vm2 = vcmp.eq.s32.totalorder %v5702_v57, %v6085_v19  ;;  %v10696_v32 = vmov 0 }
 0x215   : > { %vm6102_vm10 = vmand %vm10669_vm3, %vm10668_vm9  ;;  %10674 = vst [vmem:[#allocation50_spill] sm:$0xff] %v6109_v10  ;;  %vm10677_vm3 = vcmp.eq.s32.totalorder %v5702_v57, %v5935_v45  ;;  %v6145_v10 = vstv %s5959_s2  ;;  %v2221_v25 = vadd.f32 %v2173_v6, %v2124_v2  ;;  %v2222_v2 = vadd.f32 %v2174_v29, %v2125_v17 }
 0x216   : > { %v10671_v4 = vsel %vm6102_vm10, 4294967295, %v10670_v4  ;;  %vm6118_vm6 = vmand %vm1146_vm0, %vm5877_vm12  ;;  %10680 = vst [vmem:[#allocation51_spill] sm:$0xff] %v6136_v33  ;;  %v1602_v6 = vunpack.c.l.b16 %v1567_v35 }
 0x217   : > { %10672 = vst [vmem:[#allocation48_spill] sm:$0xff] %v10671_v4  ;;  %vm6131_vm13 = vmand %vm10677_vm3, %vm5697_vm1  ;;  %v2270_v27 = vadd.f32 %v6145_v10, %v2221_v25  ;;  %v2271_v17 = vadd.f32 %v6145_v10, %v2222_v2  ;;  %v6277_v35 = vpop.f32.mrb[12].mxu0 }
 0x218   : > { %v10679_v28 = vsel %vm6131_vm13, 4294967295, %v10678_v28  ;;  %10681 = vst [vmem:[#allocation52_spill] sm:$0xff] %v6139_v53  ;;  %10682 = vst [vmem:[#allocation53_spill] sm:$0xff] %v6141_v55  ;;  %v1072_v53 = vadd.s32 88, %v5684_v50  ;;  %v6160_v55 = vpop.f32.mrb[11].mxu1 }
 0x219   : > { %vm6151_vm12 = vmand %vm1154_vm14, %vm5892_vm5  ;;  %10685 = vst [vmem:[#allocation54_spill] sm:$0xff] %v6158_v7  ;;  %vm10688_vm5 = vnez %v10631_v41  ;;  %vm10689_vm14 = vcmp.ge.f32.partialorder %v5813_v16, 0.1  ;;  %v1070_v7 = vadd.s32 72, %v5684_v50  ;;  %v10835_v41 = vmov 0 }
 0x21a   : > { %10686 = vst [vmem:[#allocation55_spill] sm:$0xff] %v6160_v55  ;;  %vm6170_vm3 = vmand %vm10689_vm14, %vm10688_vm5  ;;  %vm1148_vm14 = vcmp.ge.f32.partialorder %v5824_v18, 0.1  ;;  %v6238_v25 = vadd.s32 %v5686_v51, %v1072_v53  ;;  %v10713_v53 = vmov 0  ;;  %v6287_v55 = vpop.f32.mrb[13].mxu0  ;;  %v10744_v18 = vmov 0 }
 0x21b   : > { %vm6183_vm13 = vmand %vm10692_vm7, %vm10668_vm9  ;;  %vm10695_vm7 = vcmp.ne.bf16.partialorder %v5925_v42, 0  ;;  %v6215_v42 = vadd.s32 %v5686_v51, %v1071_v63  ;;  %v6235_v63 = vadd.s32 %v5686_v51, %v1069_v47  ;;  %v6275_v47 = vadd.s32 %v5686_v51, %v1070_v7  ;;  %10718 = vst [vmem:[#allocation61_spill] sm:$0xff] %v6277_v35 }
 0x21c   : > { %vm1404_vm5 = vmpackc.low %vm6170_vm3, %vm6118_vm6  ;;  %10708 = vst [vmem:[#allocation59_spill] sm:$0xff] %v6238_v25  ;;  %v6292_v7 = vadd.s32 96, %v5684_v50 }
 0x21d   : > { %vm6199_vm9 = vmand %vm10695_vm7, %vm1404_vm5  ;;  %10701 = vst [vmem:[#allocation57_spill] sm:$0xff] %v6215_v42  ;;  %vm10702_vm7 = vcmp.ne.bf16.partialorder %v5928_v43, 0  ;;  %v1887_v43 = vsel %vm6078_vm15, 65537, %v10687_v23 }
 0x21e   : > { %v10697_v32 = vsel %vm6199_vm9, 4294967295, %v10696_v32  ;;  %vm6206_vm6 = vmxor %vm5976_vm4, %vm10622_vm11  ;;  %10707 = vst [vmem:[#allocation58_spill] sm:$0xff] %v6235_v63  ;;  %v1564_v9 = vsel %vm6199_vm9, 65537, %v10687_v23 }
 0x21f   : > { %10698 = vst [vmem:[#allocation56_spill] sm:$0xff] %v10697_v32  ;;  %vm6220_vm10 = vmand %vm10702_vm7, %vm1404_vm5  ;;  %vm10712_vm7 = vnez %v10652_v24  ;;  %v6279_v24 = vpop.f32.mrb[12].mxu1  ;;  %v1597_v2 = vunpack.c.l.b16 %v1564_v9  ;;  %v6906_v32 = vld [vmem:[%s5632_s20 + $0x30] sm:$0xff] }
 0x220   : > { %vm6227_vm4 = vmxor %vm5997_vm8, %vm10622_vm11  ;;  %vm10709_vm8 = vnez %v10650_v22  ;;  %v10715_v22 = vmov 0  ;;  %10717 = vst [vmem:[#allocation60_spill] sm:$0xff] %v6275_v47  ;;  %v6289_v19 = vpop.f32.mrb[13].mxu1  ;;  %v1884_v47 = vsel %vm6220_vm10, 65537, %v10687_v23  ;;  %vm6317_vm10 = vcmp.ne.s32.totalorder %v1602_v6, 0  ;;  %v6335_v6 = vpop.permute.xlu0 %1761 }
 0x221   : > { %vm6251_vm5 = vmand %vm1148_vm14, %vm10709_vm8  ;;  %10719 = vst [vmem:[#allocation62_spill] sm:$0xff] %v6279_v24  ;;  %v1598_v24 = vunpack.c.h.b16 %v1564_v9  ;;  %vm10723_vm14 = vcmp.eq.s32.totalorder %v5688_v52, %v5737_v0  ;;  %v6313_v9 = vpop.f32.mrb[14].mxu0  ;;  %vm10730_vm8 = vcmp.gt.f32.partialorder %v2270_v27, 0.0  ;;  %v1917_v25 = vunpack.c.l.b16 %v1884_v47 }
 0x222   : > { %vm6258_vm0 = vmxor %vm10712_vm7, %vm10622_vm11  ;;  %10720 = vst [vmem:[#allocation63_spill] sm:$0xff] %v6287_v55  ;;  %vm2319_vm7 = vcmp.gt.f32.partialorder %v2271_v17, 0.0  ;;  %v10724_v17 = vmov 0  ;;  %v10731_v55 = vmov 0 }
 0x223   : > { %v10714_v53 = vsel %vm6258_vm0, 4294967295, %v10713_v53  ;;  %vm6270_vm15 = vmand %vm10299_vm2, %vm5697_vm1  ;;  %10721 = vst [vmem:[#allocation64_spill] sm:$0xff] %v6289_v19  ;;  %vm10722_vm2 = vnez %v10671_v4  ;;  %v6315_v4 = vpop.f32.mrb[14].mxu1  ;;  %v1922_v19 = vunpack.c.l.b16 %v1887_v43  ;;  %v1918_v43 = vunpack.c.h.b16 %v1884_v47 }
 0x224   : > { %v10716_v22 = vsel %vm6270_vm15, 4294967295, %v10715_v22  ;;  %v1563_v35 = vsel %vm10722_vm2, 65537, %v10687_v23  ;;  %vm6309_vm9 = vmand %vm10723_vm14, %vm5697_vm1  ;;  %10726 = vst [vmem:[#allocation65_spill] sm:$0xff] %v6313_v9  ;;  %vm6326_vm2 = vcmp.ne.s32.totalorder %v1597_v2, 0  ;;  %v6331_v9 = vpop.f32.mrb[15].mxu0  ;;  %vm10739_vm15 = vcmp.eq.s32.totalorder %v5708_v59, %v5737_v0 }
 0x225   : > { %v10725_v17 = vsel %vm6309_vm9, 4294967295, %v10724_v17  ;;  %10727 = vst [vmem:[#allocation66_spill] sm:$0xff] %v6315_v4  ;;  %vm6322_vm3 = vmpackc.low %vm2319_vm7, %vm10730_vm8  ;;  %v6333_v4 = vpop.f32.mrb[15].mxu1  ;;  %vm1646_vm9 = vcmp.ne.s32.totalorder %v1598_v24, 0  ;;  %v1693_v27 = vsel %vm6326_vm2, %v5798_v12, 0.0  ;;  %v10740_v2 = vmov 0 }
 0x226   : > { %v10732_v55 = vsel %vm6322_vm3, 4294967295, %v10731_v55  ;;  %10736 = vst [vmem:[#allocation68_spill] sm:$0xff] %v6331_v9  ;;  %10737 = vst [vmem:[#allocation69_spill] sm:$0xff] %v6333_v4  ;;  %v1596_v24 = vunpack.c.l.b16 %v1563_v35  ;;  %vm10743_vm14 = vcmp.ne.bf16.partialorder %v6013_v20, 0  ;;  %v1694_v47 = vsel %vm1646_vm9, %v5813_v16, 0.0  ;;  %v6447_v31 = vpop.f32.mrb[16].mxu0 }
 0x227   : > { %10733 = vst [vmem:[#allocation67_spill] sm:$0xff] %v10732_v55  ;;  %vm6350_vm0 = vmand %vm10739_vm15, %vm5697_vm1  ;;  %v6369_v0 = vmul.f32 %v6335_v6, %v1693_v27  ;;  %vm1965_vm15 = vcmp.ne.s32.totalorder %v1917_v25, 0  ;;  %vm10748_vm7 = vnez %v10679_v28  ;;  %v10749_v35 = vmov 0  ;;  %v6395_v27 = vld [vmem:[%s5632_s20 + $0x50] sm:$0xf] }
 0x228   : > { %v10741_v2 = vsel %vm6350_vm0, 4294967295, %v10740_v2  ;;  %vm10742_vm2 = vmpackc.low %vm6151_vm12, %vm6151_vm12  ;;  %v6390_v25 = vmul.f32 %v6335_v6, %v1694_v47  ;;  %vm1966_vm9 = vcmp.ne.s32.totalorder %v1918_v43, 0  ;;  %v2013_v28 = vsel %vm1965_vm15, %v5798_v12, 0.0  ;;  %10770 = vst [vmem:[#allocation74_spill] sm:$0xff] %v6447_v31 }
 0x229   : > { %vm6363_vm3 = vmand %vm10743_vm14, %vm10742_vm2  ;;  %10747 = vst [vmem:[#allocation71_spill] sm:$0xff] %v6369_v0  ;;  %vm6399_vm12 = vcmp.ne.s32.totalorder %v1922_v19, 0  ;;  %v2078_v4 = vmul.f32 %v5902_v38, %v2013_v28  ;;  %v2127_v43 = vmul.f32 %v5905_v39, %v6369_v0  ;;  %v10760_v12 = vmov 0 }
 0x22a   : > { %v10745_v18 = vsel %vm6363_vm3, 4294967295, %v10744_v18  ;;  %vm6374_vm8 = vmxor %vm10748_vm7, %vm10622_vm11  ;;  %10755 = vst [vmem:[#allocation72_spill] sm:$0xff] %v6390_v25  ;;  %v2128_v47 = vmul.f32 %v5905_v39, %v6390_v25  ;;  %v6488_v31 = vadd.s32 %v5686_v51, %v6285_v54  ;;  %v6507_v54 = vld [vmem:[%s5632_s20 + $0x38] sm:$0xf]  ;;  %v10792_v9 = vmov 0 }
 0x22b   : > { %10746 = vst [vmem:[#allocation70_spill] sm:$0xff] %v10745_v18  ;;  %v10750_v35 = vsel %vm6374_vm8, 4294967295, %v10749_v35  ;;  %vm10751_vm14 = vmmov %vm10742_vm2  ;;  %vm10752_vm2 = vcmp.ne.bf16.partialorder %v6047_v46, 0  ;;  %v2014_v46 = vsel %vm1966_vm9, %v5813_v16, 0.0  ;;  %v1883_v16 = vsel %vm6183_vm13, 65537, %v10687_v23 }
 0x22c   : > { %vm6385_vm0 = vmand %vm10752_vm2, %vm10751_vm14  ;;  %vm10759_vm14 = vcmp.ne.bf16.partialorder %v6069_v15, 0  ;;  %v2079_v19 = vmul.f32 %v5961_v60, %v2014_v46  ;;  %vm10764_vm8 = vcmp.ne.bf16.partialorder %v6124_v58, 0  ;;  %vm10767_vm13 = vcmp.eq.s32.totalorder %v5702_v57, %v6136_v33  ;;  %10780 = vst [vmem:[#allocation76_spill] sm:$0xff] %v6488_v31 }
 0x22d   : > { %vm10758_vm15 = vmpackc.low %vm6251_vm5, %vm6251_vm5  ;;  %v1698_v58 = vsel %vm6317_vm10, %v5767_v5, 0.0  ;;  %v1569_v46 = vsel %vm6363_vm3, 65537, %v10687_v23  ;;  %v2176_v0 = vmul.f32 %v5957_v49, %v2078_v4  ;;  %v2018_v18 = vsel %vm6399_vm12, %v5767_v5, 0.0  ;;  %v6496_v5 = vpop.permute.xlu1 %1766 }
 0x22e   : > { %vm6414_vm2 = vmand %vm10759_vm14, %vm10758_vm15  ;;  %vm1150_vm14 = vcmp.ge.f32.partialorder %v5932_v44, 0.1  ;;  %v2177_v4 = vmul.f32 %v5957_v49, %v2079_v19  ;;  %vm10777_vm5 = vcmp.ge.f32.partialorder %v5900_v37, 0.1  ;;  %v1916_v29 = vunpack.c.l.b16 %v1883_v16 }
 0x22f   : > { %v10761_v12 = vsel %vm6414_vm2, 4294967295, %v10760_v12  ;;  %vm10763_vm9 = vmmov %vm10758_vm15  ;;  %v2224_v19 = vadd.f32 %v2176_v0, %v2127_v43  ;;  %v6517_v16 = vadd.s32 120, %v5684_v50  ;;  %v6520_v0 = vadd.s32 104, %v5684_v50  ;;  %v6536_v50 = vld [vmem:[%s5640_s21 + $0x38] sm:$0xf] }
 0x230   : > { %10762 = vst [vmem:[#allocation73_spill] sm:$0xff] %v10761_v12  ;;  %vm6431_vm15 = vmand %vm10764_vm8, %vm10763_vm9  ;;  %vm6452_vm8 = vcmp.ne.s32.totalorder %v1596_v24, 0  ;;  %vm10773_vm9 = vcmp.ge.f32.partialorder %v5896_v36, 0.1  ;;  %v6472_v24 = vpop.f32.mrb[17].mxu0  ;;  %v6525_v43 = vmul.f32 %v6496_v5, %v1698_v58  ;;  %v2225_v55 = vadd.f32 %v2177_v4, %v2128_v47  ;;  %v6599_v4 = vld [vmem:[%s5640_s21 + $0x24] sm:$0xff] }
 0x231   : > { %vm6441_vm7 = vmand %vm10767_vm13, %vm5697_vm1  ;;  %10776 = vst [vmem:[#allocation75_spill] sm:$0xff] %v6472_v24  ;;  %v6492_v24 = vadd.s32 %v5686_v51, %v6292_v7  ;;  %v6494_v26 = vpop.f32.mrb[18].mxu0  ;;  %v10787_v7 = vmov 0  ;;  %v6541_v58 = vmul.f32 %v5882_v34, %v2018_v18  ;;  %v1889_v47 = vsel %vm6385_vm0, 65537, %v10687_v23 }
 0x232   : > { %vm6464_vm13 = vmand %vm10773_vm9, %vm6206_vm6  ;;  %10782 = vst [vmem:[#allocation78_spill] sm:$0xff] %v6494_v26  ;;  %v1692_v26 = vsel %vm6452_vm8, %v5780_v8, 0.0  ;;  %v2273_v28 = vadd.f32 %v6145_v10, %v2224_v19  ;;  %vm10791_vm8 = vcmp.ne.bf16.partialorder %v6232_v30, 0  ;;  %v10796_v18 = vmov 0 }
 0x233   : > { %vm6482_vm6 = vmand %vm10777_vm5, %vm6227_vm4  ;;  %10781 = vst [vmem:[#allocation77_spill] sm:$0xff] %v6492_v24  ;;  %vm10783_vm4 = vnez %v10714_v53  ;;  %vm10786_vm5 = vnez %v10716_v22  ;;  %v6522_v53 = vpop.f32.mrb[19].mxu0  ;;  %v1605_v22 = vunpack.c.l.b16 %v1569_v46  ;;  %v2274_v20 = vadd.f32 %v6145_v10, %v2225_v55 }
 0x234   : > { %vm6502_vm12 = vmand %vm1150_vm14, %vm10783_vm4  ;;  %10789 = vst [vmem:[#allocation79_spill] sm:$0xff] %v6522_v53  ;;  %v1565_v30 = vsel %vm6414_vm2, 65537, %v10687_v23  ;;  %vm10798_vm0 = vcmp.ne.bf16.partialorder %v6263_v11, 0  ;;  %v6578_v55 = vmul.f32 %v6035_v21, %v1692_v26  ;;  %vm6580_vm3 = vcmp.ne.s32.totalorder %v1916_v29, 0 }
 0x235   : > { %vm6512_vm9 = vmxor %vm10786_vm5, %vm10622_vm11  ;;  %10790 = vst [vmem:[#allocation80_spill] sm:$0xff] %v6525_v43  ;;  %vm2321_vm2 = vcmp.gt.f32.partialorder %v2273_v28, 0.0  ;;  %vm10804_vm10 = vnez %v10741_v2  ;;  %v10805_v21 = vmov 0  ;;  %v10808_v26 = vmov 0 }
 0x236   : > { %v10788_v7 = vsel %vm6512_vm9, 4294967295, %v10787_v7  ;;  %vm1406_vm4 = vmpackc.low %vm6502_vm12, %vm6464_vm13  ;;  %vm10795_vm12 = vnez %v10725_v17  ;;  %v6575_v17 = vld [vmem:[%s5632_s20 + $0x24] sm:$0xff]  ;;  %10801 = vst [vmem:[#allocation82_spill] sm:$0xff] %v6578_v55  ;;  %v1925_v2 = vunpack.c.l.b16 %v1889_v47  ;;  %v10817_v53 = vmov 0 }
 0x237   : > { %vm6549_vm14 = vmand %vm10791_vm8, %vm1406_vm4  ;;  %v1885_v46 = vsel %vm6431_vm15, 65537, %v10687_v23  ;;  %vm10834_vm9 = vcmp.ne.bf16.partialorder %v6395_v27, 0  ;;  %v6774_v61 = vmul.f32 %v5905_v39, %v6525_v43  ;;  %v6795_v43 = vadd.s32 %v5686_v51, %v6520_v0 }
 0x238   : > { %v10793_v9 = vsel %vm6549_vm14, 4294967295, %v10792_v9  ;;  %vm6557_vm5 = vmxor %vm10795_vm12, %vm10622_vm11  ;;  %v1566_v11 = vsel %vm6549_vm14, 65537, %v10687_v23  ;;  %vm10807_vm12 = vcmp.eq.s32.totalorder %v5702_v57, %v6215_v42  ;;  %vm6610_vm14 = vcmp.ne.s32.totalorder %v1605_v22, 0  ;;  %v6622_v42 = vpop.f32.mrb[20].mxu0 }
 0x239   : > { %10794 = vst [vmem:[#allocation81_spill] sm:$0xff] %v10793_v9  ;;  %v10797_v18 = vsel %vm6557_vm5, 4294967295, %v10796_v18  ;;  %vm6567_vm8 = vmand %vm10798_vm0, %vm1406_vm4  ;;  %v1600_v19 = vunpack.c.l.b16 %v1566_v11  ;;  %vm10812_vm0 = vnez %v10750_v35  ;;  %v1599_v22 = vunpack.c.l.b16 %v1565_v30 }
 0x23a   : > { %vm6594_vm13 = vmxor %vm10804_vm10, %vm10622_vm11  ;;  %vm2322_vm10 = vcmp.gt.f32.partialorder %v2274_v20, 0.0  ;;  %10816 = vst [vmem:[#allocation83_spill] sm:$0xff] %v6622_v42  ;;  %v1601_v12 = vunpack.c.h.b16 %v1566_v11  ;;  %v1886_v47 = vsel %vm6567_vm8, 65537, %v10687_v23  ;;  %v6642_v20 = vpop.f32.mrb[21].mxu0  ;;  %v2012_v30 = vsel %vm6580_vm3, %v5780_v8, 0.0 }
 0x23b   : > { %v10806_v21 = vsel %vm6594_vm13, 4294967295, %v10805_v21  ;;  %vm6606_vm4 = vmand %vm10807_vm12, %vm5697_vm1  ;;  %vm10813_vm13 = vcmp.ge.f32.partialorder %v5954_v48, 0.1  ;;  %10823 = vst [vmem:[#allocation85_spill] sm:$0xff] %v6642_v20  ;;  %v1920_v25 = vunpack.c.l.b16 %v1886_v47  ;;  %v1921_v11 = vunpack.c.h.b16 %v1886_v47  ;;  %v6699_v20 = vpop.f32.mrb[22].mxu0 }
 0x23c   : > { %v10809_v26 = vsel %vm6606_vm4, 4294967295, %v10808_v26  ;;  %vm6618_vm5 = vmand %vm10813_vm13, %vm10812_vm0  ;;  %vm10820_vm13 = vcmp.eq.s32.totalorder %v5688_v52, %v5935_v45  ;;  %v1701_v42 = vsel %vm6610_vm14, %v5800_v13, 0.0  ;;  %vm1649_vm3 = vcmp.ne.s32.totalorder %v1601_v12, 0  ;;  %v10830_v12 = vld [vmem:[#allocation59_spill] sm:$0xff]  ;;  %10839 = vst [vmem:[#allocation88_spill] sm:$0xff] %v6699_v20 }
 0x23d   : > { %vm6624_vm12 = vmpackc.low %vm2322_vm10, %vm2321_vm2  ;;  %vm1648_vm10 = vcmp.ne.s32.totalorder %v1600_v19, 0  ;;  %vm10827_vm14 = vcmp.eq.s32.totalorder %v5708_v59, %v5935_v45  ;;  %v1697_v47 = vsel %vm1649_vm3, %v5932_v44, 0.0  ;;  %vm6701_vm15 = vcmp.ne.s32.totalorder %v1599_v22, 0  ;;  %v6721_v22 = vpop.f32.mrb[23].mxu0  ;;  %10862 = vst [vmem:[#allocation92_spill] sm:$0xff] %v6795_v43 }
 0x23e   : > { %v10818_v53 = vsel %vm6624_vm12, 4294967295, %v10817_v53  ;;  %vm6638_vm0 = vmand %vm10820_vm13, %vm5697_vm1  ;;  %v1696_v8 = vsel %vm1648_vm10, %v5896_v36, 0.0  ;;  %vm6677_vm10 = vcmp.ne.s32.totalorder %v1925_v2, 0  ;;  %v6697_v2 = vld [vmem:[%s5632_s20 + $0x5c] sm:$0xf]  ;;  %v6706_v27 = vmul.f32 %v6496_v5, %v1697_v47  ;;  %10845 = vst [vmem:[#allocation90_spill] sm:$0xff] %v6721_v22 }
 0x23f   : > { %10819 = vst [vmem:[#allocation84_spill] sm:$0xff] %v10818_v53  ;;  %vm6662_vm8 = vmxor %vm6441_vm7, %vm10622_vm11  ;;  %v6694_v45 = vmul.f32 %v6496_v5, %v1696_v8  ;;  %v1919_v20 = vunpack.c.l.b16 %v1885_v46  ;;  %vm10847_vm3 = vcmp.ge.f32.partialorder %v5982_v3, 0.1  ;;  %v10848_v47 = vmov 0  ;;  %v6738_v22 = vld [vmem:[%s5632_s20 + $0x44] sm:$0xf] }
 0x240   : > { %vm6671_vm13 = vmand %vm10827_vm14, %vm5697_vm1  ;;  %vm1968_vm14 = vcmp.ne.s32.totalorder %v1920_v25, 0  ;;  %10842 = vst [vmem:[#allocation89_spill] sm:$0xff] %v6706_v27  ;;  %v6717_v25 = vld [vmem:[%s5640_s21 + $0x5c] sm:$0xf]  ;;  %v2077_v46 = vmul.f32 %v5882_v34, %v2012_v30  ;;  %v2131_v30 = vmul.f32 %v5905_v39, %v6706_v27  ;;  %v6791_v27 = vadd.s32 %v5686_v51, %v6517_v16  ;;  %v7083_v43 = vld [vmem:[%s5632_s20 + $0x68] sm:$0xf] }
 0x241   : > { %vm10833_vm7 = vmpackc.low %vm6482_vm6, %vm6482_vm6  ;;  %10838 = vst [vmem:[#allocation87_spill] sm:$0xff] %v6694_v45  ;;  %v2016_v8 = vsel %vm1968_vm14, %v5896_v36, 0.0  ;;  %v2130_v36 = vmul.f32 %v5905_v39, %v6694_v45  ;;  %vm10846_vm14 = vnez %v10788_v7  ;;  %v10867_v51 = vmov 0 }
 0x242   : > { %vm6688_vm4 = vmand %vm10834_vm9, %vm10833_vm7  ;;  %vm6708_vm9 = vcmp.ne.s32.totalorder %v1921_v11, 0  ;;  %v2081_v11 = vmul.f32 %v5902_v38, %v2016_v8  ;;  %10861 = vst [vmem:[#allocation91_spill] sm:$0xff] %v6791_v27  ;;  %vm10875_vm6 = vnez %v10806_v21  ;;  %v10895_v0 = vmov 0 }
 0x243   : > { %v10836_v41 = vsel %vm6688_vm4, 4294967295, %v10835_v41  ;;  %v2017_v5 = vsel %vm6708_vm9, %v5932_v44, 0.0  ;;  %vm6733_vm12 = vmand %vm10847_vm3, %vm10846_vm14  ;;  %v2021_v44 = vsel %vm6677_vm10, %v5800_v13, 0.0  ;;  %vm10854_vm10 = vcmp.eq.s32.totalorder %v5702_v57, %v6235_v63 }
 0x244   : > { %10837 = vst [vmem:[#allocation86_spill] sm:$0xff] %v10836_v41  ;;  %v10849_v47 = vsel %vm6733_vm12, 4294967295, %v10848_v47  ;;  %vm10850_vm9 = vmmov %vm10833_vm7  ;;  %vm10851_vm7 = vcmp.ne.bf16.partialorder %v6470_v62, 0  ;;  %v2082_v7 = vmul.f32 %v5961_v60, %v2017_v5  ;;  %v10855_v13 = vmov 0  ;;  %v6770_v62 = vpop.permute.xlu1 %1771  ;;  %v6787_v5 = vld [vmem:[%s5640_s21 + $0x44] sm:$0xf] }
 0x245   : > { %vm6751_vm2 = vmand %vm10851_vm7, %vm10850_vm9  ;;  %v2179_v15 = vmul.f32 %v5957_v49, %v2081_v11  ;;  %vm10857_vm7 = vnez %v10797_v18  ;;  %vm10858_vm9 = vcmp.ge.f32.partialorder %v5980_v1, 0.1  ;;  %v6798_v18 = vmul.f32 %v6770_v62, %v1701_v42  ;;  %v10864_v11 = vld [vmem:[#allocation37_spill] sm:$0xff]  ;;  %v7040_v41 = vld [vmem:[%s5632_s20 + $0x80] sm:$0xf] }
 0x246   : > { %vm6764_vm14 = vmand %vm10854_vm10, %vm5697_vm1  ;;  %v1695_v45 = vsel %vm6701_vm15, %v10864_v11, 0.0  ;;  %v1575_v63 = vsel %vm6688_vm4, 65537, %v10687_v23  ;;  %v2180_v40 = vmul.f32 %v5957_v49, %v2082_v7  ;;  %v6824_v42 = vmul.f32 %v5957_v49, %v6541_v58 }
 0x247   : > { %v10856_v13 = vsel %vm6764_vm14, 4294967295, %v10855_v13  ;;  %vm6781_vm3 = vmand %vm10858_vm9, %vm10857_vm7  ;;  %10863 = vst [vmem:[#allocation93_spill] sm:$0xff] %v6798_v18  ;;  %vm10866_vm9 = vcmp.ne.bf16.partialorder %v6507_v54, 0  ;;  %v2086_v16 = vmul.f32 %v5882_v34, %v2021_v44  ;;  %vm6827_vm4 = vcmp.ne.s32.totalorder %v1919_v20, 0 }
 0x248   : > { %vm10865_vm7 = vmpackc.low %vm6618_vm5, %vm6618_vm5  ;;  %v2227_v54 = vadd.f32 %v2179_v15, %v2130_v36  ;;  %vm10879_vm12 = vnez %v10809_v26  ;;  %v6862_v20 = vmul.f32 %v5957_v49, %v2077_v46  ;;  %v2228_v21 = vadd.f32 %v2180_v40, %v2131_v30  ;;  %v10882_v36 = vld [vmem:[#allocation41_spill] sm:$0xff]  ;;  %v10883_v26 = vld [vmem:[#allocation60_spill] sm:$0xff] }
 0x249   : > { %vm6814_vm10 = vmand %vm10866_vm9, %vm10865_vm7  ;;  %vm10872_vm9 = vcmp.ne.bf16.partialorder %v6536_v50, 0  ;;  %v6859_v50 = vmul.f32 %v5905_v39, %v6578_v55  ;;  %v6873_v44 = vmul.f32 %v6335_v6, %v1695_v45  ;;  %v1614_v7 = vunpack.c.l.b16 %v1575_v63 }
 0x24a   : > { %v10868_v51 = vsel %vm6814_vm10, 4294967295, %v10867_v51  ;;  %vm6838_vm15 = vmand %vm10872_vm9, %vm10865_vm7  ;;  %vm10876_vm10 = vcmp.ge.f32.partialorder %v6002_v14, 0.1  ;;  %v1895_v40 = vsel %vm6751_vm2, 65537, %v10687_v23  ;;  %v2276_v46 = vadd.f32 %v6145_v10, %v2227_v54  ;;  %v6939_v54 = vpop.permute.xlu0 %1776 }
 0x24b   : > { %10869 = vst [vmem:[#allocation37_spill] sm:$0xff] %v10868_v51  ;;  %vm6846_vm14 = vmand %vm10876_vm10, %vm10875_vm6  ;;  %vm1160_vm6 = vcmp.ge.f32.partialorder %v10882_v36, 0.1  ;;  %v10886_v30 = vmov 0  ;;  %v10889_v45 = vmov 0  ;;  %v6894_v63 = vmul.f32 %v5905_v39, %v6798_v18 }
 0x24c   : > { %vm6853_vm1 = vmxor %vm10879_vm12, %vm10622_vm11  ;;  %10884 = vst [vmem:[#allocation41_spill] sm:$0xff] %v6873_v44  ;;  %v2015_v6 = vsel %vm6827_vm4, %v10864_v11, 0.0  ;;  %vm10891_vm2 = vcmp.ne.bf16.partialorder %v6599_v4, 0  ;;  %v6909_v15 = vmul.f32 %v5957_v49, %v2086_v16  ;;  %v10894_v4 = vld [vmem:[#allocation46_spill] sm:$0xff]  ;;  %vm10898_vm10 = vcmp.eq.s32.totalorder %v5702_v57, %v10830_v12 }
 0x24d   : > { %vm1408_vm5 = vmpackc.low %vm6846_vm14, %vm6781_vm3  ;;  %vm10885_vm3 = vcmp.ne.bf16.partialorder %v6575_v17, 0  ;;  %v2277_v17 = vadd.f32 %v6145_v10, %v2228_v21  ;;  %v6928_v16 = vld [vmem:[%s5640_s21 + $0x30] sm:$0xff]  ;;  %v10899_v19 = vmov 0  ;;  %v1934_v58 = vunpack.c.l.b16 %v1895_v40 }
 0x24e   : > { %vm6881_vm14 = vmand %vm10885_vm3, %vm1408_vm5  ;;  %v2080_v18 = vmul.f32 %v5882_v34, %v2015_v6  ;;  %v6948_v55 = vmul.f32 %v5905_v39, %v6873_v44  ;;  %v10903_v40 = vmov 0  ;;  %v10907_v6 = vmov 0 }
 0x24f   : > { %v10887_v30 = vsel %vm6881_vm14, 4294967295, %v10886_v30  ;;  %vm6888_vm7 = vmxor %vm6638_vm0, %vm10622_vm11  ;;  %v1568_v35 = vsel %vm6881_vm14, 65537, %v10687_v23  ;;  %vm2324_vm0 = vcmp.gt.f32.partialorder %v2276_v46, 0.0  ;;  %v10991_v9 = vmov 0 }
 0x250   : > { %10888 = vst [vmem:[#allocation94_spill] sm:$0xff] %v10887_v30  ;;  %v10890_v45 = vsel %vm6888_vm7, 4294967295, %v10889_v45  ;;  %vm1536_vm9 = vmand %vm10891_vm2, %vm1408_vm5  ;;  %v1603_v8 = vunpack.c.l.b16 %v1568_v35  ;;  %vm10897_vm2 = vnez %v10593_v56  ;;  %v1604_v29 = vunpack.c.h.b16 %v1568_v35  ;;  %v10912_v35 = vld [vmem:[#allocation47_spill] sm:$0xff] }
 0x251   : > { %vm6915_vm4 = vmand %vm1160_vm6, %vm6662_vm8  ;;  %vm2325_vm6 = vcmp.gt.f32.partialorder %v2277_v17, 0.0  ;;  %v1888_v21 = vsel %vm1536_vm9, 65537, %v10687_v23  ;;  %vm10915_vm7 = vcmp.ne.bf16.partialorder %v6697_v2, 0  ;;  %v10925_v2 = vmov 0 }
 0x252   : > { %vm6923_vm3 = vmxor %vm6671_vm13, %vm10622_vm11  ;;  %vm1651_vm9 = vcmp.ne.s32.totalorder %v1603_v8, 0  ;;  %vm10906_vm13 = vcmp.eq.s32.totalorder %v5688_v52, %v6136_v33  ;;  %v1923_v17 = vunpack.c.l.b16 %v1888_v21  ;;  %v10916_v8 = vmov 0 }
 0x253   : > { %v10896_v0 = vsel %vm6923_vm3, 4294967295, %v10895_v0  ;;  %vm6935_vm8 = vmand %vm10898_vm10, %vm10897_vm2  ;;  %vm6950_vm10 = vcmp.ne.s32.totalorder %v1614_v7, 0  ;;  %v1699_v46 = vsel %vm1651_vm9, %v5980_v1, 0.0  ;;  %vm10913_vm3 = vnez %v10849_v47 }
 0x254   : > { %v10900_v19 = vsel %vm6935_vm8, 4294967295, %v10899_v19  ;;  %vm6955_vm5 = vmpackc.low %vm2325_vm6, %vm2324_vm0  ;;  %vm6973_vm6 = vcmp.ne.s32.totalorder %v1604_v29, 0  ;;  %v6995_v44 = vmul.f32 %v6770_v62, %v1699_v46  ;;  %v1924_v12 = vunpack.c.h.b16 %v1888_v21  ;;  %v7016_v21 = vpop.f32.mrb[24].mxu0 }
 0x255   : > { %v10904_v40 = vsel %vm6955_vm5, 4294967295, %v10903_v40  ;;  %vm6965_vm14 = vmand %vm10906_vm13, %vm10897_vm2  ;;  %v1700_v29 = vsel %vm6973_vm6, %v6002_v14, 0.0  ;;  %vm10921_vm13 = vnez %v10856_v13  ;;  %v1710_v13 = vsel %vm6950_vm10, %v5900_v37, 0.0 }
 0x256   : > { %10905 = vst [vmem:[#allocation46_spill] sm:$0xff] %v10904_v40  ;;  %v10908_v6 = vsel %vm6965_vm14, 4294967295, %v10907_v6  ;;  %vm10914_vm14 = vmpackc.low %vm10913_vm3, %vm10913_vm3  ;;  %v10920_v40 = vld [vmem:[#allocation49_spill] sm:$0xff]  ;;  %vm10931_vm9 = vcmp.ne.bf16.partialorder %v6717_v25, 0  ;;  %vm1971_vm6 = vcmp.ne.s32.totalorder %v1923_v17, 0  ;;  %vm1972_vm10 = vcmp.ne.s32.totalorder %v1924_v12, 0 }
 0x257   : > { %vm6987_vm0 = vmand %vm10915_vm7, %vm10914_vm14  ;;  %10919 = vst [vmem:[#allocation95_spill] sm:$0xff] %v6995_v44  ;;  %vm10924_vm14 = vcmp.eq.s32.totalorder %v5708_v59, %v6136_v33  ;;  %v7037_v33 = vmul.f32 %v6770_v62, %v1700_v29  ;;  %v2019_v25 = vsel %vm1971_vm6, %v5980_v1, 0.0  ;;  %v10939_v62 = vmov 0  ;;  %v7061_v17 = vld [vmem:[%s5640_s21 + $0x80] sm:$0xf]  ;;  %v7065_v29 = vpop.permute.xlu0 %1786 }
 0x258   : > { %v10917_v8 = vsel %vm6987_vm0, 4294967295, %v10916_v8  ;;  %vm7001_vm12 = vmxor %vm10921_vm13, %vm10622_vm11  ;;  %10927 = vst [vmem:[#allocation49_spill] sm:$0xff] %v7016_v21  ;;  %vm7021_vm13 = vcmp.ne.s32.totalorder %v1934_v58, 0  ;;  %v7042_v58 = vpop.f32.mrb[25].mxu0  ;;  %v2178_v21 = vmul.f32 %v5957_v49, %v2080_v18  ;;  %v10942_v18 = vld [vmem:[#allocation38_spill] sm:$0xff]  ;;  %v1891_v1 = vsel %vm6838_vm15, 65537, %v10687_v23 }
 0x259   : > { %10918 = vst [vmem:[#allocation47_spill] sm:$0xff] %v10917_v8  ;;  %vm7010_vm7 = vmand %vm10924_vm14, %vm10897_vm2  ;;  %v2020_v12 = vsel %vm1972_vm10, %v6002_v14, 0.0  ;;  %vm10943_vm6 = vcmp.ge.f32.partialorder %v10912_v35, 0.1  ;;  %v7086_v53 = vmul.f32 %v7065_v29, %v1710_v13  ;;  %v2030_v14 = vsel %vm7021_vm13, %v5900_v37, 0.0 }
 0x25a   : > { %v10926_v2 = vsel %vm7010_vm7, 4294967295, %v10925_v2  ;;  %vm10930_vm14 = vmpackc.low %vm10913_vm3, %vm10913_vm3  ;;  %10934 = vst [vmem:[#allocation96_spill] sm:$0xff] %v7037_v33  ;;  %vm10936_vm3 = vnez %v10868_v51  ;;  %v2134_v28 = vmul.f32 %v5905_v39, %v7037_v33  ;;  %vm10948_vm15 = vcmp.ne.bf16.partialorder %v6787_v5, 0 }
 0x25b   : > { %vm7032_vm5 = vmand %vm10931_vm9, %vm10930_vm14  ;;  %10935 = vst [vmem:[#allocation97_spill] sm:$0xff] %v7042_v58  ;;  %v1571_v47 = vsel %vm10936_vm3, 65537, %v10687_v23  ;;  %vm10938_vm14 = vcmp.ne.bf16.partialorder %v6738_v22, 0  ;;  %v2084_v58 = vmul.f32 %v5902_v38, %v2019_v25  ;;  %v2133_v22 = vmul.f32 %v5905_v39, %v6995_v44 }
 0x25c   : > { %vm10937_vm9 = vmpackc.low %vm6915_vm4, %vm6915_vm4  ;;  %10946 = vst [vmem:[#allocation99_spill] sm:$0xff] %v7086_v53  ;;  %v2085_v25 = vmul.f32 %v5961_v60, %v2020_v12  ;;  %vm10951_vm13 = vcmp.eq.s32.totalorder %v5702_v57, %v10883_v26  ;;  %v7119_v5 = vadd.f32 %v6824_v42, %v6774_v61  ;;  %v1608_v11 = vunpack.c.l.b16 %v1571_v47  ;;  %v7132_v12 = vld [vmem:[%s5640_s21 + $0x68] sm:$0xf] }
 0x25d   : > { %vm7056_vm8 = vmand %vm10938_vm14, %vm10937_vm9  ;;  %v2182_v13 = vmul.f32 %v5957_v49, %v2084_v58  ;;  %v7136_v33 = vadd.f32 %v6862_v20, %v6859_v50  ;;  %v1928_v61 = vunpack.c.l.b16 %v1891_v1  ;;  %v1577_v42 = vsel %vm6987_vm0, 65537, %v10687_v23 }
 0x25e   : > { %v10940_v62 = vsel %vm7056_vm8, 4294967295, %v10939_v62  ;;  %vm7078_vm9 = vmand %vm10943_vm6, %vm6853_vm1  ;;  %10954 = vst [vmem:[#allocation100_spill] sm:$0xff] %v7119_v5  ;;  %v7148_v58 = vadd.f32 %v6909_v15, %v6894_v63  ;;  %v2095_v50 = vmul.f32 %v5882_v34, %v2030_v14  ;;  %v1897_v20 = vsel %vm7032_vm5, 65537, %v10687_v23 }
 0x25f   : > { %10941 = vst [vmem:[#allocation98_spill] sm:$0xff] %v10940_v62  ;;  %vm10947_vm1 = vmpackc.low %vm6915_vm4, %vm6915_vm4  ;;  %v2230_v47 = vadd.f32 %v2182_v13, %v2133_v22  ;;  %vm10961_vm4 = vcmp.ge.f32.partialorder %v10920_v40, 0.1  ;;  %v10965_v63 = vmov 0  ;;  %v7170_v15 = vadd.f32 %v2178_v21, %v6948_v55  ;;  %v10968_v22 = vld [vmem:[#allocation50_spill] sm:$0xff] }
 0x260   : > { %vm7101_vm10 = vmand %vm10948_vm15, %vm10947_vm1  ;;  %vm10955_vm1 = vnez %v10890_v45  ;;  %vm10956_vm15 = vcmp.ge.f32.partialorder %v10894_v4, 0.1  ;;  %v2183_v45 = vmul.f32 %v5957_v49, %v2085_v25  ;;  %10959 = vst [vmem:[#allocation101_spill] sm:$0xff] %v7148_v58  ;;  %v7174_v46 = vmul.f32 %v5905_v39, %v7086_v53 }
 0x261   : > { %vm7111_vm6 = vmand %vm10951_vm13, %vm10897_vm2  ;;  %vm10960_vm13 = vnez %v10896_v0  ;;  %10967 = vst [vmem:[#allocation102_spill] sm:$0xff] %v7170_v15  ;;  %v1617_v55 = vunpack.c.l.b16 %v1577_v42  ;;  %v2279_v21 = vadd.f32 %v6145_v10, %v2230_v47  ;;  %v1573_v14 = vsel %vm7056_vm8, 65537, %v10687_v23  ;;  %v7218_v42 = vld [vmem:[%s5632_s20 + $0x3c] sm:$0xff]  ;;  %v11056_v47 = vld [vmem:[#allocation55_spill] sm:$0xff] }
 0x262   : > { %vm7126_vm14 = vmand %vm10956_vm15, %vm10955_vm1  ;;  %vm10964_vm15 = vnez %v10900_v19  ;;  %v2231_v0 = vadd.f32 %v2183_v45, %v2134_v28  ;;  %vm10971_vm0 = vcmp.ne.bf16.partialorder %v6906_v32, 0  ;;  %v10972_v25 = vmov 0  ;;  %v10985_v45 = vld [vmem:[#allocation52_spill] sm:$0xff]  ;;  %v7285_v19 = vpop.permute.xlu1 %1781  ;;  %v7300_v32 = vpop.f32.mrb[26].mxu0 }
 0x263   : > { %vm7158_vm7 = vmand %vm10961_vm4, %vm10960_vm13  ;;  %v10975_v28 = vmov 0  ;;  %vm7203_vm13 = vcmp.ne.s32.totalorder %v1928_v61, 0  ;;  %v1937_v13 = vunpack.c.l.b16 %v1897_v20  ;;  %vm10979_vm4 = vcmp.ne.bf16.partialorder %v6928_v16, 0  ;;  %v10986_v20 = vld [vmem:[#allocation53_spill] sm:$0xff]  ;;  %11006 = vst [vmem:[#allocation52_spill] sm:$0xff] %v7300_v32 }
 0x264   : > { %vm7165_vm1 = vmxor %vm10964_vm15, %vm10622_vm11  ;;  %vm7182_vm15 = vcmp.ne.s32.totalorder %v1608_v11, 0  ;;  %v2280_v7 = vadd.f32 %v6145_v10, %v2231_v0  ;;  %v7221_v61 = vmul.f32 %v5957_v49, %v2095_v50  ;;  %vm10982_vm8 = vcmp.ge.f32.partialorder %v10968_v22, 0.1  ;;  %v7241_v50 = vld [vmem:[%s5640_s21 + $0x3c] sm:$0xff] }
 0x265   : > { %v10966_v63 = vsel %vm7165_vm1, 4294967295, %v10965_v63  ;;  %vm1410_vm5 = vmpackc.low %vm7158_vm7, %vm7126_vm14  ;;  %vm10974_vm7 = vnez %v10908_v6  ;;  %v1611_v1 = vunpack.c.l.b16 %v1573_v14  ;;  %v2024_v8 = vsel %vm7203_vm13, %v5954_v48, 0.0 }
 0x266   : > { %vm7192_vm3 = vmand %vm10971_vm0, %vm1410_vm5  ;;  %v10995_v14 = vmov 0  ;;  %vm10998_vm13 = vcmp.eq.s32.totalorder %v5688_v52, %v10942_v18 }
 0x267   : > { %v10973_v25 = vsel %vm7192_vm3, 4294967295, %v10972_v25  ;;  %vm7199_vm14 = vmxor %vm10974_vm7, %vm10622_vm11  ;;  %v1570_v6 = vsel %vm7192_vm3, 65537, %v10687_v23  ;;  %vm2327_vm7 = vcmp.gt.f32.partialorder %v2279_v21, 0.0  ;;  %vm10987_vm3 = vnez %v10926_v2  ;;  %v7336_v21 = vpop.f32.mrb[27].mxu0 }
 0x268   : > { %v10976_v28 = vsel %vm7199_vm14, 4294967295, %v10975_v28  ;;  %vm7210_vm0 = vmand %vm10979_vm4, %vm1410_vm5  ;;  %vm2328_vm5 = vcmp.gt.f32.partialorder %v2280_v7, 0.0  ;;  %v1606_v0 = vunpack.c.l.b16 %v1570_v6  ;;  %v1607_v53 = vunpack.c.h.b16 %v1570_v6  ;;  %11017 = vst [vmem:[#allocation103_spill] sm:$0xff] %v7336_v21  ;;  %v7360_v21 = vld [vmem:[%s5632_s20 + $0x8c] sm:$0xf] }
 0x269   : > { %vm7227_vm14 = vmand %vm10982_vm8, %vm7001_vm12  ;;  %vm10990_vm12 = vcmp.eq.s32.totalorder %v5702_v57, %v6488_v31  ;;  %v1704_v2 = vsel %vm7182_vm15, %v5954_v48, 0.0  ;;  %v1890_v6 = vsel %vm7210_vm0, 65537, %v10687_v23  ;;  %v7381_v7 = vld [vmem:[%s5640_s21 + $0x8c] sm:$0xf] }
 0x26a   : > { %vm7236_vm1 = vmxor %vm10987_vm3, %vm10622_vm11  ;;  %vm7295_vm4 = vcmp.ne.s32.totalorder %v1606_v0, 0  ;;  %vm1655_vm3 = vcmp.ne.s32.totalorder %v1607_v53, 0  ;;  %v1926_v11 = vunpack.c.l.b16 %v1890_v6  ;;  %v11009_v0 = vmov 0 }
 0x26b   : > { %vm7248_vm8 = vmand %vm10990_vm12, %vm10897_vm2  ;;  %vm7263_vm12 = vcmp.ne.s32.totalorder %v1617_v55, 0  ;;  %v1702_v53 = vsel %vm7295_vm4, %v10894_v4, 0.0  ;;  %v1703_v31 = vsel %vm1655_vm3, %v10920_v40, 0.0  ;;  %v1927_v44 = vunpack.c.h.b16 %v1890_v6  ;;  %v11040_v6 = vld [vmem:[#allocation54_spill] sm:$0xff] }
 0x26c   : > { %v10992_v9 = vsel %vm7248_vm8, 4294967295, %v10991_v9  ;;  %vm7268_vm8 = vmpackc.low %vm2328_vm5, %vm2327_vm7  ;;  %vm7287_vm7 = vcmp.ne.s32.totalorder %v1937_v13, 0  ;;  %v1893_v13 = vsel %vm7101_vm10, 65537, %v10687_v23  ;;  %vm7338_vm4 = vcmp.ne.s32.totalorder %v1611_v1, 0 }
 0x26d   : > { %v10996_v14 = vsel %vm7268_vm8, 4294967295, %v10995_v14  ;;  %vm7281_vm15 = vmand %vm10998_vm13, %vm10897_vm2  ;;  %vm11008_vm8 = vcmp.ne.bf16.partialorder %v7040_v41, 0  ;;  %v11015_v41 = vmov 0  ;;  %vm11021_vm3 = vcmp.ne.bf16.partialorder %v7061_v17, 0 }
 0x26e   : > { %10997 = vst [vmem:[#allocation50_spill] sm:$0xff] %v10996_v14  ;;  %vm11007_vm5 = vmpackc.low %vm7078_vm9, %vm7078_vm9  ;;  %v7357_v1 = vmul.f32 %v6939_v54, %v1703_v31  ;;  %v1713_v51 = vsel %vm7263_vm12, %v5982_v3, 0.0  ;;  %v2033_v17 = vsel %vm7287_vm7, %v5982_v3, 0.0  ;;  %v11028_v31 = vmov 0 }
 0x26f   : > { %vm7312_vm0 = vmand %vm11008_vm8, %vm11007_vm5  ;;  %vm11014_vm8 = vcmp.eq.s32.totalorder %v5708_v59, %v10942_v18  ;;  %v7354_v18 = vmul.f32 %v6939_v54, %v1702_v53  ;;  %v1931_v3 = vunpack.c.l.b16 %v1893_v13  ;;  %vm11032_vm7 = vnez %v10966_v63 }
 0x270   : > { %v11010_v0 = vsel %vm7312_vm0, 4294967295, %v11009_v0  ;;  %vm7323_vm10 = vmxor %vm7111_vm6, %vm10622_vm11  ;;  %11025 = vst [vmem:[#allocation105_spill] sm:$0xff] %v7357_v1  ;;  %v2137_v13 = vmul.f32 %v5905_v39, %v7357_v1  ;;  %v2089_v1 = vmul.f32 %v5882_v34, %v2024_v8  ;;  %v1583_v16 = vsel %vm7312_vm0, 65537, %v10687_v23 }
 0x271   : > { %11011 = vst [vmem:[#allocation53_spill] sm:$0xff] %v11010_v0  ;;  %vm7332_vm5 = vmand %vm11014_vm8, %vm10897_vm2  ;;  %vm1974_vm8 = vcmp.ne.s32.totalorder %v1926_v11, 0  ;;  %v11031_v11 = vld [vmem:[#allocation45_spill] sm:$0xff]  ;;  %v2136_v53 = vmul.f32 %v5905_v39, %v7354_v18  ;;  %v7455_v0 = vadd.f32 %v7221_v61, %v7174_v46  ;;  %v11054_v46 = vmov 0 }
 0x272   : > { %v11016_v41 = vsel %vm7332_vm5, 4294967295, %v11015_v41  ;;  %vm11020_vm6 = vmpackc.low %vm7078_vm9, %vm7078_vm9  ;;  %11024 = vst [vmem:[#allocation104_spill] sm:$0xff] %v7354_v18  ;;  %vm1975_vm9 = vcmp.ne.s32.totalorder %v1927_v44, 0  ;;  %v2022_v32 = vsel %vm1974_vm8, %v10894_v4, 0.0  ;;  %vm11033_vm8 = vcmp.ge.f32.partialorder %v10986_v20, 0.1  ;;  %v7419_v18 = vpop.permute.xlu1 %1791 }
 0x273   : > { %vm7349_vm13 = vmand %vm11021_vm3, %vm11020_vm6  ;;  %vm11027_vm3 = vcmp.ne.bf16.partialorder %v7083_v43, 0  ;;  %v2023_v55 = vsel %vm1975_vm9, %v10920_v40, 0.0  ;;  %v2087_v4 = vmul.f32 %v5902_v38, %v2022_v32  ;;  %v7398_v44 = vld [vmem:[%s5632_s20 + $0x74] sm:$0xf]  ;;  %v1707_v40 = vsel %vm7338_vm4, %v10882_v36, 0.0  ;;  %11047 = vst [vmem:[#allocation108_spill] sm:$0xff] %v7455_v0 }
 0x274   : > { %vm11026_vm6 = vmpackc.low %vm7227_vm14, %vm7227_vm14  ;;  %v2088_v32 = vmul.f32 %v5961_v60, %v2023_v55  ;;  %vm1159_vm4 = vcmp.ge.f32.partialorder %v11040_v6, 0.1  ;;  %v7422_v55 = vmul.f32 %v6939_v54, %v1704_v2  ;;  %v7439_v54 = vld [vmem:[%s5640_s21 + $0x74] sm:$0xf]  ;;  %v7442_v8 = vmul.f32 %v7419_v18, %v1713_v51  ;;  %v11064_v0 = vld [vmem:[#allocation61_spill] sm:$0xff] }
 0x275   : > { %vm7376_vm5 = vmand %vm11027_vm3, %vm11026_vm6  ;;  %vm11037_vm3 = vcmp.ne.bf16.partialorder %v7132_v12, 0  ;;  %v2185_v12 = vmul.f32 %v5957_v49, %v2087_v4  ;;  %v2098_v2 = vmul.f32 %v5882_v34, %v2033_v17  ;;  %v1903_v4 = vsel %vm7349_vm13, 65537, %v10687_v23  ;;  %v11073_v17 = vld [vmem:[#allocation63_spill] sm:$0xff] }
 0x276   : > { %v11029_v31 = vsel %vm7376_vm5, 4294967295, %v11028_v31  ;;  %vm7393_vm6 = vmand %vm11033_vm8, %vm11032_vm7  ;;  %11041 = vst [vmem:[#allocation54_spill] sm:$0xff] %v7422_v55  ;;  %v7458_v51 = vmul.f32 %v7285_v19, %v1707_v40  ;;  %vm7460_vm8 = vcmp.ne.s32.totalorder %v1931_v3, 0  ;;  %v1626_v61 = vunpack.c.l.b16 %v1583_v16 }
 0x277   : > { %11030 = vst [vmem:[#allocation106_spill] sm:$0xff] %v11029_v31  ;;  %vm11036_vm9 = vmpackc.low %vm7227_vm14, %vm7227_vm14  ;;  %vm11042_vm14 = vnez %v10976_v28  ;;  %v2186_v28 = vmul.f32 %v5957_v49, %v2088_v32  ;;  %v2233_v37 = vadd.f32 %v2185_v12, %v2136_v53  ;;  %v11057_v53 = vld [vmem:[#allocation62_spill] sm:$0xff]  ;;  %v7497_v40 = vmul.f32 %v5905_v39, %v7422_v55 }
 0x278   : > { %vm7413_vm7 = vmand %vm11037_vm3, %vm11036_vm9  ;;  %vm11043_vm9 = vcmp.ge.f32.partialorder %v10985_v45, 0.1  ;;  %11046 = vst [vmem:[#allocation107_spill] sm:$0xff] %v7442_v8  ;;  %v1946_v16 = vunpack.c.l.b16 %v1903_v4  ;;  %v7524_v4 = vmul.f32 %v5905_v39, %v7442_v8  ;;  %v7545_v8 = vld [vmem:[%s5632_s20 + $0x48] sm:$0xff]  ;;  %v1579_v58 = vsel %vm7376_vm5, 65537, %v10687_v23 }
 0x279   : > { %vm7433_vm3 = vmand %vm11043_vm9, %vm11042_vm14  ;;  %11048 = vst [vmem:[#allocation109_spill] sm:$0xff] %v7458_v51  ;;  %vm11053_vm9 = vnez %v10992_v9  ;;  %v2234_v3 = vadd.f32 %v2186_v28, %v2137_v13  ;;  %v7500_v13 = vmul.f32 %v5957_v49, %v2089_v1  ;;  %v2282_v12 = vadd.f32 %v6145_v10, %v2233_v37 }
 0x27a   : > { %vm7468_vm13 = vmand %vm1159_vm4, %vm7236_vm1  ;;  %v11062_v28 = vmov 0  ;;  %v2027_v37 = vsel %vm7460_vm8, %v10882_v36, 0.0  ;;  %v7551_v36 = vmul.f32 %v5905_v39, %v7458_v51  ;;  %v11075_v32 = vmov 0  ;;  %v7578_v51 = vpop.permute.xlu0 %1796 }
 0x27b   : > { %vm7475_vm14 = vmxor %vm11053_vm9, %vm10622_vm11  ;;  %vm11058_vm9 = vcmp.eq.s32.totalorder %v5702_v57, %v6492_v24  ;;  %v2283_v55 = vadd.f32 %v6145_v10, %v2234_v3  ;;  %v7576_v3 = vld [vmem:[%s5640_s21 + $0x48] sm:$0xff]  ;;  %vm7580_vm8 = vcmp.ne.s32.totalorder %v1626_v61, 0  ;;  %v1899_v31 = vsel %vm7413_vm7, 65537, %v10687_v23 }
 0x27c   : > { %v11055_v46 = vsel %vm7475_vm14, 4294967295, %v11054_v46  ;;  %vm1412_vm12 = vmpackc.low %vm7468_vm13, %vm7433_vm3  ;;  %v2092_v61 = vmul.f32 %v5882_v34, %v2027_v37  ;;  %vm7596_vm13 = vcmp.ne.s32.totalorder %v1946_v16, 0  ;;  %vm11081_vm5 = vcmp.gt.f32.partialorder %v2282_v12, 0.0  ;;  %v7618_v12 = vpop.f32.mrb[28].mxu0 }
 0x27d   : > { %vm7491_vm14 = vmand %vm11058_vm9, %vm10897_vm2  ;;  %vm11061_vm9 = vcmp.ne.bf16.partialorder %v7218_v42, 0  ;;  %v7527_v42 = vmul.f32 %v5957_v49, %v2098_v2  ;;  %v11082_v63 = vmov 0  ;;  %v11085_v16 = vmov 0  ;;  %v7625_v5 = vpop.f32.mrb[29].mxu0 }
 0x27e   : > { %vm7510_vm1 = vmand %vm11061_vm9, %vm1412_vm12  ;;  %v1620_v37 = vunpack.c.l.b16 %v1579_v58  ;;  %11088 = vst [vmem:[#allocation55_spill] sm:$0xff] %v7625_v5  ;;  %v1722_v26 = vsel %vm7580_vm8, %v10912_v35, 0.0  ;;  %v1940_v15 = vunpack.c.l.b16 %v1899_v31  ;;  %v7644_v58 = vld [vmem:[%s5640_s21 + $0xb0] sm:$0xf]  ;;  %v7680_v14 = vpop.permute.xlu0 %1806  ;;  %v11143_v9 = vmov 0 }
 0x27f   : > { %v11063_v28 = vsel %vm7510_vm1, 4294967295, %v11062_v28  ;;  %vm7518_vm0 = vmxor %vm7281_vm15, %vm10622_vm11  ;;  %vm11067_vm15 = vcmp.ne.bf16.partialorder %v7241_v50, 0  ;;  %v1572_v50 = vsel %vm7510_vm1, 65537, %v10687_v23 }
 0x280   : > { %vm7540_vm9 = vmand %vm11067_vm15, %vm1412_vm12  ;;  %vm11070_vm12 = vcmp.ge.f32.partialorder %v11056_v47, 0.1  ;;  %vm11074_vm15 = vnez %v11016_v41  ;;  %v1609_v24 = vunpack.c.l.b16 %v1572_v50  ;;  %v7591_v41 = vld [vmem:[%s5632_s20 + $0xb0] sm:$0xf] }
 0x281   : > { %vm7563_vm3 = vmand %vm11070_vm12, %vm7323_vm10  ;;  %vm2331_vm10 = vcmp.gt.f32.partialorder %v2283_v55, 0.0  ;;  %v1610_v55 = vunpack.c.h.b16 %v1572_v50  ;;  %v1892_v30 = vsel %vm7540_vm9, 65537, %v10687_v23 }
 0x282   : > { %vm7571_vm4 = vmxor %vm11074_vm15, %vm10622_vm11  ;;  %vm11084_vm15 = vcmp.eq.s32.totalorder %v5688_v52, %v11031_v11  ;;  %vm1657_vm9 = vcmp.ne.s32.totalorder %v1609_v24, 0  ;;  %v1929_v48 = vunpack.c.l.b16 %v1892_v30  ;;  %v1930_v50 = vunpack.c.h.b16 %v1892_v30 }
 0x283   : > { %v11076_v32 = vsel %vm7571_vm4, 4294967295, %v11075_v32  ;;  %vm7601_vm1 = vmpackc.low %vm2331_vm10, %vm11081_vm5  ;;  %vm11090_vm10 = vcmp.ne.bf16.partialorder %v7360_v21, 0  ;;  %v11091_v24 = vmov 0  ;;  %vm1658_vm5 = vcmp.ne.s32.totalorder %v1610_v55, 0 }
 0x284   : > { %v11083_v63 = vsel %vm7601_vm1, 4294967295, %v11082_v63  ;;  %vm7614_vm12 = vmand %vm11084_vm15, %vm10897_vm2  ;;  %v1705_v30 = vsel %vm1657_vm9, %v10985_v45, 0.0  ;;  %v1706_v31 = vsel %vm1658_vm5, %v11040_v6, 0.0  ;;  %vm1978_vm9 = vcmp.ne.s32.totalorder %v1930_v50, 0 }
 0x285   : > { %v11086_v16 = vsel %vm7614_vm12, 4294967295, %v11085_v16  ;;  %vm11089_vm15 = vmpackc.low %vm7393_vm6, %vm7393_vm6  ;;  %vm11095_vm12 = vcmp.ne.bf16.partialorder %v7381_v7, 0  ;;  %v7659_v62 = vmul.f32 %v7285_v19, %v1705_v30  ;;  %v2042_v55 = vsel %vm7596_vm13, %v10912_v35, 0.0  ;;  %v11145_v35 = vld [vmem:[#allocation65_spill] sm:$0xff] }
 0x286   : > { %vm7637_vm1 = vmand %vm11090_vm10, %vm11089_vm15  ;;  %vm1977_vm10 = vcmp.ne.s32.totalorder %v1929_v48, 0  ;;  %v7665_v43 = vmul.f32 %v7285_v19, %v1706_v31  ;;  %v2026_v5 = vsel %vm1978_vm9, %v11040_v6, 0.0  ;;  %v11102_v48 = vmov 0  ;;  %v11123_v31 = vld [vmem:[#allocation92_spill] sm:$0xff] }
 0x287   : > { %v11092_v24 = vsel %vm7637_vm1, 4294967295, %v11091_v24  ;;  %vm11094_vm8 = vmmov %vm11089_vm15  ;;  %11098 = vst [vmem:[#allocation61_spill] sm:$0xff] %v7659_v62  ;;  %v2025_v7 = vsel %vm1977_vm10, %v10985_v45, 0.0  ;;  %vm7682_vm13 = vcmp.ne.s32.totalorder %v1620_v37, 0  ;;  %v2091_v19 = vmul.f32 %v5961_v60, %v2026_v5 }
 0x288   : > { %11093 = vst [vmem:[#allocation62_spill] sm:$0xff] %v11092_v24  ;;  %vm7653_vm4 = vmand %vm11095_vm12, %vm11094_vm8  ;;  %vm11101_vm12 = vcmp.ne.bf16.partialorder %v7398_v44, 0  ;;  %v2090_v45 = vmul.f32 %v5902_v38, %v2025_v7  ;;  %v2139_v6 = vmul.f32 %v5905_v39, %v7659_v62  ;;  %vm11107_vm15 = vnez %v11055_v46 }
 0x289   : > { %11099 = vst [vmem:[#allocation63_spill] sm:$0xff] %v7665_v43  ;;  %vm11100_vm6 = vmpackc.low %vm7563_vm3, %vm7563_vm3  ;;  %vm11108_vm8 = vcmp.ge.f32.partialorder %v11057_v53, 0.1  ;;  %v2190_v37 = vmul.f32 %v5957_v49, %v2092_v61  ;;  %v7701_v50 = vmul.f32 %v7680_v14, %v1722_v26  ;;  %v2140_v46 = vmul.f32 %v5905_v39, %v7665_v43  ;;  %v7938_v26 = vld [vmem:[%s5640_s21 + $0x98] sm:$0xf] }
 0x28a   : > { %vm7676_vm5 = vmand %vm11101_vm12, %vm11100_vm6  ;;  %vm7703_vm6 = vcmp.ne.s32.totalorder %v1940_v15, 0  ;;  %v7729_v15 = vadd.f32 %v7500_v13, %v7497_v40  ;;  %v1585_v2 = vsel %vm7637_vm1, 65537, %v10687_v23  ;;  %v2189_v61 = vmul.f32 %v5957_v49, %v2091_v19  ;;  %v7782_v19 = vld [vmem:[%s5632_s20 + $0x98] sm:$0xf] }
 0x28b   : > { %v11103_v48 = vsel %vm7676_vm5, 4294967295, %v11102_v48  ;;  %vm7694_vm10 = vmand %vm11108_vm8, %vm11107_vm15  ;;  %11111 = vst [vmem:[#allocation111_spill] sm:$0xff] %v7701_v50  ;;  %vm11115_vm15 = vcmp.ne.bf16.partialorder %v7439_v54, 0  ;;  %v2188_v54 = vmul.f32 %v5957_v49, %v2090_v45  ;;  %v7748_v40 = vadd.f32 %v7527_v42, %v7524_v4  ;;  %v11132_v45 = vld [vmem:[#allocation64_spill] sm:$0xff] }
 0x28c   : > { %11104 = vst [vmem:[#allocation110_spill] sm:$0xff] %v11103_v48  ;;  %vm11114_vm12 = vmpackc.low %vm7563_vm3, %vm7563_vm3  ;;  %v2107_v13 = vmul.f32 %v5882_v34, %v2042_v55  ;;  %v1716_v7 = vsel %vm7682_vm13, %v10968_v22, 0.0  ;;  %v1905_v1 = vsel %vm7653_vm4, 65537, %v10687_v23  ;;  %v2036_v42 = vsel %vm7703_vm6, %v10968_v22, 0.0  ;;  %v7886_v48 = vpop.permute.xlu1 %1801 }
 0x28d   : > { %vm7716_vm8 = vmand %vm11115_vm15, %vm11114_vm12  ;;  %11124 = vst [vmem:[#allocation112_spill] sm:$0xff] %v7748_v40  ;;  %vm11125_vm15 = vcmp.eq.s32.totalorder %v5708_v59, %v11031_v11  ;;  %v2236_v55 = vadd.f32 %v2188_v54, %v2139_v6  ;;  %v2237_v21 = vadd.f32 %v2189_v61, %v2140_v46  ;;  %vm11128_vm4 = vnez %v11076_v32 }
 0x28e   : > { %vm7723_vm9 = vmxor %vm7491_vm14, %vm10622_vm11  ;;  %vm11120_vm14 = vcmp.ge.f32.partialorder %v11064_v0, 0.1  ;;  %vm11129_vm13 = vcmp.ge.f32.partialorder %v11073_v17, 0.1  ;;  %v7785_v11 = vadd.f32 %v2190_v37, %v7551_v36  ;;  %v7789_v22 = vmul.f32 %v5905_v39, %v7701_v50  ;;  %v11136_v36 = vld [vmem:[#allocation39_spill] sm:$0xff] }
 0x28f   : > { %vm7740_vm3 = vmand %vm11120_vm14, %vm7518_vm0  ;;  %v1629_v6 = vunpack.c.l.b16 %v1585_v2  ;;  %v11134_v32 = vmov 0  ;;  %v11138_v37 = vld [vmem:[#allocation67_spill] sm:$0xff]  ;;  %v7813_v46 = vmul.f32 %v7578_v51, %v1716_v7  ;;  %v1949_v2 = vunpack.c.l.b16 %v1905_v1 }
 0x290   : > { %vm7765_vm14 = vmand %vm11125_vm15, %vm10897_vm2  ;;  %vm11133_vm15 = vcmp.eq.s32.totalorder %v5702_v57, %v6791_v27  ;;  %vm11139_vm7 = vnez %v11138_v37  ;;  %v2285_v54 = vadd.f32 %v6145_v10, %v2236_v55  ;;  %v2286_v61 = vadd.f32 %v6145_v10, %v2237_v21  ;;  %v11158_v37 = vld [vmem:[#allocation68_spill] sm:$0xff]  ;;  %v7869_v50 = vld [vmem:[%s5640_s21 + $0x54] sm:$0xff]  ;;  %v7978_v4 = vpop.permute.xlu1 %1811 }
 0x291   : > { %vm7776_vm12 = vmand %vm11129_vm13, %vm11128_vm4  ;;  %vm11137_vm13 = vnez %v11136_v36  ;;  %11141 = vst [vmem:[#allocation64_spill] sm:$0xff] %v7813_v46  ;;  %v11147_v7 = vmov 0  ;;  %v7832_v1 = vmul.f32 %v5957_v49, %v2107_v13  ;;  %v2101_v55 = vmul.f32 %v5882_v34, %v2036_v42  ;;  %v7849_v13 = vld [vmem:[%s5632_s20 + $0x54] sm:$0xff]  ;;  %v7851_v36 = vpop.f32.mrb[30].mxu0 }
 0x292   : > { %vm1414_vm6 = vmpackc.low %vm7776_vm12, %vm7740_vm3  ;;  %vm11142_vm3 = vcmp.ne.bf16.partialorder %v7545_v8, 0  ;;  %v1581_v8 = vsel %vm7676_vm5, 65537, %v10687_v23  ;;  %11152 = vst [vmem:[#allocation39_spill] sm:$0xff] %v7851_v36  ;;  %vm2334_vm1 = vcmp.gt.f32.partialorder %v2286_v61, 0.0  ;;  %v11155_v42 = vmov 0  ;;  %v7875_v30 = vpop.f32.mrb[31].mxu0 }
 0x293   : > { %vm7800_vm4 = vmand %vm11133_vm15, %vm10897_vm2  ;;  %vm2333_vm15 = vcmp.gt.f32.partialorder %v2285_v54, 0.0  ;;  %v7873_v54 = vadd.f32 %v6145_v10, %v7136_v33  ;;  %11159 = vst [vmem:[#allocation65_spill] sm:$0xff] %v7875_v30  ;;  %v2150_v33 = vmul.f32 %v5905_v39, %v7813_v46  ;;  %v2199_v24 = vmul.f32 %v5957_v49, %v2101_v55  ;;  %v11196_v61 = vld [vmem:[#allocation69_spill] sm:$0xff] }
 0x294   : > { %v11135_v32 = vsel %vm7800_vm4, 4294967295, %v11134_v32  ;;  %vm11140_vm0 = vmand %vm11137_vm13, %vm11139_vm7  ;;  %vm11146_vm7 = vnez %v11086_v16  ;;  %vm11149_vm13 = vcmp.ne.bf16.partialorder %v7576_v3, 0  ;;  %v1901_v3 = vsel %vm7716_vm8, 65537, %v10687_v23 }
 0x295   : > { %v7810_v5 = vsel %vm11140_vm0, 65537, %v10687_v23  ;;  %vm7819_vm12 = vmand %vm11142_vm3, %vm1414_vm6  ;;  %vm7877_vm8 = vcmp.ne.s32.totalorder %v1629_v6, 0  ;;  %v1623_v6 = vunpack.c.l.b16 %v1581_v8  ;;  %v1943_v46 = vunpack.c.l.b16 %v1901_v3 }
 0x296   : > { %v11144_v9 = vsel %vm7819_vm12, 4294967295, %v11143_v9  ;;  %vm7827_vm0 = vmxor %vm11146_vm7, %vm10622_vm11  ;;  %v1574_v16 = vsel %vm7819_vm12, 65537, %v10687_v23  ;;  %v2463_v30 = vunpack.c.h.b16 %v7810_v5  ;;  %v11198_v40 = vmov 0 }
 0x297   : > { %v11148_v7 = vsel %vm7827_vm0, 4294967295, %v11147_v7  ;;  %vm7840_vm3 = vmand %vm11149_vm13, %vm1414_vm6  ;;  %vm11154_vm13 = vcmp.ne.bf16.partialorder %v7591_v41, 0  ;;  %v11162_v41 = vmov 0  ;;  %v1612_v43 = vunpack.c.l.b16 %v1574_v16 }
 0x298   : > { %vm11153_vm6 = vmpackc.low %vm7694_vm10, %vm7694_vm10  ;;  %v1613_v62 = vunpack.c.h.b16 %v1574_v16  ;;  %v1894_v16 = vsel %vm7840_vm3, 65537, %v10687_v23  ;;  %vm11168_vm0 = vcmp.ne.bf16.partialorder %v7644_v58, 0 }
 0x299   : > { %vm7863_vm5 = vmand %vm11154_vm13, %vm11153_vm6  ;;  %vm7890_vm6 = vcmp.ne.s32.totalorder %v1949_v2, 0  ;;  %v1932_v21 = vunpack.c.l.b16 %v1894_v16  ;;  %v1933_v3 = vunpack.c.h.b16 %v1894_v16 }
 0x29a   : > { %v11156_v42 = vsel %vm7863_vm5, 4294967295, %v11155_v42  ;;  %vm7881_vm12 = vmpackc.low %vm2334_vm1, %vm2333_vm15  ;;  %vm1660_vm15 = vcmp.ne.s32.totalorder %v1612_v43, 0  ;;  %v2045_v43 = vsel %vm7890_vm6, %v10986_v20, 0.0 }
 0x29b   : > { %11157 = vst [vmem:[#allocation67_spill] sm:$0xff] %v11156_v42  ;;  %v11163_v41 = vsel %vm7881_vm12, 4294967295, %v11162_v41  ;;  %vm11167_vm7 = vmpackc.low %vm7694_vm10, %vm7694_vm10  ;;  %vm1661_vm12 = vcmp.ne.s32.totalorder %v1613_v62, 0  ;;  %v1708_v8 = vsel %vm1660_vm15, %v11064_v0, 0.0  ;;  %vm11171_vm10 = vcmp.ge.f32.partialorder %v11132_v45, 0.1 }
 0x29c   : > { %vm7910_vm4 = vmand %vm11168_vm0, %vm11167_vm7  ;;  %v1709_v55 = vsel %vm1661_vm12, %v11073_v17, 0.0  ;;  %v1725_v62 = vsel %vm7877_vm8, %v10986_v20, 0.0  ;;  %v7932_v44 = vmul.f32 %v7065_v29, %v1708_v8  ;;  %vm7949_vm0 = vcmp.ne.s32.totalorder %v1623_v6, 0  ;;  %v7964_v8 = vld [vmem:[%s5632_s20 + $0xa4] sm:$0xf]  ;;  %v11208_v20 = vld [vmem:[#allocation58_spill] sm:$0xff] }
 0x29d   : > { %vm7921_vm13 = vmand %vm11171_vm10, %vm7723_vm9  ;;  %v7935_v16 = vmul.f32 %v7065_v29, %v1709_v55  ;;  %vm11176_vm9 = vcmp.eq.s32.totalorder %v5702_v57, %v11123_v31  ;;  %v1591_v29 = vsel %vm7863_vm5, 65537, %v10687_v23  ;;  %vm1980_vm7 = vcmp.ne.s32.totalorder %v1932_v21, 0 }
 0x29e   : > { %11174 = vst [vmem:[#allocation68_spill] sm:$0xff] %v7932_v44  ;;  %vm7945_vm12 = vmand %vm11176_vm9, %vm10897_vm2  ;;  %vm1981_vm8 = vcmp.ne.s32.totalorder %v1933_v3, 0  ;;  %vm7966_vm15 = vcmp.ne.s32.totalorder %v1943_v46, 0  ;;  %v1911_v55 = vsel %vm7910_vm4, 65537, %v10687_v23  ;;  %v2028_v21 = vsel %vm1980_vm7, %v11064_v0, 0.0  ;;  %v11185_v0 = vld [vmem:[#allocation66_spill] sm:$0xff] }
 0x29f   : > { %11175 = vst [vmem:[#allocation113_spill] sm:$0xff] %v7935_v16  ;;  %vm7959_vm6 = vmxor %vm7765_vm14, %vm10622_vm11  ;;  %v2029_v3 = vsel %vm1981_vm8, %v11073_v17, 0.0  ;;  %v2093_v57 = vmul.f32 %v5902_v38, %v2028_v21  ;;  %v2142_v42 = vmul.f32 %v5905_v39, %v7932_v44  ;;  %v2143_v2 = vmul.f32 %v5905_v39, %v7935_v16  ;;  %v8083_v44 = vpop.permute.xlu0 %1816 }
 0x2a0   : > { %vm10426_vm14 = vmpackc.low %vm7921_vm13, %vm7921_vm13  ;;  %v2094_v46 = vmul.f32 %v5961_v60, %v2029_v3  ;;  %vm11186_vm9 = vnez %v11135_v32  ;;  %v8003_v3 = vld [vmem:[%s5640_s21 + $0xa4] sm:$0xf]  ;;  %v8006_v16 = vmul.f32 %v7978_v4, %v1725_v62  ;;  %v1719_v32 = vsel %vm7949_vm0, %v11056_v47, 0.0 }
 0x2a1   : > { %vm7991_vm7 = vmxor %vm11186_vm9, %vm10622_vm11  ;;  %vm11192_vm9 = vnez %v11148_v7  ;;  %vm11193_vm10 = vcmp.ge.f32.partialorder %v11145_v35, 0.1  ;;  %v2039_v62 = vsel %vm7966_vm15, %v11056_v47, 0.0  ;;  %v1638_v36 = vunpack.c.l.b16 %v1591_v29 }
 0x2a2   : > { %vm7998_vm8 = vmxor %vm7945_vm12, %vm10622_vm11  ;;  %11191 = vst [vmem:[#allocation66_spill] sm:$0xff] %v8006_v16  ;;  %v2191_v27 = vmul.f32 %v5957_v49, %v2093_v57  ;;  %v2192_v7 = vmul.f32 %v5957_v49, %v2094_v46  ;;  %vm11197_vm0 = vcmp.ne.bf16.partialorder %v7782_v19, 0  ;;  %v8040_v6 = vadd.f32 %v7832_v1, %v7789_v22 }
 0x2a3   : > { %vm8015_vm4 = vmand %vm11193_vm10, %vm11192_vm9  ;;  %v2110_v47 = vmul.f32 %v5882_v34, %v2045_v43  ;;  %v1958_v57 = vunpack.c.l.b16 %v1911_v55  ;;  %vm11201_vm15 = vcmp.ge.f32.partialorder %v11158_v37, 0.1  ;;  %v8053_v19 = vadd.f32 %v2199_v24, %v2150_v33 }
 0x2a4   : > { %vm8034_vm10 = vmand %vm11197_vm0, %vm10426_vm14  ;;  %v2239_v46 = vadd.f32 %v2191_v27, %v2142_v42  ;;  %v2240_v22 = vadd.f32 %v2192_v7, %v2143_v2  ;;  %v11204_v1 = vunpack.c.l.b16 %v7810_v5  ;;  %v11205_v43 = vmov 0 }
 0x2a5   : > { %v11199_v40 = vsel %vm8034_vm10, 4294967295, %v11198_v40  ;;  %vm8047_vm9 = vmand %vm11201_vm15, %vm7959_vm6  ;;  %v2159_v24 = vmul.f32 %v5905_v39, %v8006_v16  ;;  %v8070_v27 = vmul.f32 %v7886_v48, %v1719_v32  ;;  %v2104_v42 = vmul.f32 %v5882_v34, %v2039_v62  ;;  %v11221_v62 = vld [vmem:[#allocation74_spill] sm:$0xff] }
 0x2a6   : > { %11200 = vst [vmem:[#allocation69_spill] sm:$0xff] %v11199_v40  ;;  %vm1416_vm14 = vmpackc.low %vm8047_vm9, %vm8015_vm4  ;;  %vm8061_vm12 = vcmp.ne.s32.totalorder %v11204_v1, 0  ;;  %vm11210_vm15 = vcmp.ne.bf16.partialorder %v7849_v13, 0  ;;  %v11211_v33 = vmov 0  ;;  %vm8079_vm9 = vcmp.ne.s32.totalorder %v2463_v30, 0 }
 0x2a7   : > { %v11206_v43 = vsel %vm8061_vm12, 4294967295, %v11205_v43  ;;  %11209 = vst [vmem:[#allocation115_spill] sm:$0xff] %v8070_v27  ;;  %vm8075_vm4 = vmand %vm11210_vm15, %vm1416_vm14  ;;  %v11213_v5 = vmov 0  ;;  %vm8085_vm6 = vcmp.ne.s32.totalorder %v1638_v36, 0  ;;  %v2288_v2 = vadd.f32 %v6145_v10, %v2239_v46 }
 0x2a8   : > { %11207 = vst [vmem:[#allocation114_spill] sm:$0xff] %v11206_v43  ;;  %v11212_v33 = vsel %vm8075_vm4, 4294967295, %v11211_v33  ;;  %v11214_v5 = vsel %vm8079_vm9, 4294967295, %v11213_v5  ;;  %v2289_v32 = vadd.f32 %v6145_v10, %v2240_v22  ;;  %vm11218_vm0 = vcmp.ne.bf16.partialorder %v7869_v50, 0  ;;  %v11246_v43 = vld [vmem:[#allocation56_spill] sm:$0xff] }
 0x2a9   : > { %11215 = vst [vmem:[#allocation116_spill] sm:$0xff] %v11214_v5  ;;  %vm8093_vm15 = vmand %vm11218_vm0, %vm1416_vm14  ;;  %v1576_v30 = vsel %vm8075_vm4, 65537, %v10687_v23  ;;  %v2208_v36 = vmul.f32 %v5957_v49, %v2110_v47  ;;  %vm8102_vm5 = vcmp.ne.s32.totalorder %v1958_v57, 0  ;;  %vm11224_vm14 = vcmp.ge.f32.partialorder %v11196_v61, 0.1 }
 0x2aa   : > { %v1615_v29 = vunpack.c.l.b16 %v1576_v30  ;;  %vm8110_vm0 = vmand %vm11224_vm14, %vm7998_vm8  ;;  %v10435_v46 = vmov 0.0   ;;  %vm2336_vm1 = vcmp.gt.f32.partialorder %v2288_v2, 0.0  ;;  %vm2337_vm4 = vcmp.gt.f32.partialorder %v2289_v32, 0.0  ;;  %v11229_v32 = vld [vmem:[#allocation75_spill] sm:$0xff] }
 0x2ab   : > { %v4039_v22 = vsel %vm8061_vm12, 1.0, %v10435_v46  ;;  %v1616_v47 = vunpack.c.h.b16 %v1576_v30  ;;  %v4040_v21 = vsel %vm8079_vm9, 1.0, %v10435_v46  ;;  %v2153_v57 = vmul.f32 %v5905_v39, %v8070_v27  ;;  %vm8131_vm8 = vmpackc.low %vm2337_vm4, %vm2336_vm1 }
 0x2ac   : > { %v2202_v1 = vmul.f32 %v5957_v49, %v2104_v42  ;;  %v1734_v16 = vsel %vm8085_vm6, %v11057_v53, 0.0  ;;  %v11227_v2 = vmov 0  ;;  %vm1663_vm14 = vcmp.ne.s32.totalorder %v1615_v29, 0  ;;  %vm11231_vm1 = vmpackc.low %vm7921_vm13, %vm7921_vm13 }
 0x2ad   : > { %v11228_v2 = vsel %vm8131_vm8, 4294967295, %v11227_v2  ;;  %v2054_v30 = vsel %vm8102_vm5, %v11057_v53, 0.0  ;;  %vm1664_vm9 = vcmp.ne.s32.totalorder %v1616_v47, 0  ;;  %v1711_v42 = vsel %vm1663_vm14, %v11145_v35, 0.0  ;;  %v8173_v47 = vpop.permute.xlu0 %1826  ;;  %vm11241_vm13 = vmpackc.low %vm8110_vm0, %vm8110_vm0 }
 0x2ae   : > { %v1896_v55 = vsel %vm8093_vm15, 65537, %v10687_v23  ;;  %vm11232_vm6 = vcmp.ne.bf16.partialorder %v7938_v26, 0  ;;  %v1587_v7 = vsel %vm8034_vm10, 65537, %v10687_v23  ;;  %vm11235_vm4 = vcmp.ge.f32.partialorder %v11185_v0, 0.1 }
 0x2af   : > { %vm8154_vm5 = vmand %vm11232_vm6, %vm11231_vm1  ;;  %v1712_v58 = vsel %vm1664_vm9, %v11158_v37, 0.0  ;;  %v8171_v26 = vmul.f32 %v7419_v18, %v1711_v42  ;;  %v1935_v29 = vunpack.c.l.b16 %v1896_v55  ;;  %v8175_v46 = vadd.f32 %v2208_v36, %v2159_v24  ;;  %v11248_v24 = vld [vmem:[#allocation84_spill] sm:$0xff] }
 0x2b0   : > { %vm8165_vm15 = vmand %vm11235_vm4, %vm7991_vm7  ;;  %v8178_v27 = vmul.f32 %v7419_v18, %v1712_v58  ;;  %v1936_v17 = vunpack.c.h.b16 %v1896_v55  ;;  %vm11242_vm7 = vcmp.ne.bf16.partialorder %v7964_v8, 0  ;;  %v11243_v42 = vmov 0 }
 0x2b1   : > { %11238 = vst [vmem:[#allocation74_spill] sm:$0xff] %v8171_v26  ;;  %11239 = vst [vmem:[#allocation75_spill] sm:$0xff] %v8175_v46  ;;  %vm11247_vm14 = vnez %v11246_v43  ;;  %vm11249_vm1 = vnez %v11248_v24  ;;  %v8197_v36 = vadd.f32 %v2202_v1, %v2153_v57  ;;  %v8200_v55 = vmul.f32 %v8173_v47, %v1734_v16  ;;  %v8211_v24 = vld [vmem:[%s5632_s20 + $0xbc] sm:$0xf]  ;;  %v11362_v46 = vld [vmem:[#allocation90_spill] sm:$0xff] }
 0x2b2   : > { %11240 = vst [vmem:[#allocation117_spill] sm:$0xff] %v8178_v27  ;;  %vm8187_vm9 = vmand %vm11242_vm7, %vm11241_vm13  ;;  %vm1983_vm4 = vcmp.ne.s32.totalorder %v1935_v29, 0  ;;  %vm11252_vm12 = vcmp.gt.f32.partialorder %v7873_v54, 0.0  ;;  %v2702_v58 = vadd.f32 %v4040_v21, %v4039_v22  ;;  %v2119_v43 = vmul.f32 %v5882_v34, %v2054_v30  ;;  %v11259_v22 = vld [vmem:[#allocation48_spill] sm:$0xff]  ;;  %v11294_v54 = vld [vmem:[#allocation73_spill] sm:$0xff] }
 0x2b3   : > { %v11244_v42 = vsel %vm8187_vm9, 4294967295, %v11243_v42  ;;  %vm11250_vm6 = vmand %vm11247_vm14, %vm11249_vm1  ;;  %11251 = vst [vmem:[#allocation56_spill] sm:$0xff] %v8200_v55  ;;  %v1632_v5 = vunpack.c.l.b16 %v1587_v7  ;;  %vm1984_vm7 = vcmp.ne.s32.totalorder %v1936_v17, 0  ;;  %v2031_v16 = vsel %vm1983_vm4, %v11145_v35, 0.0  ;;  %v8230_v21 = vld [vmem:[%s5640_s21 + $0xbc] sm:$0xf] }
 0x2b4   : > { %11245 = vst [vmem:[#allocation118_spill] sm:$0xff] %v11244_v42  ;;  %v2432_v18 = vsel %vm11250_vm6, 65537, %v10687_v23  ;;  %vm8205_vm13 = vmpackc.low %vm11252_vm12, %vm11252_vm12  ;;  %vm11256_vm12 = vcmp.ne.bf16.partialorder %v8003_v3, 0  ;;  %vm11260_vm6 = vnez %v11259_v22  ;;  %v2032_v35 = vsel %vm1984_vm7, %v11158_v37, 0.0  ;;  %v1354_v37 = vld [vmem:[%s5632_s20 + $0x60] sm:$0xff] }
 0x2b5   : > { %vm11255_vm14 = vmpackc.low %vm8110_vm0, %vm8110_vm0  ;;  %v2096_v57 = vmul.f32 %v5902_v38, %v2031_v16  ;;  %v2145_v50 = vmul.f32 %v5905_v39, %v8171_v26  ;;  %vm11261_vm0 = vcmp.eq.s32.totalorder %v5688_v52, %v11208_v20  ;;  %v2465_v3 = vunpack.c.l.b16 %v2432_v18  ;;  %v1482_v29 = vld [vmem:[%s5640_s21 + $0x60] sm:$0xff] }
 0x2b6   : > { %vm8221_vm1 = vmand %vm11256_vm12, %vm11255_vm14  ;;  %v2097_v1 = vmul.f32 %v5961_v60, %v2032_v35  ;;  %v2146_v30 = vmul.f32 %v5905_v39, %v8178_v27  ;;  %v2466_v17 = vunpack.c.h.b16 %v2432_v18  ;;  %v2168_v8 = vmul.f32 %v5905_v39, %v8200_v55  ;;  %v11266_v27 = vld [vmem:[#allocation102_spill] sm:$0xff] }
 0x2b7   : > { %vm2399_vm3 = vmand %vm11260_vm6, %vm8205_vm13  ;;  %vm11262_vm13 = vmmov 1   ;;  %v2194_v16 = vmul.f32 %v5957_v49, %v2096_v57  ;;  %vm11263_vm6 = vcmp.ge.f32.partialorder %v11221_v62, 0.1  ;;  %v2275_v18 = vadd.f32 %v6145_v10, %v11266_v27 }
 0x2b8   : > { %vm1218_vm4 = vmand %vm11261_vm0, %vm10897_vm2  ;;  %v2431_v7 = vsel %vm2399_vm3, 65537, %v10687_v23  ;;  %v2217_v55 = vmul.f32 %v5957_v49, %v2119_v43  ;;  %vm8264_vm0 = vcmp.ne.s32.totalorder %v1632_v5, 0  ;;  %v2195_v57 = vmul.f32 %v5957_v49, %v2097_v1 }
 0x2b9   : > { %vm1266_vm7 = vmxor %vm1218_vm4, %vm11262_vm13  ;;  %v2464_v22 = vunpack.c.l.b16 %v2431_v7  ;;  %v1589_v7 = vsel %vm8187_vm9, 65537, %v10687_v23  ;;  %v2242_v27 = vadd.f32 %v2194_v16, %v2145_v50  ;;  %v11270_v5 = vmov 0 }
 0x2ba   : > { %vm8257_vm3 = vmand %vm11263_vm6, %vm1266_vm7  ;;  %vm11269_vm7 = vcmp.eq.s32.totalorder %v5708_v59, %v11208_v20  ;;  %vm1386_vm4 = vcmp.ne.bf16.partialorder %v1354_v37, 0  ;;  %vm1514_vm10 = vcmp.ne.bf16.partialorder %v1482_v29, 0  ;;  %v2243_v43 = vadd.f32 %v2195_v57, %v2146_v30 }
 0x2bb   : > { %vm1219_vm6 = vmand %vm11269_vm7, %vm10897_vm2  ;;  %vm8278_vm14 = vcmp.ne.s32.totalorder %v2464_v22, 0  ;;  %v11273_v1 = vmov 0.0   ;;  %vm11274_vm9 = vcmp.ge.f32.partialorder %v11229_v32, 0.1  ;;  %vm8292_vm7 = vcmp.ne.s32.totalorder %v2465_v3, 0 }
 0x2bc   : > { %v11271_v5 = vsel %vm8278_vm14, 4294967295, %v11270_v5  ;;  %vm1267_vm12 = vmxor %vm1219_vm6, %vm11262_vm13  ;;  %v4041_v40 = vsel %vm8278_vm14, 1.0, %v11273_v1  ;;  %v11277_v50 = vmov 0  ;;  %vm8296_vm11 = vcmp.ne.s32.totalorder %v2466_v17, 0 }
 0x2bd   : > { %11272 = vst [vmem:[#allocation84_spill] sm:$0xff] %v11271_v5  ;;  %vm8288_vm8 = vmand %vm11274_vm9, %vm1267_vm12  ;;  %v11278_v50 = vsel %vm8292_vm7, 4294967295, %v11277_v50  ;;  %v11280_v16 = vmov 0  ;;  %v2291_v30 = vadd.f32 %v6145_v10, %v2242_v27  ;;  %v1635_v22 = vunpack.c.l.b16 %v1589_v7 }
 0x2be   : > { %11279 = vst [vmem:[#allocation48_spill] sm:$0xff] %v11278_v50  ;;  %v11281_v16 = vsel %vm8296_vm11, 4294967295, %v11280_v16  ;;  %v2703_v57 = vadd.f32 %v4041_v40, %v2702_v58  ;;  %vm1418_vm9 = vmpackc.low %vm8288_vm8, %vm8257_vm3  ;;  %vm2323_vm12 = vcmp.gt.f32.partialorder %v2275_v18, 0.0  ;;  %v8305_v20 = vadd.f32 %v2217_v55, %v2168_v8 }
 0x2bf   : > { %11282 = vst [vmem:[#allocation102_spill] sm:$0xff] %v11281_v16  ;;  %v8313_v17 = vsel %vm8154_vm5, 65537, %v10687_v23  ;;  %v2292_v7 = vadd.f32 %v6145_v10, %v2243_v43  ;;  %vm8317_vm6 = vmand %vm1386_vm4, %vm1418_vm9  ;;  %v11284_v40 = vmov 0  ;;  %vm2339_vm8 = vcmp.gt.f32.partialorder %v2291_v30, 0.0 }
 0x2c0   : > { %11283 = vst [vmem:[#allocation119_spill] sm:$0xff] %v8305_v20  ;;  %v11285_v40 = vsel %vm8317_vm6, 4294967295, %v11284_v40  ;;  %2704 = vadd.xlane.f32.xlu0 %v2703_v57  ;;  %vm1546_vm3 = vmand %vm1514_vm10, %vm1418_vm9  ;;  %v1578_v42 = vsel %vm8317_vm6, 65537, %v10687_v23  ;;  %v4042_v53 = vsel %vm8292_vm7, 1.0, %v11273_v1  ;;  %v4043_v55 = vsel %vm8296_vm11, 1.0, %v11273_v1 }
 0x2c1   : > { %vm2340_vm5 = vcmp.gt.f32.partialorder %v2292_v7, 0.0  ;;  %v1618_v58 = vunpack.c.l.b16 %v1578_v42  ;;  %v1619_v37 = vunpack.c.h.b16 %v1578_v42  ;;  %v1898_v8 = vsel %vm1546_vm3, 65537, %v10687_v23  ;;  %vm8334_vm10 = vmpackc.low %vm2323_vm12, %vm2323_vm12  ;;  %v11293_v7 = vld [vmem:[#allocation60_spill] sm:$0xff] }
 0x2c2   : > { %vm8338_vm4 = vmpackc.low %vm2340_vm5, %vm2339_vm8  ;;  %v11288_v35 = vmov 0  ;;  %vm8342_vm9 = vcmp.ne.s32.totalorder %v1635_v22, 0  ;;  %v1909_v43 = vsel %vm8221_vm1, 65537, %v10687_v23  ;;  %v1938_v30 = vunpack.c.l.b16 %v1898_v8 }
 0x2c3   : > { %v11289_v35 = vsel %vm8338_vm4, 4294967295, %v11288_v35  ;;  %v1939_v57 = vunpack.c.h.b16 %v1898_v8  ;;  %vm1666_vm7 = vcmp.ne.s32.totalorder %v1618_v58, 0  ;;  %vm1667_vm8 = vcmp.ne.s32.totalorder %v1619_v37, 0  ;;  %v11296_v8 = vld [vmem:[#allocation78_spill] sm:$0xff]  ;;  %vm11297_vm3 = vmpackc.low %vm8165_vm15, %vm8165_vm15 }
 0x2c4   : > { %v2706_v18 = vadd.f32 %v4043_v55, %v4042_v53  ;;  %v1714_v22 = vsel %vm1666_vm7, %v11221_v62, 0.0  ;;  %v1715_v42 = vsel %vm1667_vm8, %v11229_v32, 0.0  ;;  %vm1986_vm11 = vcmp.ne.s32.totalorder %v1938_v30, 0 }
 0x2c5   : > { %vm11295_vm1 = vnez %v11294_v54  ;;  %vm1170_vm6 = vcmp.ge.f32.partialorder %v11296_v8, 0.1  ;;  %vm11298_vm4 = vcmp.ne.bf16.partialorder %v8211_v24, 0  ;;  %v11299_v53 = vmov 0  ;;  %v1356_v54 = vld [vmem:[%s5632_s20 + $0x6c] sm:$0xff] }
 0x2c6   : > { %vm2401_vm14 = vmand %vm11295_vm1, %vm8334_vm10  ;;  %v8374_v55 = vmul.f32 %v7578_v51, %v1714_v22  ;;  %v8377_v58 = vmul.f32 %v7578_v51, %v1715_v42  ;;  %vm1987_vm7 = vcmp.ne.s32.totalorder %v1939_v57, 0  ;;  %v2034_v37 = vsel %vm1986_vm11, %v11221_v62, 0.0 }
 0x2c7   : > { %vm8369_vm5 = vmand %vm11298_vm4, %vm11297_vm3  ;;  %vm11305_vm4 = vcmp.ne.bf16.partialorder %v8230_v21, 0  ;;  %v2035_v29 = vsel %vm1987_vm7, %v11229_v32, 0.0  ;;  %v2099_v51 = vmul.f32 %v5902_v38, %v2034_v37  ;;  %v2433_v30 = vsel %vm2401_vm14, 65537, %v10687_v23  ;;  %v11309_v37 = vld [vmem:[#allocation81_spill] sm:$0xff] }
 0x2c8   : > { %v11300_v53 = vsel %vm8369_vm5, 4294967295, %v11299_v53  ;;  %11302 = vst [vmem:[#allocation78_spill] sm:$0xff] %v8374_v55  ;;  %11303 = vst [vmem:[#allocation120_spill] sm:$0xff] %v8377_v58  ;;  %vm10465_vm11 = vcmp.eq.s32.totalorder %v5708_v59, %v11293_v7  ;;  %v2100_v62 = vmul.f32 %v5961_v60, %v2035_v29  ;;  %v2148_v13 = vmul.f32 %v5905_v39, %v8374_v55  ;;  %v11311_v29 = vld [vmem:[#allocation46_spill] sm:$0xff] }
 0x2c9   : > { %11301 = vst [vmem:[#allocation73_spill] sm:$0xff] %v11300_v53  ;;  %vm11304_vm10 = vmmov %vm11297_vm3  ;;  %v2149_v21 = vmul.f32 %v5905_v39, %v8377_v58  ;;  %v2467_v57 = vunpack.c.l.b16 %v2433_v30  ;;  %vm11308_vm15 = vcmp.eq.s32.totalorder %v5688_v52, %v11293_v7  ;;  %v8409_v32 = vsel %vm8369_vm5, 65537, %v10687_v23  ;;  %v1484_v55 = vld [vmem:[%s5640_s21 + $0x6c] sm:$0xff]  ;;  %v11320_v53 = vld [vmem:[#allocation100_spill] sm:$0xff] }
 0x2ca   : > { %vm8387_vm3 = vmand %vm11305_vm4, %vm11304_vm10  ;;  %v1955_v22 = vunpack.c.l.b16 %v1909_v43  ;;  %v2197_v42 = vmul.f32 %v5957_v49, %v2099_v51  ;;  %vm11310_vm1 = vnez %v11309_v37  ;;  %vm11312_vm7 = vnez %v11311_v29  ;;  %v11319_v51 = vld [vmem:[#allocation79_spill] sm:$0xff] }
 0x2cb   : > { %vm1221_vm8 = vmand %vm11308_vm15, %vm10897_vm2  ;;  %v2198_v3 = vmul.f32 %v5957_v49, %v2100_v62  ;;  %vm8421_vm4 = vcmp.ne.s32.totalorder %v2467_v57, 0  ;;  %v11314_v58 = vmov 0  ;;  %v1731_v29 = vsel %vm8342_vm9, %v11196_v61, 0.0 }
 0x2cc   : > { %vm1269_vm14 = vmxor %vm1221_vm8, %vm11262_vm13  ;;  %v11315_v58 = vsel %vm8421_vm4, 4294967295, %v11314_v58  ;;  %vm1171_vm8 = vcmp.ge.f32.partialorder %v11319_v51, 0.1  ;;  %v2245_v50 = vadd.f32 %v2197_v42, %v2148_v13  ;;  %v4044_v62 = vsel %vm8421_vm4, 1.0, %v11273_v1 }
 0x2cd   : > { %vm11313_vm10 = vmand %vm11310_vm1, %vm11312_vm7  ;;  %11316 = vst [vmem:[#allocation81_spill] sm:$0xff] %v11315_v58  ;;  %v2246_v16 = vadd.f32 %v2198_v3, %v2149_v21  ;;  %v2707_v5 = vadd.f32 %v4044_v62, %v2706_v18  ;;  %vm1388_vm1 = vcmp.ne.bf16.partialorder %v1356_v54, 0  ;;  %v2278_v27 = vadd.f32 %v6145_v10, %v11320_v53  ;;  %v8459_v3 = vpop.permute.xlu1 %1821 }
 0x2ce   : > { %v2434_v30 = vsel %vm11313_vm10, 65537, %v10687_v23  ;;  %vm8427_vm15 = vmand %vm1170_vm6, %vm1269_vm14  ;;  %vm8448_vm9 = vcmp.ne.s32.totalorder %v1955_v22, 0  ;;  %v2294_v58 = vadd.f32 %v6145_v10, %v2245_v50  ;;  %vm1516_vm10 = vcmp.ne.bf16.partialorder %v1484_v55, 0 }
 0x2cf   : > { %v2468_v37 = vunpack.c.l.b16 %v2434_v30  ;;  %vm1222_vm6 = vmand %vm10465_vm11, %vm10897_vm2  ;;  %v2469_v57 = vunpack.c.h.b16 %v2434_v30  ;;  %v11325_v18 = vsel %vm8264_vm0, %v11132_v45, 0.0  ;;  %v2295_v50 = vadd.f32 %v6145_v10, %v2246_v16  ;;  %2708 = vadd.xlane.f32.xlu1 %v2707_v5 }
 0x2d0   : > { %vm1270_vm14 = vmxor %vm1222_vm6, %vm11262_vm13  ;;  %v8466_v53 = vmul.f32 %v8083_v44, %v11325_v18  ;;  %v11327_v22 = vmov 0  ;;  %v8481_v26 = vsel %vm8387_vm3, 65537, %v10687_v23  ;;  %v8484_v62 = vmul.f32 %v8459_v3, %v1731_v29  ;;  %v11339_v18 = vld [vmem:[#allocation57_spill] sm:$0xff] }
 0x2d1   : > { %vm8455_vm7 = vmand %vm1171_vm8, %vm1270_vm14  ;;  %vm8474_vm6 = vcmp.ne.s32.totalorder %v2468_v37, 0  ;;  %vm2342_vm0 = vcmp.gt.f32.partialorder %v2294_v58, 0.0  ;;  %v11331_v5 = vmov 0  ;;  %vm8491_vm11 = vcmp.ne.s32.totalorder %v2469_v57, 0 }
 0x2d2   : > { %11326 = vst [vmem:[#allocation46_spill] sm:$0xff] %v8466_v53  ;;  %vm1420_vm8 = vmpackc.low %vm8455_vm7, %vm8427_vm15  ;;  %v11328_v22 = vsel %vm8474_vm6, 4294967295, %v11327_v22  ;;  %v11333_v16 = vmov 0  ;;  %vm2343_vm15 = vcmp.gt.f32.partialorder %v2295_v50, 0.0  ;;  %vm2326_vm7 = vcmp.gt.f32.partialorder %v2278_v27, 0.0 }
 0x2d3   : > { %11329 = vst [vmem:[#allocation79_spill] sm:$0xff] %v11328_v22  ;;  %11330 = vst [vmem:[#allocation100_spill] sm:$0xff] %v8484_v62  ;;  %v11334_v16 = vsel %vm8491_vm11, 4294967295, %v11333_v16  ;;  %v11336_v24 = vmov 0  ;;  %v4045_v57 = vsel %vm8474_vm6, 1.0, %v11273_v1  ;;  %v4046_v27 = vsel %vm8491_vm11, 1.0, %v11273_v1 }
 0x2d4   : > { %vm8487_vm14 = vmand %vm1388_vm1, %vm1420_vm8  ;;  %11335 = vst [vmem:[#allocation121_spill] sm:$0xff] %v11334_v16  ;;  %v11356_v16 = vmov 0  ;;  %v2299_v56 = vadd.f32 %v6145_v10, %v8197_v36 }
 0x2d5   : > { %v11332_v5 = vsel %vm8487_vm14, 4294967295, %v11331_v5  ;;  %vm1548_vm3 = vmand %vm1516_vm10, %vm1420_vm8  ;;  %v1580_v58 = vsel %vm8487_vm14, 65537, %v10687_v23  ;;  %vm10477_vm8 = vcmp.eq.s32.totalorder %v5708_v59, %v11339_v18 }
 0x2d6   : > { %vm8502_vm1 = vmpackc.low %vm2343_vm15, %vm2342_vm0  ;;  %v1621_v54 = vunpack.c.l.b16 %v1580_v58  ;;  %v1622_v37 = vunpack.c.h.b16 %v1580_v58  ;;  %v1900_v29 = vsel %vm1548_vm3, 65537, %v10687_v23  ;;  %v11342_v58 = vld [vmem:[#allocation83_spill] sm:$0xff] }
 0x2d7   : > { %v11337_v24 = vsel %vm8502_vm1, 4294967295, %v11336_v24  ;;  %v1941_v55 = vunpack.c.l.b16 %v1900_v29  ;;  %v1942_v30 = vunpack.c.h.b16 %v1900_v29  ;;  %vm8519_vm4 = vmpackc.low %vm2326_vm7, %vm2326_vm7  ;;  %vm1173_vm6 = vcmp.ge.f32.partialorder %v11342_v58, 0.1 }
 0x2d8   : > { %vm1669_vm15 = vcmp.ne.s32.totalorder %v1621_v54, 0  ;;  %vm1670_vm3 = vcmp.ne.s32.totalorder %v1622_v37, 0  ;;  %v11343_v54 = vld [vmem:[#allocation42_spill] sm:$0xff] }
 0x2d9   : > { %v1717_v29 = vsel %vm1669_vm15, %v11296_v8, 0.0  ;;  %v1718_v21 = vsel %vm1670_vm3, %v11319_v51, 0.0  ;;  %vm1989_vm11 = vcmp.ne.s32.totalorder %v1941_v55, 0  ;;  %vm1990_vm5 = vcmp.ne.s32.totalorder %v1942_v30, 0  ;;  %v1358_v55 = vld [vmem:[%s5632_s20 + $0x78] sm:$0xff] }
 0x2da   : > { %vm11344_vm0 = vnez %v11343_v54  ;;  %v8533_v37 = vmul.f32 %v7886_v48, %v1717_v29  ;;  %v8536_v13 = vmul.f32 %v7886_v48, %v1718_v21  ;;  %v2037_v43 = vsel %vm1989_vm11, %v11296_v8, 0.0  ;;  %v1486_v48 = vld [vmem:[%s5640_s21 + $0x78] sm:$0xff] }
 0x2db   : > { %vm2403_vm7 = vmand %vm11344_vm0, %vm8519_vm4  ;;  %v2038_v7 = vsel %vm1990_vm5, %v11319_v51, 0.0  ;;  %vm11347_vm15 = vcmp.eq.s32.totalorder %v5688_v52, %v11339_v18  ;;  %v2102_v30 = vmul.f32 %v5902_v38, %v2037_v43  ;;  %v2710_v54 = vadd.f32 %v4046_v27, %v4045_v57 }
 0x2dc   : > { %11345 = vst [vmem:[#allocation83_spill] sm:$0xff] %v8533_v37  ;;  %11346 = vst [vmem:[#allocation42_spill] sm:$0xff] %v8536_v13  ;;  %v2103_v50 = vmul.f32 %v5961_v60, %v2038_v7  ;;  %v2435_v29 = vsel %vm2403_vm7, 65537, %v10687_v23  ;;  %v2151_v8 = vmul.f32 %v5905_v39, %v8533_v37  ;;  %v2152_v51 = vmul.f32 %v5905_v39, %v8536_v13  ;;  %v11350_v7 = vld [vmem:[#allocation85_spill] sm:$0xff]  ;;  %v11353_v13 = vld [vmem:[#allocation50_spill] sm:$0xff] }
 0x2dd   : > { %vm1224_vm3 = vmand %vm11347_vm15, %vm10897_vm2  ;;  %v2470_v21 = vunpack.c.l.b16 %v2435_v29  ;;  %v2200_v57 = vmul.f32 %v5957_v49, %v2102_v30  ;;  %vm1390_vm7 = vcmp.ne.bf16.partialorder %v1358_v55, 0  ;;  %v11351_v29 = vld [vmem:[#allocation94_spill] sm:$0xff]  ;;  %v11359_v30 = vld [vmem:[#allocation59_spill] sm:$0xff] }
 0x2de   : > { %vm1272_vm4 = vmxor %vm1224_vm3, %vm11262_vm13  ;;  %v2201_v27 = vmul.f32 %v5957_v49, %v2103_v50  ;;  %vm11352_vm15 = vnez %v11351_v29  ;;  %v8583_v50 = vld [vmem:[%s5632_s20 + $0x84] sm:$0xff] }
 0x2df   : > { %vm8557_vm5 = vmand %vm1173_vm6, %vm1272_vm4  ;;  %vm11354_vm6 = vnez %v11353_v13  ;;  %vm8575_vm4 = vcmp.ne.s32.totalorder %v2470_v21, 0  ;;  %v2248_v22 = vadd.f32 %v2200_v57, %v2151_v8  ;;  %v11361_v21 = vld [vmem:[#allocation88_spill] sm:$0xff] }
 0x2e0   : > { %vm1225_vm0 = vmand %vm10477_vm8, %vm10897_vm2  ;;  %v11357_v16 = vsel %vm8575_vm4, 4294967295, %v11356_v16  ;;  %v2249_v20 = vadd.f32 %v2201_v27, %v2152_v51  ;;  %v4047_v13 = vsel %vm8575_vm4, 1.0, %v11273_v1  ;;  %v11363_v27 = vmov 0 }
 0x2e1   : > { %vm11355_vm3 = vmand %vm11352_vm15, %vm11354_vm6  ;;  %11358 = vst [vmem:[#allocation85_spill] sm:$0xff] %v11357_v16  ;;  %vm11360_vm15 = vcmp.ge.f32.partialorder %v11350_v7, 0.1  ;;  %v2711_v29 = vadd.f32 %v4047_v13, %v2710_v54  ;;  %v2297_v51 = vadd.f32 %v6145_v10, %v2248_v22  ;;  %v11365_v54 = vld [vmem:[#allocation101_spill] sm:$0xff]  ;;  %vm11372_vm8 = vcmp.eq.s32.totalorder %v5688_v52, %v11359_v30 }
 0x2e2   : > { %v2436_v37 = vsel %vm11355_vm3, 65537, %v10687_v23  ;;  %vm1273_vm11 = vmxor %vm1225_vm0, %vm11262_vm13  ;;  %v2298_v57 = vadd.f32 %v6145_v10, %v2249_v20  ;;  %v8606_v43 = vadd.f32 %v6145_v10, %v11365_v54  ;;  %v11367_v20 = vmov 0 }
 0x2e3   : > { %v2471_v18 = vunpack.c.l.b16 %v2436_v37  ;;  %vm1321_vm6 = vmand %vm11360_vm15, %vm1273_vm11  ;;  %v2472_v8 = vunpack.c.h.b16 %v2436_v37  ;;  %2712 = vadd.xlane.f32.xlu0 %v2711_v29  ;;  %v8618_v37 = vadd.f32 %v6145_v10, %v7729_v15  ;;  %vm11370_vm11 = vnez %v11083_v63 }
 0x2e4   : > { %vm1422_vm0 = vmpackc.low %vm1321_vm6, %vm8557_vm5  ;;  %vm11366_vm5 = vcmp.ne.bf16.partialorder %v1486_v48, 0  ;;  %v11373_v15 = vmov 0  ;;  %v11375_v63 = vmov 0 }
 0x2e5   : > { %vm8599_vm1 = vmand %vm1390_vm7, %vm1422_vm0  ;;  %vm8612_vm6 = vcmp.ne.s32.totalorder %v2471_v18, 0  ;;  %vm11369_vm7 = vnez %v10973_v25  ;;  %vm8636_vm12 = vcmp.ne.s32.totalorder %v2472_v8, 0  ;;  %v11377_v8 = vmov 0 }
 0x2e6   : > { %v11364_v27 = vsel %vm8599_vm1, 4294967295, %v11363_v27  ;;  %vm1550_vm15 = vmand %vm11366_vm5, %vm1422_vm0  ;;  %v1582_v22 = vsel %vm8599_vm1, 65537, %v10687_v23  ;;  %v11368_v20 = vsel %vm8612_vm6, 4294967295, %v11367_v20  ;;  %vm2345_vm0 = vcmp.gt.f32.partialorder %v2297_v51, 0.0 }
 0x2e7   : > { %vm11371_vm10 = vmand %vm11369_vm7, %vm11370_vm11  ;;  %vm2346_vm5 = vcmp.gt.f32.partialorder %v2298_v57, 0.0  ;;  %v1624_v48 = vunpack.c.l.b16 %v1582_v22  ;;  %v1625_v13 = vunpack.c.h.b16 %v1582_v22  ;;  %v1902_v25 = vsel %vm1550_vm15, 65537, %v10687_v23 }
 0x2e8   : > { %v2438_v55 = vsel %vm11371_vm10, 65537, %v10687_v23  ;;  %vm1227_vm3 = vmand %vm11372_vm8, %vm10897_vm2  ;;  %v11376_v63 = vsel %vm8636_vm12, 4294967295, %v11375_v63  ;;  %v1944_v51 = vunpack.c.l.b16 %v1902_v25  ;;  %v1945_v57 = vunpack.c.h.b16 %v1902_v25  ;;  %v1488_v25 = vld [vmem:[%s5640_s21 + $0x84] sm:$0xff] }
 0x2e9   : > { %vm8631_vm4 = vmpackc.low %vm2346_vm5, %vm2345_vm0  ;;  %v2474_v18 = vunpack.c.l.b16 %v2438_v55  ;;  %v2475_v29 = vunpack.c.h.b16 %v2438_v55  ;;  %vm1672_vm11 = vcmp.ne.s32.totalorder %v1624_v48, 0  ;;  %vm1673_vm8 = vcmp.ne.s32.totalorder %v1625_v13, 0  ;;  %v11397_v13 = vld [vmem:[#allocation49_spill] sm:$0xff] }
 0x2ea   : > { %v11374_v15 = vsel %vm8631_vm4, 4294967295, %v11373_v15  ;;  %v1720_v54 = vsel %vm1672_vm11, %v11342_v58, 0.0  ;;  %v1721_v22 = vsel %vm1673_vm8, %v11350_v7, 0.0  ;;  %vm1275_vm15 = vmxor %vm1227_vm3, %vm11262_vm13  ;;  %v11380_v55 = vmov 0 }
 0x2eb   : > { %vm8647_vm7 = vcmp.ne.s32.totalorder %v2474_v18, 0  ;;  %vm8651_vm0 = vcmp.ne.s32.totalorder %v2475_v29, 0  ;;  %v8656_v16 = vmul.f32 %v7680_v14, %v1720_v54  ;;  %v8659_v48 = vmul.f32 %v7680_v14, %v1721_v22 }
 0x2ec   : > { %v11378_v8 = vsel %vm8647_vm7, 4294967295, %v11377_v8  ;;  %v11381_v55 = vsel %vm8651_vm0, 4294967295, %v11380_v55  ;;  %vm1992_vm5 = vcmp.ne.s32.totalorder %v1944_v51, 0  ;;  %vm1993_vm11 = vcmp.ne.s32.totalorder %v1945_v57, 0 }
 0x2ed   : > { %11379 = vst [vmem:[#allocation94_spill] sm:$0xff] %v11378_v8  ;;  %11382 = vst [vmem:[#allocation50_spill] sm:$0xff] %v11381_v55  ;;  %vm11385_vm8 = vcmp.ge.f32.partialorder %v11361_v21, 0.1  ;;  %v2040_v18 = vsel %vm1992_vm5, %v11342_v58, 0.0  ;;  %v2041_v29 = vsel %vm1993_vm11, %v11350_v7, 0.0  ;;  %vm11388_vm3 = vcmp.eq.s32.totalorder %v5708_v59, %v11359_v30 }
 0x2ee   : > { %11383 = vst [vmem:[#allocation88_spill] sm:$0xff] %v8656_v16  ;;  %11384 = vst [vmem:[#allocation90_spill] sm:$0xff] %v8659_v48  ;;  %v4048_v14 = vsel %vm8612_vm6, 1.0, %v11273_v1  ;;  %v4049_v51 = vsel %vm8636_vm12, 1.0, %v11273_v1  ;;  %v2105_v57 = vmul.f32 %v5902_v38, %v2040_v18  ;;  %v2106_v58 = vmul.f32 %v5961_v60, %v2041_v29 }
 0x2ef   : > { %vm8663_vm10 = vmand %vm11385_vm8, %vm1275_vm15  ;;  %v2154_v7 = vmul.f32 %v5905_v39, %v8656_v16  ;;  %v2155_v54 = vmul.f32 %v5905_v39, %v8659_v48  ;;  %v11389_v22 = vsel %vm8448_vm9, %v11196_v61, 0.0  ;;  %vm11390_vm5 = vcmp.ge.f32.partialorder %v11362_v46, 0.1 }
 0x2f0   : > { %vm1228_vm4 = vmand %vm11388_vm3, %vm10897_vm2  ;;  %v8693_v30 = vmul.f32 %v5882_v34, %v11389_v22  ;;  %v4051_v29 = vsel %vm8647_vm7, 1.0, %v11273_v1  ;;  %v4052_v42 = vsel %vm8651_vm0, 1.0, %v11273_v1  ;;  %v2203_v61 = vmul.f32 %v5957_v49, %v2105_v57  ;;  %v11396_v57 = vld [vmem:[#allocation77_spill] sm:$0xff] }
 0x2f1   : > { %vm1276_vm15 = vmxor %vm1228_vm4, %vm11262_vm13  ;;  %v2204_v22 = vmul.f32 %v5957_v49, %v2106_v58  ;;  %vm2329_vm4 = vcmp.gt.f32.partialorder %v8606_v43, 0.0  ;;  %v11394_v48 = vmov 0  ;;  %v2714_v16 = vadd.f32 %v4049_v51, %v4048_v14 }
 0x2f2   : > { %vm8697_vm11 = vmand %vm11390_vm5, %vm1276_vm15  ;;  %vm11393_vm15 = vcmp.ne.bf16.partialorder %v8583_v50, 0  ;;  %v8721_v55 = vadd.f32 %v4052_v42, %v4051_v29  ;;  %v2251_v58 = vadd.f32 %v2203_v61, %v2154_v7  ;;  %vm11400_vm3 = vnez %v11163_v41  ;;  %v11405_v61 = vld [vmem:[#allocation70_spill] sm:$0xff] }
 0x2f3   : > { %vm1424_vm9 = vmpackc.low %vm8697_vm11, %vm8663_vm10  ;;  %v2252_v18 = vadd.f32 %v2204_v22, %v2155_v54  ;;  %vm11398_vm10 = vcmp.ne.bf16.partialorder %v1488_v25, 0  ;;  %v11402_v25 = vunpack.c.l.b16 %v8313_v17  ;;  %v11433_v7 = vmov 0 }
 0x2f4   : > { %vm8717_vm5 = vmand %vm11393_vm15, %vm1424_vm9  ;;  %vm11399_vm15 = vnez %v11063_v28  ;;  %v2300_v28 = vadd.f32 %v6145_v10, %v2251_v58 }
 0x2f5   : > { %v11395_v48 = vsel %vm8717_vm5, 4294967295, %v11394_v48  ;;  %vm1552_vm11 = vmand %vm11398_vm10, %vm1424_vm9  ;;  %v1584_v50 = vsel %vm8717_vm5, 65537, %v10687_v23  ;;  %vm8741_vm9 = vcmp.ne.s32.totalorder %v11402_v25, 0  ;;  %v2301_v41 = vadd.f32 %v6145_v10, %v2252_v18 }
 0x2f6   : > { %vm11401_vm7 = vmand %vm11399_vm15, %vm11400_vm3  ;;  %v1627_v14 = vunpack.c.l.b16 %v1584_v50  ;;  %v1628_v51 = vunpack.c.h.b16 %v1584_v50  ;;  %v1904_v29 = vsel %vm1552_vm11, 65537, %v10687_v23  ;;  %vm11407_vm11 = vcmp.gt.f32.partialorder %v8618_v37, 0.0 }
 0x2f7   : > { %v2440_v43 = vsel %vm11401_vm7, 65537, %v10687_v23  ;;  %vm2373_vm0 = vmpackc.low %vm2329_vm4, %vm2329_vm4  ;;  %v1947_v54 = vunpack.c.l.b16 %v1904_v29  ;;  %v1948_v42 = vunpack.c.h.b16 %v1904_v29  ;;  %vm11406_vm7 = vnez %v11405_v61 }
 0x2f8   : > { %vm2405_vm3 = vmand %vm11406_vm7, %vm2373_vm0  ;;  %vm1675_vm10 = vcmp.ne.s32.totalorder %v1627_v14, 0  ;;  %vm1676_vm4 = vcmp.ne.s32.totalorder %v1628_v51, 0  ;;  %v2477_v50 = vunpack.c.l.b16 %v2440_v43  ;;  %vm2348_vm8 = vcmp.gt.f32.partialorder %v2300_v28, 0.0  ;;  %v11410_v14 = vld [vmem:[#allocation37_spill] sm:$0xff] }
 0x2f9   : > { %v2437_v22 = vsel %vm2405_vm3, 65537, %v10687_v23  ;;  %vm8753_vm15 = vmpackc.low %vm11407_vm11, %vm11407_vm11  ;;  %vm2349_vm12 = vcmp.gt.f32.partialorder %v2301_v41, 0.0  ;;  %v1723_v58 = vsel %vm1675_vm10, %v11361_v21, 0.0  ;;  %v1724_v18 = vsel %vm1676_vm4, %v11362_v46, 0.0 }
 0x2fa   : > { %vm11411_vm0 = vnez %v11410_v14  ;;  %vm8763_vm3 = vmpackc.low %vm2349_vm12, %vm2348_vm8  ;;  %v11412_v51 = vmov 0  ;;  %v8768_v37 = vmul.f32 %v7978_v4, %v1723_v58  ;;  %v8771_v29 = vmul.f32 %v7978_v4, %v1724_v18  ;;  %v1362_v58 = vld [vmem:[%s5632_s20 + $0x90] sm:$0xff] }
 0x2fb   : > { %vm2407_vm7 = vmand %vm11411_vm0, %vm8753_vm15  ;;  %v11413_v51 = vsel %vm8763_vm3, 4294967295, %v11412_v51  ;;  %vm1995_vm11 = vcmp.ne.s32.totalorder %v1947_v54, 0  ;;  %vm1996_vm10 = vcmp.ne.s32.totalorder %v1948_v42, 0  ;;  %v2473_v41 = vunpack.c.l.b16 %v2437_v22  ;;  %v11419_v22 = vld [vmem:[#allocation97_spill] sm:$0xff] }
 0x2fc   : > { %11414 = vst [vmem:[#allocation101_spill] sm:$0xff] %v8768_v37  ;;  %11415 = vst [vmem:[#allocation49_spill] sm:$0xff] %v8771_v29  ;;  %v2043_v25 = vsel %vm1995_vm11, %v11361_v21, 0.0  ;;  %v2044_v28 = vsel %vm1996_vm10, %v11362_v46, 0.0  ;;  %v2439_v61 = vsel %vm2407_vm7, 65537, %v10687_v23  ;;  %v2157_v54 = vmul.f32 %v5905_v39, %v8768_v37 }
 0x2fd   : > { %v2108_v17 = vmul.f32 %v5902_v38, %v2043_v25  ;;  %v2109_v4 = vmul.f32 %v5961_v60, %v2044_v28  ;;  %v2158_v42 = vmul.f32 %v5905_v39, %v8771_v29  ;;  %vm11416_vm12 = vcmp.eq.s32.totalorder %v5688_v52, %v11396_v57 }
 0x2fe   : > { %vm1230_vm8 = vmand %vm11416_vm12, %vm10897_vm2  ;;  %vm8791_vm15 = vcmp.ne.s32.totalorder %v2473_v41, 0  ;;  %v11417_v46 = vmov 0  ;;  %v2476_v21 = vunpack.c.l.b16 %v2439_v61  ;;  %v2478_v18 = vunpack.c.h.b16 %v2440_v43  ;;  %v1490_v61 = vld [vmem:[%s5640_s21 + $0x90] sm:$0xff] }
 0x2ff   : > { %v11418_v46 = vsel %vm8791_vm15, 4294967295, %v11417_v46  ;;  %vm1278_vm0 = vmxor %vm1230_vm8, %vm11262_vm13  ;;  %v2206_v14 = vmul.f32 %v5957_v49, %v2108_v17  ;;  %v2207_v25 = vmul.f32 %v5957_v49, %v2109_v4  ;;  %v4050_v28 = vsel %vm8791_vm15, 1.0, %v11273_v1 }
 0x300   : > { %vm11420_vm11 = vcmp.ge.f32.partialorder %v11397_v13, 0.1  ;;  %vm8810_vm12 = vcmp.ne.s32.totalorder %v2477_v50, 0  ;;  %v11423_v29 = vmov 0  ;;  %v2715_v43 = vadd.f32 %v4050_v28, %v2714_v16 }
 0x301   : > { %vm8805_vm10 = vmand %vm11420_vm11, %vm1278_vm0  ;;  %v11424_v29 = vsel %vm8810_vm12, 4294967295, %v11423_v29  ;;  %vm8814_vm8 = vcmp.ne.s32.totalorder %v2476_v21, 0  ;;  %v11425_v17 = vmov 0  ;;  %vm11427_vm4 = vcmp.eq.s32.totalorder %v5708_v59, %v11396_v57 }
 0x302   : > { %v11426_v17 = vsel %vm8814_vm8, 4294967295, %v11425_v17  ;;  %vm1231_vm7 = vmand %vm11427_vm4, %vm10897_vm2  ;;  %v2287_v4 = vadd.f32 %v6145_v10, %v7785_v11  ;;  %vm8825_vm0 = vcmp.ne.s32.totalorder %v2478_v18, 0  ;;  %v11428_v37 = vmov 0  ;;  %2716 = vadd.xlane.f32.xlu0 %v2715_v43 }
 0x303   : > { %v11429_v37 = vsel %vm8825_vm0, 4294967295, %v11428_v37  ;;  %v2254_v50 = vadd.f32 %v2206_v14, %v2157_v54  ;;  %v2255_v8 = vadd.f32 %v2207_v25, %v2158_v42  ;;  %v4053_v16 = vsel %vm8814_vm8, 1.0, %v11273_v1  ;;  %vm1279_vm11 = vmxor %vm1231_vm7, %vm11262_vm13 }
 0x304   : > { %vm1394_vm15 = vcmp.ne.bf16.partialorder %v1362_v58, 0  ;;  %v2719_v21 = vadd.f32 %v4053_v16, %v8721_v55  ;;  %vm11430_vm4 = vcmp.ge.f32.partialorder %v11419_v22, 0.1  ;;  %v4054_v54 = vsel %vm8810_vm12, 1.0, %v11273_v1  ;;  %v11438_v16 = vld [vmem:[#allocation52_spill] sm:$0xff] }
 0x305   : > { %vm8836_vm6 = vmand %vm11430_vm4, %vm1279_vm11  ;;  %v4055_v42 = vsel %vm8825_vm0, 1.0, %v11273_v1  ;;  %v2048_v18 = vsel %vm8741_vm9, %v11132_v45, 0.0  ;;  %v8851_v55 = vmul.f32 %v5905_v39, %v8466_v53  ;;  %v2303_v14 = vadd.f32 %v6145_v10, %v2254_v50 }
 0x306   : > { %v2304_v25 = vadd.f32 %v6145_v10, %v2255_v8  ;;  %vm1426_vm7 = vmpackc.low %vm8836_vm6, %vm8805_vm10  ;;  %v8861_v28 = vmul.f32 %v5905_v39, %v8484_v62  ;;  %v8865_v45 = vmul.f32 %v5957_v49, %v8693_v30  ;;  %2720 = vadd.xlane.f32.xlu1 %v2719_v21  ;;  %v2722_v8 = vadd.f32 %v4055_v42, %v4054_v54  ;;  %v11445_v42 = vld [vmem:[#allocation103_spill] sm:$0xff] }
 0x307   : > { %vm8868_vm9 = vmand %vm1394_vm15, %vm1426_vm7  ;;  %vm2351_vm4 = vcmp.gt.f32.partialorder %v2303_v14, 0.0  ;;  %vm11435_vm0 = vcmp.ne.bf16.partialorder %v1490_v61, 0  ;;  %v11436_v30 = vmov 0  ;;  %vm11442_vm15 = vcmp.gt.f32.partialorder %v2287_v4, 0.0 }
 0x308   : > { %v11434_v7 = vsel %vm8868_vm9, 4294967295, %v11433_v7  ;;  %vm2352_vm3 = vcmp.gt.f32.partialorder %v2304_v25, 0.0  ;;  %vm1554_vm6 = vmand %vm11435_vm0, %vm1426_vm7  ;;  %v1586_v41 = vsel %vm8868_vm9, 65537, %v10687_v23  ;;  %vm1183_vm0 = vcmp.ge.f32.partialorder %v11445_v42, 0.1 }
 0x309   : > { %vm8878_vm12 = vmpackc.low %vm2352_vm3, %vm2351_vm4  ;;  %v1630_v58 = vunpack.c.l.b16 %v1586_v41  ;;  %v1631_v43 = vunpack.c.h.b16 %v1586_v41  ;;  %v1906_v50 = vsel %vm1554_vm6, 65537, %v10687_v23  ;;  %vm11439_vm3 = vnez %v11144_v9 }
 0x30a   : > { %v11437_v30 = vsel %vm8878_vm12, 4294967295, %v11436_v30  ;;  %v1950_v61 = vunpack.c.l.b16 %v1906_v50  ;;  %v1951_v21 = vunpack.c.h.b16 %v1906_v50  ;;  %vm11440_vm4 = vnez %v11228_v2  ;;  %vm8898_vm8 = vmpackc.low %vm11442_vm15, %vm11442_vm15  ;;  %v11446_v2 = vld [vmem:[#allocation98_spill] sm:$0xff] }
 0x30b   : > { %vm11441_vm10 = vmand %vm11439_vm3, %vm11440_vm4  ;;  %vm1678_vm6 = vcmp.ne.s32.totalorder %v1630_v58, 0  ;;  %vm1679_vm11 = vcmp.ne.s32.totalorder %v1631_v43, 0  ;;  %v8941_v57 = vmul.f32 %v5882_v34, %v2048_v18  ;;  %vm11453_vm4 = vcmp.eq.s32.totalorder %v5708_v59, %v11123_v31 }
 0x30c   : > { %v2442_v11 = vsel %vm11441_vm10, 65537, %v10687_v23  ;;  %v1726_v25 = vsel %vm1678_vm6, %v11397_v13, 0.0  ;;  %v1727_v9 = vsel %vm1679_vm11, %v11419_v22, 0.0  ;;  %vm1998_vm7 = vcmp.ne.s32.totalorder %v1950_v61, 0  ;;  %vm1234_vm6 = vmand %vm11453_vm4, %vm10897_vm2 }
 0x30d   : > { %v2480_v14 = vunpack.c.l.b16 %v2442_v11  ;;  %vm1999_vm12 = vcmp.ne.s32.totalorder %v1951_v21, 0  ;;  %vm11447_vm10 = vnez %v11446_v2  ;;  %v8910_v4 = vmul.f32 %v8083_v44, %v1726_v25  ;;  %v1492_v2 = vld [vmem:[%s5640_s21 + $0x9c] sm:$0xff] }
 0x30e   : > { %vm2409_vm3 = vmand %vm11447_vm10, %vm8898_vm8  ;;  %v8913_v41 = vmul.f32 %v8083_v44, %v1727_v9  ;;  %v2046_v58 = vsel %vm1998_vm7, %v11397_v13, 0.0  ;;  %v2047_v43 = vsel %vm1999_vm12, %v11419_v22, 0.0  ;;  %vm11448_vm11 = vcmp.eq.s32.totalorder %v5688_v52, %v11123_v31  ;;  %v1364_v44 = vld [vmem:[%s5632_s20 + $0x9c] sm:$0xff]  ;;  %v1366_v9 = vld [vmem:[%s5632_s20 + $0xa8] sm:$0xff] }
 0x30f   : > { %vm1233_vm15 = vmand %vm11448_vm11, %vm10897_vm2  ;;  %v2111_v50 = vmul.f32 %v5902_v38, %v2046_v58  ;;  %v2112_v61 = vmul.f32 %v5961_v60, %v2047_v43  ;;  %v2441_v21 = vsel %vm2409_vm3, 65537, %v10687_v23  ;;  %v2481_v54 = vunpack.c.h.b16 %v2442_v11  ;;  %v11452_v58 = vld [vmem:[#allocation108_spill] sm:$0xff] }
 0x310   : > { %vm1281_vm8 = vmxor %vm1233_vm15, %vm11262_vm13  ;;  %v2160_v13 = vmul.f32 %v5905_v39, %v8910_v4  ;;  %v2161_v22 = vmul.f32 %v5905_v39, %v8913_v41  ;;  %v2479_v25 = vunpack.c.l.b16 %v2441_v21  ;;  %vm11449_vm12 = vcmp.ge.f32.partialorder %v11438_v16, 0.1 }
 0x311   : > { %vm8933_vm7 = vmand %vm11449_vm12, %vm1281_vm8  ;;  %v2290_v43 = vadd.f32 %v6145_v10, %v11452_v58  ;;  %v2209_v62 = vmul.f32 %v5957_v49, %v2111_v50  ;;  %v2210_v53 = vmul.f32 %v5957_v49, %v2112_v61  ;;  %v11454_v21 = vmov 0 }
 0x312   : > { %vm8951_vm10 = vcmp.ne.s32.totalorder %v2479_v25, 0  ;;  %vm1282_vm3 = vmxor %vm1234_vm6, %vm11262_vm13  ;;  %vm8956_vm15 = vcmp.ne.s32.totalorder %v2480_v14, 0  ;;  %v11457_v18 = vmov 0  ;;  %vm8960_vm8 = vcmp.ne.s32.totalorder %v2481_v54, 0 }
 0x313   : > { %v11455_v21 = vsel %vm8951_vm10, 4294967295, %v11454_v21  ;;  %v11458_v18 = vsel %vm8956_vm15, 4294967295, %v11457_v18  ;;  %v11460_v50 = vmov 0  ;;  %v11463_v61 = vunpack.c.l.b16 %v8409_v32  ;;  %vm1330_vm4 = vmand %vm1183_vm0, %vm1282_vm3  ;;  %v11466_v32 = vld [vmem:[#allocation76_spill] sm:$0xff] }
 0x314   : > { %11456 = vst [vmem:[#allocation70_spill] sm:$0xff] %v11455_v21  ;;  %11459 = vst [vmem:[#allocation37_spill] sm:$0xff] %v11458_v18  ;;  %v11461_v50 = vsel %vm8960_vm8, 4294967295, %v11460_v50  ;;  %v11464_v58 = vmov 0  ;;  %v2257_v25 = vadd.f32 %v2209_v62, %v2160_v13  ;;  %v2258_v11 = vadd.f32 %v2210_v53, %v2161_v22 }
 0x315   : > { %11462 = vst [vmem:[#allocation97_spill] sm:$0xff] %v11461_v50  ;;  %vm8966_vm12 = vcmp.ne.s32.totalorder %v11463_v61, 0  ;;  %v4056_v31 = vsel %vm8951_vm10, 1.0, %v11273_v1  ;;  %vm1524_vm6 = vcmp.ne.bf16.partialorder %v1492_v2, 0  ;;  %v8977_v14 = vadd.f32 %v8865_v45, %v8861_v28  ;;  %vm1428_vm11 = vmpackc.low %vm1330_vm4, %vm8933_vm7 }
 0x316   : > { %v11465_v58 = vsel %vm8966_vm12, 4294967295, %v11464_v58  ;;  %v2723_v54 = vadd.f32 %v4056_v31, %v2722_v8  ;;  %v2306_v53 = vadd.f32 %v6145_v10, %v2257_v25  ;;  %v2307_v62 = vadd.f32 %v6145_v10, %v2258_v11  ;;  %vm1556_vm0 = vmand %vm1524_vm6, %vm1428_vm11  ;;  %v11478_v11 = vld [vmem:[#allocation55_spill] sm:$0xff] }
 0x317   : > { %vm11467_vm10 = vcmp.ne.bf16.partialorder %v1364_v44, 0  ;;  %v4057_v31 = vsel %vm8956_vm15, 1.0, %v11273_v1  ;;  %v4058_v28 = vsel %vm8960_vm8, 1.0, %v11273_v1  ;;  %vm11470_vm3 = vnez %v11212_v33 }
 0x318   : > { %vm8986_vm14 = vmand %vm11467_vm10, %vm1428_vm11  ;;  %2724 = vadd.xlane.f32.xlu0 %v2723_v54  ;;  %vm11471_vm4 = vnez %v11289_v35  ;;  %vm2354_vm5 = vcmp.gt.f32.partialorder %v2306_v53, 0.0  ;;  %vm2355_vm8 = vcmp.gt.f32.partialorder %v2307_v62, 0.0  ;;  %vm11473_vm11 = vcmp.gt.f32.partialorder %v2290_v43, 0.0  ;;  %v11479_v62 = vld [vmem:[#allocation86_spill] sm:$0xff] }
 0x319   : > { %v1588_v45 = vsel %vm8986_vm14, 65537, %v10687_v23  ;;  %vm11472_vm1 = vmand %vm11470_vm3, %vm11471_vm4  ;;  %v11476_v2 = vmov 0  ;;  %v1908_v33 = vsel %vm1556_vm0, 65537, %v10687_v23  ;;  %vm1186_vm10 = vcmp.ge.f32.partialorder %v11478_v11, 0.1 }
 0x31a   : > { %v2444_v8 = vsel %vm11472_vm1, 65537, %v10687_v23  ;;  %v1633_v44 = vunpack.c.l.b16 %v1588_v45  ;;  %v1634_v22 = vunpack.c.h.b16 %v1588_v45  ;;  %vm9010_vm6 = vmpackc.low %vm11473_vm11, %vm11473_vm11  ;;  %v1953_v43 = vunpack.c.l.b16 %v1908_v33  ;;  %v11481_v45 = vld [vmem:[#allocation112_spill] sm:$0xff] }
 0x31b   : > { %vm9014_vm7 = vmpackc.low %vm2355_vm8, %vm2354_vm5  ;;  %v2483_v35 = vunpack.c.l.b16 %v2444_v8  ;;  %v2484_v61 = vunpack.c.h.b16 %v2444_v8  ;;  %v1954_v25 = vunpack.c.h.b16 %v1908_v33  ;;  %vm11480_vm5 = vnez %v11479_v62 }
 0x31c   : > { %v11477_v2 = vsel %vm9014_vm7, 4294967295, %v11476_v2  ;;  %vm1681_vm3 = vcmp.ne.s32.totalorder %v1633_v44, 0  ;;  %vm1682_vm4 = vcmp.ne.s32.totalorder %v1634_v22, 0  ;;  %vm2411_vm8 = vmand %vm11480_vm5, %vm9010_vm6  ;;  %v2293_v8 = vadd.f32 %v6145_v10, %v11481_v45 }
 0x31d   : > { %v1729_v54 = vsel %vm1681_vm3, %v11438_v16, 0.0  ;;  %v1730_v53 = vsel %vm1682_vm4, %v11445_v42, 0.0  ;;  %vm9032_vm0 = vcmp.ne.s32.totalorder %v2483_v35, 0  ;;  %v11482_v50 = vmov 0 }
 0x31e   : > { %v11483_v50 = vsel %vm9032_vm0, 4294967295, %v11482_v50  ;;  %v9037_v44 = vmul.f32 %v8459_v3, %v1729_v54  ;;  %v9040_v22 = vmul.f32 %v8459_v3, %v1730_v53  ;;  %vm2001_vm11 = vcmp.ne.s32.totalorder %v1953_v43, 0 }
 0x31f   : > { %vm2002_vm3 = vcmp.ne.s32.totalorder %v1954_v25, 0  ;;  %vm11484_vm6 = vcmp.eq.s32.totalorder %v5688_v52, %v11466_v32  ;;  %v2049_v33 = vsel %vm2001_vm11, %v11438_v16, 0.0  ;;  %v2443_v54 = vsel %vm2411_vm8, 65537, %v10687_v23 }
 0x320   : > { %vm1236_vm4 = vmand %vm11484_vm6, %vm10897_vm2  ;;  %v2050_v35 = vsel %vm2002_vm3, %v11445_v42, 0.0  ;;  %vm9052_vm1 = vcmp.ne.s32.totalorder %v2484_v61, 0  ;;  %v11485_v3 = vmov 0  ;;  %v2114_v43 = vmul.f32 %v5902_v38, %v2049_v33  ;;  %v1494_v61 = vld [vmem:[%s5640_s21 + $0xa8] sm:$0xff] }
 0x321   : > { %vm1284_vm5 = vmxor %vm1236_vm4, %vm11262_vm13  ;;  %v11486_v3 = vsel %vm9052_vm1, 4294967295, %v11485_v3  ;;  %v2115_v25 = vmul.f32 %v5961_v60, %v2050_v35  ;;  %v2163_v53 = vmul.f32 %v5905_v39, %v9037_v44  ;;  %v2164_v16 = vmul.f32 %v5905_v39, %v9040_v22 }
 0x322   : > { %11487 = vst [vmem:[#allocation52_spill] sm:$0xff] %v11486_v3  ;;  %vm11488_vm11 = vcmp.ge.f32.partialorder %v7618_v12, 0.1  ;;  %v2482_v45 = vunpack.c.l.b16 %v2443_v54  ;;  %v2726_v33 = vadd.f32 %v4058_v28, %v4057_v31  ;;  %vm11491_vm8 = vcmp.eq.s32.totalorder %v5708_v59, %v11466_v32 }
 0x323   : > { %vm9064_vm3 = vmand %vm11488_vm11, %vm1284_vm5  ;;  %v2212_v35 = vmul.f32 %v5957_v49, %v2114_v43  ;;  %v2213_v18 = vmul.f32 %v5957_v49, %v2115_v25  ;;  %v4060_v21 = vsel %vm9032_vm0, 1.0, %v11273_v1  ;;  %v4061_v31 = vsel %vm9052_vm1, 1.0, %v11273_v1 }
 0x324   : > { %vm1237_vm6 = vmand %vm11491_vm8, %vm10897_vm2  ;;  %v9088_v28 = vmul.f32 %v5957_v49, %v8941_v57  ;;  %v9092_v54 = vadd.f32 %v6145_v10, %v8977_v14  ;;  %vm9094_vm11 = vcmp.ne.s32.totalorder %v2482_v45, 0  ;;  %v11492_v43 = vmov 0 }
 0x325   : > { %vm1285_vm5 = vmxor %vm1237_vm6, %vm11262_vm13  ;;  %v11493_v43 = vsel %vm9094_vm11, 4294967295, %v11492_v43  ;;  %vm1526_vm6 = vcmp.ne.bf16.partialorder %v1494_v61, 0  ;;  %v2260_v62 = vadd.f32 %v2212_v35, %v2163_v53  ;;  %v2261_v32 = vadd.f32 %v2213_v18, %v2164_v16  ;;  %v11499_v61 = vld [vmem:[#allocation91_spill] sm:$0xff] }
 0x326   : > { %vm9100_vm8 = vmand %vm1186_vm10, %vm1285_vm5  ;;  %v4059_v57 = vsel %vm9094_vm11, 1.0, %v11273_v1  ;;  %vm2341_vm1 = vcmp.gt.f32.partialorder %v2293_v8, 0.0  ;;  %vm11496_vm0 = vcmp.ne.bf16.partialorder %v1366_v9, 0  ;;  %v2730_v3 = vadd.f32 %v4061_v31, %v4060_v21  ;;  %v11500_v18 = vld [vmem:[#allocation39_spill] sm:$0xff] }
 0x327   : > { %vm1430_vm4 = vmpackc.low %vm9100_vm8, %vm9064_vm3  ;;  %v2727_v14 = vadd.f32 %v4059_v57, %v2726_v33  ;;  %v2309_v53 = vadd.f32 %v6145_v10, %v2260_v62  ;;  %v2310_v16 = vadd.f32 %v6145_v10, %v2261_v32  ;;  %vm11502_vm3 = vnez %v11337_v24  ;;  %v11504_v35 = vld [vmem:[#allocation47_spill] sm:$0xff] }
 0x328   : > { %vm9112_vm15 = vmand %vm11496_vm0, %vm1430_vm4  ;;  %vm11501_vm0 = vnez %v11285_v40  ;;  %vm11505_vm7 = vnez %v11504_v35  ;;  %v11514_v35 = vld [vmem:[#allocation65_spill] sm:$0xff] }
 0x329   : > { %vm1558_vm11 = vmand %vm1526_vm6, %vm1430_vm4  ;;  %v1590_v8 = vsel %vm9112_vm15, 65537, %v10687_v23  ;;  %2728 = vadd.xlane.f32.xlu1 %v2727_v14  ;;  %vm10527_vm4 = vcmp.eq.s32.totalorder %v5708_v59, %v11499_v61  ;;  %vm2357_vm6 = vcmp.gt.f32.partialorder %v2309_v53, 0.0  ;;  %vm2358_vm10 = vcmp.gt.f32.partialorder %v2310_v16, 0.0 }
 0x32a   : > { %vm11503_vm8 = vmand %vm11501_vm0, %vm11502_vm3  ;;  %v1636_v9 = vunpack.c.l.b16 %v1590_v8  ;;  %v1637_v42 = vunpack.c.h.b16 %v1590_v8  ;;  %v1910_v33 = vsel %vm1558_vm11, 65537, %v10687_v23 }
 0x32b   : > { %v2446_v21 = vsel %vm11503_vm8, 65537, %v10687_v23  ;;  %vm2381_vm5 = vmpackc.low %vm2341_vm1, %vm2341_vm1  ;;  %v1956_v32 = vunpack.c.l.b16 %v1910_v33  ;;  %v1957_v62 = vunpack.c.h.b16 %v1910_v33  ;;  %vm11511_vm8 = vcmp.ge.f32.partialorder %v11500_v18, 0.1 }
 0x32c   : > { %vm2413_vm9 = vmand %vm11505_vm7, %vm2381_vm5  ;;  %vm1684_vm0 = vcmp.ne.s32.totalorder %v1636_v9, 0  ;;  %vm1685_vm3 = vcmp.ne.s32.totalorder %v1637_v42, 0  ;;  %v2486_v31 = vunpack.c.l.b16 %v2446_v21 }
 0x32d   : > { %vm9135_vm12 = vmpackc.low %vm2358_vm10, %vm2357_vm6  ;;  %v2445_v24 = vsel %vm2413_vm9, 65537, %v10687_v23  ;;  %v1732_v25 = vsel %vm1684_vm0, %v7618_v12, 0.0  ;;  %v1733_v57 = vsel %vm1685_vm3, %v11478_v11, 0.0  ;;  %vm2004_vm7 = vcmp.ne.s32.totalorder %v1956_v32, 0  ;;  %v1368_v32 = vld [vmem:[%s5632_s20 + $0xb4] sm:$0xff]  ;;  %s3703_s20 = scalar_lea.sflag [#allocation6], %s5613_s3 }
 0x32e   : > { %vm2005_vm11 = vcmp.ne.s32.totalorder %v1957_v62, 0  ;;  %v9147_v14 = vmul.f32 %v8173_v47, %v1732_v25  ;;  %v9150_v53 = vmul.f32 %v8173_v47, %v1733_v57  ;;  %v2052_v16 = vsel %vm2004_vm7, %v7618_v12, 0.0  ;;  %v1496_v25 = vld [vmem:[%s5640_s21 + $0xb4] sm:$0xff]  ;;  %vm1240_vm7 = vmand %vm10527_vm4, %vm10897_vm2  ;;  %s5225_s21 = smov [#allocation15]  }
 0x32f   : > { %v2053_v8 = vsel %vm2005_vm11, %v11478_v11, 0.0  ;;  %vm11510_vm9 = vcmp.eq.s32.totalorder %v5688_v52, %v11499_v61  ;;  %v2117_v9 = vmul.f32 %v5902_v38, %v2052_v16  ;;  %v2485_v33 = vunpack.c.l.b16 %v2445_v24  ;;  %s5069_s23 = sshll.u32 %s5225_s21, 4  ;;  %s5070_s23 = int_to_ptr.vmem [resolvable:$false] %s5069_s23 }
 0x330   : > { %11508 = vst [vmem:[#allocation103_spill] sm:$0xff] %v9147_v14  ;;  %11509 = vst [vmem:[#allocation98_spill] sm:$0xff] %v9150_v53  ;;  %v2118_v42 = vmul.f32 %v5961_v60, %v2053_v8  ;;  %v2487_v47 = vunpack.c.h.b16 %v2446_v21  ;;  %v2166_v12 = vmul.f32 %v5905_v39, %v9147_v14  ;;  %v2167_v11 = vmul.f32 %v5905_v39, %v9150_v53  ;;  %s5071_s14 = scalar_lea.vmem %s5070_s23, 6144  ;;  %p5072_p0 = scmp.lt.s32.totalorder %s10084_s18, %s5070_s23 }
 0x331   : > { %vm1239_vm10 = vmand %vm11510_vm9, %vm10897_vm2  ;;  %vm1189_vm0 = vcmp.ge.f32.partialorder %v11514_v35, 0.1  ;;  %v2296_v24 = vadd.f32 %v6145_v10, %v8053_v19  ;;  %v2215_v21 = vmul.f32 %v5957_v49, %v2117_v9  ;;  %vm9179_vm3 = vcmp.ne.s32.totalorder %v2485_v33, 0  ;;  %p5073_p7 = scmp.lt.s32.totalorder %s5071_s14, %s5065_s16 }
 0x332   : > { %vm1287_vm5 = vmxor %vm1239_vm10, %vm11262_vm13  ;;  %v2216_v57 = vmul.f32 %v5957_v49, %v2118_v42  ;;  %v11515_v16 = vmov 0  ;;  %vm9188_vm11 = vcmp.ne.s32.totalorder %v2486_v31, 0  ;;  %v11518_v8 = vmov 0 }
 0x333   : > { %vm9169_vm6 = vmand %vm11511_vm8, %vm1287_vm5  ;;  %v11516_v16 = vsel %vm9179_vm3, 4294967295, %v11515_v16  ;;  %v11519_v8 = vsel %vm9188_vm11, 4294967295, %v11518_v8  ;;  %v4062_v19 = vsel %vm9179_vm3, 1.0, %v11273_v1  ;;  %vm1400_vm10 = vcmp.ne.bf16.partialorder %v1368_v32, 0  ;;  %p5074_p2 = por %p5073_p7, %p5072_p0 }
 0x334   : > { %11517 = vst [vmem:[#allocation108_spill] sm:$0xff] %v11516_v16  ;;  %vm1288_vm9 = vmxor %vm1240_vm7, %vm11262_vm13  ;;  %vm9196_vm5 = vcmp.ne.s32.totalorder %v2487_v47, 0  ;;  %v11520_v9 = vmov 0  ;;  %v2263_v42 = vadd.f32 %v2215_v21, %v2166_v12  ;;  %v2264_v33 = vadd.f32 %v2216_v57, %v2167_v11 }
 0x335   : > { %v11521_v9 = vsel %vm9196_vm5, 4294967295, %v11520_v9  ;;  %v2731_v31 = vadd.f32 %v4062_v19, %v2730_v3  ;;  %vm9204_vm2 = vmand %vm1189_vm0, %vm1288_vm9  ;;  %vm1528_vm8 = vcmp.ne.bf16.partialorder %v1496_v25, 0  ;;  %v11524_v16 = vunpack.c.l.b16 %v8481_v26  ;;  %p5075_p5 = pnand %p5074_p2, %p5068_p6 }
 0x336   : > { %vm1432_vm7 = vmpackc.low %vm9204_vm2, %vm9169_vm6  ;;  %v4063_v36 = vsel %vm9188_vm11, 1.0, %v11273_v1  ;;  %vm11527_vm0 = vnez %v11332_v5  ;;  %vm11528_vm9 = vnez %v11374_v15  ;;  %v2302_v3 = vadd.f32 %v6145_v10, %v8040_v6 }
 0x337   : > { %vm9210_vm13 = vcmp.ne.s32.totalorder %v11524_v16, 0  ;;  %vm11529_vm1 = vmand %vm11527_vm0, %vm11528_vm9  ;;  %v2312_v12 = vadd.f32 %v6145_v10, %v2263_v42  ;;  %v2313_v61 = vadd.f32 %v6145_v10, %v2264_v33  ;;  %2732 = vadd.xlane.f32.xlu0 %v2731_v31  ;;  %v4064_v5 = vsel %vm9196_vm5, 1.0, %v11273_v1  ;;  %v1832_v33 = vpop.permute.xlu1 %1831 }
 0x338   : > { %v2448_v26 = vsel %vm11529_vm1, 65537, %v10687_v23  ;;  %vm9232_vm6 = vmand %vm1400_vm10, %vm1432_vm7  ;;  %vm11532_vm0 = vnez %v11364_v27  ;;  %vm11533_vm10 = vnez %v11413_v51  ;;  %vm11535_vm5 = vcmp.gt.f32.partialorder %v2296_v24, 0.0 }
 0x339   : > { %v2489_v15 = vunpack.c.l.b16 %v2448_v26  ;;  %vm1560_vm2 = vmand %vm1528_vm8, %vm1432_vm7  ;;  %v1592_v6 = vsel %vm9232_vm6, 65537, %v10687_v23  ;;  %v2490_v62 = vunpack.c.h.b16 %v2448_v26  ;;  %vm2360_vm4 = vcmp.gt.f32.partialorder %v2312_v12, 0.0 }
 0x33a   : > { %vm11534_vm9 = vmand %vm11532_vm0, %vm11533_vm10  ;;  %vm2361_vm11 = vcmp.gt.f32.partialorder %v2313_v61, 0.0  ;;  %v1639_v25 = vunpack.c.l.b16 %v1592_v6  ;;  %v1640_v21 = vunpack.c.h.b16 %v1592_v6  ;;  %v1912_v27 = vsel %vm1560_vm2, 65537, %v10687_v23 }
 0x33b   : > { %v2450_v32 = vsel %vm11534_vm9, 65537, %v10687_v23  ;;  %vm9250_vm8 = vmpackc.low %vm11535_vm5, %vm11535_vm5  ;;  %v2734_v19 = vadd.f32 %v4064_v5, %v4063_v36  ;;  %vm9259_vm1 = vcmp.ne.s32.totalorder %v2489_v15, 0  ;;  %v1959_v24 = vunpack.c.l.b16 %v1912_v27  ;;  %v11542_v36 = vld [vmem:[#allocation106_spill] sm:$0xff] }
 0x33c   : > { %vm9254_vm7 = vmpackc.low %vm2361_vm11, %vm2360_vm4  ;;  %vm1687_vm10 = vcmp.ne.s32.totalorder %v1639_v25, 0  ;;  %vm1688_vm9 = vcmp.ne.s32.totalorder %v1640_v21, 0  ;;  %v1960_v42 = vunpack.c.h.b16 %v1912_v27  ;;  %vm11543_vm4 = vnez %v11542_v36 }
 0x33d   : > { %v1735_v31 = vsel %vm1687_vm10, %v11500_v18, 0.0  ;;  %v1736_v26 = vsel %vm1688_vm9, %v11514_v35, 0.0  ;;  %vm2415_vm11 = vmand %vm11543_vm4, %vm9250_vm8  ;;  %vm9273_vm2 = vcmp.ne.s32.totalorder %v2490_v62, 0  ;;  %v11544_v12 = vmov 0  ;;  %v11549_v62 = vld [vmem:[#allocation110_spill] sm:$0xff] }
 0x33e   : > { %v11545_v12 = vsel %vm9273_vm2, 4294967295, %v11544_v12  ;;  %v2492_v61 = vunpack.c.l.b16 %v2450_v32  ;;  %v9277_v5 = vmul.f32 %v1832_v33, %v1735_v31  ;;  %v9279_v15 = vmul.f32 %v1832_v33, %v1736_v26  ;;  %v11552_v26 = vld [vmem:[#allocation53_spill] sm:$0xff] }
 0x33f   : > { %vm2007_vm5 = vcmp.ne.s32.totalorder %v1959_v24, 0  ;;  %vm2008_vm0 = vcmp.ne.s32.totalorder %v1960_v42, 0  ;;  %vm11548_vm3 = vcmp.gt.f32.partialorder %v2299_v56, 0.0  ;;  %v2447_v21 = vsel %vm2415_vm11, 65537, %v10687_v23 }
 0x340   : > { %11546 = vst [vmem:[#allocation55_spill] sm:$0xff] %v9277_v5  ;;  %11547 = vst [vmem:[#allocation86_spill] sm:$0xff] %v9279_v15  ;;  %v2055_v6 = vsel %vm2007_vm5, %v11500_v18, 0.0  ;;  %v2056_v25 = vsel %vm2008_vm0, %v11514_v35, 0.0  ;;  %vm11550_vm8 = vnez %v11549_v62  ;;  %v4066_v57 = vsel %vm9259_vm1, 1.0, %v11273_v1 }
 0x341   : > { %vm2385_vm10 = vmpackc.low %vm11548_vm3, %vm11548_vm3  ;;  %v2120_v27 = vmul.f32 %v5902_v38, %v2055_v6  ;;  %v2121_v24 = vmul.f32 %v5961_v60, %v2056_v25  ;;  %v2169_v56 = vmul.f32 %v5905_v39, %v9277_v5  ;;  %v2170_v18 = vmul.f32 %v5905_v39, %v9279_v15  ;;  %v11640_v15 = vld [vmem:[#allocation48_spill] sm:$0xff] }
 0x342   : > { %vm2417_vm9 = vmand %vm11550_vm8, %vm2385_vm10  ;;  %vm11551_vm3 = vcmp.gt.f32.partialorder %v2302_v3, 0.0  ;;  %v2488_v35 = vunpack.c.l.b16 %v2447_v21  ;;  %v4067_v31 = vsel %vm9273_vm2, 1.0, %v11273_v1  ;;  %vm11553_vm5 = vnez %v11552_v26 }
 0x343   : > { %vm2387_vm0 = vmpackc.low %vm11551_vm3, %vm11551_vm3  ;;  %v2449_v42 = vsel %vm2417_vm9, 65537, %v10687_v23  ;;  %v2493_v38 = vunpack.c.h.b16 %v2450_v32  ;;  %v2057_v60 = vsel %vm9210_vm13, %v11185_v0, 0.0  ;;  %v2218_v36 = vmul.f32 %v5957_v49, %v2120_v27 }
 0x344   : > { %vm2419_vm4 = vmand %vm11553_vm5, %vm2387_vm0  ;;  %v2219_v3 = vmul.f32 %v5957_v49, %v2121_v24  ;;  %v2491_v6 = vunpack.c.l.b16 %v2449_v42  ;;  %vm2359_vm11 = vcmp.gt.f32.partialorder %v9092_v54, 0.0  ;;  %vm9311_vm10 = vcmp.ne.s32.totalorder %v2488_v35, 0 }
 0x345   : > { %v11554_v25 = vmov 0  ;;  %v2738_v21 = vadd.f32 %v4067_v31, %v4066_v57  ;;  %v2451_v62 = vsel %vm2419_vm4, 65537, %v10687_v23  ;;  %v2266_v26 = vadd.f32 %v2218_v36, %v2169_v56  ;;  %vm9355_vm5 = vmpackc.low %vm2359_vm11, %vm2359_vm11 }
 0x346   : > { %v11555_v25 = vsel %vm9311_vm10, 4294967295, %v11554_v25  ;;  %v2267_v32 = vadd.f32 %v2219_v3, %v2170_v18  ;;  %v4065_v47 = vsel %vm9311_vm10, 1.0, %v11273_v1  ;;  %vm9319_vm13 = vcmp.ne.s32.totalorder %v2492_v61, 0 }
 0x347   : > { %v11556_v27 = vmov 0  ;;  %v2735_v24 = vadd.f32 %v4065_v47, %v2734_v19  ;;  %vm9323_vm8 = vcmp.ne.s32.totalorder %v2491_v6, 0  ;;  %v11558_v42 = vmov 0 }
 0x348   : > { %v11557_v27 = vsel %vm9319_vm13, 4294967295, %v11556_v27  ;;  %v11559_v42 = vsel %vm9323_vm8, 4294967295, %v11558_v42  ;;  %v2494_v35 = vunpack.c.l.b16 %v2451_v62  ;;  %vm9327_vm9 = vcmp.ne.s32.totalorder %v2493_v38, 0 }
 0x349   : > { %v11560_v57 = vmov 0  ;;  %v2259_v56 = vadd.f32 %v9088_v28, %v8851_v55  ;;  %v2315_v18 = vadd.f32 %v6145_v10, %v2266_v26  ;;  %v2316_v61 = vadd.f32 %v6145_v10, %v2267_v32  ;;  %2736 = vadd.xlane.f32.xlu1 %v2735_v24 }
 0x34a   : > { %v11561_v57 = vsel %vm9327_vm9, 4294967295, %v11560_v57  ;;  %v4068_v19 = vsel %vm9323_vm8, 1.0, %v11273_v1  ;;  %vm11562_vm3 = vnez %v11465_v58  ;;  %vm9344_vm0 = vcmp.ne.s32.totalorder %v2494_v35, 0 }
 0x34b   : > { %v11563_v31 = vsel %vm11562_vm3, %v11185_v0, 0.0  ;;  %v2739_v38 = vadd.f32 %v4068_v19, %v2738_v21  ;;  %v11564_v3 = vmov 0  ;;  %v4069_v55 = vsel %vm9319_vm13, 1.0, %v11273_v1 }
 0x34c   : > { %v9342_v36 = vmul.f32 %v1832_v33, %v11563_v31  ;;  %v11565_v3 = vsel %vm9344_vm0, 4294967295, %v11564_v3  ;;  %v2122_v28 = vmul.f32 %v5882_v34, %v2057_v60  ;;  %vm2363_vm4 = vcmp.gt.f32.partialorder %v2315_v18, 0.0  ;;  %v11568_v60 = vld [vmem:[#allocation75_spill] sm:$0xff]  ;;  %v11581_v18 = vld [vmem:[#allocation62_spill] sm:$0xff] }
 0x34d   : > { %vm2364_vm3 = vcmp.gt.f32.partialorder %v2316_v61, 0.0  ;;  %v4070_v0 = vsel %vm9327_vm9, 1.0, %v11273_v1  ;;  %2740 = vadd.xlane.f32.xlu0 %v2739_v38  ;;  %v4071_v33 = vsel %vm9344_vm0, 1.0, %v11273_v1  ;;  %v2305_v54 = vadd.f32 %v6145_v10, %v11568_v60 }
 0x34e   : > { %vm2396_vm8 = vmpackc.low %vm2364_vm3, %vm2363_vm4  ;;  %v2742_v34 = vadd.f32 %v4070_v0, %v4069_v55  ;;  %vm11569_vm11 = vnez %v11395_v48  ;;  %vm11570_vm13 = vnez %v11437_v30  ;;  %v2308_v26 = vadd.f32 %v6145_v10, %v2259_v56  ;;  %v11575_v48 = vld [vmem:[#allocation118_spill] sm:$0xff]  ;;  %v11586_v0 = vld [vmem:[#allocation69_spill] sm:$0xff]  ;;  %v2705_v55 = vpop.xlane.xlu0 %2704 }
 0x34f   : > { %vm11571_vm2 = vmand %vm11569_vm11, %vm11570_vm13  ;;  %vm11572_vm4 = vnez %v11434_v7  ;;  %vm11573_vm3 = vnez %v11477_v2  ;;  %vm11576_vm10 = vnez %v11575_v48  ;;  %v2171_v35 = vmul.f32 %v5905_v39, %v9342_v36  ;;  %v11759_v2 = vld [vmem:[#allocation77_spill] sm:$0xff] }
 0x350   : > { %v2452_v6 = vsel %vm11571_vm2, 65537, %v10687_v23  ;;  %vm2428_vm9 = vmand %vm9232_vm6, %vm2396_vm8  ;;  %v2743_v11 = vadd.f32 %v4071_v33, %v2742_v34  ;;  %vm2353_vm6 = vcmp.gt.f32.partialorder %v2305_v54, 0.0  ;;  %v2220_v56 = vmul.f32 %v5957_v49, %v2122_v28 }
 0x351   : > { %v2495_v21 = vunpack.c.l.b16 %v2452_v6  ;;  %v2496_v62 = vunpack.c.h.b16 %v2452_v6  ;;  %vm11574_vm0 = vmand %vm11572_vm4, %vm11573_vm3  ;;  %v9387_v30 = vsel %vm2428_vm9, 65537, %v10687_v23  ;;  %vm11582_vm9 = vnez %v11581_v18  ;;  %v11639_v6 = vld [vmem:[#allocation71_spill] sm:$0xff] }
 0x352   : > { %v2454_v32 = vsel %vm11574_vm0, 65537, %v10687_v23  ;;  %v2508_v24 = vunpack.c.h.b16 %v9387_v30  ;;  %vm2389_vm2 = vmpackc.low %vm2353_vm6, %vm2353_vm6  ;;  %vm2356_vm0 = vcmp.gt.f32.partialorder %v2308_v26, 0.0  ;;  %2744 = vadd.xlane.f32.xlu1 %v2743_v11  ;;  %v11583_v31 = vmov 0 }
 0x353   : > { %v2498_v47 = vunpack.c.l.b16 %v2454_v32  ;;  %vm9390_vm8 = vcmp.ne.s32.totalorder %v2495_v21, 0  ;;  %vm9394_vm11 = vcmp.ne.s32.totalorder %v2496_v62, 0  ;;  %vm2421_vm4 = vmand %vm11582_vm9, %vm2389_vm2  ;;  %v2499_v49 = vunpack.c.h.b16 %v2454_v32 }
 0x354   : > { %v4072_v61 = vsel %vm9390_vm8, 1.0, %v11273_v1  ;;  %v4073_v19 = vsel %vm9394_vm11, 1.0, %v11273_v1  ;;  %vm9409_vm3 = vcmp.ne.s32.totalorder %v2508_v24, 0  ;;  %v2453_v39 = vsel %vm2421_vm4, 65537, %v10687_v23  ;;  %vm2391_vm6 = vmpackc.low %vm2356_vm0, %vm2356_vm0 }
 0x355   : > { %v11584_v31 = vsel %vm9409_vm3, 4294967295, %v11583_v31  ;;  %v2746_v38 = vadd.f32 %v4073_v19, %v4072_v61  ;;  %v2497_v28 = vunpack.c.l.b16 %v2453_v39  ;;  %vm11587_vm2 = vnez %v11586_v0  ;;  %vm11590_vm4 = vmand %vm8986_vm14, %vm9135_vm12  ;;  %v11598_v0 = vld [vmem:[#allocation119_spill] sm:$0xff] }
 0x356   : > { %11585 = vst [vmem:[#allocation112_spill] sm:$0xff] %v11584_v31  ;;  %vm2423_vm9 = vmand %vm11587_vm2, %vm2391_vm6  ;;  %vm9419_vm13 = vcmp.ne.s32.totalorder %v2498_v47, 0  ;;  %v11588_v33 = vmov 0  ;;  %v2456_v34 = vsel %vm11590_vm4, 65537, %v10687_v23  ;;  %vm9430_vm0 = vcmp.ne.s32.totalorder %v2499_v49, 0 }
 0x357   : > { %v11589_v33 = vsel %vm9419_vm13, 4294967295, %v11588_v33  ;;  %v2455_v60 = vsel %vm2423_vm9, 65537, %v10687_v23  ;;  %v11591_v54 = vmov 0  ;;  %v4075_v21 = vsel %vm9419_vm13, 1.0, %v11273_v1  ;;  %vm11595_vm14 = vmand %vm11576_vm10, %vm9355_vm5 }
 0x358   : > { %v11592_v54 = vsel %vm9430_vm0, 4294967295, %v11591_v54  ;;  %vm9440_vm6 = vcmp.ne.s32.totalorder %v2497_v28, 0  ;;  %v2500_v40 = vunpack.c.l.b16 %v2455_v60  ;;  %v4076_v26 = vsel %vm9430_vm0, 1.0, %v11273_v1  ;;  %vm11603_vm2 = vmand %vm9112_vm15, %vm9254_vm7 }
 0x359   : > { %v4074_v32 = vsel %vm9440_vm6, 1.0, %v11273_v1  ;;  %v2750_v11 = vadd.f32 %v4076_v26, %v4075_v21  ;;  %v2457_v47 = vsel %vm11595_vm14, 65537, %v10687_v23  ;;  %v2501_v61 = vunpack.c.l.b16 %v2456_v34  ;;  %v11636_v21 = vld [vmem:[#allocation72_spill] sm:$0xff] }
 0x35a   : > { %v2747_v24 = vadd.f32 %v4074_v32, %v2746_v38  ;;  %vm9459_vm12 = vcmp.ne.s32.totalorder %v2500_v40, 0  ;;  %v2502_v19 = vunpack.c.h.b16 %v2456_v34  ;;  %v2268_v39 = vadd.f32 %v2220_v56, %v2171_v35  ;;  %v11637_v34 = vld [vmem:[#allocation102_spill] sm:$0xff] }
 0x35b   : > { %v4077_v49 = vsel %vm9459_vm12, 1.0, %v11273_v1  ;;  %v2503_v28 = vunpack.c.l.b16 %v2457_v47  ;;  %v2314_v48 = vadd.f32 %v6145_v10, %v11598_v0  ;;  %vm9468_vm10 = vcmp.ne.s32.totalorder %v2501_v61, 0 }
 0x35c   : > { %2748 = vadd.xlane.f32.xlu0 %v2747_v24  ;;  %v2751_v58 = vadd.f32 %v4077_v49, %v2750_v11  ;;  %v11599_v60 = vmov 0  ;;  %vm9472_vm5 = vcmp.ne.s32.totalorder %v2502_v19, 0  ;;  %v11601_v38 = vmov 0  ;;  %v11606_v24 = vld [vmem:[#allocation67_spill] sm:$0xff] }
 0x35d   : > { %v11600_v60 = vsel %vm9468_vm10, 4294967295, %v11599_v60  ;;  %v11602_v38 = vsel %vm9472_vm5, 4294967295, %v11601_v38  ;;  %v2458_v35 = vsel %vm11603_vm2, 65537, %v10687_v23  ;;  %vm9482_vm9 = vcmp.ne.s32.totalorder %v2503_v28, 0 }
 0x35e   : > { %v4078_v45 = vsel %vm9468_vm10, 1.0, %v11273_v1  ;;  %2752 = vadd.xlane.f32.xlu1 %v2751_v58  ;;  %v4079_v16 = vsel %vm9472_vm5, 1.0, %v11273_v1  ;;  %vm2362_vm15 = vcmp.gt.f32.partialorder %v2314_v48, 0.0  ;;  %v2504_v26 = vunpack.c.l.b16 %v2458_v35 }
 0x35f   : > { %v2754_v40 = vadd.f32 %v4079_v16, %v4078_v45  ;;  %vm2395_vm7 = vmpackc.low %vm2362_vm15, %vm2362_vm15  ;;  %v2505_v32 = vunpack.c.h.b16 %v2458_v35  ;;  %v2317_v11 = vadd.f32 %v6145_v10, %v2268_v39  ;;  %v4080_v47 = vsel %vm9482_vm9, 1.0, %v11273_v1  ;;  %v2709_v39 = vpop.xlane.xlu1 %2708 }
 0x360   : > { %vm11607_vm4 = vnez %v11606_v24  ;;  %v2507_v61 = vunpack.c.l.b16 %v9387_v30  ;;  %vm9506_vm2 = vcmp.ne.s32.totalorder %v2504_v26, 0  ;;  %v11608_v28 = vmov 0 }
 0x361   : > { %vm2427_vm14 = vmand %vm11607_vm4, %vm2395_vm7  ;;  %v2755_v19 = vadd.f32 %v4080_v47, %v2754_v40  ;;  %v11609_v28 = vsel %vm9506_vm2, 4294967295, %v11608_v28  ;;  %vm9510_vm15 = vcmp.ne.s32.totalorder %v2505_v32, 0  ;;  %v11610_v0 = vmov 0  ;;  %v11618_v47 = vld [vmem:[#allocation73_spill] sm:$0xff] }
 0x362   : > { %v2459_v49 = vsel %vm2427_vm14, 65537, %v10687_v23  ;;  %v11611_v0 = vsel %vm9510_vm15, 4294967295, %v11610_v0  ;;  %v4081_v48 = vsel %vm9506_vm2, 1.0, %v11273_v1  ;;  %v4082_v58 = vsel %vm9510_vm15, 1.0, %v11273_v1 }
 0x363   : > { %11612 = vst [vmem:[#allocation39_spill] sm:$0xff] %v11611_v0  ;;  %v2506_v10 = vunpack.c.l.b16 %v2459_v49  ;;  %2756 = vadd.xlane.f32.xlu0 %v2755_v19  ;;  %vm2365_vm7 = vcmp.gt.f32.partialorder %v2317_v11, 0.0  ;;  %vm9526_vm4 = vcmp.ne.s32.totalorder %v2507_v61, 0  ;;  %v11613_v35 = vmov 0 }
 0x364   : > { %v11614_v35 = vsel %vm9526_vm4, 4294967295, %v11613_v35  ;;  %v4085_v45 = vsel %vm9409_vm3, 1.0, %v11273_v1  ;;  %v2758_v40 = vadd.f32 %v4082_v58, %v4081_v48  ;;  %vm2397_vm2 = vmpackc.low %vm2365_vm7, %vm2365_vm7  ;;  %v4084_v32 = vsel %vm9526_vm4, 1.0, %v11273_v1 }
 0x365   : > { %11615 = vst [vmem:[#allocation47_spill] sm:$0xff] %v11614_v35  ;;  %vm9533_vm14 = vcmp.ne.s32.totalorder %v2506_v10, 0  ;;  %vm11619_vm3 = vnez %v11618_v47  ;;  %v2762_v49 = vadd.f32 %v4085_v45, %v4084_v32  ;;  %v11620_v10 = vmov 0  ;;  %v11625_v45 = vld [vmem:[#allocation82_spill] sm:$0xff]  ;;  %v11626_v32 = vld [vmem:[#allocation84_spill] sm:$0xff] }
 0x366   : > { %v4083_v11 = vsel %vm9533_vm14, 1.0, %v11273_v1  ;;  %vm2429_vm15 = vmand %vm11619_vm3, %vm2397_vm2  ;;  %v2766_v26 = vadd.f32 1.0, %v2705_v55  ;;  %vm11627_vm2 = vnez %v11626_v32 }
 0x367   : > { %v2759_v24 = vadd.f32 %v4083_v11, %v2758_v40  ;;  %v2461_v61 = vsel %vm2429_vm15, 65537, %v10687_v23  ;;  %v11622_v40 = vld [vmem:[#allocation44_spill] sm:$0xff] }
 0x368   : > { %v2509_v19 = vunpack.c.l.b16 %v2461_v61  ;;  %4748 = vrcp.f32 %v2766_v26  ;;  %v11623_v11 = vld [vmem:[#allocation116_spill] sm:$0xff]  ;;  %v11628_v61 = vld [vmem:[#allocation43_spill] sm:$0xff] }
 0x369   : > { %2760 = vadd.xlane.f32.xlu1 %v2759_v24  ;;  %vm11624_vm3 = vnez %v11623_v11  ;;  %v2560_v24 = vsel %vm11627_vm2, %v11625_v45, 0.0 }
 0x36a   : > { %vm9549_vm7 = vcmp.ne.s32.totalorder %v2509_v19, 0  ;;  %v2559_v23 = vsel %vm11624_vm3, %v11622_v40, 0.0  ;;  %v11629_v19 = vld [vmem:[#allocation114_spill] sm:$0xff] }
 0x36b   : > { %v11621_v10 = vsel %vm9549_vm7, 4294967295, %v11620_v10  ;;  %v4086_v48 = vsel %vm9549_vm7, 1.0, %v11273_v1  ;;  %vm11630_vm15 = vnez %v11629_v19  ;;  %v2767_v1 = vadd.f32 1.0, %v2709_v39 }
 0x36c   : > { %v2763_v58 = vadd.f32 %v4086_v48, %v2762_v49  ;;  %v2558_v30 = vsel %vm11630_vm15, %v11628_v61, 0.0  ;;  %v11631_v49 = vld [vmem:[#allocation33_spill] sm:$0xff]  ;;  %v11632_v48 = vld [vmem:[#allocation32_spill] sm:$0xff] }
 0x36d   : > { %vm11633_vm4 = vcmp.eq.s32.totalorder %v11631_v49, %v11632_v48  ;;  %vm11634_vm5 = vcmp.eq.s32.totalorder %v5688_v52, %v11632_v48  ;;  %vm11635_vm3 = vcmp.eq.s32.totalorder %v5708_v59, %v11632_v48  ;;  %4750 = vrcp.f32 %v2767_v1 }
 0x36e   : > { %2764 = vadd.xlane.f32.xlu0 %v2763_v58 }
 0x372   : > { %v4749_v47 = vpop.eup %4748 }
 0x373   : > { %v2816_v55 = vsel %vm11633_vm4, %v4749_v47, 0.0  ;;  %v2814_v26 = vsel %vm11634_vm5, %v4749_v47, 0.0  ;;  %v2815_v58 = vsel %vm11635_vm3, %v4749_v47, 0.0  ;;  %vm11638_vm4 = vnez %v11637_v34  ;;  %v11642_v47 = vld [vmem:[#allocation41_spill] sm:$0xff] }
 0x374   : > { %v2864_v40 = vadd.f32 %v2816_v55, %v2560_v24  ;;  %v2862_v11 = vadd.f32 %v2814_v26, %v2558_v30  ;;  %v2863_v45 = vadd.f32 %v2815_v58, %v2559_v23  ;;  %v2562_v62 = vsel %vm11638_vm4, %v11636_v21, 0.0  ;;  %v11643_v24 = vld [vmem:[#allocation81_spill] sm:$0xff]  ;;  %v11645_v23 = vld [vmem:[#allocation35_spill] sm:$0xff]  ;;  %v2713_v21 = vpop.xlane.xlu0 %2712 }
 0x375   : > { %vm11641_vm5 = vnez %v11640_v15  ;;  %vm11644_vm2 = vnez %v11643_v24  ;;  %vm11646_vm15 = vcmp.eq.s32.totalorder %v5688_v52, %v11645_v23  ;;  %vm11647_vm3 = vcmp.eq.s32.totalorder %v5708_v59, %v11645_v23 }
 0x376   : > { %v2962_v32 = vmul.f32 1.442695, %v2864_v40  ;;  %v2958_v61 = vmul.f32 1.442695, %v2862_v11  ;;  %v2960_v19 = vmul.f32 1.442695, %v2863_v45  ;;  %vm11648_vm10 = vcmp.eq.s32.totalorder %v11631_v49, %v11645_v23 }
 0x377   : > { %v4751_v39 = vpop.eup %4750  ;;  %v2561_v48 = vsel %vm11641_vm5, %v11639_v6, 0.0  ;;  %v2563_v30 = vsel %vm11644_vm2, %v11642_v47, 0.0  ;;  %vm2912_vm4 = vcmp.ne.f32.partialorder %v2864_v40, 0.0  ;;  %vm2910_vm5 = vcmp.ne.f32.partialorder %v2862_v11, 0.0 }
 0x378   : > { %4752 = vpow2.f32 %v2962_v32  ;;  %v2817_v1 = vsel %vm11646_vm15, %v4751_v39, 0.0  ;;  %v2818_v55 = vsel %vm11647_vm3, %v4751_v39, 0.0  ;;  %v2819_v34 = vsel %vm11648_vm10, %v4751_v39, 0.0 }
 0x379   : > { %4754 = vpow2.f32 %v2958_v61  ;;  %v2865_v26 = vadd.f32 %v2817_v1, %v2561_v48  ;;  %v2866_v15 = vadd.f32 %v2818_v55, %v2562_v62  ;;  %v2867_v6 = vadd.f32 %v2819_v34, %v2563_v30  ;;  %v11650_v48 = vld [vmem:[#allocation79_spill] sm:$0xff]  ;;  %v11652_v1 = vld [vmem:[#allocation89_spill] sm:$0xff] }
 0x37a   : > { %4756 = vpow2.f32 %v2960_v19  ;;  %v2768_v32 = vadd.f32 1.0, %v2713_v21  ;;  %vm2911_vm2 = vcmp.ne.f32.partialorder %v2863_v45, 0.0  ;;  %v11649_v45 = vld [vmem:[#allocation87_spill] sm:$0xff]  ;;  %vm11651_vm10 = vnez %v11650_v48  ;;  %v11653_v55 = vld [vmem:[#allocation121_spill] sm:$0xff]  ;;  %v11655_v21 = vld [vmem:[#allocation80_spill] sm:$0xff] }
 0x37b   : > { %v2964_v47 = vmul.f32 1.442695, %v2865_v26  ;;  %v2966_v5 = vmul.f32 1.442695, %v2866_v15  ;;  %v2968_v23 = vmul.f32 1.442695, %v2867_v6  ;;  %vm11654_vm15 = vnez %v11653_v55 }
 0x37c   : > { %4758 = vrcp.f32 %v2768_v32  ;;  %v2564_v30 = vsel %vm11651_vm10, %v11649_v45, 0.0  ;;  %v2565_v34 = vsel %vm11654_vm15, %v11652_v1, 0.0  ;;  %vm2915_vm15 = vcmp.ne.f32.partialorder %v2867_v6, 0.0 }
 0x37d   : > { %4760 = vpow2.f32 %v2964_v47 }
 0x37e   : > { %4762 = vpow2.f32 %v2966_v5  ;;  %v11658_v5 = vld [vmem:[#allocation34_spill] sm:$0xff] }
 0x37f   : > { %4764 = vpow2.f32 %v2968_v23  ;;  %vm11660_vm0 = vcmp.eq.s32.totalorder %v5688_v52, %v11658_v5  ;;  %vm11661_vm10 = vcmp.eq.s32.totalorder %v5708_v59, %v11658_v5 }
 0x382   : > { %v4753_v58 = vpop.eup %4752 }
 0x383   : > { %v4755_v61 = vpop.eup %4754  ;;  %v3056_v19 = vsel %vm2912_vm4, %v4753_v58, 0.0  ;;  %v11656_v58 = vld [vmem:[#allocation85_spill] sm:$0xff]  ;;  %vm2913_vm4 = vcmp.ne.f32.partialorder %v2865_v26, 0.0 }
 0x384   : > { %v4757_v24 = vpop.eup %4756  ;;  %v4177_v31 = vpack.c.bf16 %v3056_v19, %v3056_v19  ;;  %v3054_v35 = vsel %vm2910_vm5, %v4755_v61, 0.0  ;;  %vm11657_vm3 = vnez %v11656_v58  ;;  %vm2914_vm5 = vcmp.ne.f32.partialorder %v2866_v15, 0.0 }
 0x385   : > { %v3055_v39 = vsel %vm2911_vm2, %v4757_v24, 0.0  ;;  %v2566_v32 = vsel %vm11657_vm3, %v11655_v21, 0.0  ;;  %vm11659_vm2 = vcmp.eq.s32.totalorder %v11631_v49, %v11658_v5 }
 0x386   : > { %3263 = vst [vmem:[%s9593_s30 + $0x8] sm:$0xf] %v4177_v31  ;;  %v4604_v62 = vpack.i.bf16 %v3055_v39, %v3054_v35  ;;  %v4176_v40 = vpack.c.bf16 %v3055_v39, %v3054_v35  ;;  %v4759_v11 = vpop.eup %4758 }
 0x387   : > { %v4761_v31 = vpop.eup %4760  ;;  %v2822_v61 = vsel %vm11659_vm2, %v4759_v11, 0.0  ;;  %v2820_v47 = vsel %vm11660_vm0, %v4759_v11, 0.0  ;;  %v2821_v24 = vsel %vm11661_vm10, %v4759_v11, 0.0  ;;  %vm11665_vm2 = vnez %v11376_v63 }
 0x388   : > { %3262 = vst [vmem:[%s9593_s30] sm:$0xff] %v4176_v40  ;;  %v4763_v23 = vpop.eup %4762  ;;  %v3057_v40 = vsel %vm2913_vm4, %v4761_v31, 0.0  ;;  %v2870_v26 = vadd.f32 %v2822_v61, %v2566_v32  ;;  %v2868_v45 = vadd.f32 %v2820_v47, %v2564_v30  ;;  %v2869_v48 = vadd.f32 %v2821_v24, %v2565_v34 }
 0x389   : > { %v4765_v15 = vpop.eup %4764  ;;  %v3058_v1 = vsel %vm2914_vm5, %v4763_v23, 0.0  ;;  %v3630_v55 = vadd.f32 %v3057_v40, %v3054_v35  ;;  %vm11663_vm5 = vnez %v11368_v20  ;;  %vm11667_vm10 = vnez %v11418_v46  ;;  %v11672_v46 = vld [vmem:[#allocation40_spill] sm:$0xff] }
 0x38a   : > { %v4178_v21 = vpack.c.bf16 %v3058_v1, %v3057_v40  ;;  %v3651_v58 = vadd.f32 %v3058_v1, %v3055_v39  ;;  %v3059_v53 = vsel %vm2915_vm15, %v4765_v15, 0.0  ;;  %v4606_v0 = vpack.i.bf16 %v3058_v1, %v3057_v40  ;;  %v11662_v1 = vld [vmem:[#allocation95_spill] sm:$0xff] }
 0x38b   : > { %v4179_v14 = vpack.c.bf16 %v3059_v53, %v3059_v53  ;;  %v3672_v5 = vadd.f32 %v3059_v53, %v3056_v19  ;;  %v2974_v11 = vmul.f32 1.442695, %v2870_v26  ;;  %v2972_v31 = vmul.f32 1.442695, %v2869_v48 }
 0x38c   : > { %3264 = vst [vmem:[%s9593_s30 + $0xc] sm:$0xff] %v4178_v21  ;;  %vm2918_vm0 = vcmp.ne.f32.partialorder %v2870_v26, 0.0  ;;  %vm2916_vm3 = vcmp.ne.f32.partialorder %v2868_v45, 0.0  ;;  %vm2917_vm4 = vcmp.ne.f32.partialorder %v2869_v48, 0.0  ;;  %v11664_v21 = vld [vmem:[#allocation96_spill] sm:$0xff]  ;;  %v11666_v48 = vld [vmem:[#allocation93_spill] sm:$0xff] }
 0x38d   : > { %3265 = vst [vmem:[%s9593_s30 + $0x14] sm:$0xf] %v4179_v14  ;;  %4766 = vpow2.f32 %v2974_v11 }
 0x38f   : > { %v2717_v30 = vpop.xlane.xlu0 %2716 }
 0x390   : > { %v2769_v34 = vadd.f32 1.0, %v2717_v30 }
 0x393   : > { %v2721_v35 = vpop.xlane.xlu1 %2720 }
 0x394   : > { %v2770_v6 = vadd.f32 1.0, %v2721_v35 }
 0x397   : > { %v4767_v39 = vpop.eup %4766 }
 0x39b   : > { %3358 = vxpose.xlu0.b32.start [1/16] %v3056_v19, 128 }
 0x39c   : > { %4605 = vxpose.xlu1.b32.start [1/16] %v4604_v62, 128  ;;  %v2970_v62 = vmul.f32 1.442695, %v2868_v45  ;;  %v2567_v45 = vsel %vm11663_vm5, %v11662_v1, 0.0  ;;  %vm11674_vm5 = vcmp.eq.s32.totalorder %v5688_v52, %v11672_v46  ;;  %v11682_v1 = vld [vmem:[#allocation50_spill] sm:$0xff] }
 0x39e   : > { %4768 = vpow2.f32 %v2970_v62 }
 0x39f   : > { %3359 = vxpose.xlu0.b32.cont [2/16] %v3059_v53, 128  ;;  %4770 = vpow2.f32 %v2972_v31  ;;  %v3062_v53 = vsel %vm2918_vm0, %v4767_v39, 0.0 }
 0x3a0   : > { %4607 = vxpose.xlu1.b32.cont [2/16] %v4606_v0, 128  ;;  %4772 = vrcp.f32 %v2769_v34  ;;  %v4181_v0 = vpack.c.bf16 %v3062_v53, %v3062_v53  ;;  %v9617_v14 = vadd.f32 %v3672_v5, %v3062_v53  ;;  %v2568_v5 = vsel %vm11665_vm2, %v11664_v21, 0.0 }
 0x3a1   : > { %4774 = vrcp.f32 %v2770_v6  ;;  %vm11675_vm2 = vcmp.eq.s32.totalorder %v5708_v59, %v11672_v46 }
 0x3a2   : > { %3267 = vst [vmem:[%s9593_s30 + $0x20] sm:$0xf] %v4181_v0 }
 0x3a3   : > { %3360 = vxpose.xlu0.b32.cont [3/16] %v3062_v53, 128  ;;  %v11676_v53 = vld [vmem:[#allocation104_spill] sm:$0xff] }
 0x3a5   : > { %v2725_v35 = vpop.xlane.xlu0 %2724 }
 0x3a8   : > { %v4769_v32 = vpop.eup %4768 }
 0x3a9   : > { %v4771_v19 = vpop.eup %4770  ;;  %v3060_v61 = vsel %vm2916_vm3, %v4769_v32, 0.0 }
 0x3aa   : > { %v3061_v47 = vsel %vm2917_vm4, %v4771_v19, 0.0  ;;  %v9619_v24 = vadd.f32 %v3630_v55, %v3060_v61  ;;  %v4773_v26 = vpop.eup %4772  ;;  %v2569_v55 = vsel %vm11667_vm10, %v11666_v48, 0.0  ;;  %vm11673_vm4 = vcmp.eq.s32.totalorder %v11631_v49, %v11672_v46  ;;  %v11677_v19 = vld [vmem:[#allocation94_spill] sm:$0xff] }
 0x3ab   : > { %v9622_v23 = vadd.f32 %v3651_v58, %v3061_v47  ;;  %v4608_v40 = vpack.i.bf16 %v3061_v47, %v3060_v61  ;;  %v4180_v15 = vpack.c.bf16 %v3061_v47, %v3060_v61  ;;  %v11668_v58 = vld [vmem:[#allocation36_spill] sm:$0xff]  ;;  %v4775_v63 = vpop.eup %4774  ;;  %vm11678_vm10 = vnez %v11677_v19  ;;  %v11679_v61 = vld [vmem:[#allocation54_spill] sm:$0xff] }
 0x3ac   : > { %vm11669_vm15 = vcmp.eq.s32.totalorder %v11631_v49, %v11668_v58  ;;  %vm11670_vm0 = vcmp.eq.s32.totalorder %v5688_v52, %v11668_v58  ;;  %vm11671_vm3 = vcmp.eq.s32.totalorder %v5708_v59, %v11668_v58  ;;  %v2828_v6 = vsel %vm11673_vm4, %v4775_v63, 0.0 }
 0x3ad   : > { %4609 = vxpose.xlu1.b32.cont [3/16] %v4608_v40, 128  ;;  %3266 = vst [vmem:[%s9593_s30 + $0x18] sm:$0xff] %v4180_v15  ;;  %v2825_v11 = vsel %vm11669_vm15, %v4773_v26, 0.0  ;;  %v2823_v62 = vsel %vm11670_vm0, %v4773_v26, 0.0  ;;  %v2824_v20 = vsel %vm11671_vm3, %v4773_v26, 0.0  ;;  %v2826_v39 = vsel %vm11674_vm5, %v4775_v63, 0.0  ;;  %v11681_v26 = vld [vmem:[#allocation105_spill] sm:$0xff] }
 0x3ae   : > { %v2873_v31 = vadd.f32 %v2825_v11, %v2569_v55  ;;  %v2871_v30 = vadd.f32 %v2823_v62, %v2567_v45  ;;  %v2872_v34 = vadd.f32 %v2824_v20, %v2568_v5  ;;  %v2827_v32 = vsel %vm11675_vm2, %v4775_v63, 0.0 }
 0x3af   : > { %v2570_v0 = vsel %vm11678_vm10, %v11676_v53, 0.0  ;;  %vm11680_vm15 = vnez %v11426_v17  ;;  %v2771_v40 = vadd.f32 1.0, %v2725_v35  ;;  %vm11683_vm0 = vnez %v11682_v1  ;;  %v11684_v17 = vld [vmem:[#allocation61_spill] sm:$0xff]  ;;  %v11686_v35 = vld [vmem:[#allocation63_spill] sm:$0xff] }
 0x3b0   : > { %v2572_v47 = vsel %vm11680_vm15, %v11679_v61, 0.0  ;;  %v2980_v15 = vmul.f32 1.442695, %v2873_v31  ;;  %v2571_v45 = vsel %vm11683_vm0, %v11681_v26, 0.0  ;;  %v2976_v21 = vmul.f32 1.442695, %v2871_v30 }
 0x3b1   : > { %v2978_v5 = vmul.f32 1.442695, %v2872_v34  ;;  %v2876_v48 = vadd.f32 %v2828_v6, %v2572_v47  ;;  %4776 = vrcp.f32 %v2771_v40  ;;  %v2874_v55 = vadd.f32 %v2826_v39, %v2570_v0  ;;  %v11688_v6 = vld [vmem:[#allocation109_spill] sm:$0xff]  ;;  %v11689_v39 = vld [vmem:[#allocation70_spill] sm:$0xff]  ;;  %v11691_v61 = vld [vmem:[#allocation51_spill] sm:$0xff] }
 0x3b2   : > { %v2875_v58 = vadd.f32 %v2827_v32, %v2571_v45  ;;  %4778 = vpow2.f32 %v2980_v15  ;;  %vm11685_vm3 = vnez %v11424_v29  ;;  %vm11687_vm4 = vnez %v11429_v37 }
 0x3b3   : > { %v2986_v11 = vmul.f32 1.442695, %v2876_v48  ;;  %4780 = vpow2.f32 %v2976_v21  ;;  %v2982_v62 = vmul.f32 1.442695, %v2874_v55  ;;  %v2573_v63 = vsel %vm11685_vm3, %v11684_v17, 0.0 }
 0x3b4   : > { %4782 = vpow2.f32 %v2978_v5  ;;  %v2984_v20 = vmul.f32 1.442695, %v2875_v58  ;;  %v2574_v46 = vsel %vm11687_vm4, %v11686_v35, 0.0  ;;  %vm11690_vm5 = vnez %v11689_v39 }
 0x3b5   : > { %4784 = vpow2.f32 %v2986_v11  ;;  %v2575_v32 = vsel %vm11690_vm5, %v11688_v6, 0.0  ;;  %vm2921_vm2 = vcmp.ne.f32.partialorder %v2873_v31, 0.0  ;;  %vm2919_vm10 = vcmp.ne.f32.partialorder %v2871_v30, 0.0 }
 0x3b6   : > { %4786 = vpow2.f32 %v2982_v62  ;;  %vm2920_vm15 = vcmp.ne.f32.partialorder %v2872_v34, 0.0  ;;  %vm2924_vm0 = vcmp.ne.f32.partialorder %v2876_v48, 0.0  ;;  %v2729_v0 = vpop.xlane.xlu1 %2728  ;;  %vm2922_vm13 = vcmp.ne.f32.partialorder %v2874_v55, 0.0 }
 0x3b7   : > { %4788 = vpow2.f32 %v2984_v20  ;;  %vm11692_vm7 = vcmp.eq.s32.totalorder %v11631_v49, %v11691_v61  ;;  %vm11693_vm3 = vcmp.eq.s32.totalorder %v5688_v52, %v11691_v61  ;;  %vm11694_vm4 = vcmp.eq.s32.totalorder %v5708_v59, %v11691_v61 }
 0x3b8   : > { %v2772_v31 = vadd.f32 1.0, %v2729_v0  ;;  %vm2923_vm5 = vcmp.ne.f32.partialorder %v2875_v58, 0.0 }
 0x3ba   : > { %4790 = vrcp.f32 %v2772_v31  ;;  %v11695_v31 = vld [vmem:[#allocation68_spill] sm:$0xff] }
 0x3bb   : > { %v4777_v53 = vpop.eup %4776 }
 0x3bc   : > { %v4779_v19 = vpop.eup %4778  ;;  %v2831_v29 = vsel %vm11692_vm7, %v4777_v53, 0.0  ;;  %v2829_v37 = vsel %vm11693_vm3, %v4777_v53, 0.0  ;;  %v2830_v47 = vsel %vm11694_vm4, %v4777_v53, 0.0 }
 0x3bd   : > { %v4781_v40 = vpop.eup %4780  ;;  %v3065_v15 = vsel %vm2921_vm2, %v4779_v19, 0.0  ;;  %v2879_v26 = vadd.f32 %v2831_v29, %v2575_v32  ;;  %v9681_v11 = vadd.f32 %v2829_v37, %v2573_v63  ;;  %v2878_v35 = vadd.f32 %v2830_v47, %v2574_v46 }
 0x3be   : > { %v4783_v1 = vpop.eup %4782  ;;  %3361 = vxpose.xlu0.b32.cont [4/16] %v3065_v15, 128  ;;  %v4183_v45 = vpack.c.bf16 %v3065_v15, %v3065_v15  ;;  %v3674_v21 = vadd.f32 %v9617_v14, %v3065_v15  ;;  %v3063_v5 = vsel %vm2919_vm10, %v4781_v40, 0.0  ;;  %v11696_v15 = vld [vmem:[#allocation37_spill] sm:$0xff]  ;;  %vm11702_vm2 = vnez %v11493_v43 }
 0x3bf   : > { %v4785_v62 = vpop.eup %4784  ;;  %v3064_v20 = vsel %vm2920_vm15, %v4783_v1, 0.0  ;;  %v3632_v17 = vadd.f32 %v9619_v24, %v3063_v5  ;;  %v2992_v0 = vmul.f32 1.442695, %v2879_v26  ;;  %v2988_v48 = vmul.f32 1.442695, %v9681_v11  ;;  %v11698_v1 = vld [vmem:[#allocation113_spill] sm:$0xff] }
 0x3c0   : > { %v4787_v6 = vpop.eup %4786  ;;  %3269 = vst [vmem:[%s9593_s30 + $0x2c] sm:$0xf] %v4183_v45  ;;  %v3653_v39 = vadd.f32 %v9622_v23, %v3064_v20  ;;  %v4610_v32 = vpack.i.bf16 %v3064_v20, %v3063_v5  ;;  %v4182_v53 = vpack.c.bf16 %v3064_v20, %v3063_v5  ;;  %v3068_v14 = vsel %vm2924_vm0, %v4785_v62, 0.0  ;;  %v11699_v45 = vld [vmem:[#allocation97_spill] sm:$0xff]  ;;  %v11701_v5 = vld [vmem:[#allocation99_spill] sm:$0xff]  ;;  %v11703_v20 = vld [vmem:[#allocation38_spill] sm:$0xff] }
 0x3c1   : > { %v4789_v30 = vpop.eup %4788  ;;  %v4185_v63 = vpack.c.bf16 %v3068_v14, %v3068_v14  ;;  %v3675_v19 = vadd.f32 %v3674_v21, %v3068_v14  ;;  %v3066_v34 = vsel %vm2922_vm13, %v4787_v6, 0.0  ;;  %4792 = vpow2.f32 %v2992_v0 }
 0x3c2   : > { %4611 = vxpose.xlu1.b32.cont [4/16] %v4610_v32, 128  ;;  %3268 = vst [vmem:[%s9593_s30 + $0x24] sm:$0xff] %v4182_v53  ;;  %3362 = vxpose.xlu0.b32.cont [5/16] %v3068_v14, 128  ;;  %v3067_v24 = vsel %vm2923_vm5, %v4789_v30, 0.0  ;;  %v3633_v46 = vadd.f32 %v3632_v17, %v3066_v34  ;;  %v2990_v37 = vmul.f32 1.442695, %v2878_v35  ;;  %4794 = vpow2.f32 %v2988_v48 }
 0x3c3   : > { %3271 = vst [vmem:[%s9593_s30 + $0x38] sm:$0xf] %v4185_v63  ;;  %v4612_v61 = vpack.i.bf16 %v3067_v24, %v3066_v34  ;;  %v4184_v23 = vpack.c.bf16 %v3067_v24, %v3066_v34  ;;  %v3654_v29 = vadd.f32 %v3653_v39, %v3067_v24  ;;  %vm11697_vm13 = vnez %v11696_v15 }
 0x3c4   : > { %v2733_v55 = vpop.xlane.xlu0 %2732  ;;  %4796 = vpow2.f32 %v2990_v37  ;;  %v4791_v40 = vpop.eup %4790  ;;  %v2576_v58 = vsel %vm11697_vm13, %v11695_v31, 0.0  ;;  %vm11700_vm7 = vnez %v11699_v45  ;;  %v2578_v62 = vsel %vm11702_vm2, %v11701_v5, 0.0  ;;  %v11710_v45 = vld [vmem:[#allocation52_spill] sm:$0xff] }
 0x3c5   : > { %3270 = vst [vmem:[%s9593_s30 + $0x30] sm:$0xff] %v4184_v23  ;;  %v2773_v47 = vadd.f32 1.0, %v2733_v55  ;;  %v2577_v21 = vsel %vm11700_vm7, %v11698_v1, 0.0  ;;  %vm11704_vm10 = vcmp.eq.s32.totalorder %v11631_v49, %v11703_v20  ;;  %vm11705_vm15 = vcmp.eq.s32.totalorder %v5688_v52, %v11703_v20  ;;  %v11709_v1 = vld [vmem:[#allocation117_spill] sm:$0xff]  ;;  %v11713_v5 = vld [vmem:[#allocation108_spill] sm:$0xff] }
 0x3c6   : > { %4613 = vxpose.xlu1.b32.cont [5/16] %v4612_v61, 128  ;;  %v2834_v17 = vsel %vm11704_vm10, %v4791_v40, 0.0  ;;  %v2832_v6 = vsel %vm11705_vm15, %v4791_v40, 0.0  ;;  %vm11706_vm0 = vcmp.eq.s32.totalorder %v5708_v59, %v11703_v20  ;;  %vm2927_vm3 = vcmp.ne.f32.partialorder %v2879_v26, 0.0 }
 0x3c7   : > { %4798 = vrcp.f32 %v2773_v47  ;;  %v2833_v39 = vsel %vm11706_vm0, %v4791_v40, 0.0  ;;  %v2882_v32 = vadd.f32 %v2834_v17, %v2578_v62  ;;  %v2880_v53 = vadd.f32 %v2832_v6, %v2576_v58  ;;  %v11707_v58 = vld [vmem:[#allocation74_spill] sm:$0xff] }
 0x3c8   : > { %v2881_v14 = vadd.f32 %v2833_v39, %v2577_v21  ;;  %vm2925_vm4 = vcmp.ne.f32.partialorder %v9681_v11, 0.0  ;;  %vm2926_vm5 = vcmp.ne.f32.partialorder %v2878_v35, 0.0  ;;  %vm11708_vm13 = vnez %v11483_v50  ;;  %v11712_v21 = vld [vmem:[#allocation107_spill] sm:$0xff] }
 0x3c9   : > { %v2998_v43 = vmul.f32 1.442695, %v2882_v32  ;;  %v2994_v34 = vmul.f32 1.442695, %v2880_v53  ;;  %vm11711_vm7 = vnez %v11710_v45  ;;  %vm11714_vm2 = vnez %v11713_v5  ;;  %v11721_v5 = vld [vmem:[#allocation120_spill] sm:$0xff] }
 0x3ca   : > { %v2996_v0 = vmul.f32 1.442695, %v2881_v14  ;;  %v2580_v11 = vsel %vm11711_vm7, %v11709_v1, 0.0  ;;  %v2581_v35 = vsel %vm11714_vm2, %v11712_v21, 0.0  ;;  %vm11722_vm7 = vnez %v11521_v9 }
 0x3cb   : > { %v4793_v30 = vpop.eup %4792  ;;  %4800 = vpow2.f32 %v2998_v43  ;;  %vm11725_vm2 = vnez %v11555_v25 }
 0x3cc   : > { %v3071_v63 = vsel %vm2927_vm3, %v4793_v30, 0.0  ;;  %v4795_v23 = vpop.eup %4794  ;;  %4802 = vpow2.f32 %v2994_v34  ;;  %vm2930_vm3 = vcmp.ne.f32.partialorder %v2882_v32, 0.0 }
 0x3cd   : > { %3363 = vxpose.xlu0.b32.cont [6/16] %v3071_v63, 128  ;;  %v4187_v24 = vpack.c.bf16 %v3071_v63, %v3071_v63  ;;  %v3676_v61 = vadd.f32 %v3675_v19, %v3071_v63  ;;  %v3069_v37 = vsel %vm2925_vm4, %v4795_v23, 0.0  ;;  %4804 = vpow2.f32 %v2996_v0 }
 0x3ce   : > { %v4797_v48 = vpop.eup %4796  ;;  %v3634_v26 = vadd.f32 %v3633_v46, %v3069_v37  ;;  %v2579_v19 = vsel %vm11708_vm13, %v11707_v58, 0.0  ;;  %v11715_v46 = vld [vmem:[#allocation45_spill] sm:$0xff]  ;;  %vm2928_vm4 = vcmp.ne.f32.partialorder %v2880_v53, 0.0  ;;  %vm11720_vm13 = vnez %v11519_v8 }
 0x3cf   : > { %3273 = vst [vmem:[%s9593_s30 + $0x44] sm:$0xf] %v4187_v24  ;;  %v3070_v55 = vsel %vm2926_vm5, %v4797_v48, 0.0  ;;  %vm11716_vm10 = vcmp.eq.s32.totalorder %v11631_v49, %v11715_v46  ;;  %vm11717_vm15 = vcmp.eq.s32.totalorder %v5688_v52, %v11715_v46  ;;  %vm11718_vm0 = vcmp.eq.s32.totalorder %v5708_v59, %v11715_v46  ;;  %v11724_v46 = vld [vmem:[#allocation64_spill] sm:$0xff] }
 0x3d0   : > { %v3655_v47 = vadd.f32 %v3654_v29, %v3070_v55  ;;  %v4614_v40 = vpack.i.bf16 %v3070_v55, %v3069_v37  ;;  %v4186_v31 = vpack.c.bf16 %v3070_v55, %v3069_v37  ;;  %vm2929_vm5 = vcmp.ne.f32.partialorder %v2881_v14, 0.0  ;;  %v11719_v14 = vld [vmem:[#allocation78_spill] sm:$0xff] }
 0x3d1   : > { %v4799_v15 = vpop.eup %4798  ;;  %v2582_v21 = vsel %vm11720_vm13, %v11719_v14, 0.0 }
 0x3d2   : > { %4615 = vxpose.xlu1.b32.cont [6/16] %v4614_v40, 128  ;;  %3272 = vst [vmem:[%s9593_s30 + $0x3c] sm:$0xff] %v4186_v31  ;;  %v2837_v29 = vsel %vm11716_vm10, %v4799_v15, 0.0  ;;  %v2835_v62 = vsel %vm11717_vm15, %v4799_v15, 0.0  ;;  %v2836_v50 = vsel %vm11718_vm0, %v4799_v15, 0.0  ;;  %vm11727_vm10 = vnez %v11545_v12 }
 0x3d3   : > { %v2885_v17 = vadd.f32 %v2837_v29, %v2581_v35  ;;  %v9733_v6 = vadd.f32 %v2835_v62, %v2579_v19  ;;  %v9735_v39 = vadd.f32 %v2836_v50, %v2580_v11  ;;  %v11723_v35 = vld [vmem:[#allocation83_spill] sm:$0xff]  ;;  %v11726_v29 = vld [vmem:[#allocation42_spill] sm:$0xff]  ;;  %vm11729_vm15 = vnez %v11559_v42 }
 0x3d4   : > { %v2586_v62 = vsel %vm11727_vm10, %v11726_v29, 0.0  ;;  %v11728_v50 = vld [vmem:[#allocation115_spill] sm:$0xff]  ;;  %vm11731_vm0 = vnez %v11557_v27 }
 0x3d5   : > { %v3004_v63 = vmul.f32 1.442695, %v2885_v17  ;;  %v4801_v34 = vpop.eup %4800  ;;  %v3000_v24 = vmul.f32 1.442695, %v9733_v6  ;;  %v3002_v37 = vmul.f32 1.442695, %v9735_v39 }
 0x3d6   : > { %v2737_v20 = vpop.xlane.xlu1 %2736  ;;  %v4803_v23 = vpop.eup %4802  ;;  %v3074_v48 = vsel %vm2930_vm3, %v4801_v34, 0.0  ;;  %v2587_v8 = vsel %vm11729_vm15, %v11728_v50, 0.0  ;;  %vm11735_vm3 = vnez %v11565_v3  ;;  %v11736_v34 = vld [vmem:[#allocation101_spill] sm:$0xff]  ;;  %vm2932_vm10 = vcmp.ne.f32.partialorder %v9735_v39, 0.0 }
 0x3d7   : > { %v2774_v30 = vadd.f32 1.0, %v2737_v20  ;;  %v4805_v55 = vpop.eup %4804  ;;  %v4189_v40 = vpack.c.bf16 %v3074_v48, %v3074_v48  ;;  %3364 = vxpose.xlu0.b32.cont [7/16] %v3074_v48, 128  ;;  %v3677_v32 = vadd.f32 %v3676_v61, %v3074_v48  ;;  %v3072_v31 = vsel %vm2928_vm4, %v4803_v23, 0.0  ;;  %v11730_v20 = vld [vmem:[#allocation88_spill] sm:$0xff]  ;;  %v11738_v48 = vld [vmem:[#allocation58_spill] sm:$0xff] }
 0x3d8   : > { %v3073_v58 = vsel %vm2929_vm5, %v4805_v55, 0.0  ;;  %v3635_v19 = vadd.f32 %v3634_v26, %v3072_v31  ;;  %v2583_v61 = vsel %vm11722_vm7, %v11721_v5, 0.0  ;;  %v2585_v26 = vsel %vm9259_vm1, %v11723_v35, 0.0  ;;  %v11742_v35 = vld [vmem:[#allocation66_spill] sm:$0xff] }
 0x3d9   : > { %4806 = vrcp.f32 %v2774_v30  ;;  %3275 = vst [vmem:[%s9593_s30 + $0x50] sm:$0xf] %v4189_v40  ;;  %v4616_v1 = vpack.i.bf16 %v3073_v58, %v3072_v31  ;;  %v4188_v45 = vpack.c.bf16 %v3073_v58, %v3072_v31  ;;  %v3656_v11 = vadd.f32 %v3655_v47, %v3073_v58 }
 0x3da   : > { %v2741_v43 = vpop.xlane.xlu0 %2740  ;;  %4808 = vpow2.f32 %v3004_v63  ;;  %v2584_v47 = vsel %vm11725_vm2, %v11724_v46, 0.0  ;;  %v2588_v9 = vsel %vm11731_vm0, %v11730_v20, 0.0  ;;  %vm11733_vm1 = vnez %v11561_v57  ;;  %v11734_v63 = vld [vmem:[#allocation111_spill] sm:$0xff] }
 0x3db   : > { %v2775_v0 = vadd.f32 1.0, %v2741_v43  ;;  %4617 = vxpose.xlu1.b32.cont [7/16] %v4616_v1, 128  ;;  %3274 = vst [vmem:[%s9593_s30 + $0x48] sm:$0xff] %v4188_v45  ;;  %v11732_v43 = vld [vmem:[#allocation90_spill] sm:$0xff]  ;;  %v2590_v25 = vsel %vm11735_vm3, %v11734_v63, 0.0  ;;  %v2591_v12 = vsel %vm9390_vm8, %v11736_v34, 0.0  ;;  %vm2933_vm4 = vcmp.ne.f32.partialorder %v2885_v17, 0.0 }
 0x3dc   : > { %v2589_v51 = vsel %vm11733_vm1, %v11732_v43, 0.0  ;;  %vm11739_vm5 = vcmp.eq.s32.totalorder %v11631_v49, %v11738_v48  ;;  %vm11740_vm13 = vcmp.eq.s32.totalorder %v5688_v52, %v11738_v48  ;;  %vm11741_vm7 = vcmp.eq.s32.totalorder %v5708_v59, %v11738_v48 }
 0x3dd   : > { %4810 = vrcp.f32 %v2775_v0  ;;  %v11737_v0 = vld [vmem:[#allocation49_spill] sm:$0xff]  ;;  %vm2931_vm2 = vcmp.ne.f32.partialorder %v9733_v6, 0.0  ;;  %v2593_v46 = vsel %vm9440_vm6, %v11742_v35, 0.0  ;;  %vm11760_vm8 = vcmp.eq.s32.totalorder %v11631_v49, %v11759_v2 }
 0x3de   : > { %4812 = vpow2.f32 %v3000_v24  ;;  %v2592_v42 = vsel %vm9394_vm11, %v11737_v0, 0.0  ;;  %vm11761_vm6 = vcmp.eq.s32.totalorder %v5688_v52, %v11759_v2 }
 0x3df   : > { %v2745_v15 = vpop.xlane.xlu1 %2744  ;;  %4814 = vpow2.f32 %v3002_v37 }
 0x3e0   : > { %v2776_v53 = vadd.f32 1.0, %v2745_v15 }
 0x3e2   : > { %4816 = vrcp.f32 %v2776_v53 }
 0x3e3   : > { %v4807_v30 = vpop.eup %4806 }
 0x3e4   : > { %v4809_v24 = vpop.eup %4808  ;;  %v2840_v37 = vsel %vm11739_vm5, %v4807_v30, 0.0  ;;  %v2838_v3 = vsel %vm11740_vm13, %v4807_v30, 0.0  ;;  %v2839_v55 = vsel %vm11741_vm7, %v4807_v30, 0.0  ;;  %v11743_v30 = vld [vmem:[#allocation60_spill] sm:$0xff] }
 0x3e5   : > { %v3077_v15 = vsel %vm2933_vm4, %v4809_v24, 0.0  ;;  %v9783_v58 = vadd.f32 %v2840_v37, %v2584_v47  ;;  %v9785_v53 = vadd.f32 %v2838_v3, %v2582_v21  ;;  %v9790_v5 = vadd.f32 %v2839_v55, %v2583_v61 }
 0x3e6   : > { %3365 = vxpose.xlu0.b32.cont [8/16] %v3077_v15, 128  ;;  %v4191_v45 = vpack.c.bf16 %v3077_v15, %v3077_v15  ;;  %v9787_v14 = vadd.f32 %v3677_v32, %v3077_v15  ;;  %vm11744_vm15 = vcmp.eq.s32.totalorder %v11631_v49, %v11743_v30  ;;  %vm11745_vm3 = vcmp.eq.s32.totalorder %v5688_v52, %v11743_v30 }
 0x3e7   : > { %v4811_v40 = vpop.eup %4810  ;;  %v3010_v32 = vmul.f32 1.442695, %v9783_v58  ;;  %v3006_v63 = vmul.f32 1.442695, %v9785_v53  ;;  %v3008_v24 = vmul.f32 1.442695, %v9790_v5  ;;  %vm11746_vm4 = vcmp.eq.s32.totalorder %v5708_v59, %v11743_v30 }
 0x3e8   : > { %v4813_v17 = vpop.eup %4812  ;;  %3277 = vst [vmem:[%s9593_s30 + $0x5c] sm:$0xf] %v4191_v45  ;;  %v2843_v6 = vsel %vm11744_vm15, %v4811_v40, 0.0  ;;  %v2841_v55 = vsel %vm11745_vm3, %v4811_v40, 0.0  ;;  %vm2934_vm15 = vcmp.ne.f32.partialorder %v9785_v53, 0.0  ;;  %vm2935_vm3 = vcmp.ne.f32.partialorder %v9790_v5, 0.0 }
 0x3e9   : > { %v2749_v23 = vpop.xlane.xlu0 %2748  ;;  %v3075_v47 = vsel %vm2931_vm2, %v4813_v17, 0.0  ;;  %v4815_v50 = vpop.eup %4814  ;;  %v9807_v3 = vadd.f32 %v2843_v6, %v2587_v8  ;;  %vm11754_vm2 = vnez %v11621_v10 }
 0x3ea   : > { %v2777_v31 = vadd.f32 1.0, %v2749_v23  ;;  %v9797_v21 = vadd.f32 %v3635_v19, %v3075_v47  ;;  %v3076_v61 = vsel %vm2932_vm10, %v4815_v50, 0.0  ;;  %v11751_v50 = vld [vmem:[#allocation100_spill] sm:$0xff]  ;;  %vm2936_vm10 = vcmp.ne.f32.partialorder %v9783_v58, 0.0 }
 0x3eb   : > { %v2753_v1 = vpop.xlane.xlu1 %2752  ;;  %v9805_v48 = vadd.f32 %v3656_v11, %v3076_v61  ;;  %v4618_v37 = vpack.i.bf16 %v3076_v61, %v3075_v47  ;;  %v4190_v39 = vpack.c.bf16 %v3076_v61, %v3075_v47  ;;  %v9816_v11 = vadd.f32 %v2841_v55, %v2585_v26 }
 0x3ec   : > { %4818 = vrcp.f32 %v2777_v31  ;;  %v2778_v29 = vadd.f32 1.0, %v2753_v1  ;;  %v4817_v23 = vpop.eup %4816  ;;  %v2842_v31 = vsel %vm11746_vm4, %v4811_v40, 0.0  ;;  %v11747_v1 = vld [vmem:[#allocation46_spill] sm:$0xff]  ;;  %v3016_v45 = vmul.f32 1.442695, %v9807_v3 }
 0x3ed   : > { %4619 = vxpose.xlu1.b32.cont [8/16] %v4618_v37, 128  ;;  %3276 = vst [vmem:[%s9593_s30 + $0x54] sm:$0xff] %v4190_v39  ;;  %v9818_v17 = vadd.f32 %v2842_v31, %v2586_v62  ;;  %v2596_v8 = vsel %vm9459_vm12, %v11747_v1, 0.0  ;;  %v2599_v26 = vsel %vm9482_vm9, %v11751_v50, 0.0  ;;  %v11752_v62 = vld [vmem:[#allocation56_spill] sm:$0xff]  ;;  %v3012_v30 = vmul.f32 1.442695, %v9816_v11 }
 0x3ee   : > { %4820 = vrcp.f32 %v2778_v29  ;;  %v11748_v29 = vld [vmem:[#allocation57_spill] sm:$0xff] }
 0x3ef   : > { %4822 = vpow2.f32 %v3010_v32  ;;  %vm11749_vm5 = vcmp.eq.s32.totalorder %v11631_v49, %v11748_v29  ;;  %vm11750_vm13 = vcmp.eq.s32.totalorder %v5688_v52, %v11748_v29  ;;  %v2602_v32 = vsel %vm9533_vm14, %v11752_v62, 0.0 }
 0x3f0   : > { %v2757_v19 = vpop.xlane.xlu0 %2756  ;;  %4824 = vpow2.f32 %v3006_v63  ;;  %v2846_v47 = vsel %vm11749_vm5, %v4817_v23, 0.0  ;;  %v2844_v40 = vsel %vm11750_vm13, %v4817_v23, 0.0  ;;  %v3014_v6 = vmul.f32 1.442695, %v9818_v17 }
 0x3f1   : > { %v2779_v15 = vadd.f32 1.0, %v2757_v19  ;;  %4826 = vpow2.f32 %v3008_v24  ;;  %v9838_v61 = vadd.f32 %v2846_v47, %v2590_v25  ;;  %vm11753_vm7 = vcmp.eq.s32.totalorder %v5708_v59, %v11748_v29 }
 0x3f2   : > { %v2845_v63 = vsel %vm11753_vm7, %v4817_v23, 0.0  ;;  %v2605_v24 = vsel %vm11754_vm2, %v9342_v36, 0.0  ;;  %v9850_v39 = vadd.f32 %v2844_v40, %v2588_v9  ;;  %v11755_v9 = vld [vmem:[#allocation59_spill] sm:$0xff]  ;;  %vm2939_vm5 = vcmp.ne.f32.partialorder %v9807_v3, 0.0 }
 0x3f3   : > { %4828 = vrcp.f32 %v2779_v15  ;;  %v9856_v25 = vadd.f32 %v2845_v63, %v2589_v51  ;;  %v3022_v55 = vmul.f32 1.442695, %v9838_v61  ;;  %vm11756_vm0 = vcmp.eq.s32.totalorder %v11631_v49, %v11755_v9 }
 0x3f4   : > { %4830 = vpow2.f32 %v3016_v45  ;;  %v3018_v27 = vmul.f32 1.442695, %v9850_v39  ;;  %vm11757_vm1 = vcmp.eq.s32.totalorder %v5688_v52, %v11755_v9  ;;  %vm11758_vm4 = vcmp.eq.s32.totalorder %v5708_v59, %v11755_v9 }
 0x3f5   : > { %4832 = vpow2.f32 %v3012_v30  ;;  %v3020_v20 = vmul.f32 1.442695, %v9856_v25  ;;  %vm2937_vm13 = vcmp.ne.f32.partialorder %v9816_v11, 0.0  ;;  %vm2938_vm11 = vcmp.ne.f32.partialorder %v9818_v17, 0.0 }
 0x3f6   : > { %v2761_v37 = vpop.xlane.xlu1 %2760  ;;  %v4819_v19 = vpop.eup %4818  ;;  %4834 = vpow2.f32 %v3014_v6  ;;  %vm11762_vm7 = vcmp.eq.s32.totalorder %v5708_v59, %v11759_v2  ;;  %vm2942_vm12 = vcmp.ne.f32.partialorder %v9838_v61, 0.0 }
 0x3f7   : > { %v2780_v23 = vadd.f32 1.0, %v2761_v37  ;;  %v2849_v43 = vsel %vm11756_vm0, %v4819_v19, 0.0  ;;  %v2847_v51 = vsel %vm11757_vm1, %v4819_v19, 0.0  ;;  %v2848_v31 = vsel %vm11758_vm4, %v4819_v19, 0.0 }
 0x3f8   : > { %v4821_v57 = vpop.eup %4820  ;;  %v9879_v45 = vadd.f32 %v2849_v43, %v2593_v46  ;;  %v9887_v30 = vadd.f32 %v2847_v51, %v2591_v12  ;;  %v9893_v13 = vadd.f32 %v2848_v31, %v2592_v42  ;;  %vm2940_vm0 = vcmp.ne.f32.partialorder %v9850_v39, 0.0 }
 0x3f9   : > { %4836 = vrcp.f32 %v2780_v23  ;;  %v4823_v15 = vpop.eup %4822  ;;  %v2852_v12 = vsel %vm11760_vm8, %v4821_v57, 0.0  ;;  %v2850_v19 = vsel %vm11761_vm6, %v4821_v57, 0.0  ;;  %vm2941_vm1 = vcmp.ne.f32.partialorder %v9856_v25, 0.0 }
 0x3fa   : > { %4838 = vpow2.f32 %v3022_v55  ;;  %v4825_v29 = vpop.eup %4824  ;;  %v3080_v40 = vsel %vm2936_vm10, %v4823_v15, 0.0  ;;  %v3028_v5 = vmul.f32 1.442695, %v9879_v45  ;;  %vm11763_vm10 = vnez %v11589_v33 }
 0x3fb   : > { %v2765_v47 = vpop.xlane.xlu0 %2764  ;;  %4840 = vpow2.f32 %v3018_v27  ;;  %v4827_v35 = vpop.eup %4826  ;;  %v4193_v6 = vpack.c.bf16 %v3080_v40, %v3080_v40  ;;  %3366 = vxpose.xlu0.b32.cont [9/16] %v3080_v40, 128  ;;  %v3679_v58 = vadd.f32 %v9787_v14, %v3080_v40  ;;  %v3078_v63 = vsel %vm2934_vm15, %v4825_v29, 0.0 }
 0x3fc   : > { %v2781_v46 = vadd.f32 1.0, %v2765_v47  ;;  %v3079_v7 = vsel %vm2935_vm3, %v4827_v35, 0.0  ;;  %v3637_v34 = vadd.f32 %v9797_v21, %v3078_v63  ;;  %4842 = vpow2.f32 %v3020_v20 }
 0x3fd   : > { %v4829_v0 = vpop.eup %4828  ;;  %3279 = vst [vmem:[%s9593_s30 + $0x68] sm:$0xf] %v4193_v6  ;;  %v4620_v42 = vpack.i.bf16 %v3079_v7, %v3078_v63  ;;  %v4192_v37 = vpack.c.bf16 %v3079_v7, %v3078_v63  ;;  %v3658_v14 = vadd.f32 %v9805_v48, %v3079_v7  ;;  %v3024_v21 = vmul.f32 1.442695, %v9887_v30 }
 0x3fe   : > { %v4831_v53 = vpop.eup %4830  ;;  %4844 = vrcp.f32 %v2781_v46  ;;  %v3026_v48 = vmul.f32 1.442695, %v9893_v13  ;;  %v9920_v27 = vadd.f32 %v2852_v12, %v2596_v8  ;;  %v2851_v20 = vsel %vm11762_vm7, %v4821_v57, 0.0  ;;  %v11767_v46 = vld [vmem:[#allocation92_spill] sm:$0xff] }
 0x3ff   : > { %v4833_v23 = vpop.eup %4832  ;;  %4621 = vxpose.xlu1.b32.cont [9/16] %v4620_v42, 128  ;;  %3278 = vst [vmem:[%s9593_s30 + $0x60] sm:$0xff] %v4192_v37  ;;  %v3083_v55 = vsel %vm2939_vm5, %v4831_v53, 0.0  ;;  %4846 = vpow2.f32 %v3028_v5  ;;  %v11764_v11 = vsel %vm11763_vm10, %v8910_v4, 0.0  ;;  %vm11765_vm15 = vnez %v11592_v54 }
 0x400   : > { %v4835_v9 = vpop.eup %4834  ;;  %3367 = vxpose.xlu0.b32.cont [10/16] %v3083_v55, 128  ;;  %v4195_v43 = vpack.c.bf16 %v3083_v55, %v3083_v55  ;;  %v3680_v51 = vadd.f32 %v3679_v58, %v3083_v55  ;;  %v3081_v3 = vsel %vm2937_vm13, %v4833_v23, 0.0  ;;  %4848 = vpow2.f32 %v3024_v21  ;;  %v11775_v21 = vld [vmem:[#allocation76_spill] sm:$0xff] }
 0x401   : > { %v3082_v31 = vsel %vm2938_vm11, %v4835_v9, 0.0  ;;  %v3638_v18 = vadd.f32 %v3637_v34, %v3081_v3  ;;  %4850 = vpow2.f32 %v3026_v48  ;;  %v3034_v47 = vmul.f32 1.442695, %v9920_v27 }
 0x402   : > { %3281 = vst [vmem:[%s9593_s30 + $0x74] sm:$0xf] %v4195_v43  ;;  %v3659_v8 = vadd.f32 %v3658_v14, %v3082_v31  ;;  %v4622_v57 = vpack.i.bf16 %v3082_v31, %v3081_v3  ;;  %v4194_v15 = vpack.c.bf16 %v3082_v31, %v3081_v3  ;;  %v9936_v17 = vadd.f32 %v2850_v19, %v11764_v11 }
 0x403   : > { %v4837_v1 = vpop.eup %4836  ;;  %v11766_v40 = vsel %vm11765_vm15, %v8913_v41, 0.0  ;;  %vm11768_vm3 = vcmp.eq.s32.totalorder %v11631_v49, %v11767_v46  ;;  %4852 = vpow2.f32 %v3034_v47  ;;  %vm11769_vm4 = vcmp.eq.s32.totalorder %v5688_v52, %v11767_v46  ;;  %v11786_v47 = vld [vmem:[#allocation91_spill] sm:$0xff] }
 0x404   : > { %v4839_v29 = vpop.eup %4838  ;;  %v9942_v35 = vadd.f32 %v2851_v20, %v11766_v40  ;;  %v2855_v6 = vsel %vm11768_vm3, %v4829_v0, 0.0  ;;  %4623 = vxpose.xlu1.b32.cont [10/16] %v4622_v57, 128  ;;  %3280 = vst [vmem:[%s9593_s30 + $0x6c] sm:$0xff] %v4194_v15  ;;  %v3030_v61 = vmul.f32 1.442695, %v9936_v17  ;;  %v2853_v39 = vsel %vm11769_vm4, %v4829_v0, 0.0  ;;  %v11782_v57 = vld [vmem:[#allocation39_spill] sm:$0xff] }
 0x405   : > { %v4841_v58 = vpop.eup %4840  ;;  %v3086_v33 = vsel %vm2942_vm12, %v4839_v29, 0.0  ;;  %v9956_v4 = vadd.f32 %v2855_v6, %v2599_v26  ;;  %vm11770_vm5 = vcmp.eq.s32.totalorder %v5708_v59, %v11767_v46  ;;  %vm2945_vm9 = vcmp.ne.f32.partialorder %v9879_v45, 0.0  ;;  %v11784_v15 = vld [vmem:[#allocation98_spill] sm:$0xff] }
 0x406   : > { %v4197_v41 = vpack.c.bf16 %v3086_v33, %v3086_v33  ;;  %3368 = vxpose.xlu0.b32.cont [11/16] %v3086_v33, 128  ;;  %v3681_v54 = vadd.f32 %v3680_v51, %v3086_v33  ;;  %v3084_v63 = vsel %vm2940_vm0, %v4841_v58, 0.0  ;;  %v4843_v7 = vpop.eup %4842  ;;  %v2854_v56 = vsel %vm11770_vm5, %v4829_v0, 0.0 }
 0x407   : > { %v3639_v34 = vadd.f32 %v3638_v18, %v3084_v63  ;;  %v3085_v50 = vsel %vm2941_vm1, %v4843_v7, 0.0  ;;  %v3032_v26 = vmul.f32 1.442695, %v9942_v35  ;;  %v3040_v25 = vmul.f32 1.442695, %v9956_v4  ;;  %v11780_v18 = vld [vmem:[#allocation103_spill] sm:$0xff] }
 0x408   : > { %3283 = vst [vmem:[%s9593_s30 + $0x80] sm:$0xf] %v4197_v41  ;;  %v4845_v2 = vpop.eup %4844  ;;  %v4624_v12 = vpack.i.bf16 %v3085_v50, %v3084_v63  ;;  %v4196_v42 = vpack.c.bf16 %v3085_v50, %v3084_v63  ;;  %v3660_v37 = vadd.f32 %v3659_v8, %v3085_v50  ;;  %4854 = vpow2.f32 %v3030_v61 }
 0x409   : > { %4856 = vpow2.f32 %v3032_v26  ;;  %vm11771_vm13 = vnez %v11600_v60  ;;  %vm11773_vm8 = vnez %v11602_v38  ;;  %vm11776_vm11 = vcmp.eq.s32.totalorder %v11631_v49, %v11775_v21  ;;  %v4847_v23 = vpop.eup %4846 }
 0x40a   : > { %v11772_v14 = vsel %vm11771_vm13, %v9037_v44, 0.0  ;;  %v11774_v53 = vsel %vm11773_vm8, %v9040_v22, 0.0  ;;  %v2858_v19 = vsel %vm11776_vm11, %v4837_v1, 0.0  ;;  %4625 = vxpose.xlu1.b32.cont [11/16] %v4624_v12, 128  ;;  %3282 = vst [vmem:[%s9593_s30 + $0x78] sm:$0xff] %v4196_v42  ;;  %vm2943_vm6 = vcmp.ne.f32.partialorder %v9887_v30, 0.0  ;;  %v4849_v22 = vpop.eup %4848 }
 0x40b   : > { %v9973_v0 = vadd.f32 %v2853_v39, %v11772_v14  ;;  %v9979_v5 = vadd.f32 %v2854_v56, %v11774_v53  ;;  %vm2944_vm7 = vcmp.ne.f32.partialorder %v9893_v13, 0.0  ;;  %4858 = vpow2.f32 %v3040_v25  ;;  %v4851_v16 = vpop.eup %4850 }
 0x40c   : > { %v9991_v44 = vadd.f32 %v2858_v19, %v2602_v32  ;;  %v3089_v60 = vsel %vm2945_vm9, %v4847_v23, 0.0  ;;  %vm11777_vm12 = vcmp.eq.s32.totalorder %v5688_v52, %v11775_v21  ;;  %vm11778_vm10 = vcmp.eq.s32.totalorder %v5708_v59, %v11775_v21 }
 0x40d   : > { %v3036_v38 = vmul.f32 1.442695, %v9973_v0  ;;  %v2856_v30 = vsel %vm11777_vm12, %v4837_v1, 0.0  ;;  %v2857_v13 = vsel %vm11778_vm10, %v4837_v1, 0.0  ;;  %3369 = vxpose.xlu0.b32.cont [12/16] %v3089_v60, 128  ;;  %v4199_v62 = vpack.c.bf16 %v3089_v60, %v3089_v60  ;;  %v4853_v3 = vpop.eup %4852 }
 0x40e   : > { %v3682_v32 = vadd.f32 %v3681_v54, %v3089_v60  ;;  %v3087_v55 = vsel %vm2943_vm6, %v4849_v22, 0.0  ;;  %v3038_v48 = vmul.f32 1.442695, %v9979_v5  ;;  %v3088_v45 = vsel %vm2944_vm7, %v4851_v16, 0.0  ;;  %v11792_v54 = vld [vmem:[#allocation55_spill] sm:$0xff] }
 0x40f   : > { %v3640_v20 = vadd.f32 %v3639_v34, %v3087_v55  ;;  %vm2948_vm14 = vcmp.ne.f32.partialorder %v9920_v27, 0.0  ;;  %4860 = vpow2.f32 %v3036_v38  ;;  %3285 = vst [vmem:[%s9593_s30 + $0x8c] sm:$0xf] %v4199_v62  ;;  %v3661_v9 = vadd.f32 %v3660_v37, %v3088_v45  ;;  %v11794_v34 = vld [vmem:[#allocation112_spill] sm:$0xff] }
 0x410   : > { %v4626_v43 = vpack.i.bf16 %v3088_v45, %v3087_v55  ;;  %v4198_v51 = vpack.c.bf16 %v3088_v45, %v3087_v55  ;;  %4862 = vpow2.f32 %v3038_v48  ;;  %v3046_v31 = vmul.f32 1.442695, %v9991_v44 }
 0x411   : > { %vm11779_vm15 = vnez %v11609_v28  ;;  %vm11783_vm3 = vnez %v11782_v57  ;;  %vm11787_vm0 = vcmp.eq.s32.totalorder %v11631_v49, %v11786_v47  ;;  %v3092_v40 = vsel %vm2948_vm14, %v4853_v3, 0.0 }
 0x412   : > { %v11781_v1 = vsel %vm11779_vm15, %v11780_v18, 0.0  ;;  %v11785_v29 = vsel %vm11783_vm3, %v11784_v15, 0.0  ;;  %v2861_v11 = vsel %vm11787_vm0, %v4845_v2, 0.0  ;;  %4627 = vxpose.xlu1.b32.cont [12/16] %v4626_v43, 128  ;;  %3284 = vst [vmem:[%s9593_s30 + $0x84] sm:$0xff] %v4198_v51  ;;  %vm11788_vm1 = vcmp.eq.s32.totalorder %v5688_v52, %v11786_v47  ;;  %3370 = vxpose.xlu0.b32.cont [13/16] %v3092_v40, 128  ;;  %v4855_v33 = vpop.eup %4854 }
 0x413   : > { %v10010_v8 = vadd.f32 %v2856_v30, %v11781_v1  ;;  %v10016_v27 = vadd.f32 %v2857_v13, %v11785_v29  ;;  %v10026_v28 = vadd.f32 %v2861_v11, %v2605_v24  ;;  %v2859_v46 = vsel %vm11788_vm1, %v4845_v2, 0.0  ;;  %v4857_v24 = vpop.eup %4856 }
 0x414   : > { %vm11789_vm4 = vcmp.eq.s32.totalorder %v5708_v59, %v11786_v47  ;;  %v4201_v49 = vpack.c.bf16 %v3092_v40, %v3092_v40  ;;  %v3683_v58 = vadd.f32 %v3682_v32, %v3092_v40  ;;  %4864 = vpow2.f32 %v3046_v31  ;;  %v11790_v59 = vld [vmem:[#allocation47_spill] sm:$0xff] }
 0x415   : > { %v2860_v6 = vsel %vm11789_vm4, %v4845_v2, 0.0  ;;  %vm2946_vm5 = vcmp.ne.f32.partialorder %v9936_v17, 0.0  ;;  %vm2947_vm9 = vcmp.ne.f32.partialorder %v9942_v35, 0.0  ;;  %v3042_v36 = vmul.f32 1.442695, %v10010_v8  ;;  %v11796_v17 = vld [vmem:[#allocation86_spill] sm:$0xff]  ;;  %v4859_v39 = vpop.eup %4858 }
 0x416   : > { %v3044_v10 = vmul.f32 1.442695, %v10016_v27  ;;  %3287 = vst [vmem:[%s9593_s30 + $0x98] sm:$0xf] %v4201_v49  ;;  %v3090_v52 = vsel %vm2946_vm5, %v4855_v33, 0.0  ;;  %vm11791_vm2 = vnez %v11790_v59  ;;  %vm11795_vm13 = vnez %v11794_v34  ;;  %v11798_v59 = vld [vmem:[#allocation31_spill] sm:$0xff] }
 0x417   : > { %v3052_v41 = vmul.f32 1.442695, %v10026_v28  ;;  %v11793_v63 = vsel %vm11791_vm2, %v11792_v54, 0.0  ;;  %v11797_v61 = vsel %vm11795_vm13, %v11796_v17, 0.0  ;;  %v3091_v56 = vsel %vm2947_vm9, %v4857_v24, 0.0 }
 0x418   : > { %v10044_v7 = vadd.f32 %v2859_v46, %v11793_v63  ;;  %v10050_v35 = vadd.f32 %v2860_v6, %v11797_v61  ;;  %v3641_v50 = vadd.f32 %v3640_v20, %v3090_v52  ;;  %vm2951_vm8 = vcmp.ne.f32.partialorder %v9956_v4, 0.0 }
 0x419   : > { %4866 = vpow2.f32 %v3042_v36  ;;  %v4628_v26 = vpack.i.bf16 %v3091_v56, %v3090_v52  ;;  %v4200_v25 = vpack.c.bf16 %v3091_v56, %v3090_v52  ;;  %v3662_v2 = vadd.f32 %v3661_v9, %v3091_v56  ;;  %v4861_v14 = vpop.eup %4860 }
 0x41a   : > { %v3095_v12 = vsel %vm2951_vm8, %v4859_v39, 0.0  ;;  %4868 = vpow2.f32 %v3044_v10  ;;  %vm2949_vm11 = vcmp.ne.f32.partialorder %v9973_v0, 0.0  ;;  %v3048_v53 = vmul.f32 1.442695, %v10044_v7  ;;  %v4863_v21 = vpop.eup %4862 }
 0x41b   : > { %3371 = vxpose.xlu0.b32.cont [14/16] %v3095_v12, 128  ;;  %v4203_v42 = vpack.c.bf16 %v3095_v12, %v3095_v12  ;;  %v3684_v37 = vadd.f32 %v3683_v58, %v3095_v12  ;;  %4629 = vxpose.xlu1.b32.cont [13/16] %v4628_v26, 128  ;;  %3286 = vst [vmem:[%s9593_s30 + $0x90] sm:$0xff] %v4200_v25  ;;  %4870 = vpow2.f32 %v3052_v41  ;;  %v3050_v4 = vmul.f32 1.442695, %v10050_v35 }
 0x41c   : > { %vm2950_vm6 = vcmp.ne.f32.partialorder %v9979_v5, 0.0  ;;  %v3093_v19 = vsel %vm2949_vm11, %v4861_v14, 0.0  ;;  %4872 = vpow2.f32 %v3048_v53  ;;  %vm2954_vm7 = vcmp.ne.f32.partialorder %v9991_v44, 0.0 }
 0x41d   : > { %3289 = vst [vmem:[%s9593_s30 + $0xa4] sm:$0xf] %v4203_v42  ;;  %v3094_v23 = vsel %vm2950_vm6, %v4863_v21, 0.0  ;;  %v3642_v22 = vadd.f32 %v3641_v50, %v3093_v19  ;;  %4874 = vpow2.f32 %v3050_v4  ;;  %vm2952_vm12 = vcmp.ne.f32.partialorder %v10010_v8, 0.0 }
 0x41e   : > { %v3663_v60 = vadd.f32 %v3662_v2, %v3094_v23  ;;  %v4630_v38 = vpack.i.bf16 %v3094_v23, %v3093_v19  ;;  %v4202_v30 = vpack.c.bf16 %v3094_v23, %v3093_v19  ;;  %v4865_v0 = vpop.eup %4864  ;;  %vm2953_vm10 = vcmp.ne.f32.partialorder %v10016_v27, 0.0 }
 0x41f   : > { %v3098_v13 = vsel %vm2954_vm7, %v4865_v0, 0.0  ;;  %vm2957_vm14 = vcmp.ne.f32.partialorder %v10026_v28, 0.0  ;;  %vm2955_vm15 = vcmp.ne.f32.partialorder %v10044_v7, 0.0  ;;  %vm2956_vm3 = vcmp.ne.f32.partialorder %v10050_v35, 0.0 }
 0x420   : > { %4631 = vxpose.xlu1.b32.cont [14/16] %v4630_v38, 128  ;;  %3288 = vst [vmem:[%s9593_s30 + $0x9c] sm:$0xff] %v4202_v30  ;;  %v4205_v16 = vpack.c.bf16 %v3098_v13, %v3098_v13  ;;  %3372 = vxpose.xlu0.b32.cont [15/16] %v3098_v13, 128  ;;  %v3685_v62 = vadd.f32 %v3684_v37, %v3098_v13  ;;  %vm3693_vm0 = vcmp.eq.s32.totalorder %v11798_v59, 0 }
 0x422   : > { %3291 = vst [vmem:[%s9593_s30 + $0xb0] sm:$0xf] %v4205_v16 }
 0x423   : > { %v4867_v32 = vpop.eup %4866 }
 0x424   : > { %v3096_v5 = vsel %vm2952_vm12, %v4867_v32, 0.0  ;;  %v4869_v55 = vpop.eup %4868 }
 0x425   : > { %v3643_v48 = vadd.f32 %v3642_v22, %v3096_v5  ;;  %v4871_v45 = vpop.eup %4870  ;;  %v3097_v20 = vsel %vm2953_vm10, %v4869_v55, 0.0 }
 0x426   : > { %v4632_v44 = vpack.i.bf16 %v3097_v20, %v3096_v5  ;;  %v4204_v9 = vpack.c.bf16 %v3097_v20, %v3096_v5  ;;  %v3664_v43 = vadd.f32 %v3663_v60, %v3097_v20  ;;  %v3101_v51 = vsel %vm2957_vm14, %v4871_v45, 0.0  ;;  %v4873_v3 = vpop.eup %4872 }
 0x427   : > { %3373 = vxpose.xlu0.b32.end [16/16] %v3101_v51, 128  ;;  %v4207_v31 = vpack.c.bf16 %v3101_v51, %v3101_v51  ;;  %v3686_v18 = vadd.f32 %v3685_v62, %v3101_v51  ;;  %v4875_v1 = vpop.eup %4874  ;;  %v3099_v8 = vsel %vm2955_vm15, %v4873_v3, 0.0 }
 0x428   : > { %4633 = vxpose.xlu1.b32.cont [15/16] %v4632_v44, 128  ;;  %3290 = vst [vmem:[%s9593_s30 + $0xa8] sm:$0xff] %v4204_v9  ;;  %v3100_v15 = vsel %vm2956_vm3, %v4875_v1, 0.0  ;;  %v3644_v29 = vadd.f32 %v3643_v48, %v3099_v8 }
 0x429   : > { %3293 = vst [vmem:[%s9593_s30 + $0xbc] sm:$0xf] %v4207_v31  ;;  %v3687_v57 = vrot.slane %v3686_v18, 4  ;;  %v3665_v27 = vadd.f32 %v3664_v43, %v3100_v15  ;;  %v4634_v47 = vpack.i.bf16 %v3100_v15, %v3099_v8  ;;  %v4206_v11 = vpack.c.bf16 %v3100_v15, %v3099_v8 }
 0x42a   : > { %v3645_v28 = vrot.slane %v3644_v29, 4 }
 0x42b   : > { %v3688_v40 = vadd.f32 %v3687_v57, %v3686_v18  ;;  %v3666_v46 = vrot.slane %v3665_v27, 4  ;;  %3292 = vst [vmem:[%s9593_s30 + $0xb4] sm:$0xff] %v4206_v11 }
 0x42c   : > { %4635 = vxpose.xlu1.b32.end [16/16] %v4634_v47, 128  ;;  %v3646_v49 = vadd.f32 %v3645_v28, %v3644_v29 }
 0x42d   : > { %v3689_v6 = vrot.slane %v3688_v40, 2  ;;  %v3667_v58 = vadd.f32 %v3666_v46, %v3665_v27 }
 0x42e   : > { %v3647_v36 = vrot.slane %v3646_v49, 2 }
 0x42f   : > { %v3690_v33 = vadd.f32 %v3689_v6, %v3688_v40  ;;  %v3668_v10 = vrot.slane %v3667_v58, 2 }
 0x430   : > { %v3648_v52 = vadd.f32 %v3647_v36, %v3646_v49 }
 0x431   : > { %v3691_v24 = vrot.slane %v3690_v33, 1  ;;  %v3669_v41 = vadd.f32 %v3668_v10, %v3667_v58 }
 0x432   : > { %v3649_v63 = vrot.slane %v3648_v52, 1 }
 0x433   : > { %v3692_v54 = vadd.f32 %v3691_v24, %v3690_v33  ;;  %v3670_v7 = vrot.slane %v3669_v41, 1 }
 0x434   : > { %v3650_v34 = vadd.f32 %v3649_v63, %v3648_v52 }
 0x435   : > { %v3698_v17 = vsel %vm3693_vm0, %v3692_v54, 0.0  ;;  %v3671_v61 = vadd.f32 %v3670_v7, %v3669_v41 }
 0x436   : > { %3701 = vst [vmem:[%s10076_s11 + $0x10] sm:$0xff] %v3698_v17  ;;  %v3696_v35 = vsel %vm3693_vm0, %v3650_v34, 0.0 }
 0x437   : > { %5078 = shalt.err (!%p5075_p5)
}
 0x438   : > { %s5079_s13 = scalar_lea.hbm %s10082_s0, 3072  ;;  %s5083_s19 = scalar_lea.hbm %s10240_s9, 9216 }
 0x439   : > { %p5080_p13 = scmp.ne.s32.totalorder %s10082_s0, %s5079_s13  ;;  %p5084_p1 = scmp.lt.u32.totalorder %s10082_s0, %s10240_s9 }
 0x43a   : > { %p5085_p3 = scmp.lt.u32.totalorder %s5083_s19, %s5079_s13  ;;  %p5087_p10 = scmp.lt.u32.totalorder %s5079_s13, %s10082_s0 }
 0x43b   : > { %p5081_p12 = pnand %p5080_p13, %p11799_p11 }
 0x43c   : > { %p5086_p4 = por %p5085_p3, %p5084_p1 }
 0x43d   : > { %p5082_p8 = pneg %p5081_p12 }
 0x43e   : > { %p5088_p9 = por %p5087_p10, %p5086_p4 }
 0x440   : > { %p5089_p6 = pnand %p5088_p9, %p5082_p8 }
 0x442   : > { %5092 = shalt.err (!%p5089_p6)
}
 0x443   : > { %s5226_s28 = smov 192   ;;  %s5227_s12 = smov 12   ;;  %v3697_v39 = vsel %vm3693_vm0, %v3671_v61, 0.0  ;;  %3699 = vst [vmem:[%s10076_s11] sm:$0xff] %v3696_v35 }
 0x444   : > { %4507 = dma.vmem_to_hbm [thread:$0]  (%p11799_p11), %s10084_s18, 3072, %s10082_s0, %s3703_s20, %s5226_s28, %s5226_s28, %s5227_s12  }
 0x445   : > { %3700 = vst [vmem:[%s10076_s11 + $0x8] sm:$0xff] %v3697_v39  ;;  %s10119_s7 = scalar_lea.vmem [#allocation16], %s5629_s17  ;;  %s4170_s3 = sshll.u32 %s5423_s27, 6 }
 0x446   : > { %s3742_s17 = sshll.u32 %s10119_s7, 4  ;;  %s4486_s18 = smul.u32 384, %s5423_s27  ;;  %s10152_s17 = int_to_ptr.vmem [resolvable:$true] %s3742_s17 }
 0x447   : > { %s3759_s8 = sshll.u32 %s10076_s11, 4  ;;  %s10150_s16 = scalar_lea.hbm %s10241_s10, %s4170_s3  ;;  %s10159_s8 = int_to_ptr.vmem [resolvable:$true] %s3759_s8 }
 0x448   : > { %s11800_s14 = sld [smem:[#allocation125_spill]]  ;;  %s10165_s11 = scalar_lea.sflag [#allocation17], %s469_s25 }
 0x449   : > { %s5093_s26 = scalar_lea.vmem %s10152_s17, 3072  ;;  %s5228_s15 = smov [#allocation16]  }
 0x44a   : > { %p5094_p0 = scmp.ne.s32.totalorder %s10152_s17, %s5093_s26  ;;  %s5097_s19 = sshll.u32 %s5228_s15, 4  ;;  %s5098_s19 = int_to_ptr.vmem [resolvable:$false] %s5097_s19 }
 0x44b   : > { %s5099_s2 = scalar_lea.vmem %s5098_s19, 6144  ;;  %p5100_p5 = scmp.lt.s32.totalorder %s10152_s17, %s5098_s19 }
 0x44c   : > { %p5095_p7 = pnand %p5094_p0, %p11799_p11  ;;  %p5101_p13 = scmp.lt.s32.totalorder %s5099_s2, %s5093_s26 }
 0x44e   : > { %s10157_s13 = scalar_lea.hbm %s11800_s14, %s4486_s18  ;;  %p5096_p2 = pneg %p5095_p7 }
 0x44f   : > { %p5102_p12 = por %p5101_p13, %p5100_p5 }
 0x451   : > { %p5103_p8 = pnand %p5102_p12, %p5096_p2 }
 0x46b   : > { %v3374_v56 = vpop.trf.xlu0 }
 0x46f   : > { %v3375_v50 = vpop.trf.xlu0 }
 0x470   : > { %v4636_v26 = vpop.trf.xlu1  ;;  %v4339_v25 = vpack.c.bf16 %v3375_v50, %v3374_v56 }
 0x471   : > { %v4640_v12 = vunpack.i.h.bf16 %v4636_v26  ;;  %v4637_v42 = vunpack.i.l.bf16 %v4636_v26 }
 0x472   : > { %4391 = vst [vmem:[%s10119_s7 + $0x80] sm:$0xff] %v4339_v25  }
 0x473   : > { %v3376_v2 = vpop.trf.xlu0 }
 0x474   : > { %v4641_v37 = vpop.trf.xlu1 }
 0x475   : > { %v4645_v14 = vunpack.i.h.bf16 %v4641_v37  ;;  %v4642_v53 = vunpack.i.l.bf16 %v4641_v37 }
 0x477   : > { %v4259_v4 = vpack.c.bf16 %v4642_v53, %v4637_v42  ;;  %v4299_v21 = vpack.c.bf16 %v4645_v14, %v4640_v12  ;;  %v3377_v19 = vpop.trf.xlu0 }
 0x478   : > { %v4646_v23 = vpop.trf.xlu1  ;;  %v4344_v22 = vpack.c.bf16 %v3377_v19, %v3376_v2 }
 0x479   : > { %4260 = vst [vmem:[%s10119_s7] sm:$0xff] %v4259_v4   ;;  %4383 = vst [vmem:[%s10119_s7 + $0x40] sm:$0xff] %v4299_v21   ;;  %v4650_v38 = vunpack.i.h.bf16 %v4646_v23  ;;  %v4647_v30 = vunpack.i.l.bf16 %v4646_v23 }
 0x47a   : > { %4392 = vst [vmem:[%s10119_s7 + $0x88] sm:$0xff] %v4344_v22  }
 0x47b   : > { %v3378_v60 = vpop.trf.xlu0 }
 0x47c   : > { %v4651_v0 = vpop.trf.xlu1 }
 0x47d   : > { %v4655_v13 = vunpack.i.h.bf16 %v4651_v0  ;;  %v4652_v16 = vunpack.i.l.bf16 %v4651_v0 }
 0x47f   : > { %v4264_v62 = vpack.c.bf16 %v4652_v16, %v4647_v30  ;;  %v4304_v32 = vpack.c.bf16 %v4655_v13, %v4650_v38  ;;  %v3379_v5 = vpop.trf.xlu0 }
 0x480   : > { %v4656_v55 = vpop.trf.xlu1  ;;  %v4349_v48 = vpack.c.bf16 %v3379_v5, %v3378_v60 }
 0x481   : > { %4376 = vst [vmem:[%s10119_s7 + $0x8] sm:$0xff] %v4264_v62   ;;  %4384 = vst [vmem:[%s10119_s7 + $0x48] sm:$0xff] %v4304_v32   ;;  %v4660_v20 = vunpack.i.h.bf16 %v4656_v55  ;;  %v4657_v44 = vunpack.i.l.bf16 %v4656_v55 }
 0x482   : > { %4393 = vst [vmem:[%s10119_s7 + $0x90] sm:$0xff] %v4349_v48  }
 0x483   : > { %v3380_v45 = vpop.trf.xlu0 }
 0x484   : > { %v4661_v9 = vpop.trf.xlu1 }
 0x485   : > { %v4665_v43 = vunpack.i.h.bf16 %v4661_v9  ;;  %v4662_v51 = vunpack.i.l.bf16 %v4661_v9 }
 0x487   : > { %v4269_v3 = vpack.c.bf16 %v4662_v51, %v4657_v44  ;;  %v4309_v31 = vpack.c.bf16 %v4665_v43, %v4660_v20  ;;  %v3381_v18 = vpop.trf.xlu0 }
 0x488   : > { %v4666_v1 = vpop.trf.xlu1  ;;  %v4354_v8 = vpack.c.bf16 %v3381_v18, %v3380_v45 }
 0x489   : > { %4377 = vst [vmem:[%s10119_s7 + $0x10] sm:$0xff] %v4269_v3   ;;  %4385 = vst [vmem:[%s10119_s7 + $0x50] sm:$0xff] %v4309_v31   ;;  %v4670_v15 = vunpack.i.h.bf16 %v4666_v1  ;;  %v4667_v29 = vunpack.i.l.bf16 %v4666_v1 }
 0x48a   : > { %4394 = vst [vmem:[%s10119_s7 + $0x98] sm:$0xff] %v4354_v8  }
 0x48b   : > { %v3382_v57 = vpop.trf.xlu0 }
 0x48c   : > { %v4671_v27 = vpop.trf.xlu1 }
 0x48d   : > { %v4675_v47 = vunpack.i.h.bf16 %v4671_v27  ;;  %v4672_v11 = vunpack.i.l.bf16 %v4671_v27 }
 0x48f   : > { %v4274_v40 = vpack.c.bf16 %v4672_v11, %v4667_v29  ;;  %v4314_v28 = vpack.c.bf16 %v4675_v47, %v4670_v15  ;;  %v3383_v46 = vpop.trf.xlu0 }
 0x490   : > { %v4676_v6 = vpop.trf.xlu1  ;;  %v4359_v49 = vpack.c.bf16 %v3383_v46, %v3382_v57 }
 0x491   : > { %4378 = vst [vmem:[%s10119_s7 + $0x18] sm:$0xff] %v4274_v40   ;;  %4386 = vst [vmem:[%s10119_s7 + $0x58] sm:$0xff] %v4314_v28   ;;  %v4680_v33 = vunpack.i.h.bf16 %v4676_v6  ;;  %v4677_v36 = vunpack.i.l.bf16 %v4676_v6 }
 0x492   : > { %4395 = vst [vmem:[%s10119_s7 + $0xa0] sm:$0xff] %v4359_v49  }
 0x493   : > { %v3384_v58 = vpop.trf.xlu0 }
 0x494   : > { %v4681_v10 = vpop.trf.xlu1 }
 0x495   : > { %v4685_v24 = vunpack.i.h.bf16 %v4681_v10  ;;  %v4682_v52 = vunpack.i.l.bf16 %v4681_v10 }
 0x497   : > { %v4279_v41 = vpack.c.bf16 %v4682_v52, %v4677_v36  ;;  %v4319_v59 = vpack.c.bf16 %v4685_v24, %v4680_v33  ;;  %v3385_v54 = vpop.trf.xlu0 }
 0x498   : > { %v4686_v63 = vpop.trf.xlu1  ;;  %v4364_v7 = vpack.c.bf16 %v3385_v54, %v3384_v58 }
 0x499   : > { %4379 = vst [vmem:[%s10119_s7 + $0x20] sm:$0xff] %v4279_v41   ;;  %4387 = vst [vmem:[%s10119_s7 + $0x60] sm:$0xff] %v4319_v59   ;;  %v4690_v17 = vunpack.i.h.bf16 %v4686_v63  ;;  %v4687_v61 = vunpack.i.l.bf16 %v4686_v63 }
 0x49a   : > { %4396 = vst [vmem:[%s10119_s7 + $0xa8] sm:$0xff] %v4364_v7  }
 0x49b   : > { %v3386_v34 = vpop.trf.xlu0 }
 0x49c   : > { %v4691_v35 = vpop.trf.xlu1 }
 0x49d   : > { %v4695_v39 = vunpack.i.h.bf16 %v4691_v35  ;;  %v4692_v56 = vunpack.i.l.bf16 %v4691_v35 }
 0x49f   : > { %v4284_v50 = vpack.c.bf16 %v4692_v56, %v4687_v61  ;;  %v4324_v26 = vpack.c.bf16 %v4695_v39, %v4690_v17  ;;  %v3387_v25 = vpop.trf.xlu0 }
 0x4a0   : > { %v4696_v2 = vpop.trf.xlu1  ;;  %v4369_v12 = vpack.c.bf16 %v3387_v25, %v3386_v34 }
 0x4a1   : > { %4380 = vst [vmem:[%s10119_s7 + $0x28] sm:$0xff] %v4284_v50   ;;  %4388 = vst [vmem:[%s10119_s7 + $0x68] sm:$0xff] %v4324_v26   ;;  %v4700_v37 = vunpack.i.h.bf16 %v4696_v2  ;;  %v4697_v14 = vunpack.i.l.bf16 %v4696_v2 }
 0x4a2   : > { %4397 = vst [vmem:[%s10119_s7 + $0xb0] sm:$0xff] %v4369_v12  }
 0x4a3   : > { %v3388_v42 = vpop.trf.xlu0 }
 0x4a4   : > { %v4701_v53 = vpop.trf.xlu1 }
 0x4a5   : > { %v4705_v4 = vunpack.i.h.bf16 %v4701_v53  ;;  %v4702_v21 = vunpack.i.l.bf16 %v4701_v53 }
 0x4a7   : > { %v4289_v19 = vpack.c.bf16 %v4702_v21, %v4697_v14  ;;  %v4329_v23 = vpack.c.bf16 %v4705_v4, %v4700_v37  ;;  %v3389_v22 = vpop.trf.xlu0 }
 0x4a8   : > { %v4706_v60 = vpop.trf.xlu1  ;;  %v4374_v38 = vpack.c.bf16 %v3389_v22, %v3388_v42 }
 0x4a9   : > { %4381 = vst [vmem:[%s10119_s7 + $0x30] sm:$0xff] %v4289_v19   ;;  %4389 = vst [vmem:[%s10119_s7 + $0x70] sm:$0xff] %v4329_v23   ;;  %v4710_v30 = vunpack.i.h.bf16 %v4706_v60  ;;  %v4707_v0 = vunpack.i.l.bf16 %v4706_v60 }
 0x4aa   : > { %4398 = vst [vmem:[%s10119_s7 + $0xb8] sm:$0xff] %v4374_v38  }
 0x4ac   : > { %v4711_v13 = vpop.trf.xlu1 }
 0x4ad   : > { %v4715_v16 = vunpack.i.h.bf16 %v4711_v13  ;;  %v4712_v62 = vunpack.i.l.bf16 %v4711_v13 }
 0x4af   : > { %v4294_v32 = vpack.c.bf16 %v4712_v62, %v4707_v0  ;;  %v4334_v5 = vpack.c.bf16 %v4715_v16, %v4710_v30 }
 0x4b1   : > { %4382 = vst [vmem:[%s10119_s7 + $0x38] sm:$0xff] %v4294_v32   ;;  %4390 = vst [vmem:[%s10119_s7 + $0x78] sm:$0xff] %v4334_v5  }
 0x4b2   : > { %5106 = shalt.err (!%p5103_p8)
}
 0x4b3   : > { %s5107_s27 = scalar_lea.hbm %s10150_s16, 3072  ;;  %s5111_s12 = scalar_lea.hbm %s10241_s10, 9216 }
 0x4b4   : > { %p5108_p1 = scmp.ne.s32.totalorder %s10150_s16, %s5107_s27  ;;  %p5112_p10 = scmp.lt.u32.totalorder %s10150_s16, %s10241_s10 }
 0x4b5   : > { %p5113_p9 = scmp.lt.u32.totalorder %s5111_s12, %s5107_s27  ;;  %p5115_p0 = scmp.lt.u32.totalorder %s5107_s27, %s10150_s16 }
 0x4b6   : > { %p5109_p3 = pnand %p5108_p1, %p11799_p11 }
 0x4b7   : > { %p5114_p6 = por %p5113_p9, %p5112_p10 }
 0x4b8   : > { %p5110_p4 = pneg %p5109_p3 }
 0x4b9   : > { %p5116_p7 = por %p5115_p0, %p5114_p6 }
 0x4bb   : > { %p5117_p2 = pnand %p5116_p7, %p5110_p4 }
 0x4bd   : > { %5120 = shalt.err (!%p5117_p2)
}
 0x4be   : > { %s5229_s18 = smov 64   ;;  %s5230_s0 = smov 4  }
 0x4bf   : > { %4508 = dma.vmem_to_hbm [thread:$0]  (%p11799_p11), %s10152_s17, 3072, %s10150_s16, %s10165_s11, %s5229_s18, %s5226_s28, %s5230_s0  }
 0x4c0   : > { %s5121_s20 = scalar_lea.vmem %s10159_s8, 384  ;;  %s5231_s21 = smov [#allocation18]  }
 0x4c1   : > { %p5122_p5 = scmp.ne.s32.totalorder %s10159_s8, %s5121_s20  ;;  %s5125_s23 = sshll.u32 %s5231_s21, 4  ;;  %s5126_s23 = int_to_ptr.vmem [resolvable:$false] %s5125_s23 }
 0x4c2   : > { %s5127_s26 = scalar_lea.vmem %s5126_s23, 768  ;;  %p5128_p8 = scmp.lt.s32.totalorder %s10159_s8, %s5126_s23 }
 0x4c3   : > { %p5123_p13 = pnand %p5122_p5, %p11799_p11  ;;  %p5129_p1 = scmp.lt.s32.totalorder %s5127_s26, %s5121_s20 }
 0x4c5   : > { %p5124_p12 = pneg %p5123_p13  ;;  %p5130_p3 = por %p5129_p1, %p5128_p8 }
 0x4c7   : > { %p5131_p4 = pnand %p5130_p3, %p5124_p12 }
 0x4c9   : > { %5134 = shalt.err (!%p5131_p4)
}
 0x4ca   : > { %s5135_s28 = scalar_lea.hbm %s10157_s13, 384  ;;  %s5139_s15 = scalar_lea.hbm %s11800_s14, 1152 }
 0x4cb   : > { %p5136_p10 = scmp.ne.s32.totalorder %s10157_s13, %s5135_s28  ;;  %p5140_p0 = scmp.lt.u32.totalorder %s10157_s13, %s11800_s14 }
 0x4cc   : > { %p5141_p7 = scmp.lt.u32.totalorder %s5139_s15, %s5135_s28  ;;  %p5143_p5 = scmp.lt.u32.totalorder %s5135_s28, %s10157_s13 }
 0x4cd   : > { %p5137_p9 = pnand %p5136_p10, %p11799_p11 }
 0x4ce   : > { %p5142_p2 = por %p5141_p7, %p5140_p0 }
 0x4cf   : > { %p5138_p6 = pneg %p5137_p9 }
 0x4d0   : > { %p5144_p13 = por %p5143_p5, %p5142_p2 }
 0x4d2   : > { %p5145_p12 = pnand %p5144_p13, %p5138_p6 }
 0x4d4   : > { %5148 = shalt.err (!%p5145_p12)
}
 0x4d5   : > { %4509 = dma.vmem_to_hbm [thread:$0]  (%p11799_p11), %s10159_s8, 384, %s10157_s13, %s10165_s11  }
 0x4d6 PF: > { %s11801_s27 = sld [smem:[#allocation26_spill]]  ;;  %s11802_s25 = sld [smem:[#allocation30_spill]] }
 0x4d7   : > { %p4553_p8 = scmp.ge.s32.totalorder %s5207_s24, 2 }
 0x4dc   : > { %s3771_s30 = sand.u32 1, %s11801_s27   ;;  %p11803_p1 = scmp.ne.s32.totalorder %s11802_s25, 0 }
 0x4dd   : > { %s3772_s12 = scalar_lea.sflag [#allocation6], %s3771_s30 }
 0x4de   : > { %p4537_p3 = pnand %p4553_p8, %p11803_p1 }
 0x4e0   : > { %5186 = dma.done.wait (!%p4537_p3), %s3772_s12, 3072  }
 0x4e1   : > { %5188 = vsyncadd (!%p4537_p3), %s3772_s12, 4294964224  ;;  %s11804_s7 = sadd.s32 4294967294, %s5207_s24  }
 0x4e2   : > { %s3780_s3 = sand.u32 1, %s11804_s7  }
 0x4e3   : > { %s3781_s18 = scalar_lea.sflag [#allocation17], %s3780_s3 }
 0x4e4   : > { %5190 = dma.done.wait (!%p4537_p3), %s3781_s18, 3456  }
 0x4e5   : > { %5192 = vsyncadd (!%p4537_p3), %s3781_s18, 4294963840  ;;  %s11805_s24 = sld [smem:[#allocation28_spill]]  ;;  %s11806_s29 = sld [smem:[#allocation27_spill]] }
 0x4e6   : > { %s11807_s23 = sld [smem:[#allocation29_spill]]  ;;  %s11808_s21 = smov %s5199_s22 }
 0x4eb   : > { %p32_p11 = scmp.ge.s32.totalorder %s11805_s24, 5   ;;  %s11809_s22 = smov %s11806_s29 }
 0x4ed   :  { %34 = sbr.rel (!%p32_p11) target bundleno = 16 (0x10), region = 179 }
 0x4f4   :  { %3795 = vsyncpa [#allocation5], 1 }
 0x4f5   :  { %3797 = vsyncpa [#allocation5 + $0x1], 1 }
 0x4f6   :  { %3798 = vsyncpa [#allocation9], 1 }
 0x4f7   :  { %3799 = vsyncpa [#allocation6], 1 }
 0x4f8   :  { %3801 = vsyncpa [#allocation6 + $0x1], 1 }
 0x4f9   :  { %3802 = vsyncpa [#allocation17], 1 }
 0x4fa   :  { %3804 = vsyncpa [#allocation17 + $0x1], 1 }
 0x4fb   :  { %3805 = vsyncpa [#allocation7], 1 }
 0x4fc   :  { %3807 = vsyncpa [#allocation7 + $0x1], 1 }

</bundles_post_ra>
